<compile_context>
chip_gen: v7x
topology: tpu7x:2x2x1
jax: 0.10.0
libtpu: 0.0.40
codegen_flags: <defaults>
</compile_context>

<pallas_src>
import functools

import jax
import jax.numpy as jnp
from jax.experimental import pallas as pl
from jax.experimental.pallas import tpu as pltpu

KSIZE = 7
PAD = 3
TOP = 8            # sublane-aligned top halo of the padded conv planes
LANES = 128
SUBLANES = 8


def _round_up(v, m):
    return (v + m - 1) // m * m


def _sff_kernel(wsq_ref, bsq_ref, w3_ref, b3_ref,
                high_ref, low_ref, x_ref, out_ref, pad_ref, roll_ref, *, H, W):
    # Per-grid-step shapes:
    #   high_ref/low_ref : (1, C2, S)   spatially flattened, lane-dense
    #   x_ref/out_ref    : (1, C,  S)
    #   w3_ref           : (C, C2) f32  conv3 weight (1x1 conv as MXU matmul)
    #   b3_ref           : (C, 1)  f32  conv3 bias (column)
    #   wsq_ref          : SMEM (2*2*7*7,) f32, OIHW flatten order
    #   bsq_ref          : SMEM (2,) f32
    #   pad_ref          : VMEM (2, H_pad, W_pad) f32 zero-padded conv planes
    #   roll_ref         : VMEM (2, Hwin_pad, W) f32 rolled-window scratch
    _, C2, _ = high_ref.shape
    _, H_pad, W_pad = pad_ref.shape
    Hwin = H + 2 * PAD

    high = high_ref[0].astype(jnp.float32)   # (C2, S)
    low = low_ref[0].astype(jnp.float32)     # (C2, S)

    # Channel mean / max over the virtual concat [high, low] (2*C2 channels),
    # computed directly on the lane-dense (C2, S) layout.
    avg = (jnp.sum(high, axis=0, keepdims=True)
           + jnp.sum(low, axis=0, keepdims=True)) * (1.0 / (2 * C2))      # (1, S)
    mx = jnp.maximum(jnp.max(high, axis=0, keepdims=True),
                     jnp.max(low, axis=0, keepdims=True))                 # (1, S)
    agg_hw = jnp.concatenate([avg, mx], axis=0).reshape(2, H, W)          # (2, H, W)

    # Zero only the halo the conv reads (scratch persists across grid steps and
    # megacore cores, so this runs every step), then store the interiors at
    # sublane 0 / lane 0 (aligned stores).  The left pad is folded into the
    # roll direction; the right lane-halo supplies the wrap-in zeros.
    for ci in range(2):
        pad_ref[ci, 0:TOP, :] = jnp.zeros((TOP, W_pad), jnp.float32)
        pad_ref[ci, TOP + H:H_pad, :] = jnp.zeros((H_pad - TOP - H, W_pad),
                                                  jnp.float32)
        pad_ref[ci, TOP:TOP + H, W:W_pad] = jnp.zeros((H, W_pad - W), jnp.float32)
        pad_ref[ci, TOP:TOP + H, 0:W] = agg_hw[ci]

    # conv_squeeze: Conv2d(2, 2, 7, padding=3).
    #   kx -> ONE lane roll of the whole padded window per (ci, kx) (XLU),
    #         parked (lanes sliced to W) in the double-buffered roll_ref;
    #   ky -> cheap sublane-offset window loads from roll_ref;
    #   taps -> SMEM-scalar * (H, W) VPU MACs into 4 accumulators (co x parity).
    acc = [[None, None], [None, None]]
    for ci in range(2):
        win = pad_ref[ci, TOP - PAD:TOP - PAD + Hwin, :]            # (Hwin, W_pad)
        for kx in range(KSIZE):
            dx = kx - PAD
            rolled = win if dx == 0 else pltpu.roll(win, (-dx) % W_pad, axis=1)
            slot = kx & 1                                           # break WAR chains
            roll_ref[slot, 0:Hwin, :] = rolled[:, 0:W]
            for ky in range(KSIZE):
                rows = roll_ref[slot, ky:ky + H, :]                 # (H, W)
                for co in range(2):
                    wt = wsq_ref[((co * 2 + ci) * KSIZE + ky) * KSIZE + kx]
                    term = wt * rows
                    if acc[co][slot] is None:
                        acc[co][slot] = term
                    else:
                        acc[co][slot] = acc[co][slot] + term

    conv0 = acc[0][0] + acc[0][1] + bsq_ref[0]                      # (H, W)
    conv1 = acc[1][0] + acc[1][1] + bsq_ref[1]
    sig = jax.nn.sigmoid(jnp.stack([conv0, conv1], axis=0).reshape(2, H * W))

    # out = high * sig[0] + low * sig[1], on the lane-dense (C2, S) layout.
    gated = high * sig[0:1, :] + low * sig[1:2, :]                  # (C2, S)

    # conv3: 1x1 conv (C2 -> C) as one MXU matmul; gated is already (C2, S),
    # so no relayout in front of the MXU.
    outc = jnp.dot(w3_ref[...], gated,
                   preferred_element_type=jnp.float32) + b3_ref[...]   # (C, S)

    # result = x * out  (lane-dense (C, S) store)
    out_ref[0] = (x_ref[0].astype(jnp.float32) * outc).astype(out_ref.dtype)


def _vmem_limit_bytes():
    # Per-generation scoped-VMEM budget with headroom (never the full physical
    # capacity): ~56 MiB on v7x (64 MiB VMEM), ~112 MiB on v5e/v6e (128 MiB).
    cap = 64 * 1024 * 1024          # conservative fallback
    try:
        cap = int(pltpu.get_tpu_info().vmem_capacity_bytes)
    except Exception:
        pass
    return max(32 * 1024 * 1024, min(cap * 7 // 8, 112 * 1024 * 1024))


def sff_forward(high, low, x, wsq, bsq, w3, b3):
    """SFFModule forward.

    high/low: (N, dim//2, H, W), x: (N, dim, H, W)  (NCHW, like PyTorch)
    wsq: (2, 2, 7, 7)  conv_squeeze.weight (OIHW);  bsq: (2,)  conv_squeeze.bias
    w3 : (dim, dim//2, 1, 1)  conv3.weight;         b3 : (dim,) conv3.bias
    I/O may be f32 or bf16; all in-kernel math runs in f32.
    """
    N, C2, H, W = high.shape
    C = x.shape[1]
    S = H * W
    assert wsq.shape == (2, 2, KSIZE, KSIZE), "conv_squeeze weight must be (2,2,7,7)"
    assert w3.shape == (C, C2, 1, 1), "conv3 weight must be (dim, dim//2, 1, 1)"

    H_pad = TOP + _round_up(H + PAD, SUBLANES)
    W_pad = _round_up(W + 2 * PAD, LANES)
    Hwin_pad = _round_up(H + 2 * PAD, SUBLANES)

    wsq_flat = wsq.reshape(-1).astype(jnp.float32)     # OIHW flatten order
    bsq_f = bsq.astype(jnp.float32)
    w3_mat = w3[:, :, 0, 0].astype(jnp.float32)        # (C, C2)
    b3_col = b3.reshape(C, 1).astype(jnp.float32)

    # Lane-dense flattened I/O layout for everything channel-pointwise.
    high_flat = high.reshape(N, C2, S)
    low_flat = low.reshape(N, C2, S)
    x_flat = x.reshape(N, C, S)

    itemsize = jnp.dtype(x.dtype).itemsize
    cost = pl.CostEstimate(
        flops=int(N * S * (2 * 2 * 2 * KSIZE * KSIZE     # conv_squeeze MACs
                           + 6 * C2                       # mean/max + gating
                           + 2 * C2 * C + C)),            # conv3 + final mul
        transcendentals=int(N * 2 * S),                   # 2 sigmoid planes
        bytes_accessed=int((high.size + low.size + 2 * x.size) * itemsize),
    )

    kernel = pl.pallas_call(
        functools.partial(_sff_kernel, H=H, W=W),
        out_shape=jax.ShapeDtypeStruct((N, C, S), x.dtype),
        grid_spec=pltpu.PrefetchScalarGridSpec(
            num_scalar_prefetch=0,
            grid=(N,),
            in_specs=[
                pl.BlockSpec(memory_space=pltpu.MemorySpace.SMEM),     # wsq flat
                pl.BlockSpec(memory_space=pltpu.MemorySpace.SMEM),     # bsq
                pl.BlockSpec((C, C2), lambda n: (0, 0)),               # w3
                pl.BlockSpec((C, 1), lambda n: (0, 0)),                # b3
                pl.BlockSpec((1, C2, S), lambda n: (n, 0, 0)),         # high (flat)
                pl.BlockSpec((1, C2, S), lambda n: (n, 0, 0)),         # low  (flat)
                pl.BlockSpec((1, C, S), lambda n: (n, 0, 0)),          # x    (flat)
            ],
            out_specs=pl.BlockSpec((1, C, S), lambda n: (n, 0, 0)),
            scratch_shapes=[
                pltpu.VMEM((2, H_pad, W_pad), jnp.float32),            # padded planes
                pltpu.VMEM((2, Hwin_pad, W), jnp.float32),             # rolled windows
            ],
        ),
        compiler_params=pltpu.CompilerParams(
            dimension_semantics=("parallel",),
            vmem_limit_bytes=_vmem_limit_bytes()),
        cost_estimate=cost,
    )
    out_flat = kernel(wsq_flat, bsq_f, w3_mat, b3_col, high_flat, low_flat, x_flat)
    return out_flat.reshape(N, C, H, W)


def sff_reference(high, low, x, wsq, bsq, w3, b3):
    """Pure-JAX NCHW reference mirroring the PyTorch forward exactly."""
    out = jnp.concatenate([high, low], axis=1)
    avg = jnp.mean(out, axis=1, keepdims=True)
    mx = jnp.max(out, axis=1, keepdims=True)
    agg = jnp.concatenate([avg, mx], axis=1)                         # (N, 2, H, W)
    sig = jax.lax.conv_general_dilated(
        agg, wsq, window_strides=(1, 1),
        padding=((PAD, PAD), (PAD, PAD)),
        dimension_numbers=("NCHW", "OIHW", "NCHW"),
        precision=jax.lax.Precision.HIGHEST) + bsq.reshape(1, 2, 1, 1)
    sig = jax.nn.sigmoid(sig)
    gated = high * sig[:, 0:1] + low * sig[:, 1:2]
    outc = jnp.einsum("oc,nchw->nohw", w3[:, :, 0, 0], gated,
                      precision=jax.lax.Precision.HIGHEST) + b3.reshape(1, -1, 1, 1)
    return x * outc


if __name__ == "__main__":
    key = jax.random.PRNGKey(0)
    dim = 8                      # SFFModule(dim); high/low carry dim//2 channels
    N, H, W = 2, 16, 128         # W = one full lane width -> fully lane-dense demo
    C2 = dim // 2

    k1, k2, k3, k4, k5, k6, k7 = jax.random.split(key, 7)
    high = jax.random.normal(k1, (N, C2, H, W), jnp.float32)
    low = jax.random.normal(k2, (N, C2, H, W), jnp.float32)
    x = jax.random.normal(k3, (N, dim, H, W), jnp.float32)

    wsq = jax.random.normal(k4, (2, 2, KSIZE, KSIZE), jnp.float32) * 0.1  # conv_squeeze.weight
    bsq = jax.random.normal(k5, (2,), jnp.float32) * 0.1                  # conv_squeeze.bias
    w3 = jax.random.normal(k6, (dim, C2, 1, 1), jnp.float32) * 0.2        # conv3.weight
    b3 = jax.random.normal(k7, (dim,), jnp.float32) * 0.1                 # conv3.bias

    # f32 run + tight validation against the PyTorch-equivalent reference.
    out = jax.block_until_ready(sff_forward(high, low, x, wsq, bsq, w3, b3))
    ref = sff_reference(high, low, x, wsq, bsq, w3, b3)
    assert out.shape == (N, dim, H, W)
    max_err = float(jnp.max(jnp.abs(out - ref)))
    assert jnp.allclose(out, ref, atol=2e-2, rtol=2e-2), max_err

    # bf16 HBM-I/O run (the production roofline lever); kernel upcasts internally,
    # so only input/output rounding differs from the f32 reference on the same data.
    hb, lb, xb = (t.astype(jnp.bfloat16) for t in (high, low, x))
    out_bf = jax.block_until_ready(sff_forward(hb, lb, xb, wsq, bsq, w3, b3))
    ref_bf = sff_reference(hb.astype(jnp.float32), lb.astype(jnp.float32),
                           xb.astype(jnp.float32), wsq, bsq, w3, b3)
    assert out_bf.dtype == jnp.bfloat16
    max_err_bf = float(jnp.max(jnp.abs(out_bf.astype(jnp.float32) - ref_bf)))
    assert jnp.allclose(out_bf.astype(jnp.float32), ref_bf, atol=1e-1, rtol=1e-1), max_err_bf

    print("KERNEL_OK")
</pallas_src>

<mosaic_0001>
module attributes {stable_mosaic.version = 11 : i64} {
  func.func @_sff_kernel(%arg0: i32, %arg1: memref<196xf32, #tpu.memory_space<smem>>, %arg2: memref<2xf32, #tpu.memory_space<smem>>, %arg3: memref<8x4xf32, #tpu.memory_space<vmem>>, %arg4: memref<8x1xf32, #tpu.memory_space<vmem>>, %arg5: memref<1x4x2048xf32, #tpu.memory_space<vmem>>, %arg6: memref<1x4x2048xf32, #tpu.memory_space<vmem>>, %arg7: memref<1x8x2048xf32, #tpu.memory_space<vmem>>, %arg8: memref<1x8x2048xf32, #tpu.memory_space<vmem>>, %arg9: memref<2x32x256xf32, #tpu.memory_space<vmem>>, %arg10: memref<2x24x128xf32, #tpu.memory_space<vmem>>) attributes {dimension_semantics = [#tpu.dimension_semantics<parallel>], iteration_bounds = array<i64: 2>, scalar_prefetch = 0 : i64, scratch_operands = 2 : i64, tpu.core_type = #tpu.core_type<tc>, window_params = [{transform_indices = @transform_0, window_bounds = array<i64: 196>}, {transform_indices = @transform_1, window_bounds = array<i64: 2>}, {pipeline_mode = #tpu.pipeline_mode<synchronous>, transform_indices = @transform_2, window_bounds = array<i64: 8, 4>}, {pipeline_mode = #tpu.pipeline_mode<synchronous>, transform_indices = @transform_3, window_bounds = array<i64: 8, 1>}, {transform_indices = @transform_4, window_bounds = array<i64: 1, 4, 2048>}, {transform_indices = @transform_5, window_bounds = array<i64: 1, 4, 2048>}, {transform_indices = @transform_6, window_bounds = array<i64: 1, 8, 2048>}, {transform_indices = @transform_7, window_bounds = array<i64: 1, 8, 2048>}]} {
    %c0 = arith.constant 0 : index
    %c0_0 = arith.constant 0 : index
    %c0_1 = arith.constant 0 : index
    %0 = vector.load %arg5[%c0, %c0_0, %c0_1] : memref<1x4x2048xf32, #tpu.memory_space<vmem>>, vector<1x4x2048xf32>
    %1 = vector.shape_cast %0 : vector<1x4x2048xf32> to vector<4x2048xf32>
    %c0_2 = arith.constant 0 : index
    %c0_3 = arith.constant 0 : index
    %c0_4 = arith.constant 0 : index
    %2 = vector.load %arg6[%c0_2, %c0_3, %c0_4] : memref<1x4x2048xf32, #tpu.memory_space<vmem>>, vector<1x4x2048xf32>
    %3 = vector.shape_cast %2 : vector<1x4x2048xf32> to vector<4x2048xf32>
    %cst = arith.constant dense<0.000000e+00> : vector<2048xf32>
    %4 = vector.multi_reduction <add>, %1, %cst [0] : vector<4x2048xf32> to vector<2048xf32>
    %5 = vector.shape_cast %4 : vector<2048xf32> to vector<1x2048xf32>
    %cst_5 = arith.constant dense<0.000000e+00> : vector<2048xf32>
    %6 = vector.multi_reduction <add>, %3, %cst_5 [0] : vector<4x2048xf32> to vector<2048xf32>
    %7 = vector.shape_cast %6 : vector<2048xf32> to vector<1x2048xf32>
    %8 = arith.addf %5, %7 : vector<1x2048xf32>
    %cst_6 = arith.constant 1.250000e-01 : f32
    %9 = vector.broadcast %cst_6 : f32 to vector<1x2048xf32>
    %10 = arith.mulf %8, %9 : vector<1x2048xf32>
    %cst_7 = arith.constant dense<0xFF800000> : vector<2048xf32>
    %11 = vector.multi_reduction <maximumf>, %1, %cst_7 [0] : vector<4x2048xf32> to vector<2048xf32>
    %12 = vector.shape_cast %11 : vector<2048xf32> to vector<1x2048xf32>
    %cst_8 = arith.constant dense<0xFF800000> : vector<2048xf32>
    %13 = vector.multi_reduction <maximumf>, %3, %cst_8 [0] : vector<4x2048xf32> to vector<2048xf32>
    %14 = vector.shape_cast %13 : vector<2048xf32> to vector<1x2048xf32>
    %15 = arith.maximumf %12, %14 : vector<1x2048xf32>
    %16 = tpu.concatenate %10, %15 in 0 : vector<1x2048xf32>, vector<1x2048xf32> -> vector<2x2048xf32>
    %17 = vector.shape_cast %16 : vector<2x2048xf32> to vector<2x16x128xf32>
    %cst_9 = arith.constant 0.000000e+00 : f32
    %18 = vector.broadcast %cst_9 : f32 to vector<8x256xf32>
    %c0_10 = arith.constant 0 : index
    %c0_11 = arith.constant 0 : index
    %c0_12 = arith.constant 0 : index
    %19 = vector.load %arg9[%c0_10, %c0_11, %c0_12] : memref<2x32x256xf32, #tpu.memory_space<vmem>>, vector<1x8x256xf32>
    %20 = vector.shape_cast %19 : vector<1x8x256xf32> to vector<8x256xf32>
    %21 = vector.shape_cast %18 : vector<8x256xf32> to vector<1x8x256xf32>
    tpu.vector_store %arg9[%c0_10, %c0_11, %c0_12], %21 {strides = array<i32>} : memref<2x32x256xf32, #tpu.memory_space<vmem>>, vector<1x8x256xf32>,
    %cst_13 = arith.constant 0.000000e+00 : f32
    %22 = vector.broadcast %cst_13 : f32 to vector<8x256xf32>
    %c0_14 = arith.constant 0 : index
    %c24 = arith.constant 24 : index
    %c0_15 = arith.constant 0 : index
    %23 = vector.load %arg9[%c0_14, %c24, %c0_15] : memref<2x32x256xf32, #tpu.memory_space<vmem>>, vector<1x8x256xf32>
    %24 = vector.shape_cast %23 : vector<1x8x256xf32> to vector<8x256xf32>
    %25 = vector.shape_cast %22 : vector<8x256xf32> to vector<1x8x256xf32>
    tpu.vector_store %arg9[%c0_14, %c24, %c0_15], %25 {strides = array<i32>} : memref<2x32x256xf32, #tpu.memory_space<vmem>>, vector<1x8x256xf32>,
    %cst_16 = arith.constant 0.000000e+00 : f32
    %26 = vector.broadcast %cst_16 : f32 to vector<16x128xf32>
    %c0_17 = arith.constant 0 : index
    %c8 = arith.constant 8 : index
    %c128 = arith.constant 128 : index
    %27 = vector.load %arg9[%c0_17, %c8, %c128] : memref<2x32x256xf32, #tpu.memory_space<vmem>>, vector<1x16x128xf32>
    %28 = vector.shape_cast %27 : vector<1x16x128xf32> to vector<16x128xf32>
    %29 = vector.shape_cast %26 : vector<16x128xf32> to vector<1x16x128xf32>
    tpu.vector_store %arg9[%c0_17, %c8, %c128], %29 {strides = array<i32>} : memref<2x32x256xf32, #tpu.memory_space<vmem>>, vector<1x16x128xf32>,
    %30 = vector.extract_strided_slice %17 {offsets = [0, 0, 0], sizes = [1, 16, 128], strides = [1, 1, 1]} : vector<2x16x128xf32> to vector<1x16x128xf32>
    %31 = vector.shape_cast %30 : vector<1x16x128xf32> to vector<16x128xf32>
    %c0_18 = arith.constant 0 : index
    %c8_19 = arith.constant 8 : index
    %c0_20 = arith.constant 0 : index
    %32 = vector.load %arg9[%c0_18, %c8_19, %c0_20] : memref<2x32x256xf32, #tpu.memory_space<vmem>>, vector<1x16x128xf32>
    %33 = vector.shape_cast %32 : vector<1x16x128xf32> to vector<16x128xf32>
    %34 = vector.shape_cast %31 : vector<16x128xf32> to vector<1x16x128xf32>
    tpu.vector_store %arg9[%c0_18, %c8_19, %c0_20], %34 {strides = array<i32>} : memref<2x32x256xf32, #tpu.memory_space<vmem>>, vector<1x16x128xf32>,
    %cst_21 = arith.constant 0.000000e+00 : f32
    %35 = vector.broadcast %cst_21 : f32 to vector<8x256xf32>
    %c1 = arith.constant 1 : index
    %c0_22 = arith.constant 0 : index
    %c0_23 = arith.constant 0 : index
    %36 = vector.load %arg9[%c1, %c0_22, %c0_23] : memref<2x32x256xf32, #tpu.memory_space<vmem>>, vector<1x8x256xf32>
    %37 = vector.shape_cast %36 : vector<1x8x256xf32> to vector<8x256xf32>
    %38 = vector.shape_cast %35 : vector<8x256xf32> to vector<1x8x256xf32>
    tpu.vector_store %arg9[%c1, %c0_22, %c0_23], %38 {strides = array<i32>} : memref<2x32x256xf32, #tpu.memory_space<vmem>>, vector<1x8x256xf32>,
    %cst_24 = arith.constant 0.000000e+00 : f32
    %39 = vector.broadcast %cst_24 : f32 to vector<8x256xf32>
    %c1_25 = arith.constant 1 : index
    %c24_26 = arith.constant 24 : index
    %c0_27 = arith.constant 0 : index
    %40 = vector.load %arg9[%c1_25, %c24_26, %c0_27] : memref<2x32x256xf32, #tpu.memory_space<vmem>>, vector<1x8x256xf32>
    %41 = vector.shape_cast %40 : vector<1x8x256xf32> to vector<8x256xf32>
    %42 = vector.shape_cast %39 : vector<8x256xf32> to vector<1x8x256xf32>
    tpu.vector_store %arg9[%c1_25, %c24_26, %c0_27], %42 {strides = array<i32>} : memref<2x32x256xf32, #tpu.memory_space<vmem>>, vector<1x8x256xf32>,
    %cst_28 = arith.constant 0.000000e+00 : f32
    %43 = vector.broadcast %cst_28 : f32 to vector<16x128xf32>
    %c1_29 = arith.constant 1 : index
    %c8_30 = arith.constant 8 : index
    %c128_31 = arith.constant 128 : index
    %44 = vector.load %arg9[%c1_29, %c8_30, %c128_31] : memref<2x32x256xf32, #tpu.memory_space<vmem>>, vector<1x16x128xf32>
    %45 = vector.shape_cast %44 : vector<1x16x128xf32> to vector<16x128xf32>
    %46 = vector.shape_cast %43 : vector<16x128xf32> to vector<1x16x128xf32>
    tpu.vector_store %arg9[%c1_29, %c8_30, %c128_31], %46 {strides = array<i32>} : memref<2x32x256xf32, #tpu.memory_space<vmem>>, vector<1x16x128xf32>,
    %47 = vector.extract_strided_slice %17 {offsets = [1, 0, 0], sizes = [1, 16, 128], strides = [1, 1, 1]} : vector<2x16x128xf32> to vector<1x16x128xf32>
    %48 = vector.shape_cast %47 : vector<1x16x128xf32> to vector<16x128xf32>
    %c1_32 = arith.constant 1 : index
    %c8_33 = arith.constant 8 : index
    %c0_34 = arith.constant 0 : index
    %49 = vector.load %arg9[%c1_32, %c8_33, %c0_34] : memref<2x32x256xf32, #tpu.memory_space<vmem>>, vector<1x16x128xf32>
    %50 = vector.shape_cast %49 : vector<1x16x128xf32> to vector<16x128xf32>
    %51 = vector.shape_cast %48 : vector<16x128xf32> to vector<1x16x128xf32>
    tpu.vector_store %arg9[%c1_32, %c8_33, %c0_34], %51 {strides = array<i32>} : memref<2x32x256xf32, #tpu.memory_space<vmem>>, vector<1x16x128xf32>,
    %c0_35 = arith.constant 0 : index
    %c5 = arith.constant 5 : index
    %c0_36 = arith.constant 0 : index
    %52 = vector.load %arg9[%c0_35, %c5, %c0_36] : memref<2x32x256xf32, #tpu.memory_space<vmem>>, vector<1x22x256xf32>
    %53 = vector.shape_cast %52 : vector<1x22x256xf32> to vector<22x256xf32>
    %c3_i32 = arith.constant 3 : i32
    %54 = tpu.dynamic_rotate %53 by %c3_i32 dim 1 : vector<22x256xf32>, i32 -> vector<22x256xf32>
    %55 = vector.extract_strided_slice %54 {offsets = [0, 0], sizes = [22, 128], strides = [1, 1]} : vector<22x256xf32> to vector<22x128xf32>
    %c0_37 = arith.constant 0 : index
    %c0_38 = arith.constant 0 : index
    %c0_39 = arith.constant 0 : index
    %56 = vector.load %arg10[%c0_37, %c0_38, %c0_39] : memref<2x24x128xf32, #tpu.memory_space<vmem>>, vector<1x22x128xf32>
    %57 = vector.shape_cast %56 : vector<1x22x128xf32> to vector<22x128xf32>
    %58 = vector.shape_cast %55 : vector<22x128xf32> to vector<1x22x128xf32>
    tpu.vector_store %arg10[%c0_37, %c0_38, %c0_39], %58 {strides = array<i32>} : memref<2x24x128xf32, #tpu.memory_space<vmem>>, vector<1x22x128xf32>,
    %c0_40 = arith.constant 0 : index
    %c0_41 = arith.constant 0 : index
    %c0_42 = arith.constant 0 : index
    %59 = vector.load %arg10[%c0_40, %c0_41, %c0_42] : memref<2x24x128xf32, #tpu.memory_space<vmem>>, vector<1x16x128xf32>
    %60 = vector.shape_cast %59 : vector<1x16x128xf32> to vector<16x128xf32>
    %c0_43 = arith.constant 0 : index
    %61 = memref.load %arg1[%c0_43] : memref<196xf32, #tpu.memory_space<smem>>
    %62 = vector.broadcast %61 : f32 to vector<16x128xf32>
    %63 = arith.mulf %62, %60 : vector<16x128xf32>
    %c98 = arith.constant 98 : index
    %64 = memref.load %arg1[%c98] : memref<196xf32, #tpu.memory_space<smem>>
    %65 = vector.broadcast %64 : f32 to vector<16x128xf32>
    %66 = arith.mulf %65, %60 : vector<16x128xf32>
    %c0_44 = arith.constant 0 : index
    %c1_45 = arith.constant 1 : index
    %c0_46 = arith.constant 0 : index
    %67 = vector.load %arg10[%c0_44, %c1_45, %c0_46] : memref<2x24x128xf32, #tpu.memory_space<vmem>>, vector<1x16x128xf32>
    %68 = vector.shape_cast %67 : vector<1x16x128xf32> to vector<16x128xf32>
    %c7 = arith.constant 7 : index
    %69 = memref.load %arg1[%c7] : memref<196xf32, #tpu.memory_space<smem>>
    %70 = vector.broadcast %69 : f32 to vector<16x128xf32>
    %71 = arith.mulf %70, %68 : vector<16x128xf32>
    %72 = arith.addf %63, %71 : vector<16x128xf32>
    %c105 = arith.constant 105 : index
    %73 = memref.load %arg1[%c105] : memref<196xf32, #tpu.memory_space<smem>>
    %74 = vector.broadcast %73 : f32 to vector<16x128xf32>
    %75 = arith.mulf %74, %68 : vector<16x128xf32>
    %76 = arith.addf %66, %75 : vector<16x128xf32>
    %c0_47 = arith.constant 0 : index
    %c2 = arith.constant 2 : index
    %c0_48 = arith.constant 0 : index
    %77 = vector.load %arg10[%c0_47, %c2, %c0_48] : memref<2x24x128xf32, #tpu.memory_space<vmem>>, vector<1x16x128xf32>
    %78 = vector.shape_cast %77 : vector<1x16x128xf32> to vector<16x128xf32>
    %c14 = arith.constant 14 : index
    %79 = memref.load %arg1[%c14] : memref<196xf32, #tpu.memory_space<smem>>
    %80 = vector.broadcast %79 : f32 to vector<16x128xf32>
    %81 = arith.mulf %80, %78 : vector<16x128xf32>
    %82 = arith.addf %72, %81 : vector<16x128xf32>
    %c112 = arith.constant 112 : index
    %83 = memref.load %arg1[%c112] : memref<196xf32, #tpu.memory_space<smem>>
    %84 = vector.broadcast %83 : f32 to vector<16x128xf32>
    %85 = arith.mulf %84, %78 : vector<16x128xf32>
    %86 = arith.addf %76, %85 : vector<16x128xf32>
    %c0_49 = arith.constant 0 : index
    %c3 = arith.constant 3 : index
    %c0_50 = arith.constant 0 : index
    %87 = vector.load %arg10[%c0_49, %c3, %c0_50] : memref<2x24x128xf32, #tpu.memory_space<vmem>>, vector<1x16x128xf32>
    %88 = vector.shape_cast %87 : vector<1x16x128xf32> to vector<16x128xf32>
    %c21 = arith.constant 21 : index
    %89 = memref.load %arg1[%c21] : memref<196xf32, #tpu.memory_space<smem>>
    %90 = vector.broadcast %89 : f32 to vector<16x128xf32>
    %91 = arith.mulf %90, %88 : vector<16x128xf32>
    %92 = arith.addf %82, %91 : vector<16x128xf32>
    %c119 = arith.constant 119 : index
    %93 = memref.load %arg1[%c119] : memref<196xf32, #tpu.memory_space<smem>>
    %94 = vector.broadcast %93 : f32 to vector<16x128xf32>
    %95 = arith.mulf %94, %88 : vector<16x128xf32>
    %96 = arith.addf %86, %95 : vector<16x128xf32>
    %c0_51 = arith.constant 0 : index
    %c4 = arith.constant 4 : index
    %c0_52 = arith.constant 0 : index
    %97 = vector.load %arg10[%c0_51, %c4, %c0_52] : memref<2x24x128xf32, #tpu.memory_space<vmem>>, vector<1x16x128xf32>
    %98 = vector.shape_cast %97 : vector<1x16x128xf32> to vector<16x128xf32>
    %c28 = arith.constant 28 : index
    %99 = memref.load %arg1[%c28] : memref<196xf32, #tpu.memory_space<smem>>
    %100 = vector.broadcast %99 : f32 to vector<16x128xf32>
    %101 = arith.mulf %100, %98 : vector<16x128xf32>
    %102 = arith.addf %92, %101 : vector<16x128xf32>
    %c126 = arith.constant 126 : index
    %103 = memref.load %arg1[%c126] : memref<196xf32, #tpu.memory_space<smem>>
    %104 = vector.broadcast %103 : f32 to vector<16x128xf32>
    %105 = arith.mulf %104, %98 : vector<16x128xf32>
    %106 = arith.addf %96, %105 : vector<16x128xf32>
    %c0_53 = arith.constant 0 : index
    %c5_54 = arith.constant 5 : index
    %c0_55 = arith.constant 0 : index
    %107 = vector.load %arg10[%c0_53, %c5_54, %c0_55] : memref<2x24x128xf32, #tpu.memory_space<vmem>>, vector<1x16x128xf32>
    %108 = vector.shape_cast %107 : vector<1x16x128xf32> to vector<16x128xf32>
    %c35 = arith.constant 35 : index
    %109 = memref.load %arg1[%c35] : memref<196xf32, #tpu.memory_space<smem>>
    %110 = vector.broadcast %109 : f32 to vector<16x128xf32>
    %111 = arith.mulf %110, %108 : vector<16x128xf32>
    %112 = arith.addf %102, %111 : vector<16x128xf32>
    %c133 = arith.constant 133 : index
    %113 = memref.load %arg1[%c133] : memref<196xf32, #tpu.memory_space<smem>>
    %114 = vector.broadcast %113 : f32 to vector<16x128xf32>
    %115 = arith.mulf %114, %108 : vector<16x128xf32>
    %116 = arith.addf %106, %115 : vector<16x128xf32>
    %c0_56 = arith.constant 0 : index
    %c6 = arith.constant 6 : index
    %c0_57 = arith.constant 0 : index
    %117 = vector.load %arg10[%c0_56, %c6, %c0_57] : memref<2x24x128xf32, #tpu.memory_space<vmem>>, vector<1x16x128xf32>
    %118 = vector.shape_cast %117 : vector<1x16x128xf32> to vector<16x128xf32>
    %c42 = arith.constant 42 : index
    %119 = memref.load %arg1[%c42] : memref<196xf32, #tpu.memory_space<smem>>
    %120 = vector.broadcast %119 : f32 to vector<16x128xf32>
    %121 = arith.mulf %120, %118 : vector<16x128xf32>
    %122 = arith.addf %112, %121 : vector<16x128xf32>
    %c140 = arith.constant 140 : index
    %123 = memref.load %arg1[%c140] : memref<196xf32, #tpu.memory_space<smem>>
    %124 = vector.broadcast %123 : f32 to vector<16x128xf32>
    %125 = arith.mulf %124, %118 : vector<16x128xf32>
    %126 = arith.addf %116, %125 : vector<16x128xf32>
    %c2_i32 = arith.constant 2 : i32
    %127 = tpu.dynamic_rotate %53 by %c2_i32 dim 1 : vector<22x256xf32>, i32 -> vector<22x256xf32>
    %128 = vector.extract_strided_slice %127 {offsets = [0, 0], sizes = [22, 128], strides = [1, 1]} : vector<22x256xf32> to vector<22x128xf32>
    %c1_58 = arith.constant 1 : index
    %c0_59 = arith.constant 0 : index
    %c0_60 = arith.constant 0 : index
    %129 = vector.load %arg10[%c1_58, %c0_59, %c0_60] : memref<2x24x128xf32, #tpu.memory_space<vmem>>, vector<1x22x128xf32>
    %130 = vector.shape_cast %129 : vector<1x22x128xf32> to vector<22x128xf32>
    %131 = vector.shape_cast %128 : vector<22x128xf32> to vector<1x22x128xf32>
    tpu.vector_store %arg10[%c1_58, %c0_59, %c0_60], %131 {strides = array<i32>} : memref<2x24x128xf32, #tpu.memory_space<vmem>>, vector<1x22x128xf32>,
    %c1_61 = arith.constant 1 : index
    %c0_62 = arith.constant 0 : index
    %c0_63 = arith.constant 0 : index
    %132 = vector.load %arg10[%c1_61, %c0_62, %c0_63] : memref<2x24x128xf32, #tpu.memory_space<vmem>>, vector<1x16x128xf32>
    %133 = vector.shape_cast %132 : vector<1x16x128xf32> to vector<16x128xf32>
    %c1_64 = arith.constant 1 : index
    %134 = memref.load %arg1[%c1_64] : memref<196xf32, #tpu.memory_space<smem>>
    %135 = vector.broadcast %134 : f32 to vector<16x128xf32>
    %136 = arith.mulf %135, %133 : vector<16x128xf32>
    %c99 = arith.constant 99 : index
    %137 = memref.load %arg1[%c99] : memref<196xf32, #tpu.memory_space<smem>>
    %138 = vector.broadcast %137 : f32 to vector<16x128xf32>
    %139 = arith.mulf %138, %133 : vector<16x128xf32>
    %c1_65 = arith.constant 1 : index
    %c1_66 = arith.constant 1 : index
    %c0_67 = arith.constant 0 : index
    %140 = vector.load %arg10[%c1_65, %c1_66, %c0_67] : memref<2x24x128xf32, #tpu.memory_space<vmem>>, vector<1x16x128xf32>
    %141 = vector.shape_cast %140 : vector<1x16x128xf32> to vector<16x128xf32>
    %c8_68 = arith.constant 8 : index
    %142 = memref.load %arg1[%c8_68] : memref<196xf32, #tpu.memory_space<smem>>
    %143 = vector.broadcast %142 : f32 to vector<16x128xf32>
    %144 = arith.mulf %143, %141 : vector<16x128xf32>
    %145 = arith.addf %136, %144 : vector<16x128xf32>
    %c106 = arith.constant 106 : index
    %146 = memref.load %arg1[%c106] : memref<196xf32, #tpu.memory_space<smem>>
    %147 = vector.broadcast %146 : f32 to vector<16x128xf32>
    %148 = arith.mulf %147, %141 : vector<16x128xf32>
    %149 = arith.addf %139, %148 : vector<16x128xf32>
    %c1_69 = arith.constant 1 : index
    %c2_70 = arith.constant 2 : index
    %c0_71 = arith.constant 0 : index
    %150 = vector.load %arg10[%c1_69, %c2_70, %c0_71] : memref<2x24x128xf32, #tpu.memory_space<vmem>>, vector<1x16x128xf32>
    %151 = vector.shape_cast %150 : vector<1x16x128xf32> to vector<16x128xf32>
    %c15 = arith.constant 15 : index
    %152 = memref.load %arg1[%c15] : memref<196xf32, #tpu.memory_space<smem>>
    %153 = vector.broadcast %152 : f32 to vector<16x128xf32>
    %154 = arith.mulf %153, %151 : vector<16x128xf32>
    %155 = arith.addf %145, %154 : vector<16x128xf32>
    %c113 = arith.constant 113 : index
    %156 = memref.load %arg1[%c113] : memref<196xf32, #tpu.memory_space<smem>>
    %157 = vector.broadcast %156 : f32 to vector<16x128xf32>
    %158 = arith.mulf %157, %151 : vector<16x128xf32>
    %159 = arith.addf %149, %158 : vector<16x128xf32>
    %c1_72 = arith.constant 1 : index
    %c3_73 = arith.constant 3 : index
    %c0_74 = arith.constant 0 : index
    %160 = vector.load %arg10[%c1_72, %c3_73, %c0_74] : memref<2x24x128xf32, #tpu.memory_space<vmem>>, vector<1x16x128xf32>
    %161 = vector.shape_cast %160 : vector<1x16x128xf32> to vector<16x128xf32>
    %c22 = arith.constant 22 : index
    %162 = memref.load %arg1[%c22] : memref<196xf32, #tpu.memory_space<smem>>
    %163 = vector.broadcast %162 : f32 to vector<16x128xf32>
    %164 = arith.mulf %163, %161 : vector<16x128xf32>
    %165 = arith.addf %155, %164 : vector<16x128xf32>
    %c120 = arith.constant 120 : index
    %166 = memref.load %arg1[%c120] : memref<196xf32, #tpu.memory_space<smem>>
    %167 = vector.broadcast %166 : f32 to vector<16x128xf32>
    %168 = arith.mulf %167, %161 : vector<16x128xf32>
    %169 = arith.addf %159, %168 : vector<16x128xf32>
    %c1_75 = arith.constant 1 : index
    %c4_76 = arith.constant 4 : index
    %c0_77 = arith.constant 0 : index
    %170 = vector.load %arg10[%c1_75, %c4_76, %c0_77] : memref<2x24x128xf32, #tpu.memory_space<vmem>>, vector<1x16x128xf32>
    %171 = vector.shape_cast %170 : vector<1x16x128xf32> to vector<16x128xf32>
    %c29 = arith.constant 29 : index
    %172 = memref.load %arg1[%c29] : memref<196xf32, #tpu.memory_space<smem>>
    %173 = vector.broadcast %172 : f32 to vector<16x128xf32>
    %174 = arith.mulf %173, %171 : vector<16x128xf32>
    %175 = arith.addf %165, %174 : vector<16x128xf32>
    %c127 = arith.constant 127 : index
    %176 = memref.load %arg1[%c127] : memref<196xf32, #tpu.memory_space<smem>>
    %177 = vector.broadcast %176 : f32 to vector<16x128xf32>
    %178 = arith.mulf %177, %171 : vector<16x128xf32>
    %179 = arith.addf %169, %178 : vector<16x128xf32>
    %c1_78 = arith.constant 1 : index
    %c5_79 = arith.constant 5 : index
    %c0_80 = arith.constant 0 : index
    %180 = vector.load %arg10[%c1_78, %c5_79, %c0_80] : memref<2x24x128xf32, #tpu.memory_space<vmem>>, vector<1x16x128xf32>
    %181 = vector.shape_cast %180 : vector<1x16x128xf32> to vector<16x128xf32>
    %c36 = arith.constant 36 : index
    %182 = memref.load %arg1[%c36] : memref<196xf32, #tpu.memory_space<smem>>
    %183 = vector.broadcast %182 : f32 to vector<16x128xf32>
    %184 = arith.mulf %183, %181 : vector<16x128xf32>
    %185 = arith.addf %175, %184 : vector<16x128xf32>
    %c134 = arith.constant 134 : index
    %186 = memref.load %arg1[%c134] : memref<196xf32, #tpu.memory_space<smem>>
    %187 = vector.broadcast %186 : f32 to vector<16x128xf32>
    %188 = arith.mulf %187, %181 : vector<16x128xf32>
    %189 = arith.addf %179, %188 : vector<16x128xf32>
    %c1_81 = arith.constant 1 : index
    %c6_82 = arith.constant 6 : index
    %c0_83 = arith.constant 0 : index
    %190 = vector.load %arg10[%c1_81, %c6_82, %c0_83] : memref<2x24x128xf32, #tpu.memory_space<vmem>>, vector<1x16x128xf32>
    %191 = vector.shape_cast %190 : vector<1x16x128xf32> to vector<16x128xf32>
    %c43 = arith.constant 43 : index
    %192 = memref.load %arg1[%c43] : memref<196xf32, #tpu.memory_space<smem>>
    %193 = vector.broadcast %192 : f32 to vector<16x128xf32>
    %194 = arith.mulf %193, %191 : vector<16x128xf32>
    %195 = arith.addf %185, %194 : vector<16x128xf32>
    %c141 = arith.constant 141 : index
    %196 = memref.load %arg1[%c141] : memref<196xf32, #tpu.memory_space<smem>>
    %197 = vector.broadcast %196 : f32 to vector<16x128xf32>
    %198 = arith.mulf %197, %191 : vector<16x128xf32>
    %199 = arith.addf %189, %198 : vector<16x128xf32>
    %c1_i32 = arith.constant 1 : i32
    %200 = tpu.dynamic_rotate %53 by %c1_i32 dim 1 : vector<22x256xf32>, i32 -> vector<22x256xf32>
    %201 = vector.extract_strided_slice %200 {offsets = [0, 0], sizes = [22, 128], strides = [1, 1]} : vector<22x256xf32> to vector<22x128xf32>
    %c0_84 = arith.constant 0 : index
    %c0_85 = arith.constant 0 : index
    %c0_86 = arith.constant 0 : index
    %202 = vector.load %arg10[%c0_84, %c0_85, %c0_86] : memref<2x24x128xf32, #tpu.memory_space<vmem>>, vector<1x22x128xf32>
    %203 = vector.shape_cast %202 : vector<1x22x128xf32> to vector<22x128xf32>
    %204 = vector.shape_cast %201 : vector<22x128xf32> to vector<1x22x128xf32>
    tpu.vector_store %arg10[%c0_84, %c0_85, %c0_86], %204 {strides = array<i32>} : memref<2x24x128xf32, #tpu.memory_space<vmem>>, vector<1x22x128xf32>,
    %c0_87 = arith.constant 0 : index
    %c0_88 = arith.constant 0 : index
    %c0_89 = arith.constant 0 : index
    %205 = vector.load %arg10[%c0_87, %c0_88, %c0_89] : memref<2x24x128xf32, #tpu.memory_space<vmem>>, vector<1x16x128xf32>
    %206 = vector.shape_cast %205 : vector<1x16x128xf32> to vector<16x128xf32>
    %c2_90 = arith.constant 2 : index
    %207 = memref.load %arg1[%c2_90] : memref<196xf32, #tpu.memory_space<smem>>
    %208 = vector.broadcast %207 : f32 to vector<16x128xf32>
    %209 = arith.mulf %208, %206 : vector<16x128xf32>
    %210 = arith.addf %122, %209 : vector<16x128xf32>
    %c100 = arith.constant 100 : index
    %211 = memref.load %arg1[%c100] : memref<196xf32, #tpu.memory_space<smem>>
    %212 = vector.broadcast %211 : f32 to vector<16x128xf32>
    %213 = arith.mulf %212, %206 : vector<16x128xf32>
    %214 = arith.addf %126, %213 : vector<16x128xf32>
    %c0_91 = arith.constant 0 : index
    %c1_92 = arith.constant 1 : index
    %c0_93 = arith.constant 0 : index
    %215 = vector.load %arg10[%c0_91, %c1_92, %c0_93] : memref<2x24x128xf32, #tpu.memory_space<vmem>>, vector<1x16x128xf32>
    %216 = vector.shape_cast %215 : vector<1x16x128xf32> to vector<16x128xf32>
    %c9 = arith.constant 9 : index
    %217 = memref.load %arg1[%c9] : memref<196xf32, #tpu.memory_space<smem>>
    %218 = vector.broadcast %217 : f32 to vector<16x128xf32>
    %219 = arith.mulf %218, %216 : vector<16x128xf32>
    %220 = arith.addf %210, %219 : vector<16x128xf32>
    %c107 = arith.constant 107 : index
    %221 = memref.load %arg1[%c107] : memref<196xf32, #tpu.memory_space<smem>>
    %222 = vector.broadcast %221 : f32 to vector<16x128xf32>
    %223 = arith.mulf %222, %216 : vector<16x128xf32>
    %224 = arith.addf %214, %223 : vector<16x128xf32>
    %c0_94 = arith.constant 0 : index
    %c2_95 = arith.constant 2 : index
    %c0_96 = arith.constant 0 : index
    %225 = vector.load %arg10[%c0_94, %c2_95, %c0_96] : memref<2x24x128xf32, #tpu.memory_space<vmem>>, vector<1x16x128xf32>
    %226 = vector.shape_cast %225 : vector<1x16x128xf32> to vector<16x128xf32>
    %c16 = arith.constant 16 : index
    %227 = memref.load %arg1[%c16] : memref<196xf32, #tpu.memory_space<smem>>
    %228 = vector.broadcast %227 : f32 to vector<16x128xf32>
    %229 = arith.mulf %228, %226 : vector<16x128xf32>
    %230 = arith.addf %220, %229 : vector<16x128xf32>
    %c114 = arith.constant 114 : index
    %231 = memref.load %arg1[%c114] : memref<196xf32, #tpu.memory_space<smem>>
    %232 = vector.broadcast %231 : f32 to vector<16x128xf32>
    %233 = arith.mulf %232, %226 : vector<16x128xf32>
    %234 = arith.addf %224, %233 : vector<16x128xf32>
    %c0_97 = arith.constant 0 : index
    %c3_98 = arith.constant 3 : index
    %c0_99 = arith.constant 0 : index
    %235 = vector.load %arg10[%c0_97, %c3_98, %c0_99] : memref<2x24x128xf32, #tpu.memory_space<vmem>>, vector<1x16x128xf32>
    %236 = vector.shape_cast %235 : vector<1x16x128xf32> to vector<16x128xf32>
    %c23 = arith.constant 23 : index
    %237 = memref.load %arg1[%c23] : memref<196xf32, #tpu.memory_space<smem>>
    %238 = vector.broadcast %237 : f32 to vector<16x128xf32>
    %239 = arith.mulf %238, %236 : vector<16x128xf32>
    %240 = arith.addf %230, %239 : vector<16x128xf32>
    %c121 = arith.constant 121 : index
    %241 = memref.load %arg1[%c121] : memref<196xf32, #tpu.memory_space<smem>>
    %242 = vector.broadcast %241 : f32 to vector<16x128xf32>
    %243 = arith.mulf %242, %236 : vector<16x128xf32>
    %244 = arith.addf %234, %243 : vector<16x128xf32>
    %c0_100 = arith.constant 0 : index
    %c4_101 = arith.constant 4 : index
    %c0_102 = arith.constant 0 : index
    %245 = vector.load %arg10[%c0_100, %c4_101, %c0_102] : memref<2x24x128xf32, #tpu.memory_space<vmem>>, vector<1x16x128xf32>
    %246 = vector.shape_cast %245 : vector<1x16x128xf32> to vector<16x128xf32>
    %c30 = arith.constant 30 : index
    %247 = memref.load %arg1[%c30] : memref<196xf32, #tpu.memory_space<smem>>
    %248 = vector.broadcast %247 : f32 to vector<16x128xf32>
    %249 = arith.mulf %248, %246 : vector<16x128xf32>
    %250 = arith.addf %240, %249 : vector<16x128xf32>
    %c128_103 = arith.constant 128 : index
    %251 = memref.load %arg1[%c128_103] : memref<196xf32, #tpu.memory_space<smem>>
    %252 = vector.broadcast %251 : f32 to vector<16x128xf32>
    %253 = arith.mulf %252, %246 : vector<16x128xf32>
    %254 = arith.addf %244, %253 : vector<16x128xf32>
    %c0_104 = arith.constant 0 : index
    %c5_105 = arith.constant 5 : index
    %c0_106 = arith.constant 0 : index
    %255 = vector.load %arg10[%c0_104, %c5_105, %c0_106] : memref<2x24x128xf32, #tpu.memory_space<vmem>>, vector<1x16x128xf32>
    %256 = vector.shape_cast %255 : vector<1x16x128xf32> to vector<16x128xf32>
    %c37 = arith.constant 37 : index
    %257 = memref.load %arg1[%c37] : memref<196xf32, #tpu.memory_space<smem>>
    %258 = vector.broadcast %257 : f32 to vector<16x128xf32>
    %259 = arith.mulf %258, %256 : vector<16x128xf32>
    %260 = arith.addf %250, %259 : vector<16x128xf32>
    %c135 = arith.constant 135 : index
    %261 = memref.load %arg1[%c135] : memref<196xf32, #tpu.memory_space<smem>>
    %262 = vector.broadcast %261 : f32 to vector<16x128xf32>
    %263 = arith.mulf %262, %256 : vector<16x128xf32>
    %264 = arith.addf %254, %263 : vector<16x128xf32>
    %c0_107 = arith.constant 0 : index
    %c6_108 = arith.constant 6 : index
    %c0_109 = arith.constant 0 : index
    %265 = vector.load %arg10[%c0_107, %c6_108, %c0_109] : memref<2x24x128xf32, #tpu.memory_space<vmem>>, vector<1x16x128xf32>
    %266 = vector.shape_cast %265 : vector<1x16x128xf32> to vector<16x128xf32>
    %c44 = arith.constant 44 : index
    %267 = memref.load %arg1[%c44] : memref<196xf32, #tpu.memory_space<smem>>
    %268 = vector.broadcast %267 : f32 to vector<16x128xf32>
    %269 = arith.mulf %268, %266 : vector<16x128xf32>
    %270 = arith.addf %260, %269 : vector<16x128xf32>
    %c142 = arith.constant 142 : index
    %271 = memref.load %arg1[%c142] : memref<196xf32, #tpu.memory_space<smem>>
    %272 = vector.broadcast %271 : f32 to vector<16x128xf32>
    %273 = arith.mulf %272, %266 : vector<16x128xf32>
    %274 = arith.addf %264, %273 : vector<16x128xf32>
    %275 = vector.extract_strided_slice %53 {offsets = [0, 0], sizes = [22, 128], strides = [1, 1]} : vector<22x256xf32> to vector<22x128xf32>
    %c1_110 = arith.constant 1 : index
    %c0_111 = arith.constant 0 : index
    %c0_112 = arith.constant 0 : index
    %276 = vector.load %arg10[%c1_110, %c0_111, %c0_112] : memref<2x24x128xf32, #tpu.memory_space<vmem>>, vector<1x22x128xf32>
    %277 = vector.shape_cast %276 : vector<1x22x128xf32> to vector<22x128xf32>
    %278 = vector.shape_cast %275 : vector<22x128xf32> to vector<1x22x128xf32>
    tpu.vector_store %arg10[%c1_110, %c0_111, %c0_112], %278 {strides = array<i32>} : memref<2x24x128xf32, #tpu.memory_space<vmem>>, vector<1x22x128xf32>,
    %c1_113 = arith.constant 1 : index
    %c0_114 = arith.constant 0 : index
    %c0_115 = arith.constant 0 : index
    %279 = vector.load %arg10[%c1_113, %c0_114, %c0_115] : memref<2x24x128xf32, #tpu.memory_space<vmem>>, vector<1x16x128xf32>
    %280 = vector.shape_cast %279 : vector<1x16x128xf32> to vector<16x128xf32>
    %c3_116 = arith.constant 3 : index
    %281 = memref.load %arg1[%c3_116] : memref<196xf32, #tpu.memory_space<smem>>
    %282 = vector.broadcast %281 : f32 to vector<16x128xf32>
    %283 = arith.mulf %282, %280 : vector<16x128xf32>
    %284 = arith.addf %195, %283 : vector<16x128xf32>
    %c101 = arith.constant 101 : index
    %285 = memref.load %arg1[%c101] : memref<196xf32, #tpu.memory_space<smem>>
    %286 = vector.broadcast %285 : f32 to vector<16x128xf32>
    %287 = arith.mulf %286, %280 : vector<16x128xf32>
    %288 = arith.addf %199, %287 : vector<16x128xf32>
    %c1_117 = arith.constant 1 : index
    %c1_118 = arith.constant 1 : index
    %c0_119 = arith.constant 0 : index
    %289 = vector.load %arg10[%c1_117, %c1_118, %c0_119] : memref<2x24x128xf32, #tpu.memory_space<vmem>>, vector<1x16x128xf32>
    %290 = vector.shape_cast %289 : vector<1x16x128xf32> to vector<16x128xf32>
    %c10 = arith.constant 10 : index
    %291 = memref.load %arg1[%c10] : memref<196xf32, #tpu.memory_space<smem>>
    %292 = vector.broadcast %291 : f32 to vector<16x128xf32>
    %293 = arith.mulf %292, %290 : vector<16x128xf32>
    %294 = arith.addf %284, %293 : vector<16x128xf32>
    %c108 = arith.constant 108 : index
    %295 = memref.load %arg1[%c108] : memref<196xf32, #tpu.memory_space<smem>>
    %296 = vector.broadcast %295 : f32 to vector<16x128xf32>
    %297 = arith.mulf %296, %290 : vector<16x128xf32>
    %298 = arith.addf %288, %297 : vector<16x128xf32>
    %c1_120 = arith.constant 1 : index
    %c2_121 = arith.constant 2 : index
    %c0_122 = arith.constant 0 : index
    %299 = vector.load %arg10[%c1_120, %c2_121, %c0_122] : memref<2x24x128xf32, #tpu.memory_space<vmem>>, vector<1x16x128xf32>
    %300 = vector.shape_cast %299 : vector<1x16x128xf32> to vector<16x128xf32>
    %c17 = arith.constant 17 : index
    %301 = memref.load %arg1[%c17] : memref<196xf32, #tpu.memory_space<smem>>
    %302 = vector.broadcast %301 : f32 to vector<16x128xf32>
    %303 = arith.mulf %302, %300 : vector<16x128xf32>
    %304 = arith.addf %294, %303 : vector<16x128xf32>
    %c115 = arith.constant 115 : index
    %305 = memref.load %arg1[%c115] : memref<196xf32, #tpu.memory_space<smem>>
    %306 = vector.broadcast %305 : f32 to vector<16x128xf32>
    %307 = arith.mulf %306, %300 : vector<16x128xf32>
    %308 = arith.addf %298, %307 : vector<16x128xf32>
    %c1_123 = arith.constant 1 : index
    %c3_124 = arith.constant 3 : index
    %c0_125 = arith.constant 0 : index
    %309 = vector.load %arg10[%c1_123, %c3_124, %c0_125] : memref<2x24x128xf32, #tpu.memory_space<vmem>>, vector<1x16x128xf32>
    %310 = vector.shape_cast %309 : vector<1x16x128xf32> to vector<16x128xf32>
    %c24_126 = arith.constant 24 : index
    %311 = memref.load %arg1[%c24_126] : memref<196xf32, #tpu.memory_space<smem>>
    %312 = vector.broadcast %311 : f32 to vector<16x128xf32>
    %313 = arith.mulf %312, %310 : vector<16x128xf32>
    %314 = arith.addf %304, %313 : vector<16x128xf32>
    %c122 = arith.constant 122 : index
    %315 = memref.load %arg1[%c122] : memref<196xf32, #tpu.memory_space<smem>>
    %316 = vector.broadcast %315 : f32 to vector<16x128xf32>
    %317 = arith.mulf %316, %310 : vector<16x128xf32>
    %318 = arith.addf %308, %317 : vector<16x128xf32>
    %c1_127 = arith.constant 1 : index
    %c4_128 = arith.constant 4 : index
    %c0_129 = arith.constant 0 : index
    %319 = vector.load %arg10[%c1_127, %c4_128, %c0_129] : memref<2x24x128xf32, #tpu.memory_space<vmem>>, vector<1x16x128xf32>
    %320 = vector.shape_cast %319 : vector<1x16x128xf32> to vector<16x128xf32>
    %c31 = arith.constant 31 : index
    %321 = memref.load %arg1[%c31] : memref<196xf32, #tpu.memory_space<smem>>
    %322 = vector.broadcast %321 : f32 to vector<16x128xf32>
    %323 = arith.mulf %322, %320 : vector<16x128xf32>
    %324 = arith.addf %314, %323 : vector<16x128xf32>
    %c129 = arith.constant 129 : index
    %325 = memref.load %arg1[%c129] : memref<196xf32, #tpu.memory_space<smem>>
    %326 = vector.broadcast %325 : f32 to vector<16x128xf32>
    %327 = arith.mulf %326, %320 : vector<16x128xf32>
    %328 = arith.addf %318, %327 : vector<16x128xf32>
    %c1_130 = arith.constant 1 : index
    %c5_131 = arith.constant 5 : index
    %c0_132 = arith.constant 0 : index
    %329 = vector.load %arg10[%c1_130, %c5_131, %c0_132] : memref<2x24x128xf32, #tpu.memory_space<vmem>>, vector<1x16x128xf32>
    %330 = vector.shape_cast %329 : vector<1x16x128xf32> to vector<16x128xf32>
    %c38 = arith.constant 38 : index
    %331 = memref.load %arg1[%c38] : memref<196xf32, #tpu.memory_space<smem>>
    %332 = vector.broadcast %331 : f32 to vector<16x128xf32>
    %333 = arith.mulf %332, %330 : vector<16x128xf32>
    %334 = arith.addf %324, %333 : vector<16x128xf32>
    %c136 = arith.constant 136 : index
    %335 = memref.load %arg1[%c136] : memref<196xf32, #tpu.memory_space<smem>>
    %336 = vector.broadcast %335 : f32 to vector<16x128xf32>
    %337 = arith.mulf %336, %330 : vector<16x128xf32>
    %338 = arith.addf %328, %337 : vector<16x128xf32>
    %c1_133 = arith.constant 1 : index
    %c6_134 = arith.constant 6 : index
    %c0_135 = arith.constant 0 : index
    %339 = vector.load %arg10[%c1_133, %c6_134, %c0_135] : memref<2x24x128xf32, #tpu.memory_space<vmem>>, vector<1x16x128xf32>
    %340 = vector.shape_cast %339 : vector<1x16x128xf32> to vector<16x128xf32>
    %c45 = arith.constant 45 : index
    %341 = memref.load %arg1[%c45] : memref<196xf32, #tpu.memory_space<smem>>
    %342 = vector.broadcast %341 : f32 to vector<16x128xf32>
    %343 = arith.mulf %342, %340 : vector<16x128xf32>
    %344 = arith.addf %334, %343 : vector<16x128xf32>
    %c143 = arith.constant 143 : index
    %345 = memref.load %arg1[%c143] : memref<196xf32, #tpu.memory_space<smem>>
    %346 = vector.broadcast %345 : f32 to vector<16x128xf32>
    %347 = arith.mulf %346, %340 : vector<16x128xf32>
    %348 = arith.addf %338, %347 : vector<16x128xf32>
    %c255_i32 = arith.constant 255 : i32
    %349 = tpu.dynamic_rotate %53 by %c255_i32 dim 1 : vector<22x256xf32>, i32 -> vector<22x256xf32>
    %350 = vector.extract_strided_slice %349 {offsets = [0, 0], sizes = [22, 128], strides = [1, 1]} : vector<22x256xf32> to vector<22x128xf32>
    %c0_136 = arith.constant 0 : index
    %c0_137 = arith.constant 0 : index
    %c0_138 = arith.constant 0 : index
    %351 = vector.load %arg10[%c0_136, %c0_137, %c0_138] : memref<2x24x128xf32, #tpu.memory_space<vmem>>, vector<1x22x128xf32>
    %352 = vector.shape_cast %351 : vector<1x22x128xf32> to vector<22x128xf32>
    %353 = vector.shape_cast %350 : vector<22x128xf32> to vector<1x22x128xf32>
    tpu.vector_store %arg10[%c0_136, %c0_137, %c0_138], %353 {strides = array<i32>} : memref<2x24x128xf32, #tpu.memory_space<vmem>>, vector<1x22x128xf32>,
    %c0_139 = arith.constant 0 : index
    %c0_140 = arith.constant 0 : index
    %c0_141 = arith.constant 0 : index
    %354 = vector.load %arg10[%c0_139, %c0_140, %c0_141] : memref<2x24x128xf32, #tpu.memory_space<vmem>>, vector<1x16x128xf32>
    %355 = vector.shape_cast %354 : vector<1x16x128xf32> to vector<16x128xf32>
    %c4_142 = arith.constant 4 : index
    %356 = memref.load %arg1[%c4_142] : memref<196xf32, #tpu.memory_space<smem>>
    %357 = vector.broadcast %356 : f32 to vector<16x128xf32>
    %358 = arith.mulf %357, %355 : vector<16x128xf32>
    %359 = arith.addf %270, %358 : vector<16x128xf32>
    %c102 = arith.constant 102 : index
    %360 = memref.load %arg1[%c102] : memref<196xf32, #tpu.memory_space<smem>>
    %361 = vector.broadcast %360 : f32 to vector<16x128xf32>
    %362 = arith.mulf %361, %355 : vector<16x128xf32>
    %363 = arith.addf %274, %362 : vector<16x128xf32>
    %c0_143 = arith.constant 0 : index
    %c1_144 = arith.constant 1 : index
    %c0_145 = arith.constant 0 : index
    %364 = vector.load %arg10[%c0_143, %c1_144, %c0_145] : memref<2x24x128xf32, #tpu.memory_space<vmem>>, vector<1x16x128xf32>
    %365 = vector.shape_cast %364 : vector<1x16x128xf32> to vector<16x128xf32>
    %c11 = arith.constant 11 : index
    %366 = memref.load %arg1[%c11] : memref<196xf32, #tpu.memory_space<smem>>
    %367 = vector.broadcast %366 : f32 to vector<16x128xf32>
    %368 = arith.mulf %367, %365 : vector<16x128xf32>
    %369 = arith.addf %359, %368 : vector<16x128xf32>
    %c109 = arith.constant 109 : index
    %370 = memref.load %arg1[%c109] : memref<196xf32, #tpu.memory_space<smem>>
    %371 = vector.broadcast %370 : f32 to vector<16x128xf32>
    %372 = arith.mulf %371, %365 : vector<16x128xf32>
    %373 = arith.addf %363, %372 : vector<16x128xf32>
    %c0_146 = arith.constant 0 : index
    %c2_147 = arith.constant 2 : index
    %c0_148 = arith.constant 0 : index
    %374 = vector.load %arg10[%c0_146, %c2_147, %c0_148] : memref<2x24x128xf32, #tpu.memory_space<vmem>>, vector<1x16x128xf32>
    %375 = vector.shape_cast %374 : vector<1x16x128xf32> to vector<16x128xf32>
    %c18 = arith.constant 18 : index
    %376 = memref.load %arg1[%c18] : memref<196xf32, #tpu.memory_space<smem>>
    %377 = vector.broadcast %376 : f32 to vector<16x128xf32>
    %378 = arith.mulf %377, %375 : vector<16x128xf32>
    %379 = arith.addf %369, %378 : vector<16x128xf32>
    %c116 = arith.constant 116 : index
    %380 = memref.load %arg1[%c116] : memref<196xf32, #tpu.memory_space<smem>>
    %381 = vector.broadcast %380 : f32 to vector<16x128xf32>
    %382 = arith.mulf %381, %375 : vector<16x128xf32>
    %383 = arith.addf %373, %382 : vector<16x128xf32>
    %c0_149 = arith.constant 0 : index
    %c3_150 = arith.constant 3 : index
    %c0_151 = arith.constant 0 : index
    %384 = vector.load %arg10[%c0_149, %c3_150, %c0_151] : memref<2x24x128xf32, #tpu.memory_space<vmem>>, vector<1x16x128xf32>
    %385 = vector.shape_cast %384 : vector<1x16x128xf32> to vector<16x128xf32>
    %c25 = arith.constant 25 : index
    %386 = memref.load %arg1[%c25] : memref<196xf32, #tpu.memory_space<smem>>
    %387 = vector.broadcast %386 : f32 to vector<16x128xf32>
    %388 = arith.mulf %387, %385 : vector<16x128xf32>
    %389 = arith.addf %379, %388 : vector<16x128xf32>
    %c123 = arith.constant 123 : index
    %390 = memref.load %arg1[%c123] : memref<196xf32, #tpu.memory_space<smem>>
    %391 = vector.broadcast %390 : f32 to vector<16x128xf32>
    %392 = arith.mulf %391, %385 : vector<16x128xf32>
    %393 = arith.addf %383, %392 : vector<16x128xf32>
    %c0_152 = arith.constant 0 : index
    %c4_153 = arith.constant 4 : index
    %c0_154 = arith.constant 0 : index
    %394 = vector.load %arg10[%c0_152, %c4_153, %c0_154] : memref<2x24x128xf32, #tpu.memory_space<vmem>>, vector<1x16x128xf32>
    %395 = vector.shape_cast %394 : vector<1x16x128xf32> to vector<16x128xf32>
    %c32 = arith.constant 32 : index
    %396 = memref.load %arg1[%c32] : memref<196xf32, #tpu.memory_space<smem>>
    %397 = vector.broadcast %396 : f32 to vector<16x128xf32>
    %398 = arith.mulf %397, %395 : vector<16x128xf32>
    %399 = arith.addf %389, %398 : vector<16x128xf32>
    %c130 = arith.constant 130 : index
    %400 = memref.load %arg1[%c130] : memref<196xf32, #tpu.memory_space<smem>>
    %401 = vector.broadcast %400 : f32 to vector<16x128xf32>
    %402 = arith.mulf %401, %395 : vector<16x128xf32>
    %403 = arith.addf %393, %402 : vector<16x128xf32>
    %c0_155 = arith.constant 0 : index
    %c5_156 = arith.constant 5 : index
    %c0_157 = arith.constant 0 : index
    %404 = vector.load %arg10[%c0_155, %c5_156, %c0_157] : memref<2x24x128xf32, #tpu.memory_space<vmem>>, vector<1x16x128xf32>
    %405 = vector.shape_cast %404 : vector<1x16x128xf32> to vector<16x128xf32>
    %c39 = arith.constant 39 : index
    %406 = memref.load %arg1[%c39] : memref<196xf32, #tpu.memory_space<smem>>
    %407 = vector.broadcast %406 : f32 to vector<16x128xf32>
    %408 = arith.mulf %407, %405 : vector<16x128xf32>
    %409 = arith.addf %399, %408 : vector<16x128xf32>
    %c137 = arith.constant 137 : index
    %410 = memref.load %arg1[%c137] : memref<196xf32, #tpu.memory_space<smem>>
    %411 = vector.broadcast %410 : f32 to vector<16x128xf32>
    %412 = arith.mulf %411, %405 : vector<16x128xf32>
    %413 = arith.addf %403, %412 : vector<16x128xf32>
    %c0_158 = arith.constant 0 : index
    %c6_159 = arith.constant 6 : index
    %c0_160 = arith.constant 0 : index
    %414 = vector.load %arg10[%c0_158, %c6_159, %c0_160] : memref<2x24x128xf32, #tpu.memory_space<vmem>>, vector<1x16x128xf32>
    %415 = vector.shape_cast %414 : vector<1x16x128xf32> to vector<16x128xf32>
    %c46 = arith.constant 46 : index
    %416 = memref.load %arg1[%c46] : memref<196xf32, #tpu.memory_space<smem>>
    %417 = vector.broadcast %416 : f32 to vector<16x128xf32>
    %418 = arith.mulf %417, %415 : vector<16x128xf32>
    %419 = arith.addf %409, %418 : vector<16x128xf32>
    %c144 = arith.constant 144 : index
    %420 = memref.load %arg1[%c144] : memref<196xf32, #tpu.memory_space<smem>>
    %421 = vector.broadcast %420 : f32 to vector<16x128xf32>
    %422 = arith.mulf %421, %415 : vector<16x128xf32>
    %423 = arith.addf %413, %422 : vector<16x128xf32>
    %c254_i32 = arith.constant 254 : i32
    %424 = tpu.dynamic_rotate %53 by %c254_i32 dim 1 : vector<22x256xf32>, i32 -> vector<22x256xf32>
    %425 = vector.extract_strided_slice %424 {offsets = [0, 0], sizes = [22, 128], strides = [1, 1]} : vector<22x256xf32> to vector<22x128xf32>
    %c1_161 = arith.constant 1 : index
    %c0_162 = arith.constant 0 : index
    %c0_163 = arith.constant 0 : index
    %426 = vector.load %arg10[%c1_161, %c0_162, %c0_163] : memref<2x24x128xf32, #tpu.memory_space<vmem>>, vector<1x22x128xf32>
    %427 = vector.shape_cast %426 : vector<1x22x128xf32> to vector<22x128xf32>
    %428 = vector.shape_cast %425 : vector<22x128xf32> to vector<1x22x128xf32>
    tpu.vector_store %arg10[%c1_161, %c0_162, %c0_163], %428 {strides = array<i32>} : memref<2x24x128xf32, #tpu.memory_space<vmem>>, vector<1x22x128xf32>,
    %c1_164 = arith.constant 1 : index
    %c0_165 = arith.constant 0 : index
    %c0_166 = arith.constant 0 : index
    %429 = vector.load %arg10[%c1_164, %c0_165, %c0_166] : memref<2x24x128xf32, #tpu.memory_space<vmem>>, vector<1x16x128xf32>
    %430 = vector.shape_cast %429 : vector<1x16x128xf32> to vector<16x128xf32>
    %c5_167 = arith.constant 5 : index
    %431 = memref.load %arg1[%c5_167] : memref<196xf32, #tpu.memory_space<smem>>
    %432 = vector.broadcast %431 : f32 to vector<16x128xf32>
    %433 = arith.mulf %432, %430 : vector<16x128xf32>
    %434 = arith.addf %344, %433 : vector<16x128xf32>
    %c103 = arith.constant 103 : index
    %435 = memref.load %arg1[%c103] : memref<196xf32, #tpu.memory_space<smem>>
    %436 = vector.broadcast %435 : f32 to vector<16x128xf32>
    %437 = arith.mulf %436, %430 : vector<16x128xf32>
    %438 = arith.addf %348, %437 : vector<16x128xf32>
    %c1_168 = arith.constant 1 : index
    %c1_169 = arith.constant 1 : index
    %c0_170 = arith.constant 0 : index
    %439 = vector.load %arg10[%c1_168, %c1_169, %c0_170] : memref<2x24x128xf32, #tpu.memory_space<vmem>>, vector<1x16x128xf32>
    %440 = vector.shape_cast %439 : vector<1x16x128xf32> to vector<16x128xf32>
    %c12 = arith.constant 12 : index
    %441 = memref.load %arg1[%c12] : memref<196xf32, #tpu.memory_space<smem>>
    %442 = vector.broadcast %441 : f32 to vector<16x128xf32>
    %443 = arith.mulf %442, %440 : vector<16x128xf32>
    %444 = arith.addf %434, %443 : vector<16x128xf32>
    %c110 = arith.constant 110 : index
    %445 = memref.load %arg1[%c110] : memref<196xf32, #tpu.memory_space<smem>>
    %446 = vector.broadcast %445 : f32 to vector<16x128xf32>
    %447 = arith.mulf %446, %440 : vector<16x128xf32>
    %448 = arith.addf %438, %447 : vector<16x128xf32>
    %c1_171 = arith.constant 1 : index
    %c2_172 = arith.constant 2 : index
    %c0_173 = arith.constant 0 : index
    %449 = vector.load %arg10[%c1_171, %c2_172, %c0_173] : memref<2x24x128xf32, #tpu.memory_space<vmem>>, vector<1x16x128xf32>
    %450 = vector.shape_cast %449 : vector<1x16x128xf32> to vector<16x128xf32>
    %c19 = arith.constant 19 : index
    %451 = memref.load %arg1[%c19] : memref<196xf32, #tpu.memory_space<smem>>
    %452 = vector.broadcast %451 : f32 to vector<16x128xf32>
    %453 = arith.mulf %452, %450 : vector<16x128xf32>
    %454 = arith.addf %444, %453 : vector<16x128xf32>
    %c117 = arith.constant 117 : index
    %455 = memref.load %arg1[%c117] : memref<196xf32, #tpu.memory_space<smem>>
    %456 = vector.broadcast %455 : f32 to vector<16x128xf32>
    %457 = arith.mulf %456, %450 : vector<16x128xf32>
    %458 = arith.addf %448, %457 : vector<16x128xf32>
    %c1_174 = arith.constant 1 : index
    %c3_175 = arith.constant 3 : index
    %c0_176 = arith.constant 0 : index
    %459 = vector.load %arg10[%c1_174, %c3_175, %c0_176] : memref<2x24x128xf32, #tpu.memory_space<vmem>>, vector<1x16x128xf32>
    %460 = vector.shape_cast %459 : vector<1x16x128xf32> to vector<16x128xf32>
    %c26 = arith.constant 26 : index
    %461 = memref.load %arg1[%c26] : memref<196xf32, #tpu.memory_space<smem>>
    %462 = vector.broadcast %461 : f32 to vector<16x128xf32>
    %463 = arith.mulf %462, %460 : vector<16x128xf32>
    %464 = arith.addf %454, %463 : vector<16x128xf32>
    %c124 = arith.constant 124 : index
    %465 = memref.load %arg1[%c124] : memref<196xf32, #tpu.memory_space<smem>>
    %466 = vector.broadcast %465 : f32 to vector<16x128xf32>
    %467 = arith.mulf %466, %460 : vector<16x128xf32>
    %468 = arith.addf %458, %467 : vector<16x128xf32>
    %c1_177 = arith.constant 1 : index
    %c4_178 = arith.constant 4 : index
    %c0_179 = arith.constant 0 : index
    %469 = vector.load %arg10[%c1_177, %c4_178, %c0_179] : memref<2x24x128xf32, #tpu.memory_space<vmem>>, vector<1x16x128xf32>
    %470 = vector.shape_cast %469 : vector<1x16x128xf32> to vector<16x128xf32>
    %c33 = arith.constant 33 : index
    %471 = memref.load %arg1[%c33] : memref<196xf32, #tpu.memory_space<smem>>
    %472 = vector.broadcast %471 : f32 to vector<16x128xf32>
    %473 = arith.mulf %472, %470 : vector<16x128xf32>
    %474 = arith.addf %464, %473 : vector<16x128xf32>
    %c131 = arith.constant 131 : index
    %475 = memref.load %arg1[%c131] : memref<196xf32, #tpu.memory_space<smem>>
    %476 = vector.broadcast %475 : f32 to vector<16x128xf32>
    %477 = arith.mulf %476, %470 : vector<16x128xf32>
    %478 = arith.addf %468, %477 : vector<16x128xf32>
    %c1_180 = arith.constant 1 : index
    %c5_181 = arith.constant 5 : index
    %c0_182 = arith.constant 0 : index
    %479 = vector.load %arg10[%c1_180, %c5_181, %c0_182] : memref<2x24x128xf32, #tpu.memory_space<vmem>>, vector<1x16x128xf32>
    %480 = vector.shape_cast %479 : vector<1x16x128xf32> to vector<16x128xf32>
    %c40 = arith.constant 40 : index
    %481 = memref.load %arg1[%c40] : memref<196xf32, #tpu.memory_space<smem>>
    %482 = vector.broadcast %481 : f32 to vector<16x128xf32>
    %483 = arith.mulf %482, %480 : vector<16x128xf32>
    %484 = arith.addf %474, %483 : vector<16x128xf32>
    %c138 = arith.constant 138 : index
    %485 = memref.load %arg1[%c138] : memref<196xf32, #tpu.memory_space<smem>>
    %486 = vector.broadcast %485 : f32 to vector<16x128xf32>
    %487 = arith.mulf %486, %480 : vector<16x128xf32>
    %488 = arith.addf %478, %487 : vector<16x128xf32>
    %c1_183 = arith.constant 1 : index
    %c6_184 = arith.constant 6 : index
    %c0_185 = arith.constant 0 : index
    %489 = vector.load %arg10[%c1_183, %c6_184, %c0_185] : memref<2x24x128xf32, #tpu.memory_space<vmem>>, vector<1x16x128xf32>
    %490 = vector.shape_cast %489 : vector<1x16x128xf32> to vector<16x128xf32>
    %c47 = arith.constant 47 : index
    %491 = memref.load %arg1[%c47] : memref<196xf32, #tpu.memory_space<smem>>
    %492 = vector.broadcast %491 : f32 to vector<16x128xf32>
    %493 = arith.mulf %492, %490 : vector<16x128xf32>
    %494 = arith.addf %484, %493 : vector<16x128xf32>
    %c145 = arith.constant 145 : index
    %495 = memref.load %arg1[%c145] : memref<196xf32, #tpu.memory_space<smem>>
    %496 = vector.broadcast %495 : f32 to vector<16x128xf32>
    %497 = arith.mulf %496, %490 : vector<16x128xf32>
    %498 = arith.addf %488, %497 : vector<16x128xf32>
    %c253_i32 = arith.constant 253 : i32
    %499 = tpu.dynamic_rotate %53 by %c253_i32 dim 1 : vector<22x256xf32>, i32 -> vector<22x256xf32>
    %500 = vector.extract_strided_slice %499 {offsets = [0, 0], sizes = [22, 128], strides = [1, 1]} : vector<22x256xf32> to vector<22x128xf32>
    %c0_186 = arith.constant 0 : index
    %c0_187 = arith.constant 0 : index
    %c0_188 = arith.constant 0 : index
    %501 = vector.load %arg10[%c0_186, %c0_187, %c0_188] : memref<2x24x128xf32, #tpu.memory_space<vmem>>, vector<1x22x128xf32>
    %502 = vector.shape_cast %501 : vector<1x22x128xf32> to vector<22x128xf32>
    %503 = vector.shape_cast %500 : vector<22x128xf32> to vector<1x22x128xf32>
    tpu.vector_store %arg10[%c0_186, %c0_187, %c0_188], %503 {strides = array<i32>} : memref<2x24x128xf32, #tpu.memory_space<vmem>>, vector<1x22x128xf32>,
    %c0_189 = arith.constant 0 : index
    %c0_190 = arith.constant 0 : index
    %c0_191 = arith.constant 0 : index
    %504 = vector.load %arg10[%c0_189, %c0_190, %c0_191] : memref<2x24x128xf32, #tpu.memory_space<vmem>>, vector<1x16x128xf32>
    %505 = vector.shape_cast %504 : vector<1x16x128xf32> to vector<16x128xf32>
    %c6_192 = arith.constant 6 : index
    %506 = memref.load %arg1[%c6_192] : memref<196xf32, #tpu.memory_space<smem>>
    %507 = vector.broadcast %506 : f32 to vector<16x128xf32>
    %508 = arith.mulf %507, %505 : vector<16x128xf32>
    %509 = arith.addf %419, %508 : vector<16x128xf32>
    %c104 = arith.constant 104 : index
    %510 = memref.load %arg1[%c104] : memref<196xf32, #tpu.memory_space<smem>>
    %511 = vector.broadcast %510 : f32 to vector<16x128xf32>
    %512 = arith.mulf %511, %505 : vector<16x128xf32>
    %513 = arith.addf %423, %512 : vector<16x128xf32>
    %c0_193 = arith.constant 0 : index
    %c1_194 = arith.constant 1 : index
    %c0_195 = arith.constant 0 : index
    %514 = vector.load %arg10[%c0_193, %c1_194, %c0_195] : memref<2x24x128xf32, #tpu.memory_space<vmem>>, vector<1x16x128xf32>
    %515 = vector.shape_cast %514 : vector<1x16x128xf32> to vector<16x128xf32>
    %c13 = arith.constant 13 : index
    %516 = memref.load %arg1[%c13] : memref<196xf32, #tpu.memory_space<smem>>
    %517 = vector.broadcast %516 : f32 to vector<16x128xf32>
    %518 = arith.mulf %517, %515 : vector<16x128xf32>
    %519 = arith.addf %509, %518 : vector<16x128xf32>
    %c111 = arith.constant 111 : index
    %520 = memref.load %arg1[%c111] : memref<196xf32, #tpu.memory_space<smem>>
    %521 = vector.broadcast %520 : f32 to vector<16x128xf32>
    %522 = arith.mulf %521, %515 : vector<16x128xf32>
    %523 = arith.addf %513, %522 : vector<16x128xf32>
    %c0_196 = arith.constant 0 : index
    %c2_197 = arith.constant 2 : index
    %c0_198 = arith.constant 0 : index
    %524 = vector.load %arg10[%c0_196, %c2_197, %c0_198] : memref<2x24x128xf32, #tpu.memory_space<vmem>>, vector<1x16x128xf32>
    %525 = vector.shape_cast %524 : vector<1x16x128xf32> to vector<16x128xf32>
    %c20 = arith.constant 20 : index
    %526 = memref.load %arg1[%c20] : memref<196xf32, #tpu.memory_space<smem>>
    %527 = vector.broadcast %526 : f32 to vector<16x128xf32>
    %528 = arith.mulf %527, %525 : vector<16x128xf32>
    %529 = arith.addf %519, %528 : vector<16x128xf32>
    %c118 = arith.constant 118 : index
    %530 = memref.load %arg1[%c118] : memref<196xf32, #tpu.memory_space<smem>>
    %531 = vector.broadcast %530 : f32 to vector<16x128xf32>
    %532 = arith.mulf %531, %525 : vector<16x128xf32>
    %533 = arith.addf %523, %532 : vector<16x128xf32>
    %c0_199 = arith.constant 0 : index
    %c3_200 = arith.constant 3 : index
    %c0_201 = arith.constant 0 : index
    %534 = vector.load %arg10[%c0_199, %c3_200, %c0_201] : memref<2x24x128xf32, #tpu.memory_space<vmem>>, vector<1x16x128xf32>
    %535 = vector.shape_cast %534 : vector<1x16x128xf32> to vector<16x128xf32>
    %c27 = arith.constant 27 : index
    %536 = memref.load %arg1[%c27] : memref<196xf32, #tpu.memory_space<smem>>
    %537 = vector.broadcast %536 : f32 to vector<16x128xf32>
    %538 = arith.mulf %537, %535 : vector<16x128xf32>
    %539 = arith.addf %529, %538 : vector<16x128xf32>
    %c125 = arith.constant 125 : index
    %540 = memref.load %arg1[%c125] : memref<196xf32, #tpu.memory_space<smem>>
    %541 = vector.broadcast %540 : f32 to vector<16x128xf32>
    %542 = arith.mulf %541, %535 : vector<16x128xf32>
    %543 = arith.addf %533, %542 : vector<16x128xf32>
    %c0_202 = arith.constant 0 : index
    %c4_203 = arith.constant 4 : index
    %c0_204 = arith.constant 0 : index
    %544 = vector.load %arg10[%c0_202, %c4_203, %c0_204] : memref<2x24x128xf32, #tpu.memory_space<vmem>>, vector<1x16x128xf32>
    %545 = vector.shape_cast %544 : vector<1x16x128xf32> to vector<16x128xf32>
    %c34 = arith.constant 34 : index
    %546 = memref.load %arg1[%c34] : memref<196xf32, #tpu.memory_space<smem>>
    %547 = vector.broadcast %546 : f32 to vector<16x128xf32>
    %548 = arith.mulf %547, %545 : vector<16x128xf32>
    %549 = arith.addf %539, %548 : vector<16x128xf32>
    %c132 = arith.constant 132 : index
    %550 = memref.load %arg1[%c132] : memref<196xf32, #tpu.memory_space<smem>>
    %551 = vector.broadcast %550 : f32 to vector<16x128xf32>
    %552 = arith.mulf %551, %545 : vector<16x128xf32>
    %553 = arith.addf %543, %552 : vector<16x128xf32>
    %c0_205 = arith.constant 0 : index
    %c5_206 = arith.constant 5 : index
    %c0_207 = arith.constant 0 : index
    %554 = vector.load %arg10[%c0_205, %c5_206, %c0_207] : memref<2x24x128xf32, #tpu.memory_space<vmem>>, vector<1x16x128xf32>
    %555 = vector.shape_cast %554 : vector<1x16x128xf32> to vector<16x128xf32>
    %c41 = arith.constant 41 : index
    %556 = memref.load %arg1[%c41] : memref<196xf32, #tpu.memory_space<smem>>
    %557 = vector.broadcast %556 : f32 to vector<16x128xf32>
    %558 = arith.mulf %557, %555 : vector<16x128xf32>
    %559 = arith.addf %549, %558 : vector<16x128xf32>
    %c139 = arith.constant 139 : index
    %560 = memref.load %arg1[%c139] : memref<196xf32, #tpu.memory_space<smem>>
    %561 = vector.broadcast %560 : f32 to vector<16x128xf32>
    %562 = arith.mulf %561, %555 : vector<16x128xf32>
    %563 = arith.addf %553, %562 : vector<16x128xf32>
    %c0_208 = arith.constant 0 : index
    %c6_209 = arith.constant 6 : index
    %c0_210 = arith.constant 0 : index
    %564 = vector.load %arg10[%c0_208, %c6_209, %c0_210] : memref<2x24x128xf32, #tpu.memory_space<vmem>>, vector<1x16x128xf32>
    %565 = vector.shape_cast %564 : vector<1x16x128xf32> to vector<16x128xf32>
    %c48 = arith.constant 48 : index
    %566 = memref.load %arg1[%c48] : memref<196xf32, #tpu.memory_space<smem>>
    %567 = vector.broadcast %566 : f32 to vector<16x128xf32>
    %568 = arith.mulf %567, %565 : vector<16x128xf32>
    %569 = arith.addf %559, %568 : vector<16x128xf32>
    %c146 = arith.constant 146 : index
    %570 = memref.load %arg1[%c146] : memref<196xf32, #tpu.memory_space<smem>>
    %571 = vector.broadcast %570 : f32 to vector<16x128xf32>
    %572 = arith.mulf %571, %565 : vector<16x128xf32>
    %573 = arith.addf %563, %572 : vector<16x128xf32>
    %c1_211 = arith.constant 1 : index
    %c5_212 = arith.constant 5 : index
    %c0_213 = arith.constant 0 : index
    %574 = vector.load %arg9[%c1_211, %c5_212, %c0_213] : memref<2x32x256xf32, #tpu.memory_space<vmem>>, vector<1x22x256xf32>
    %575 = vector.shape_cast %574 : vector<1x22x256xf32> to vector<22x256xf32>
    %c3_i32_214 = arith.constant 3 : i32
    %576 = tpu.dynamic_rotate %575 by %c3_i32_214 dim 1 : vector<22x256xf32>, i32 -> vector<22x256xf32>
    %577 = vector.extract_strided_slice %576 {offsets = [0, 0], sizes = [22, 128], strides = [1, 1]} : vector<22x256xf32> to vector<22x128xf32>
    %c0_215 = arith.constant 0 : index
    %c0_216 = arith.constant 0 : index
    %c0_217 = arith.constant 0 : index
    %578 = vector.load %arg10[%c0_215, %c0_216, %c0_217] : memref<2x24x128xf32, #tpu.memory_space<vmem>>, vector<1x22x128xf32>
    %579 = vector.shape_cast %578 : vector<1x22x128xf32> to vector<22x128xf32>
    %580 = vector.shape_cast %577 : vector<22x128xf32> to vector<1x22x128xf32>
    tpu.vector_store %arg10[%c0_215, %c0_216, %c0_217], %580 {strides = array<i32>} : memref<2x24x128xf32, #tpu.memory_space<vmem>>, vector<1x22x128xf32>,
    %c0_218 = arith.constant 0 : index
    %c0_219 = arith.constant 0 : index
    %c0_220 = arith.constant 0 : index
    %581 = vector.load %arg10[%c0_218, %c0_219, %c0_220] : memref<2x24x128xf32, #tpu.memory_space<vmem>>, vector<1x16x128xf32>
    %582 = vector.shape_cast %581 : vector<1x16x128xf32> to vector<16x128xf32>
    %c49 = arith.constant 49 : index
    %583 = memref.load %arg1[%c49] : memref<196xf32, #tpu.memory_space<smem>>
    %584 = vector.broadcast %583 : f32 to vector<16x128xf32>
    %585 = arith.mulf %584, %582 : vector<16x128xf32>
    %586 = arith.addf %569, %585 : vector<16x128xf32>
    %c147 = arith.constant 147 : index
    %587 = memref.load %arg1[%c147] : memref<196xf32, #tpu.memory_space<smem>>
    %588 = vector.broadcast %587 : f32 to vector<16x128xf32>
    %589 = arith.mulf %588, %582 : vector<16x128xf32>
    %590 = arith.addf %573, %589 : vector<16x128xf32>
    %c0_221 = arith.constant 0 : index
    %c1_222 = arith.constant 1 : index
    %c0_223 = arith.constant 0 : index
    %591 = vector.load %arg10[%c0_221, %c1_222, %c0_223] : memref<2x24x128xf32, #tpu.memory_space<vmem>>, vector<1x16x128xf32>
    %592 = vector.shape_cast %591 : vector<1x16x128xf32> to vector<16x128xf32>
    %c56 = arith.constant 56 : index
    %593 = memref.load %arg1[%c56] : memref<196xf32, #tpu.memory_space<smem>>
    %594 = vector.broadcast %593 : f32 to vector<16x128xf32>
    %595 = arith.mulf %594, %592 : vector<16x128xf32>
    %596 = arith.addf %586, %595 : vector<16x128xf32>
    %c154 = arith.constant 154 : index
    %597 = memref.load %arg1[%c154] : memref<196xf32, #tpu.memory_space<smem>>
    %598 = vector.broadcast %597 : f32 to vector<16x128xf32>
    %599 = arith.mulf %598, %592 : vector<16x128xf32>
    %600 = arith.addf %590, %599 : vector<16x128xf32>
    %c0_224 = arith.constant 0 : index
    %c2_225 = arith.constant 2 : index
    %c0_226 = arith.constant 0 : index
    %601 = vector.load %arg10[%c0_224, %c2_225, %c0_226] : memref<2x24x128xf32, #tpu.memory_space<vmem>>, vector<1x16x128xf32>
    %602 = vector.shape_cast %601 : vector<1x16x128xf32> to vector<16x128xf32>
    %c63 = arith.constant 63 : index
    %603 = memref.load %arg1[%c63] : memref<196xf32, #tpu.memory_space<smem>>
    %604 = vector.broadcast %603 : f32 to vector<16x128xf32>
    %605 = arith.mulf %604, %602 : vector<16x128xf32>
    %606 = arith.addf %596, %605 : vector<16x128xf32>
    %c161 = arith.constant 161 : index
    %607 = memref.load %arg1[%c161] : memref<196xf32, #tpu.memory_space<smem>>
    %608 = vector.broadcast %607 : f32 to vector<16x128xf32>
    %609 = arith.mulf %608, %602 : vector<16x128xf32>
    %610 = arith.addf %600, %609 : vector<16x128xf32>
    %c0_227 = arith.constant 0 : index
    %c3_228 = arith.constant 3 : index
    %c0_229 = arith.constant 0 : index
    %611 = vector.load %arg10[%c0_227, %c3_228, %c0_229] : memref<2x24x128xf32, #tpu.memory_space<vmem>>, vector<1x16x128xf32>
    %612 = vector.shape_cast %611 : vector<1x16x128xf32> to vector<16x128xf32>
    %c70 = arith.constant 70 : index
    %613 = memref.load %arg1[%c70] : memref<196xf32, #tpu.memory_space<smem>>
    %614 = vector.broadcast %613 : f32 to vector<16x128xf32>
    %615 = arith.mulf %614, %612 : vector<16x128xf32>
    %616 = arith.addf %606, %615 : vector<16x128xf32>
    %c168 = arith.constant 168 : index
    %617 = memref.load %arg1[%c168] : memref<196xf32, #tpu.memory_space<smem>>
    %618 = vector.broadcast %617 : f32 to vector<16x128xf32>
    %619 = arith.mulf %618, %612 : vector<16x128xf32>
    %620 = arith.addf %610, %619 : vector<16x128xf32>
    %c0_230 = arith.constant 0 : index
    %c4_231 = arith.constant 4 : index
    %c0_232 = arith.constant 0 : index
    %621 = vector.load %arg10[%c0_230, %c4_231, %c0_232] : memref<2x24x128xf32, #tpu.memory_space<vmem>>, vector<1x16x128xf32>
    %622 = vector.shape_cast %621 : vector<1x16x128xf32> to vector<16x128xf32>
    %c77 = arith.constant 77 : index
    %623 = memref.load %arg1[%c77] : memref<196xf32, #tpu.memory_space<smem>>
    %624 = vector.broadcast %623 : f32 to vector<16x128xf32>
    %625 = arith.mulf %624, %622 : vector<16x128xf32>
    %626 = arith.addf %616, %625 : vector<16x128xf32>
    %c175 = arith.constant 175 : index
    %627 = memref.load %arg1[%c175] : memref<196xf32, #tpu.memory_space<smem>>
    %628 = vector.broadcast %627 : f32 to vector<16x128xf32>
    %629 = arith.mulf %628, %622 : vector<16x128xf32>
    %630 = arith.addf %620, %629 : vector<16x128xf32>
    %c0_233 = arith.constant 0 : index
    %c5_234 = arith.constant 5 : index
    %c0_235 = arith.constant 0 : index
    %631 = vector.load %arg10[%c0_233, %c5_234, %c0_235] : memref<2x24x128xf32, #tpu.memory_space<vmem>>, vector<1x16x128xf32>
    %632 = vector.shape_cast %631 : vector<1x16x128xf32> to vector<16x128xf32>
    %c84 = arith.constant 84 : index
    %633 = memref.load %arg1[%c84] : memref<196xf32, #tpu.memory_space<smem>>
    %634 = vector.broadcast %633 : f32 to vector<16x128xf32>
    %635 = arith.mulf %634, %632 : vector<16x128xf32>
    %636 = arith.addf %626, %635 : vector<16x128xf32>
    %c182 = arith.constant 182 : index
    %637 = memref.load %arg1[%c182] : memref<196xf32, #tpu.memory_space<smem>>
    %638 = vector.broadcast %637 : f32 to vector<16x128xf32>
    %639 = arith.mulf %638, %632 : vector<16x128xf32>
    %640 = arith.addf %630, %639 : vector<16x128xf32>
    %c0_236 = arith.constant 0 : index
    %c6_237 = arith.constant 6 : index
    %c0_238 = arith.constant 0 : index
    %641 = vector.load %arg10[%c0_236, %c6_237, %c0_238] : memref<2x24x128xf32, #tpu.memory_space<vmem>>, vector<1x16x128xf32>
    %642 = vector.shape_cast %641 : vector<1x16x128xf32> to vector<16x128xf32>
    %c91 = arith.constant 91 : index
    %643 = memref.load %arg1[%c91] : memref<196xf32, #tpu.memory_space<smem>>
    %644 = vector.broadcast %643 : f32 to vector<16x128xf32>
    %645 = arith.mulf %644, %642 : vector<16x128xf32>
    %646 = arith.addf %636, %645 : vector<16x128xf32>
    %c189 = arith.constant 189 : index
    %647 = memref.load %arg1[%c189] : memref<196xf32, #tpu.memory_space<smem>>
    %648 = vector.broadcast %647 : f32 to vector<16x128xf32>
    %649 = arith.mulf %648, %642 : vector<16x128xf32>
    %650 = arith.addf %640, %649 : vector<16x128xf32>
    %c2_i32_239 = arith.constant 2 : i32
    %651 = tpu.dynamic_rotate %575 by %c2_i32_239 dim 1 : vector<22x256xf32>, i32 -> vector<22x256xf32>
    %652 = vector.extract_strided_slice %651 {offsets = [0, 0], sizes = [22, 128], strides = [1, 1]} : vector<22x256xf32> to vector<22x128xf32>
    %c1_240 = arith.constant 1 : index
    %c0_241 = arith.constant 0 : index
    %c0_242 = arith.constant 0 : index
    %653 = vector.load %arg10[%c1_240, %c0_241, %c0_242] : memref<2x24x128xf32, #tpu.memory_space<vmem>>, vector<1x22x128xf32>
    %654 = vector.shape_cast %653 : vector<1x22x128xf32> to vector<22x128xf32>
    %655 = vector.shape_cast %652 : vector<22x128xf32> to vector<1x22x128xf32>
    tpu.vector_store %arg10[%c1_240, %c0_241, %c0_242], %655 {strides = array<i32>} : memref<2x24x128xf32, #tpu.memory_space<vmem>>, vector<1x22x128xf32>,
    %c1_243 = arith.constant 1 : index
    %c0_244 = arith.constant 0 : index
    %c0_245 = arith.constant 0 : index
    %656 = vector.load %arg10[%c1_243, %c0_244, %c0_245] : memref<2x24x128xf32, #tpu.memory_space<vmem>>, vector<1x16x128xf32>
    %657 = vector.shape_cast %656 : vector<1x16x128xf32> to vector<16x128xf32>
    %c50 = arith.constant 50 : index
    %658 = memref.load %arg1[%c50] : memref<196xf32, #tpu.memory_space<smem>>
    %659 = vector.broadcast %658 : f32 to vector<16x128xf32>
    %660 = arith.mulf %659, %657 : vector<16x128xf32>
    %661 = arith.addf %494, %660 : vector<16x128xf32>
    %c148 = arith.constant 148 : index
    %662 = memref.load %arg1[%c148] : memref<196xf32, #tpu.memory_space<smem>>
    %663 = vector.broadcast %662 : f32 to vector<16x128xf32>
    %664 = arith.mulf %663, %657 : vector<16x128xf32>
    %665 = arith.addf %498, %664 : vector<16x128xf32>
    %c1_246 = arith.constant 1 : index
    %c1_247 = arith.constant 1 : index
    %c0_248 = arith.constant 0 : index
    %666 = vector.load %arg10[%c1_246, %c1_247, %c0_248] : memref<2x24x128xf32, #tpu.memory_space<vmem>>, vector<1x16x128xf32>
    %667 = vector.shape_cast %666 : vector<1x16x128xf32> to vector<16x128xf32>
    %c57 = arith.constant 57 : index
    %668 = memref.load %arg1[%c57] : memref<196xf32, #tpu.memory_space<smem>>
    %669 = vector.broadcast %668 : f32 to vector<16x128xf32>
    %670 = arith.mulf %669, %667 : vector<16x128xf32>
    %671 = arith.addf %661, %670 : vector<16x128xf32>
    %c155 = arith.constant 155 : index
    %672 = memref.load %arg1[%c155] : memref<196xf32, #tpu.memory_space<smem>>
    %673 = vector.broadcast %672 : f32 to vector<16x128xf32>
    %674 = arith.mulf %673, %667 : vector<16x128xf32>
    %675 = arith.addf %665, %674 : vector<16x128xf32>
    %c1_249 = arith.constant 1 : index
    %c2_250 = arith.constant 2 : index
    %c0_251 = arith.constant 0 : index
    %676 = vector.load %arg10[%c1_249, %c2_250, %c0_251] : memref<2x24x128xf32, #tpu.memory_space<vmem>>, vector<1x16x128xf32>
    %677 = vector.shape_cast %676 : vector<1x16x128xf32> to vector<16x128xf32>
    %c64 = arith.constant 64 : index
    %678 = memref.load %arg1[%c64] : memref<196xf32, #tpu.memory_space<smem>>
    %679 = vector.broadcast %678 : f32 to vector<16x128xf32>
    %680 = arith.mulf %679, %677 : vector<16x128xf32>
    %681 = arith.addf %671, %680 : vector<16x128xf32>
    %c162 = arith.constant 162 : index
    %682 = memref.load %arg1[%c162] : memref<196xf32, #tpu.memory_space<smem>>
    %683 = vector.broadcast %682 : f32 to vector<16x128xf32>
    %684 = arith.mulf %683, %677 : vector<16x128xf32>
    %685 = arith.addf %675, %684 : vector<16x128xf32>
    %c1_252 = arith.constant 1 : index
    %c3_253 = arith.constant 3 : index
    %c0_254 = arith.constant 0 : index
    %686 = vector.load %arg10[%c1_252, %c3_253, %c0_254] : memref<2x24x128xf32, #tpu.memory_space<vmem>>, vector<1x16x128xf32>
    %687 = vector.shape_cast %686 : vector<1x16x128xf32> to vector<16x128xf32>
    %c71 = arith.constant 71 : index
    %688 = memref.load %arg1[%c71] : memref<196xf32, #tpu.memory_space<smem>>
    %689 = vector.broadcast %688 : f32 to vector<16x128xf32>
    %690 = arith.mulf %689, %687 : vector<16x128xf32>
    %691 = arith.addf %681, %690 : vector<16x128xf32>
    %c169 = arith.constant 169 : index
    %692 = memref.load %arg1[%c169] : memref<196xf32, #tpu.memory_space<smem>>
    %693 = vector.broadcast %692 : f32 to vector<16x128xf32>
    %694 = arith.mulf %693, %687 : vector<16x128xf32>
    %695 = arith.addf %685, %694 : vector<16x128xf32>
    %c1_255 = arith.constant 1 : index
    %c4_256 = arith.constant 4 : index
    %c0_257 = arith.constant 0 : index
    %696 = vector.load %arg10[%c1_255, %c4_256, %c0_257] : memref<2x24x128xf32, #tpu.memory_space<vmem>>, vector<1x16x128xf32>
    %697 = vector.shape_cast %696 : vector<1x16x128xf32> to vector<16x128xf32>
    %c78 = arith.constant 78 : index
    %698 = memref.load %arg1[%c78] : memref<196xf32, #tpu.memory_space<smem>>
    %699 = vector.broadcast %698 : f32 to vector<16x128xf32>
    %700 = arith.mulf %699, %697 : vector<16x128xf32>
    %701 = arith.addf %691, %700 : vector<16x128xf32>
    %c176 = arith.constant 176 : index
    %702 = memref.load %arg1[%c176] : memref<196xf32, #tpu.memory_space<smem>>
    %703 = vector.broadcast %702 : f32 to vector<16x128xf32>
    %704 = arith.mulf %703, %697 : vector<16x128xf32>
    %705 = arith.addf %695, %704 : vector<16x128xf32>
    %c1_258 = arith.constant 1 : index
    %c5_259 = arith.constant 5 : index
    %c0_260 = arith.constant 0 : index
    %706 = vector.load %arg10[%c1_258, %c5_259, %c0_260] : memref<2x24x128xf32, #tpu.memory_space<vmem>>, vector<1x16x128xf32>
    %707 = vector.shape_cast %706 : vector<1x16x128xf32> to vector<16x128xf32>
    %c85 = arith.constant 85 : index
    %708 = memref.load %arg1[%c85] : memref<196xf32, #tpu.memory_space<smem>>
    %709 = vector.broadcast %708 : f32 to vector<16x128xf32>
    %710 = arith.mulf %709, %707 : vector<16x128xf32>
    %711 = arith.addf %701, %710 : vector<16x128xf32>
    %c183 = arith.constant 183 : index
    %712 = memref.load %arg1[%c183] : memref<196xf32, #tpu.memory_space<smem>>
    %713 = vector.broadcast %712 : f32 to vector<16x128xf32>
    %714 = arith.mulf %713, %707 : vector<16x128xf32>
    %715 = arith.addf %705, %714 : vector<16x128xf32>
    %c1_261 = arith.constant 1 : index
    %c6_262 = arith.constant 6 : index
    %c0_263 = arith.constant 0 : index
    %716 = vector.load %arg10[%c1_261, %c6_262, %c0_263] : memref<2x24x128xf32, #tpu.memory_space<vmem>>, vector<1x16x128xf32>
    %717 = vector.shape_cast %716 : vector<1x16x128xf32> to vector<16x128xf32>
    %c92 = arith.constant 92 : index
    %718 = memref.load %arg1[%c92] : memref<196xf32, #tpu.memory_space<smem>>
    %719 = vector.broadcast %718 : f32 to vector<16x128xf32>
    %720 = arith.mulf %719, %717 : vector<16x128xf32>
    %721 = arith.addf %711, %720 : vector<16x128xf32>
    %c190 = arith.constant 190 : index
    %722 = memref.load %arg1[%c190] : memref<196xf32, #tpu.memory_space<smem>>
    %723 = vector.broadcast %722 : f32 to vector<16x128xf32>
    %724 = arith.mulf %723, %717 : vector<16x128xf32>
    %725 = arith.addf %715, %724 : vector<16x128xf32>
    %c1_i32_264 = arith.constant 1 : i32
    %726 = tpu.dynamic_rotate %575 by %c1_i32_264 dim 1 : vector<22x256xf32>, i32 -> vector<22x256xf32>
    %727 = vector.extract_strided_slice %726 {offsets = [0, 0], sizes = [22, 128], strides = [1, 1]} : vector<22x256xf32> to vector<22x128xf32>
    %c0_265 = arith.constant 0 : index
    %c0_266 = arith.constant 0 : index
    %c0_267 = arith.constant 0 : index
    %728 = vector.load %arg10[%c0_265, %c0_266, %c0_267] : memref<2x24x128xf32, #tpu.memory_space<vmem>>, vector<1x22x128xf32>
    %729 = vector.shape_cast %728 : vector<1x22x128xf32> to vector<22x128xf32>
    %730 = vector.shape_cast %727 : vector<22x128xf32> to vector<1x22x128xf32>
    tpu.vector_store %arg10[%c0_265, %c0_266, %c0_267], %730 {strides = array<i32>} : memref<2x24x128xf32, #tpu.memory_space<vmem>>, vector<1x22x128xf32>,
    %c0_268 = arith.constant 0 : index
    %c0_269 = arith.constant 0 : index
    %c0_270 = arith.constant 0 : index
    %731 = vector.load %arg10[%c0_268, %c0_269, %c0_270] : memref<2x24x128xf32, #tpu.memory_space<vmem>>, vector<1x16x128xf32>
    %732 = vector.shape_cast %731 : vector<1x16x128xf32> to vector<16x128xf32>
    %c51 = arith.constant 51 : index
    %733 = memref.load %arg1[%c51] : memref<196xf32, #tpu.memory_space<smem>>
    %734 = vector.broadcast %733 : f32 to vector<16x128xf32>
    %735 = arith.mulf %734, %732 : vector<16x128xf32>
    %736 = arith.addf %646, %735 : vector<16x128xf32>
    %c149 = arith.constant 149 : index
    %737 = memref.load %arg1[%c149] : memref<196xf32, #tpu.memory_space<smem>>
    %738 = vector.broadcast %737 : f32 to vector<16x128xf32>
    %739 = arith.mulf %738, %732 : vector<16x128xf32>
    %740 = arith.addf %650, %739 : vector<16x128xf32>
    %c0_271 = arith.constant 0 : index
    %c1_272 = arith.constant 1 : index
    %c0_273 = arith.constant 0 : index
    %741 = vector.load %arg10[%c0_271, %c1_272, %c0_273] : memref<2x24x128xf32, #tpu.memory_space<vmem>>, vector<1x16x128xf32>
    %742 = vector.shape_cast %741 : vector<1x16x128xf32> to vector<16x128xf32>
    %c58 = arith.constant 58 : index
    %743 = memref.load %arg1[%c58] : memref<196xf32, #tpu.memory_space<smem>>
    %744 = vector.broadcast %743 : f32 to vector<16x128xf32>
    %745 = arith.mulf %744, %742 : vector<16x128xf32>
    %746 = arith.addf %736, %745 : vector<16x128xf32>
    %c156 = arith.constant 156 : index
    %747 = memref.load %arg1[%c156] : memref<196xf32, #tpu.memory_space<smem>>
    %748 = vector.broadcast %747 : f32 to vector<16x128xf32>
    %749 = arith.mulf %748, %742 : vector<16x128xf32>
    %750 = arith.addf %740, %749 : vector<16x128xf32>
    %c0_274 = arith.constant 0 : index
    %c2_275 = arith.constant 2 : index
    %c0_276 = arith.constant 0 : index
    %751 = vector.load %arg10[%c0_274, %c2_275, %c0_276] : memref<2x24x128xf32, #tpu.memory_space<vmem>>, vector<1x16x128xf32>
    %752 = vector.shape_cast %751 : vector<1x16x128xf32> to vector<16x128xf32>
    %c65 = arith.constant 65 : index
    %753 = memref.load %arg1[%c65] : memref<196xf32, #tpu.memory_space<smem>>
    %754 = vector.broadcast %753 : f32 to vector<16x128xf32>
    %755 = arith.mulf %754, %752 : vector<16x128xf32>
    %756 = arith.addf %746, %755 : vector<16x128xf32>
    %c163 = arith.constant 163 : index
    %757 = memref.load %arg1[%c163] : memref<196xf32, #tpu.memory_space<smem>>
    %758 = vector.broadcast %757 : f32 to vector<16x128xf32>
    %759 = arith.mulf %758, %752 : vector<16x128xf32>
    %760 = arith.addf %750, %759 : vector<16x128xf32>
    %c0_277 = arith.constant 0 : index
    %c3_278 = arith.constant 3 : index
    %c0_279 = arith.constant 0 : index
    %761 = vector.load %arg10[%c0_277, %c3_278, %c0_279] : memref<2x24x128xf32, #tpu.memory_space<vmem>>, vector<1x16x128xf32>
    %762 = vector.shape_cast %761 : vector<1x16x128xf32> to vector<16x128xf32>
    %c72 = arith.constant 72 : index
    %763 = memref.load %arg1[%c72] : memref<196xf32, #tpu.memory_space<smem>>
    %764 = vector.broadcast %763 : f32 to vector<16x128xf32>
    %765 = arith.mulf %764, %762 : vector<16x128xf32>
    %766 = arith.addf %756, %765 : vector<16x128xf32>
    %c170 = arith.constant 170 : index
    %767 = memref.load %arg1[%c170] : memref<196xf32, #tpu.memory_space<smem>>
    %768 = vector.broadcast %767 : f32 to vector<16x128xf32>
    %769 = arith.mulf %768, %762 : vector<16x128xf32>
    %770 = arith.addf %760, %769 : vector<16x128xf32>
    %c0_280 = arith.constant 0 : index
    %c4_281 = arith.constant 4 : index
    %c0_282 = arith.constant 0 : index
    %771 = vector.load %arg10[%c0_280, %c4_281, %c0_282] : memref<2x24x128xf32, #tpu.memory_space<vmem>>, vector<1x16x128xf32>
    %772 = vector.shape_cast %771 : vector<1x16x128xf32> to vector<16x128xf32>
    %c79 = arith.constant 79 : index
    %773 = memref.load %arg1[%c79] : memref<196xf32, #tpu.memory_space<smem>>
    %774 = vector.broadcast %773 : f32 to vector<16x128xf32>
    %775 = arith.mulf %774, %772 : vector<16x128xf32>
    %776 = arith.addf %766, %775 : vector<16x128xf32>
    %c177 = arith.constant 177 : index
    %777 = memref.load %arg1[%c177] : memref<196xf32, #tpu.memory_space<smem>>
    %778 = vector.broadcast %777 : f32 to vector<16x128xf32>
    %779 = arith.mulf %778, %772 : vector<16x128xf32>
    %780 = arith.addf %770, %779 : vector<16x128xf32>
    %c0_283 = arith.constant 0 : index
    %c5_284 = arith.constant 5 : index
    %c0_285 = arith.constant 0 : index
    %781 = vector.load %arg10[%c0_283, %c5_284, %c0_285] : memref<2x24x128xf32, #tpu.memory_space<vmem>>, vector<1x16x128xf32>
    %782 = vector.shape_cast %781 : vector<1x16x128xf32> to vector<16x128xf32>
    %c86 = arith.constant 86 : index
    %783 = memref.load %arg1[%c86] : memref<196xf32, #tpu.memory_space<smem>>
    %784 = vector.broadcast %783 : f32 to vector<16x128xf32>
    %785 = arith.mulf %784, %782 : vector<16x128xf32>
    %786 = arith.addf %776, %785 : vector<16x128xf32>
    %c184 = arith.constant 184 : index
    %787 = memref.load %arg1[%c184] : memref<196xf32, #tpu.memory_space<smem>>
    %788 = vector.broadcast %787 : f32 to vector<16x128xf32>
    %789 = arith.mulf %788, %782 : vector<16x128xf32>
    %790 = arith.addf %780, %789 : vector<16x128xf32>
    %c0_286 = arith.constant 0 : index
    %c6_287 = arith.constant 6 : index
    %c0_288 = arith.constant 0 : index
    %791 = vector.load %arg10[%c0_286, %c6_287, %c0_288] : memref<2x24x128xf32, #tpu.memory_space<vmem>>, vector<1x16x128xf32>
    %792 = vector.shape_cast %791 : vector<1x16x128xf32> to vector<16x128xf32>
    %c93 = arith.constant 93 : index
    %793 = memref.load %arg1[%c93] : memref<196xf32, #tpu.memory_space<smem>>
    %794 = vector.broadcast %793 : f32 to vector<16x128xf32>
    %795 = arith.mulf %794, %792 : vector<16x128xf32>
    %796 = arith.addf %786, %795 : vector<16x128xf32>
    %c191 = arith.constant 191 : index
    %797 = memref.load %arg1[%c191] : memref<196xf32, #tpu.memory_space<smem>>
    %798 = vector.broadcast %797 : f32 to vector<16x128xf32>
    %799 = arith.mulf %798, %792 : vector<16x128xf32>
    %800 = arith.addf %790, %799 : vector<16x128xf32>
    %801 = vector.extract_strided_slice %575 {offsets = [0, 0], sizes = [22, 128], strides = [1, 1]} : vector<22x256xf32> to vector<22x128xf32>
    %c1_289 = arith.constant 1 : index
    %c0_290 = arith.constant 0 : index
    %c0_291 = arith.constant 0 : index
    %802 = vector.load %arg10[%c1_289, %c0_290, %c0_291] : memref<2x24x128xf32, #tpu.memory_space<vmem>>, vector<1x22x128xf32>
    %803 = vector.shape_cast %802 : vector<1x22x128xf32> to vector<22x128xf32>
    %804 = vector.shape_cast %801 : vector<22x128xf32> to vector<1x22x128xf32>
    tpu.vector_store %arg10[%c1_289, %c0_290, %c0_291], %804 {strides = array<i32>} : memref<2x24x128xf32, #tpu.memory_space<vmem>>, vector<1x22x128xf32>,
    %c1_292 = arith.constant 1 : index
    %c0_293 = arith.constant 0 : index
    %c0_294 = arith.constant 0 : index
    %805 = vector.load %arg10[%c1_292, %c0_293, %c0_294] : memref<2x24x128xf32, #tpu.memory_space<vmem>>, vector<1x16x128xf32>
    %806 = vector.shape_cast %805 : vector<1x16x128xf32> to vector<16x128xf32>
    %c52 = arith.constant 52 : index
    %807 = memref.load %arg1[%c52] : memref<196xf32, #tpu.memory_space<smem>>
    %808 = vector.broadcast %807 : f32 to vector<16x128xf32>
    %809 = arith.mulf %808, %806 : vector<16x128xf32>
    %810 = arith.addf %721, %809 : vector<16x128xf32>
    %c150 = arith.constant 150 : index
    %811 = memref.load %arg1[%c150] : memref<196xf32, #tpu.memory_space<smem>>
    %812 = vector.broadcast %811 : f32 to vector<16x128xf32>
    %813 = arith.mulf %812, %806 : vector<16x128xf32>
    %814 = arith.addf %725, %813 : vector<16x128xf32>
    %c1_295 = arith.constant 1 : index
    %c1_296 = arith.constant 1 : index
    %c0_297 = arith.constant 0 : index
    %815 = vector.load %arg10[%c1_295, %c1_296, %c0_297] : memref<2x24x128xf32, #tpu.memory_space<vmem>>, vector<1x16x128xf32>
    %816 = vector.shape_cast %815 : vector<1x16x128xf32> to vector<16x128xf32>
    %c59 = arith.constant 59 : index
    %817 = memref.load %arg1[%c59] : memref<196xf32, #tpu.memory_space<smem>>
    %818 = vector.broadcast %817 : f32 to vector<16x128xf32>
    %819 = arith.mulf %818, %816 : vector<16x128xf32>
    %820 = arith.addf %810, %819 : vector<16x128xf32>
    %c157 = arith.constant 157 : index
    %821 = memref.load %arg1[%c157] : memref<196xf32, #tpu.memory_space<smem>>
    %822 = vector.broadcast %821 : f32 to vector<16x128xf32>
    %823 = arith.mulf %822, %816 : vector<16x128xf32>
    %824 = arith.addf %814, %823 : vector<16x128xf32>
    %c1_298 = arith.constant 1 : index
    %c2_299 = arith.constant 2 : index
    %c0_300 = arith.constant 0 : index
    %825 = vector.load %arg10[%c1_298, %c2_299, %c0_300] : memref<2x24x128xf32, #tpu.memory_space<vmem>>, vector<1x16x128xf32>
    %826 = vector.shape_cast %825 : vector<1x16x128xf32> to vector<16x128xf32>
    %c66 = arith.constant 66 : index
    %827 = memref.load %arg1[%c66] : memref<196xf32, #tpu.memory_space<smem>>
    %828 = vector.broadcast %827 : f32 to vector<16x128xf32>
    %829 = arith.mulf %828, %826 : vector<16x128xf32>
    %830 = arith.addf %820, %829 : vector<16x128xf32>
    %c164 = arith.constant 164 : index
    %831 = memref.load %arg1[%c164] : memref<196xf32, #tpu.memory_space<smem>>
    %832 = vector.broadcast %831 : f32 to vector<16x128xf32>
    %833 = arith.mulf %832, %826 : vector<16x128xf32>
    %834 = arith.addf %824, %833 : vector<16x128xf32>
    %c1_301 = arith.constant 1 : index
    %c3_302 = arith.constant 3 : index
    %c0_303 = arith.constant 0 : index
    %835 = vector.load %arg10[%c1_301, %c3_302, %c0_303] : memref<2x24x128xf32, #tpu.memory_space<vmem>>, vector<1x16x128xf32>
    %836 = vector.shape_cast %835 : vector<1x16x128xf32> to vector<16x128xf32>
    %c73 = arith.constant 73 : index
    %837 = memref.load %arg1[%c73] : memref<196xf32, #tpu.memory_space<smem>>
    %838 = vector.broadcast %837 : f32 to vector<16x128xf32>
    %839 = arith.mulf %838, %836 : vector<16x128xf32>
    %840 = arith.addf %830, %839 : vector<16x128xf32>
    %c171 = arith.constant 171 : index
    %841 = memref.load %arg1[%c171] : memref<196xf32, #tpu.memory_space<smem>>
    %842 = vector.broadcast %841 : f32 to vector<16x128xf32>
    %843 = arith.mulf %842, %836 : vector<16x128xf32>
    %844 = arith.addf %834, %843 : vector<16x128xf32>
    %c1_304 = arith.constant 1 : index
    %c4_305 = arith.constant 4 : index
    %c0_306 = arith.constant 0 : index
    %845 = vector.load %arg10[%c1_304, %c4_305, %c0_306] : memref<2x24x128xf32, #tpu.memory_space<vmem>>, vector<1x16x128xf32>
    %846 = vector.shape_cast %845 : vector<1x16x128xf32> to vector<16x128xf32>
    %c80 = arith.constant 80 : index
    %847 = memref.load %arg1[%c80] : memref<196xf32, #tpu.memory_space<smem>>
    %848 = vector.broadcast %847 : f32 to vector<16x128xf32>
    %849 = arith.mulf %848, %846 : vector<16x128xf32>
    %850 = arith.addf %840, %849 : vector<16x128xf32>
    %c178 = arith.constant 178 : index
    %851 = memref.load %arg1[%c178] : memref<196xf32, #tpu.memory_space<smem>>
    %852 = vector.broadcast %851 : f32 to vector<16x128xf32>
    %853 = arith.mulf %852, %846 : vector<16x128xf32>
    %854 = arith.addf %844, %853 : vector<16x128xf32>
    %c1_307 = arith.constant 1 : index
    %c5_308 = arith.constant 5 : index
    %c0_309 = arith.constant 0 : index
    %855 = vector.load %arg10[%c1_307, %c5_308, %c0_309] : memref<2x24x128xf32, #tpu.memory_space<vmem>>, vector<1x16x128xf32>
    %856 = vector.shape_cast %855 : vector<1x16x128xf32> to vector<16x128xf32>
    %c87 = arith.constant 87 : index
    %857 = memref.load %arg1[%c87] : memref<196xf32, #tpu.memory_space<smem>>
    %858 = vector.broadcast %857 : f32 to vector<16x128xf32>
    %859 = arith.mulf %858, %856 : vector<16x128xf32>
    %860 = arith.addf %850, %859 : vector<16x128xf32>
    %c185 = arith.constant 185 : index
    %861 = memref.load %arg1[%c185] : memref<196xf32, #tpu.memory_space<smem>>
    %862 = vector.broadcast %861 : f32 to vector<16x128xf32>
    %863 = arith.mulf %862, %856 : vector<16x128xf32>
    %864 = arith.addf %854, %863 : vector<16x128xf32>
    %c1_310 = arith.constant 1 : index
    %c6_311 = arith.constant 6 : index
    %c0_312 = arith.constant 0 : index
    %865 = vector.load %arg10[%c1_310, %c6_311, %c0_312] : memref<2x24x128xf32, #tpu.memory_space<vmem>>, vector<1x16x128xf32>
    %866 = vector.shape_cast %865 : vector<1x16x128xf32> to vector<16x128xf32>
    %c94 = arith.constant 94 : index
    %867 = memref.load %arg1[%c94] : memref<196xf32, #tpu.memory_space<smem>>
    %868 = vector.broadcast %867 : f32 to vector<16x128xf32>
    %869 = arith.mulf %868, %866 : vector<16x128xf32>
    %870 = arith.addf %860, %869 : vector<16x128xf32>
    %c192 = arith.constant 192 : index
    %871 = memref.load %arg1[%c192] : memref<196xf32, #tpu.memory_space<smem>>
    %872 = vector.broadcast %871 : f32 to vector<16x128xf32>
    %873 = arith.mulf %872, %866 : vector<16x128xf32>
    %874 = arith.addf %864, %873 : vector<16x128xf32>
    %c255_i32_313 = arith.constant 255 : i32
    %875 = tpu.dynamic_rotate %575 by %c255_i32_313 dim 1 : vector<22x256xf32>, i32 -> vector<22x256xf32>
    %876 = vector.extract_strided_slice %875 {offsets = [0, 0], sizes = [22, 128], strides = [1, 1]} : vector<22x256xf32> to vector<22x128xf32>
    %c0_314 = arith.constant 0 : index
    %c0_315 = arith.constant 0 : index
    %c0_316 = arith.constant 0 : index
    %877 = vector.load %arg10[%c0_314, %c0_315, %c0_316] : memref<2x24x128xf32, #tpu.memory_space<vmem>>, vector<1x22x128xf32>
    %878 = vector.shape_cast %877 : vector<1x22x128xf32> to vector<22x128xf32>
    %879 = vector.shape_cast %876 : vector<22x128xf32> to vector<1x22x128xf32>
    tpu.vector_store %arg10[%c0_314, %c0_315, %c0_316], %879 {strides = array<i32>} : memref<2x24x128xf32, #tpu.memory_space<vmem>>, vector<1x22x128xf32>,
    %c0_317 = arith.constant 0 : index
    %c0_318 = arith.constant 0 : index
    %c0_319 = arith.constant 0 : index
    %880 = vector.load %arg10[%c0_317, %c0_318, %c0_319] : memref<2x24x128xf32, #tpu.memory_space<vmem>>, vector<1x16x128xf32>
    %881 = vector.shape_cast %880 : vector<1x16x128xf32> to vector<16x128xf32>
    %c53 = arith.constant 53 : index
    %882 = memref.load %arg1[%c53] : memref<196xf32, #tpu.memory_space<smem>>
    %883 = vector.broadcast %882 : f32 to vector<16x128xf32>
    %884 = arith.mulf %883, %881 : vector<16x128xf32>
    %885 = arith.addf %796, %884 : vector<16x128xf32>
    %c151 = arith.constant 151 : index
    %886 = memref.load %arg1[%c151] : memref<196xf32, #tpu.memory_space<smem>>
    %887 = vector.broadcast %886 : f32 to vector<16x128xf32>
    %888 = arith.mulf %887, %881 : vector<16x128xf32>
    %889 = arith.addf %800, %888 : vector<16x128xf32>
    %c0_320 = arith.constant 0 : index
    %c1_321 = arith.constant 1 : index
    %c0_322 = arith.constant 0 : index
    %890 = vector.load %arg10[%c0_320, %c1_321, %c0_322] : memref<2x24x128xf32, #tpu.memory_space<vmem>>, vector<1x16x128xf32>
    %891 = vector.shape_cast %890 : vector<1x16x128xf32> to vector<16x128xf32>
    %c60 = arith.constant 60 : index
    %892 = memref.load %arg1[%c60] : memref<196xf32, #tpu.memory_space<smem>>
    %893 = vector.broadcast %892 : f32 to vector<16x128xf32>
    %894 = arith.mulf %893, %891 : vector<16x128xf32>
    %895 = arith.addf %885, %894 : vector<16x128xf32>
    %c158 = arith.constant 158 : index
    %896 = memref.load %arg1[%c158] : memref<196xf32, #tpu.memory_space<smem>>
    %897 = vector.broadcast %896 : f32 to vector<16x128xf32>
    %898 = arith.mulf %897, %891 : vector<16x128xf32>
    %899 = arith.addf %889, %898 : vector<16x128xf32>
    %c0_323 = arith.constant 0 : index
    %c2_324 = arith.constant 2 : index
    %c0_325 = arith.constant 0 : index
    %900 = vector.load %arg10[%c0_323, %c2_324, %c0_325] : memref<2x24x128xf32, #tpu.memory_space<vmem>>, vector<1x16x128xf32>
    %901 = vector.shape_cast %900 : vector<1x16x128xf32> to vector<16x128xf32>
    %c67 = arith.constant 67 : index
    %902 = memref.load %arg1[%c67] : memref<196xf32, #tpu.memory_space<smem>>
    %903 = vector.broadcast %902 : f32 to vector<16x128xf32>
    %904 = arith.mulf %903, %901 : vector<16x128xf32>
    %905 = arith.addf %895, %904 : vector<16x128xf32>
    %c165 = arith.constant 165 : index
    %906 = memref.load %arg1[%c165] : memref<196xf32, #tpu.memory_space<smem>>
    %907 = vector.broadcast %906 : f32 to vector<16x128xf32>
    %908 = arith.mulf %907, %901 : vector<16x128xf32>
    %909 = arith.addf %899, %908 : vector<16x128xf32>
    %c0_326 = arith.constant 0 : index
    %c3_327 = arith.constant 3 : index
    %c0_328 = arith.constant 0 : index
    %910 = vector.load %arg10[%c0_326, %c3_327, %c0_328] : memref<2x24x128xf32, #tpu.memory_space<vmem>>, vector<1x16x128xf32>
    %911 = vector.shape_cast %910 : vector<1x16x128xf32> to vector<16x128xf32>
    %c74 = arith.constant 74 : index
    %912 = memref.load %arg1[%c74] : memref<196xf32, #tpu.memory_space<smem>>
    %913 = vector.broadcast %912 : f32 to vector<16x128xf32>
    %914 = arith.mulf %913, %911 : vector<16x128xf32>
    %915 = arith.addf %905, %914 : vector<16x128xf32>
    %c172 = arith.constant 172 : index
    %916 = memref.load %arg1[%c172] : memref<196xf32, #tpu.memory_space<smem>>
    %917 = vector.broadcast %916 : f32 to vector<16x128xf32>
    %918 = arith.mulf %917, %911 : vector<16x128xf32>
    %919 = arith.addf %909, %918 : vector<16x128xf32>
    %c0_329 = arith.constant 0 : index
    %c4_330 = arith.constant 4 : index
    %c0_331 = arith.constant 0 : index
    %920 = vector.load %arg10[%c0_329, %c4_330, %c0_331] : memref<2x24x128xf32, #tpu.memory_space<vmem>>, vector<1x16x128xf32>
    %921 = vector.shape_cast %920 : vector<1x16x128xf32> to vector<16x128xf32>
    %c81 = arith.constant 81 : index
    %922 = memref.load %arg1[%c81] : memref<196xf32, #tpu.memory_space<smem>>
    %923 = vector.broadcast %922 : f32 to vector<16x128xf32>
    %924 = arith.mulf %923, %921 : vector<16x128xf32>
    %925 = arith.addf %915, %924 : vector<16x128xf32>
    %c179 = arith.constant 179 : index
    %926 = memref.load %arg1[%c179] : memref<196xf32, #tpu.memory_space<smem>>
    %927 = vector.broadcast %926 : f32 to vector<16x128xf32>
    %928 = arith.mulf %927, %921 : vector<16x128xf32>
    %929 = arith.addf %919, %928 : vector<16x128xf32>
    %c0_332 = arith.constant 0 : index
    %c5_333 = arith.constant 5 : index
    %c0_334 = arith.constant 0 : index
    %930 = vector.load %arg10[%c0_332, %c5_333, %c0_334] : memref<2x24x128xf32, #tpu.memory_space<vmem>>, vector<1x16x128xf32>
    %931 = vector.shape_cast %930 : vector<1x16x128xf32> to vector<16x128xf32>
    %c88 = arith.constant 88 : index
    %932 = memref.load %arg1[%c88] : memref<196xf32, #tpu.memory_space<smem>>
    %933 = vector.broadcast %932 : f32 to vector<16x128xf32>
    %934 = arith.mulf %933, %931 : vector<16x128xf32>
    %935 = arith.addf %925, %934 : vector<16x128xf32>
    %c186 = arith.constant 186 : index
    %936 = memref.load %arg1[%c186] : memref<196xf32, #tpu.memory_space<smem>>
    %937 = vector.broadcast %936 : f32 to vector<16x128xf32>
    %938 = arith.mulf %937, %931 : vector<16x128xf32>
    %939 = arith.addf %929, %938 : vector<16x128xf32>
    %c0_335 = arith.constant 0 : index
    %c6_336 = arith.constant 6 : index
    %c0_337 = arith.constant 0 : index
    %940 = vector.load %arg10[%c0_335, %c6_336, %c0_337] : memref<2x24x128xf32, #tpu.memory_space<vmem>>, vector<1x16x128xf32>
    %941 = vector.shape_cast %940 : vector<1x16x128xf32> to vector<16x128xf32>
    %c95 = arith.constant 95 : index
    %942 = memref.load %arg1[%c95] : memref<196xf32, #tpu.memory_space<smem>>
    %943 = vector.broadcast %942 : f32 to vector<16x128xf32>
    %944 = arith.mulf %943, %941 : vector<16x128xf32>
    %945 = arith.addf %935, %944 : vector<16x128xf32>
    %c193 = arith.constant 193 : index
    %946 = memref.load %arg1[%c193] : memref<196xf32, #tpu.memory_space<smem>>
    %947 = vector.broadcast %946 : f32 to vector<16x128xf32>
    %948 = arith.mulf %947, %941 : vector<16x128xf32>
    %949 = arith.addf %939, %948 : vector<16x128xf32>
    %c254_i32_338 = arith.constant 254 : i32
    %950 = tpu.dynamic_rotate %575 by %c254_i32_338 dim 1 : vector<22x256xf32>, i32 -> vector<22x256xf32>
    %951 = vector.extract_strided_slice %950 {offsets = [0, 0], sizes = [22, 128], strides = [1, 1]} : vector<22x256xf32> to vector<22x128xf32>
    %c1_339 = arith.constant 1 : index
    %c0_340 = arith.constant 0 : index
    %c0_341 = arith.constant 0 : index
    %952 = vector.load %arg10[%c1_339, %c0_340, %c0_341] : memref<2x24x128xf32, #tpu.memory_space<vmem>>, vector<1x22x128xf32>
    %953 = vector.shape_cast %952 : vector<1x22x128xf32> to vector<22x128xf32>
    %954 = vector.shape_cast %951 : vector<22x128xf32> to vector<1x22x128xf32>
    tpu.vector_store %arg10[%c1_339, %c0_340, %c0_341], %954 {strides = array<i32>} : memref<2x24x128xf32, #tpu.memory_space<vmem>>, vector<1x22x128xf32>,
    %c1_342 = arith.constant 1 : index
    %c0_343 = arith.constant 0 : index
    %c0_344 = arith.constant 0 : index
    %955 = vector.load %arg10[%c1_342, %c0_343, %c0_344] : memref<2x24x128xf32, #tpu.memory_space<vmem>>, vector<1x16x128xf32>
    %956 = vector.shape_cast %955 : vector<1x16x128xf32> to vector<16x128xf32>
    %c54 = arith.constant 54 : index
    %957 = memref.load %arg1[%c54] : memref<196xf32, #tpu.memory_space<smem>>
    %958 = vector.broadcast %957 : f32 to vector<16x128xf32>
    %959 = arith.mulf %958, %956 : vector<16x128xf32>
    %960 = arith.addf %870, %959 : vector<16x128xf32>
    %c152 = arith.constant 152 : index
    %961 = memref.load %arg1[%c152] : memref<196xf32, #tpu.memory_space<smem>>
    %962 = vector.broadcast %961 : f32 to vector<16x128xf32>
    %963 = arith.mulf %962, %956 : vector<16x128xf32>
    %964 = arith.addf %874, %963 : vector<16x128xf32>
    %c1_345 = arith.constant 1 : index
    %c1_346 = arith.constant 1 : index
    %c0_347 = arith.constant 0 : index
    %965 = vector.load %arg10[%c1_345, %c1_346, %c0_347] : memref<2x24x128xf32, #tpu.memory_space<vmem>>, vector<1x16x128xf32>
    %966 = vector.shape_cast %965 : vector<1x16x128xf32> to vector<16x128xf32>
    %c61 = arith.constant 61 : index
    %967 = memref.load %arg1[%c61] : memref<196xf32, #tpu.memory_space<smem>>
    %968 = vector.broadcast %967 : f32 to vector<16x128xf32>
    %969 = arith.mulf %968, %966 : vector<16x128xf32>
    %970 = arith.addf %960, %969 : vector<16x128xf32>
    %c159 = arith.constant 159 : index
    %971 = memref.load %arg1[%c159] : memref<196xf32, #tpu.memory_space<smem>>
    %972 = vector.broadcast %971 : f32 to vector<16x128xf32>
    %973 = arith.mulf %972, %966 : vector<16x128xf32>
    %974 = arith.addf %964, %973 : vector<16x128xf32>
    %c1_348 = arith.constant 1 : index
    %c2_349 = arith.constant 2 : index
    %c0_350 = arith.constant 0 : index
    %975 = vector.load %arg10[%c1_348, %c2_349, %c0_350] : memref<2x24x128xf32, #tpu.memory_space<vmem>>, vector<1x16x128xf32>
    %976 = vector.shape_cast %975 : vector<1x16x128xf32> to vector<16x128xf32>
    %c68 = arith.constant 68 : index
    %977 = memref.load %arg1[%c68] : memref<196xf32, #tpu.memory_space<smem>>
    %978 = vector.broadcast %977 : f32 to vector<16x128xf32>
    %979 = arith.mulf %978, %976 : vector<16x128xf32>
    %980 = arith.addf %970, %979 : vector<16x128xf32>
    %c166 = arith.constant 166 : index
    %981 = memref.load %arg1[%c166] : memref<196xf32, #tpu.memory_space<smem>>
    %982 = vector.broadcast %981 : f32 to vector<16x128xf32>
    %983 = arith.mulf %982, %976 : vector<16x128xf32>
    %984 = arith.addf %974, %983 : vector<16x128xf32>
    %c1_351 = arith.constant 1 : index
    %c3_352 = arith.constant 3 : index
    %c0_353 = arith.constant 0 : index
    %985 = vector.load %arg10[%c1_351, %c3_352, %c0_353] : memref<2x24x128xf32, #tpu.memory_space<vmem>>, vector<1x16x128xf32>
    %986 = vector.shape_cast %985 : vector<1x16x128xf32> to vector<16x128xf32>
    %c75 = arith.constant 75 : index
    %987 = memref.load %arg1[%c75] : memref<196xf32, #tpu.memory_space<smem>>
    %988 = vector.broadcast %987 : f32 to vector<16x128xf32>
    %989 = arith.mulf %988, %986 : vector<16x128xf32>
    %990 = arith.addf %980, %989 : vector<16x128xf32>
    %c173 = arith.constant 173 : index
    %991 = memref.load %arg1[%c173] : memref<196xf32, #tpu.memory_space<smem>>
    %992 = vector.broadcast %991 : f32 to vector<16x128xf32>
    %993 = arith.mulf %992, %986 : vector<16x128xf32>
    %994 = arith.addf %984, %993 : vector<16x128xf32>
    %c1_354 = arith.constant 1 : index
    %c4_355 = arith.constant 4 : index
    %c0_356 = arith.constant 0 : index
    %995 = vector.load %arg10[%c1_354, %c4_355, %c0_356] : memref<2x24x128xf32, #tpu.memory_space<vmem>>, vector<1x16x128xf32>
    %996 = vector.shape_cast %995 : vector<1x16x128xf32> to vector<16x128xf32>
    %c82 = arith.constant 82 : index
    %997 = memref.load %arg1[%c82] : memref<196xf32, #tpu.memory_space<smem>>
    %998 = vector.broadcast %997 : f32 to vector<16x128xf32>
    %999 = arith.mulf %998, %996 : vector<16x128xf32>
    %1000 = arith.addf %990, %999 : vector<16x128xf32>
    %c180 = arith.constant 180 : index
    %1001 = memref.load %arg1[%c180] : memref<196xf32, #tpu.memory_space<smem>>
    %1002 = vector.broadcast %1001 : f32 to vector<16x128xf32>
    %1003 = arith.mulf %1002, %996 : vector<16x128xf32>
    %1004 = arith.addf %994, %1003 : vector<16x128xf32>
    %c1_357 = arith.constant 1 : index
    %c5_358 = arith.constant 5 : index
    %c0_359 = arith.constant 0 : index
    %1005 = vector.load %arg10[%c1_357, %c5_358, %c0_359] : memref<2x24x128xf32, #tpu.memory_space<vmem>>, vector<1x16x128xf32>
    %1006 = vector.shape_cast %1005 : vector<1x16x128xf32> to vector<16x128xf32>
    %c89 = arith.constant 89 : index
    %1007 = memref.load %arg1[%c89] : memref<196xf32, #tpu.memory_space<smem>>
    %1008 = vector.broadcast %1007 : f32 to vector<16x128xf32>
    %1009 = arith.mulf %1008, %1006 : vector<16x128xf32>
    %1010 = arith.addf %1000, %1009 : vector<16x128xf32>
    %c187 = arith.constant 187 : index
    %1011 = memref.load %arg1[%c187] : memref<196xf32, #tpu.memory_space<smem>>
    %1012 = vector.broadcast %1011 : f32 to vector<16x128xf32>
    %1013 = arith.mulf %1012, %1006 : vector<16x128xf32>
    %1014 = arith.addf %1004, %1013 : vector<16x128xf32>
    %c1_360 = arith.constant 1 : index
    %c6_361 = arith.constant 6 : index
    %c0_362 = arith.constant 0 : index
    %1015 = vector.load %arg10[%c1_360, %c6_361, %c0_362] : memref<2x24x128xf32, #tpu.memory_space<vmem>>, vector<1x16x128xf32>
    %1016 = vector.shape_cast %1015 : vector<1x16x128xf32> to vector<16x128xf32>
    %c96 = arith.constant 96 : index
    %1017 = memref.load %arg1[%c96] : memref<196xf32, #tpu.memory_space<smem>>
    %1018 = vector.broadcast %1017 : f32 to vector<16x128xf32>
    %1019 = arith.mulf %1018, %1016 : vector<16x128xf32>
    %1020 = arith.addf %1010, %1019 : vector<16x128xf32>
    %c194 = arith.constant 194 : index
    %1021 = memref.load %arg1[%c194] : memref<196xf32, #tpu.memory_space<smem>>
    %1022 = vector.broadcast %1021 : f32 to vector<16x128xf32>
    %1023 = arith.mulf %1022, %1016 : vector<16x128xf32>
    %1024 = arith.addf %1014, %1023 : vector<16x128xf32>
    %c253_i32_363 = arith.constant 253 : i32
    %1025 = tpu.dynamic_rotate %575 by %c253_i32_363 dim 1 : vector<22x256xf32>, i32 -> vector<22x256xf32>
    %1026 = vector.extract_strided_slice %1025 {offsets = [0, 0], sizes = [22, 128], strides = [1, 1]} : vector<22x256xf32> to vector<22x128xf32>
    %c0_364 = arith.constant 0 : index
    %c0_365 = arith.constant 0 : index
    %c0_366 = arith.constant 0 : index
    %1027 = vector.load %arg10[%c0_364, %c0_365, %c0_366] : memref<2x24x128xf32, #tpu.memory_space<vmem>>, vector<1x22x128xf32>
    %1028 = vector.shape_cast %1027 : vector<1x22x128xf32> to vector<22x128xf32>
    %1029 = vector.shape_cast %1026 : vector<22x128xf32> to vector<1x22x128xf32>
    tpu.vector_store %arg10[%c0_364, %c0_365, %c0_366], %1029 {strides = array<i32>} : memref<2x24x128xf32, #tpu.memory_space<vmem>>, vector<1x22x128xf32>,
    %c0_367 = arith.constant 0 : index
    %c0_368 = arith.constant 0 : index
    %c0_369 = arith.constant 0 : index
    %1030 = vector.load %arg10[%c0_367, %c0_368, %c0_369] : memref<2x24x128xf32, #tpu.memory_space<vmem>>, vector<1x16x128xf32>
    %1031 = vector.shape_cast %1030 : vector<1x16x128xf32> to vector<16x128xf32>
    %c55 = arith.constant 55 : index
    %1032 = memref.load %arg1[%c55] : memref<196xf32, #tpu.memory_space<smem>>
    %1033 = vector.broadcast %1032 : f32 to vector<16x128xf32>
    %1034 = arith.mulf %1033, %1031 : vector<16x128xf32>
    %1035 = arith.addf %945, %1034 : vector<16x128xf32>
    %c153 = arith.constant 153 : index
    %1036 = memref.load %arg1[%c153] : memref<196xf32, #tpu.memory_space<smem>>
    %1037 = vector.broadcast %1036 : f32 to vector<16x128xf32>
    %1038 = arith.mulf %1037, %1031 : vector<16x128xf32>
    %1039 = arith.addf %949, %1038 : vector<16x128xf32>
    %c0_370 = arith.constant 0 : index
    %c1_371 = arith.constant 1 : index
    %c0_372 = arith.constant 0 : index
    %1040 = vector.load %arg10[%c0_370, %c1_371, %c0_372] : memref<2x24x128xf32, #tpu.memory_space<vmem>>, vector<1x16x128xf32>
    %1041 = vector.shape_cast %1040 : vector<1x16x128xf32> to vector<16x128xf32>
    %c62 = arith.constant 62 : index
    %1042 = memref.load %arg1[%c62] : memref<196xf32, #tpu.memory_space<smem>>
    %1043 = vector.broadcast %1042 : f32 to vector<16x128xf32>
    %1044 = arith.mulf %1043, %1041 : vector<16x128xf32>
    %1045 = arith.addf %1035, %1044 : vector<16x128xf32>
    %c160 = arith.constant 160 : index
    %1046 = memref.load %arg1[%c160] : memref<196xf32, #tpu.memory_space<smem>>
    %1047 = vector.broadcast %1046 : f32 to vector<16x128xf32>
    %1048 = arith.mulf %1047, %1041 : vector<16x128xf32>
    %1049 = arith.addf %1039, %1048 : vector<16x128xf32>
    %c0_373 = arith.constant 0 : index
    %c2_374 = arith.constant 2 : index
    %c0_375 = arith.constant 0 : index
    %1050 = vector.load %arg10[%c0_373, %c2_374, %c0_375] : memref<2x24x128xf32, #tpu.memory_space<vmem>>, vector<1x16x128xf32>
    %1051 = vector.shape_cast %1050 : vector<1x16x128xf32> to vector<16x128xf32>
    %c69 = arith.constant 69 : index
    %1052 = memref.load %arg1[%c69] : memref<196xf32, #tpu.memory_space<smem>>
    %1053 = vector.broadcast %1052 : f32 to vector<16x128xf32>
    %1054 = arith.mulf %1053, %1051 : vector<16x128xf32>
    %1055 = arith.addf %1045, %1054 : vector<16x128xf32>
    %c167 = arith.constant 167 : index
    %1056 = memref.load %arg1[%c167] : memref<196xf32, #tpu.memory_space<smem>>
    %1057 = vector.broadcast %1056 : f32 to vector<16x128xf32>
    %1058 = arith.mulf %1057, %1051 : vector<16x128xf32>
    %1059 = arith.addf %1049, %1058 : vector<16x128xf32>
    %c0_376 = arith.constant 0 : index
    %c3_377 = arith.constant 3 : index
    %c0_378 = arith.constant 0 : index
    %1060 = vector.load %arg10[%c0_376, %c3_377, %c0_378] : memref<2x24x128xf32, #tpu.memory_space<vmem>>, vector<1x16x128xf32>
    %1061 = vector.shape_cast %1060 : vector<1x16x128xf32> to vector<16x128xf32>
    %c76 = arith.constant 76 : index
    %1062 = memref.load %arg1[%c76] : memref<196xf32, #tpu.memory_space<smem>>
    %1063 = vector.broadcast %1062 : f32 to vector<16x128xf32>
    %1064 = arith.mulf %1063, %1061 : vector<16x128xf32>
    %1065 = arith.addf %1055, %1064 : vector<16x128xf32>
    %c174 = arith.constant 174 : index
    %1066 = memref.load %arg1[%c174] : memref<196xf32, #tpu.memory_space<smem>>
    %1067 = vector.broadcast %1066 : f32 to vector<16x128xf32>
    %1068 = arith.mulf %1067, %1061 : vector<16x128xf32>
    %1069 = arith.addf %1059, %1068 : vector<16x128xf32>
    %c0_379 = arith.constant 0 : index
    %c4_380 = arith.constant 4 : index
    %c0_381 = arith.constant 0 : index
    %1070 = vector.load %arg10[%c0_379, %c4_380, %c0_381] : memref<2x24x128xf32, #tpu.memory_space<vmem>>, vector<1x16x128xf32>
    %1071 = vector.shape_cast %1070 : vector<1x16x128xf32> to vector<16x128xf32>
    %c83 = arith.constant 83 : index
    %1072 = memref.load %arg1[%c83] : memref<196xf32, #tpu.memory_space<smem>>
    %1073 = vector.broadcast %1072 : f32 to vector<16x128xf32>
    %1074 = arith.mulf %1073, %1071 : vector<16x128xf32>
    %1075 = arith.addf %1065, %1074 : vector<16x128xf32>
    %c181 = arith.constant 181 : index
    %1076 = memref.load %arg1[%c181] : memref<196xf32, #tpu.memory_space<smem>>
    %1077 = vector.broadcast %1076 : f32 to vector<16x128xf32>
    %1078 = arith.mulf %1077, %1071 : vector<16x128xf32>
    %1079 = arith.addf %1069, %1078 : vector<16x128xf32>
    %c0_382 = arith.constant 0 : index
    %c5_383 = arith.constant 5 : index
    %c0_384 = arith.constant 0 : index
    %1080 = vector.load %arg10[%c0_382, %c5_383, %c0_384] : memref<2x24x128xf32, #tpu.memory_space<vmem>>, vector<1x16x128xf32>
    %1081 = vector.shape_cast %1080 : vector<1x16x128xf32> to vector<16x128xf32>
    %c90 = arith.constant 90 : index
    %1082 = memref.load %arg1[%c90] : memref<196xf32, #tpu.memory_space<smem>>
    %1083 = vector.broadcast %1082 : f32 to vector<16x128xf32>
    %1084 = arith.mulf %1083, %1081 : vector<16x128xf32>
    %1085 = arith.addf %1075, %1084 : vector<16x128xf32>
    %c188 = arith.constant 188 : index
    %1086 = memref.load %arg1[%c188] : memref<196xf32, #tpu.memory_space<smem>>
    %1087 = vector.broadcast %1086 : f32 to vector<16x128xf32>
    %1088 = arith.mulf %1087, %1081 : vector<16x128xf32>
    %1089 = arith.addf %1079, %1088 : vector<16x128xf32>
    %c0_385 = arith.constant 0 : index
    %c6_386 = arith.constant 6 : index
    %c0_387 = arith.constant 0 : index
    %1090 = vector.load %arg10[%c0_385, %c6_386, %c0_387] : memref<2x24x128xf32, #tpu.memory_space<vmem>>, vector<1x16x128xf32>
    %1091 = vector.shape_cast %1090 : vector<1x16x128xf32> to vector<16x128xf32>
    %c97 = arith.constant 97 : index
    %1092 = memref.load %arg1[%c97] : memref<196xf32, #tpu.memory_space<smem>>
    %1093 = vector.broadcast %1092 : f32 to vector<16x128xf32>
    %1094 = arith.mulf %1093, %1091 : vector<16x128xf32>
    %1095 = arith.addf %1085, %1094 : vector<16x128xf32>
    %c195 = arith.constant 195 : index
    %1096 = memref.load %arg1[%c195] : memref<196xf32, #tpu.memory_space<smem>>
    %1097 = vector.broadcast %1096 : f32 to vector<16x128xf32>
    %1098 = arith.mulf %1097, %1091 : vector<16x128xf32>
    %1099 = arith.addf %1089, %1098 : vector<16x128xf32>
    %1100 = arith.addf %1095, %1020 : vector<16x128xf32>
    %c0_388 = arith.constant 0 : index
    %1101 = memref.load %arg2[%c0_388] : memref<2xf32, #tpu.memory_space<smem>>
    %1102 = vector.broadcast %1101 : f32 to vector<16x128xf32>
    %1103 = arith.addf %1100, %1102 : vector<16x128xf32>
    %1104 = arith.addf %1099, %1024 : vector<16x128xf32>
    %c1_389 = arith.constant 1 : index
    %1105 = memref.load %arg2[%c1_389] : memref<2xf32, #tpu.memory_space<smem>>
    %1106 = vector.broadcast %1105 : f32 to vector<16x128xf32>
    %1107 = arith.addf %1104, %1106 : vector<16x128xf32>
    %1108 = vector.shape_cast %1103 : vector<16x128xf32> to vector<1x16x128xf32>
    %1109 = vector.shape_cast %1107 : vector<16x128xf32> to vector<1x16x128xf32>
    %1110 = tpu.concatenate %1108, %1109 in 0 : vector<1x16x128xf32>, vector<1x16x128xf32> -> vector<2x16x128xf32>
    %1111 = vector.shape_cast %1110 : vector<2x16x128xf32> to vector<2x2048xf32>
    %1112 = arith.negf %1111 : vector<2x2048xf32>
    %1113 = math.exp %1112 : vector<2x2048xf32>
    %cst_390 = arith.constant 1.000000e+00 : f32
    %1114 = vector.broadcast %cst_390 : f32 to vector<2x2048xf32>
    %1115 = arith.addf %1114, %1113 : vector<2x2048xf32>
    %1116 = arith.divf %1114, %1115 : vector<2x2048xf32>
    %1117 = vector.extract_strided_slice %1116 {offsets = [0, 0], sizes = [1, 2048], strides = [1, 1]} : vector<2x2048xf32> to vector<1x2048xf32>
    %1118 = vector.broadcast %1117 : vector<1x2048xf32> to vector<4x2048xf32>
    %1119 = arith.mulf %1, %1118 : vector<4x2048xf32>
    %1120 = vector.extract_strided_slice %1116 {offsets = [1, 0], sizes = [1, 2048], strides = [1, 1]} : vector<2x2048xf32> to vector<1x2048xf32>
    %1121 = vector.broadcast %1120 : vector<1x2048xf32> to vector<4x2048xf32>
    %1122 = arith.mulf %3, %1121 : vector<4x2048xf32>
    %1123 = arith.addf %1119, %1122 : vector<4x2048xf32>
    %c0_391 = arith.constant 0 : index
    %c0_392 = arith.constant 0 : index
    %1124 = vector.load %arg3[%c0_391, %c0_392] : memref<8x4xf32, #tpu.memory_space<vmem>>, vector<8x4xf32>
    %cst_393 = arith.constant dense<0.000000e+00> : vector<8x2048xf32>
    %1125 = tpu.matmul %1124, %1123, %cst_393 {dimension_numbers = #tpu.dot_dimension_numbers<[1], [0], [0], [1], [0, 0, 1, 1], [], []>} : vector<8x4xf32>, vector<4x2048xf32>, vector<8x2048xf32> -> vector<8x2048xf32>
    %c0_394 = arith.constant 0 : index
    %c0_395 = arith.constant 0 : index
    %1126 = vector.load %arg4[%c0_394, %c0_395] : memref<8x1xf32, #tpu.memory_space<vmem>>, vector<8x1xf32>
    %1127 = vector.broadcast %1126 : vector<8x1xf32> to vector<8x2048xf32>
    %1128 = arith.addf %1125, %1127 : vector<8x2048xf32>
    %c0_396 = arith.constant 0 : index
    %c0_397 = arith.constant 0 : index
    %c0_398 = arith.constant 0 : index
    %1129 = vector.load %arg7[%c0_396, %c0_397, %c0_398] : memref<1x8x2048xf32, #tpu.memory_space<vmem>>, vector<1x8x2048xf32>
    %1130 = vector.shape_cast %1129 : vector<1x8x2048xf32> to vector<8x2048xf32>
    %1131 = arith.mulf %1130, %1128 : vector<8x2048xf32>
    %c0_399 = arith.constant 0 : index
    %c0_400 = arith.constant 0 : index
    %c0_401 = arith.constant 0 : index
    %1132 = vector.load %arg8[%c0_399, %c0_400, %c0_401] : memref<1x8x2048xf32, #tpu.memory_space<vmem>>, vector<1x8x2048xf32>
    %1133 = vector.shape_cast %1132 : vector<1x8x2048xf32> to vector<8x2048xf32>
    %1134 = vector.shape_cast %1131 : vector<8x2048xf32> to vector<1x8x2048xf32>
    tpu.vector_store %arg8[%c0_399, %c0_400, %c0_401], %1134 {strides = array<i32>} : memref<1x8x2048xf32, #tpu.memory_space<vmem>>, vector<1x8x2048xf32>,
    return
  }
  func.func @transform_0(%arg0: i32) -> i32 {
    %c0_i32 = arith.constant 0 : i32
    %c0_i32_0 = arith.constant 0 : i32
    return %c0_i32 : i32
  }
  func.func @transform_1(%arg0: i32) -> i32 {
    %c0_i32 = arith.constant 0 : i32
    %c0_i32_0 = arith.constant 0 : i32
    return %c0_i32 : i32
  }
  func.func @transform_2(%arg0: i32) -> (i32, i32) {
    %c0_i32 = arith.constant 0 : i32
    %c0_i32_0 = arith.constant 0 : i32
    %c0_i32_1 = arith.constant 0 : i32
    return %c0_i32, %c0_i32_0 : i32, i32
  }
  func.func @transform_3(%arg0: i32) -> (i32, i32) {
    %c0_i32 = arith.constant 0 : i32
    %c0_i32_0 = arith.constant 0 : i32
    %c0_i32_1 = arith.constant 0 : i32
    return %c0_i32, %c0_i32_0 : i32, i32
  }
  func.func @transform_4(%arg0: i32) -> (i32, i32, i32) {
    %c0_i32 = arith.constant 0 : i32
    %c0_i32_0 = arith.constant 0 : i32
    %c0_i32_1 = arith.constant 0 : i32
    return %arg0, %c0_i32, %c0_i32_0 : i32, i32, i32
  }
  func.func @transform_5(%arg0: i32) -> (i32, i32, i32) {
    %c0_i32 = arith.constant 0 : i32
    %c0_i32_0 = arith.constant 0 : i32
    %c0_i32_1 = arith.constant 0 : i32
    return %arg0, %c0_i32, %c0_i32_0 : i32, i32, i32
  }
  func.func @transform_6(%arg0: i32) -> (i32, i32, i32) {
    %c0_i32 = arith.constant 0 : i32
    %c0_i32_0 = arith.constant 0 : i32
    %c0_i32_1 = arith.constant 0 : i32
    return %arg0, %c0_i32, %c0_i32_0 : i32, i32, i32
  }
  func.func @transform_7(%arg0: i32) -> (i32, i32, i32) {
    %c0_i32 = arith.constant 0 : i32
    %c0_i32_0 = arith.constant 0 : i32
    %c0_i32_1 = arith.constant 0 : i32
    return %arg0, %c0_i32, %c0_i32_0 : i32, i32, i32
  }
}

</mosaic_0001>

<bundles_post_ra>
// kernel: tpu_custom_call.1
= control target key start
LH: loop header
LB: loop body
LE: loop exit
PB: predicated region body
PF: predicated region fallthrough
CT: control target
= control target key end

     0   :  { %s7847_s0 = inlined_call_operand.vmem [shape: f32[196], index: 0, kind: input, shape index: {}]   ;;  %s7848_s1 = inlined_call_operand.vmem [shape: f32[2], index: 1, kind: input, shape index: {}]   ;;  %s7849_s2 = inlined_call_operand.vmem [shape: f32[8,4], index: 2, kind: input, shape index: {}]   ;;  %s7850_s3 = inlined_call_operand.vmem [shape: f32[8,1], index: 3, kind: input, shape index: {}]   ;;  %s7851_s4 = inlined_call_operand.hbm [shape: f32[2,4,2048], index: 4, kind: input, shape index: {}]   ;;  %s7852_s5 = inlined_call_operand.hbm [shape: f32[2,4,2048], index: 5, kind: input, shape index: {}]   ;;  %s7853_s6 = inlined_call_operand.hbm [shape: f32[2,8,2048], index: 6, kind: input, shape index: {}]   ;;  %s7854_s7 = inlined_call_operand.hbm [shape: f32[2,8,2048], index: 7, kind: output, shape index: {}]  }
   0x1   :  { %8131 = sst [smem:[#allocation177_spill]] %s7847_s0 }
   0x2   :  { %8132 = sst [smem:[#allocation178_spill]] %s7848_s1 }
   0x3   :  { %8133 = sst [smem:[#allocation179_spill]] %s7849_s2 }
   0x4   :  { %8134 = sst [smem:[#allocation180_spill]] %s7850_s3 }
   0x5   :  { %8135 = sst [smem:[#allocation181_spill]] %s7851_s4 }
   0x6   :  { %8136 = sst [smem:[#allocation182_spill]] %s7852_s5 }
   0x7   :  { %8137 = sst [smem:[#allocation183_spill]] %s7853_s6 }
   0x8   :  { %8138 = sst [smem:[#allocation184_spill]] %s7854_s7 }
   0x9   :  { %12 = vsyncpa [#allocation7], 0 }
   0xa   :  { %13 = vsyncpa [#allocation9], 0 }
   0xb   :  { %14 = vsyncpa [#allocation5], 0 }
   0xc   :  { %16 = vsyncpa [#allocation5 + $0x1], 0 }
   0xd   :  { %17 = vsyncpa [#allocation12], 0 }
   0xe   :  { %19 = vsyncpa [#allocation12 + $0x1], 0 }
   0xf   :  { %20 = vsyncpa [#allocation6], 0 }
  0x10   :  { %22 = vsyncpa [#allocation6 + $0x1], 0  ;;  %s4811_s24 = smov 0   ;;  %s4813_s25 = smov 0  }
  0x11   :  { %s4815_s26 = smov 0   ;;  %s4817_s27 = smov 0  }
  0x12 LB: > { %8139 = sst [smem:[#allocation20_spill]] %s4741_s24  ;;  %s4832_s28 = sadd.s32 1, %s4753_s27   ;;  %s4753_s27 = sphi %s4817_s27, %s8788_s27   ;;  %s4749_s26 = sphi %s4815_s26, %s8791_s26   ;;  %s4745_s25 = sphi %s4813_s25, %s8790_s25   ;;  %s4741_s24 = sphi %s4811_s24, %s8789_s24  }
  0x13   : > { %8140 = sst [smem:[#allocation21_spill]] %s4745_s25  ;;  %s119_s29 = sadd.s32 1, %s4749_s26 }
  0x14   : > { %8141 = sst [smem:[#allocation22_spill]] %s4749_s26  ;;  %s116_s30 = ssub.s32 %s4753_s27, %s4832_s28 }
  0x15   : > { %8142 = sst [smem:[#allocation23_spill]] %s4753_s27  ;;  %p7855_p0 = scmp.ne.s32.totalorder %s4749_s26, %s4745_s25 }
  0x16   : > { %8143 = sst [smem:[#allocation24_spill]] %s4832_s28  ;;  %p117_p1 = scmp.eq.s32.totalorder %s116_s30, 0 }
  0x17   : > { %p127_p2 = scmp.eq.s32.totalorder %s4753_s27, 0  ;;  %p4346_p4 = scmp.lt.s32.totalorder %s4753_s27, 2 }
  0x18   : > { %s4843_s8 = scalar_select %p117_p1, %s4749_s26, %s119_s29  }
  0x19   : > { %p128_p5 = por %p127_p2, %p7855_p0  ;;  %s4849_s9 = sand.u32 1, %s4749_s26  }
  0x1a   : > { %8144 = sst [smem:[#allocation25_spill]] %s4843_s8  ;;  %s7856_s10 = sshll.u32 %s4849_s9, 6 }
  0x1b   : > { %s4303_s11 = sshll.u32 %s4753_s27, 10  ;;  %p4853_p6 = pnand %p4346_p4, %p128_p5 }
  0x1c   : > { %s281_s13 = sand.u32 1, %s4753_s27   ;;  %s8146_s5 = sld [smem:[#allocation182_spill]] }
  0x1d   : > { %s8145_s12 = scalar_select %p4853_p6, 1, 0 }
  0x1e   : > { %s285_s17 = scalar_lea.vmem [#allocation11], %s7856_s10  ;;  %s4869_s19 = scalar_lea.sflag [#allocation12], %s281_s13 }
  0x1f   : > { %s293_s18 = sshll.u32 %s285_s17, 4  ;;  %p4875_p8 = pneg %p4853_p6  ;;  %s4867_s18 = int_to_ptr.vmem [resolvable:$true] %s293_s18 }
  0x21   : > { %s8147_s21 = scalar_select %p4875_p8, 1, 0 }
  0x22   : > { %s4863_s16 = scalar_lea.hbm %s8146_s5, %s4303_s11  ;;  %s4560_s29 = scalar_lea.hbm %s8146_s5, 2048 }
  0x23   : > { %s4555_s20 = scalar_lea.hbm %s4863_s16, 1024  ;;  %p4561_p11 = scmp.lt.u32.totalorder %s4863_s16, %s8146_s5 }
  0x24   : > { %p4556_p7 = scmp.ne.s32.totalorder %s4863_s16, %s4555_s20  ;;  %p4562_p12 = scmp.lt.u32.totalorder %s4560_s29, %s4555_s20 }
  0x25   : > { %p4564_p1 = scmp.lt.u32.totalorder %s4555_s20, %s4863_s16 }
  0x26   : > { %p4558_p9 = pnand %p4875_p8, %p4556_p7  ;;  %p4563_p13 = por %p4562_p12, %p4561_p11 }
  0x28   : > { %p4559_p10 = pneg %p4558_p9  ;;  %p4565_p2 = por %p4564_p1, %p4563_p13 }
  0x2a   : > { %p4566_p4 = pnand %p4565_p2, %p4559_p10 }
  0x2c   : > { %4569 = shalt.err (!%p4566_p4)
}
  0x2d   : > { %s4570_s13 = scalar_lea.vmem %s4867_s18, 1024  ;;  %s4755_s15 = smov [#allocation11]  }
  0x2e   : > { %p4571_p5 = scmp.ne.s32.totalorder %s4867_s18, %s4570_s13  ;;  %s4575_s17 = sshll.u32 %s4755_s15, 4  ;;  %s4576_s17 = int_to_ptr.vmem [resolvable:$false] %s4575_s17 }
  0x2f   : > { %s4577_s22 = scalar_lea.vmem %s4576_s17, 2048  ;;  %p4578_p3 = scmp.lt.s32.totalorder %s4867_s18, %s4576_s17 }
  0x30   : > { %p4573_p7 = pnand %p4571_p5, %p4875_p8  ;;  %p4579_p0 = scmp.lt.s32.totalorder %s4577_s22, %s4570_s13 }
  0x32   : > { %p4574_p9 = pneg %p4573_p7  ;;  %p4580_p11 = por %p4579_p0, %p4578_p3 }
  0x34   : > { %p4581_p12 = pnand %p4580_p11, %p4574_p9 }
  0x36   : > { %4584 = shalt.err (!%p4581_p12)
}
  0x37   : > { %4336 = dma.hbm_to_vmem [thread:$0]  (!%p4853_p6), %s4863_s16, 1024, %s4867_s18, %s4869_s19  }
  0x38   : > { %s4900_s20 = sadd.s32 4294967295, %s4753_s27   ;;  %s4041_s23 = sadd.s32 4294967294, %s4753_s27  }
  0x39   : > { %8148 = sst [smem:[#allocation26_spill]] %s4900_s20  ;;  %p132_p0 = scmp.ne.s32.totalorder %s4745_s25, %s4741_s24 }
  0x3a   : > { %p7857_p3 = scmp.eq.s32.totalorder %s4900_s20, 0  ;;  %p208_p10 = scmp.eq.s32.totalorder %s4900_s20, 1 }
  0x3b   : > { %p214_p13 = scmp.eq.s32.totalorder %s4041_s23, 1  ;;  %p4042_p2 = scmp.ge.s32.totalorder %s4753_s27, 1 }
  0x3c   : > { %p4909_p1 = por %p7857_p3, %p132_p0  ;;  %p8150_p4 = scmp.ne.s32.totalorder %s4749_s26, %s4745_s25 }
  0x3d   : > { %p4921_p7 = por %p214_p13, %p132_p0  ;;  %p221_p9 = scmp.lt.s32.totalorder %s4753_s27, 3 }
  0x3e   : > { %s8149_s29 = scalar_select %p4909_p1, 1, 0 }
  0x3f   : > { %p4917_p5 = por %p208_p10, %p8150_p4  ;;  %s8155_s0 = sld [smem:[#allocation177_spill]] }
  0x40   : > { %s8153_s18 = scalar_select %p4921_p7, 1, 0 }
  0x41   : > { %s8151_s16 = scalar_select %p4917_p5, 1, 0 }
  0x42   : > { %8154 = sst [smem:[#allocation28_spill]] %s8153_s18  ;;  %p4929_p11 = pnand %p4042_p2, %p221_p9 }
  0x43   : > { %8152 = sst [smem:[#allocation27_spill]] %s8151_s16  ;;  %s8157_s1 = sld [smem:[#allocation178_spill]] }
  0x44   : > { %s8156_s15 = scalar_select %p4929_p11, 1, 0 }
  0x45   : > { %s234_s13 = sshll.u32 %s8155_s0, 4  ;;  %p4323_p12 = pneg %p4929_p11  ;;  %s235_s13 = int_to_ptr.vmem [resolvable:$true] %s234_s13 }
  0x46   : > { %s8159_s4 = sld [smem:[#allocation181_spill]]  ;;  %s8160_s5 = sshll.u32 %s4849_s9, 6 }
  0x47   : > { %p4942_p0 = pnand %p4323_p12, %p7857_p3  ;;  %s266_s8 = scalar_lea.vmem [#allocation10], %s8160_s5 }
  0x48   : > { %s274_s17 = sshll.u32 %s266_s8, 4  ;;  %s4052_s22 = sshll.u32 %s4849_s9, 7  ;;  %s4956_s17 = int_to_ptr.vmem [resolvable:$true] %s274_s17 }
  0x49   : > { %s245_s23 = sshll.u32 %s8157_s1, 4  ;;  %s4585_s1 = scalar_lea.vmem %s235_s13, 32  ;;  %s4938_s23 = int_to_ptr.vmem [resolvable:$true] %s245_s23 }
  0x4a   : > { %p4586_p10 = scmp.ne.s32.totalorder %s235_s13, %s4585_s1  ;;  %p4587_p13 = pneg %p4942_p0 }
  0x4b   : > { %p4593_p9 = scmp.lt.s32.totalorder %s235_s13, %s235_s13  ;;  %p4594_p12 = scmp.lt.s32.totalorder %s4585_s1, %s4585_s1 }
  0x4c   : > { %s4951_s0 = scalar_lea.hbm %s8159_s4, %s4303_s11  ;;  %p4588_p2 = pnand %p4587_p13, %p4586_p10 }
  0x4d   : > { %p4595_p3 = por %p4594_p12, %p4593_p9 }
  0x4e   : > { %p4589_p4 = pneg %p4588_p2 }
  0x50   : > { %p4596_p7 = pnand %p4595_p3, %p4589_p4 }
  0x52   : > { %4599 = shalt.err (!%p4596_p7)
}
  0x53   : > { %s4756_s30 = smov [#allocation4]   ;;  %s4600_s5 = scalar_lea.vmem %s4938_s23, 16 }
  0x54   : > { %4326 = dma.vmem_to_smem (!%p4942_p0), %s235_s13, 32, %s4756_s30, [#allocation7]  }
  0x55   : > { %p4601_p5 = scmp.ne.s32.totalorder %s4938_s23, %s4600_s5  ;;  %p4608_p6 = scmp.lt.s32.totalorder %s4938_s23, %s4938_s23 }
  0x56   : > { %p4609_p10 = scmp.lt.s32.totalorder %s4600_s5, %s4600_s5 }
  0x57   : > { %p4603_p1 = pnand %p4601_p5, %p4587_p13 }
  0x58   : > { %p4610_p2 = por %p4609_p10, %p4608_p6 }
  0x59   : > { %p4604_p11 = pneg %p4603_p1 }
  0x5b   : > { %p4611_p8 = pnand %p4610_p2, %p4604_p11 }
  0x5d   : > { %4614 = shalt.err (!%p4611_p8)
}
  0x5e   : > { %s4757_s1 = smov [#allocation8]   ;;  %s263_s8 = scalar_lea.sflag [#allocation5], %s4849_s9 }
  0x5f   : > { %4329 = dma.vmem_to_smem (!%p4942_p0), %s4938_s23, 16, %s4757_s1, [#allocation9]  }
  0x60   : > { %s4615_s11 = scalar_lea.hbm %s4951_s0, 1024  ;;  %p8161_p1 = scmp.ne.s32.totalorder %s8147_s21, 0 }
  0x61   : > { %p4616_p3 = scmp.ne.s32.totalorder %s4951_s0, %s4615_s11  ;;  %s4620_s30 = scalar_lea.hbm %s8159_s4, 2048 }
  0x62   : > { %p4621_p6 = scmp.lt.u32.totalorder %s4951_s0, %s8159_s4  ;;  %p4622_p8 = scmp.lt.u32.totalorder %s4620_s30, %s4615_s11 }
  0x63   : > { %p4618_p5 = pnand %p4616_p3, %p8161_p1  ;;  %p4624_p13 = scmp.lt.u32.totalorder %s4615_s11, %s4951_s0 }
  0x64   : > { %p4623_p11 = por %p4622_p8, %p4621_p6 }
  0x65   : > { %p4619_p7 = pneg %p4618_p5 }
  0x66   : > { %p4625_p4 = por %p4624_p13, %p4623_p11 }
  0x68   : > { %p4626_p9 = pnand %p4625_p4, %p4619_p7 }
  0x6a   : > { %4629 = shalt.err (!%p4626_p9)
}
  0x6b   : > { %s4630_s23 = scalar_lea.vmem %s4956_s17, 1024  ;;  %s4758_s1 = smov [#allocation10]  }
  0x6c   : > { %p4631_p0 = scmp.ne.s32.totalorder %s4956_s17, %s4630_s23  ;;  %s4635_s13 = sshll.u32 %s4758_s1, 4  ;;  %s4636_s13 = int_to_ptr.vmem [resolvable:$false] %s4635_s13 }
  0x6d   : > { %s4637_s14 = scalar_lea.vmem %s4636_s13, 2048  ;;  %p4638_p2 = scmp.lt.s32.totalorder %s4956_s17, %s4636_s13 }
  0x6e   : > { %p4633_p12 = pnand %p4631_p0, %p8161_p1  ;;  %p4639_p3 = scmp.lt.s32.totalorder %s4637_s14, %s4630_s23 }
  0x70   : > { %p4634_p10 = pneg %p4633_p12  ;;  %p4640_p5 = por %p4639_p3, %p4638_p2 }
  0x72   : > { %p4641_p6 = pnand %p4640_p5, %p4634_p10 }
  0x74   : > { %4644 = shalt.err (!%p4641_p6)
}
  0x75   : > { %p8162_p7 = scmp.ne.s32.totalorder %s8145_s12, 0  ;;  %s4305_s11 = sshll.u32 %s4753_s27, 11 }
  0x76   : > { %s8163_s6 = sld [smem:[#allocation183_spill]]  ;;  %s304_s23 = scalar_lea.vmem [#allocation13], %s4052_s22 }
  0x77   : > { %4333 = dma.hbm_to_vmem [thread:$0]  (!%p8162_p7), %s4951_s0, 1024, %s4956_s17, %s263_s8  }
  0x78   : > { %s312_s1 = sshll.u32 %s304_s23, 4  ;;  %s313_s1 = int_to_ptr.vmem [resolvable:$true] %s312_s1 }
  0x7c   : > { %s4995_s10 = scalar_lea.hbm %s8163_s6, %s4305_s11  ;;  %s4650_s8 = scalar_lea.hbm %s8163_s6, 4096 }
  0x7d   : > { %s4645_s13 = scalar_lea.hbm %s4995_s10, 2048  ;;  %p4651_p4 = scmp.lt.u32.totalorder %s4995_s10, %s8163_s6 }
  0x7e   : > { %p4646_p8 = scmp.ne.s32.totalorder %s4995_s10, %s4645_s13  ;;  %p4652_p9 = scmp.lt.u32.totalorder %s4650_s8, %s4645_s13 }
  0x7f   : > { %p4654_p12 = scmp.lt.u32.totalorder %s4645_s13, %s4995_s10 }
  0x80   : > { %p4648_p11 = pnand %p4646_p8, %p8161_p1  ;;  %p4653_p0 = por %p4652_p9, %p4651_p4 }
  0x82   : > { %p4649_p13 = pneg %p4648_p11  ;;  %p4655_p10 = por %p4654_p12, %p4653_p0 }
  0x84   : > { %p4656_p2 = pnand %p4655_p10, %p4649_p13 }
  0x86   : > { %4659 = shalt.err (!%p4656_p2)
}
  0x87   : > { %s4660_s9 = scalar_lea.vmem %s313_s1, 2048  ;;  %s4759_s22 = smov [#allocation13]  }
  0x88   : > { %p4661_p3 = scmp.ne.s32.totalorder %s313_s1, %s4660_s9  ;;  %s4665_s30 = sshll.u32 %s4759_s22, 4  ;;  %s4666_s30 = int_to_ptr.vmem [resolvable:$false] %s4665_s30 }
  0x89   : > { %s4667_s5 = scalar_lea.vmem %s4666_s30, 4096  ;;  %p4668_p8 = scmp.lt.s32.totalorder %s313_s1, %s4666_s30 }
  0x8a   : > { %p4663_p5 = pnand %p4661_p3, %p8161_p1  ;;  %p4669_p11 = scmp.lt.s32.totalorder %s4667_s5, %s4660_s9 }
  0x8c   : > { %p4664_p6 = pneg %p4663_p5  ;;  %p4670_p7 = por %p4669_p11, %p4668_p8 }
  0x8e   : > { %p4671_p4 = pnand %p4670_p7, %p4664_p6 }
  0x90   : > { %4674 = shalt.err (!%p4671_p4)
}
  0x91   : > { %p8164_p9 = scmp.ne.s32.totalorder %s8145_s12, 0  ;;  %p8165_p13 = scmp.ne.s32.totalorder %s8156_s15, 0 }
  0x93   : > { %4339 = dma.hbm_to_vmem [thread:$0]  (!%p8164_p9), %s4995_s10, 2048, %s313_s1, %s4869_s19  }
  0x94   : > { %321 = sbr.rel (%p8165_p13) target bundleno = 1054 (0x41e), region = 48 }
  0x9b   : > { %p8166_p1 = scmp.eq.s32.totalorder %s4900_s20, 0 }
  0x9d   : > { %4720 = dma.done.wait (%p8166_p1), [#allocation7], 32   ;;  %p8167_p0 = pmov %p8166_p1 }
  0x9f   : > { %4722 = vsyncadd (%p8167_p0), [#allocation7], 4294967264  ;;  %p8168_p12 = pmov %p8167_p0 }
  0xa0   : > { %p8169_p7 = pmov %p8167_p0 }
  0xa1   : > { %4724 = dma.done.wait (%p8168_p12), [#allocation9], 16  }
  0xa2   : > { %4726 = vsyncadd (%p8169_p7), [#allocation9], 4294967280  ;;  %s5028_s12 = sand.u32 1, %s4745_s25   ;;  %p8172_p10 = scmp.ne.s32.totalorder %s8149_s29, 0 }
  0xa3   : > { %8170 = sst [smem:[#allocation29_spill]] %s5028_s12  ;;  %s4058_s19 = sshll.u32 %s5028_s12, 6 }
  0xa4   : > { %s332_s21 = scalar_lea.sflag [#allocation5], %s5028_s12  ;;  %s5032_s15 = scalar_lea.vmem [#allocation10], %s4058_s19 }
  0xa5   : > { %8171 = sst [smem:[#allocation30_spill]] %s5032_s15 }
  0xa6   : > { %4728 = dma.done.wait (%p8172_p10), %s332_s21, 1024  }
  0xa7   : > { %4730 = vsyncadd (%p8172_p10), %s332_s21, 4294966272  ;;  %s340_s10 = sand.u32 1, %s4900_s20   ;;  %s5039_s1 = scalar_lea.vmem [#allocation11], %s4058_s19 }
  0xa8   : > { %s341_s23 = scalar_lea.sflag [#allocation12], %s340_s10  ;;  %8173 = sst [smem:[#allocation31_spill]] %s5039_s1 }
  0xa9   : > { %4732 = dma.done.wait (%p8172_p10), %s341_s23, 3072  }
  0xaa   : > { %4734 = vsyncadd (%p8172_p10), %s341_s23, 4294964224  ;;  %s7872_s13 = sshll.u32 %s5028_s12, 7 }
  0xab   : > { %s5048_s0 = scalar_lea.vmem [#allocation13], %s7872_s13 }
  0xac   : > { %8174 = sst [smem:[#allocation32_spill]] %s5048_s0 }
  0xad   : > { %358 = sfence }
  0xae   : > { %v5051_v0 = vld [vmem:[%s5032_s15 + $0x20] sm:$0xff]  ;;  %v5054_v1 = vld [vmem:[%s5032_s15 + $0x28] sm:$0xff]  ;;  %v4760_v2 = vmov 0.0   ;;  %vm1106_vm0 = vcmask 1042432   ;;  %v5057_v3 = vld [vmem:[%s5032_s15 + $0x30] sm:$0xff]  ;;  %v7865_v8 = vlaneseq  ;;  %vm435_vm1 = vcmask 1043456  }
  0xaf   : > { %1074 = vst [vmem:[#allocation2 + $0x8] sm:$0xff] %v4760_v2  ;;  %1073 = vst [vmem:[#allocation2] sm:$0xff] %v4760_v2  ;;  %v5060_v4 = vld [vmem:[%s5032_s15 + $0x38] sm:$0xff]  ;;  %v5063_v5 = vld [vmem:[%s5039_s1 + $0x20] sm:$0xff]  ;;  %v5067_v6 = vcombine.high %v5051_v0, %v5051_v0  ;;  %v5071_v7 = vcombine.high %v5054_v1, %v5054_v1  ;;  %3339 = vmatprep.mubr.f32.mxu0 %v4760_v2  ;;  %3410 = vmatprep.mubr.f32.mxu1 %v4760_v2  ;;  %v1111_v9 = vrot.slane %v4760_v2, 5  ;;  %s4761_s29 = smov 3  }
  0xb0   : > { %1075 = vst [vmem:[#allocation2 + $0x30] sm:$0xff] %v4760_v2  ;;  %1076 = vst [vmem:[#allocation2 + $0x38] sm:$0xff] %v4760_v2  ;;  %v5075_v10 = vcombine.high %v5057_v3, %v5057_v3  ;;  %v5079_v11 = vcombine.high %v5060_v4, %v5060_v4  ;;  %v492_v12 = vsel %vm435_vm1, %v5051_v0, 0.0  ;;  %v506_v14 = vsel %vm435_vm1, %v5054_v1, 0.0  ;;  %v5106_v47 = vld [vmem:[%s5039_s1 + $0x28] sm:$0xff]  ;;  %v5113_v54 = vld [vmem:[%s5039_s1 + $0x30] sm:$0xff] }
  0xb1   : > { %1082 = vst [vmem:[#allocation2 + $0x40] sm:$0xff] %v4760_v2  ;;  %1083 = vst [vmem:[#allocation2 + $0x48] sm:$0xff] %v4760_v2  ;;  %v499_v13 = vsel %vm435_vm1, %v5067_v6, 0.0  ;;  %v5089_v15 = vcombine.high %v5063_v5, %v5063_v5  ;;  %v493_v16 = vrot.slane %v492_v12, 4  ;;  %v507_v18 = vrot.slane %v506_v14, 4  ;;  %s7898_s17 = smov 1  }
  0xb2   : > { %1084 = vst [vmem:[#allocation2 + $0x70] sm:$0xff] %v4760_v2  ;;  %1085 = vst [vmem:[#allocation2 + $0x78] sm:$0xff] %v4760_v2  ;;  %v500_v17 = vrot.slane %v499_v13, 4  ;;  %v513_v19 = vsel %vm435_vm1, %v5071_v7, 0.0  ;;  %v520_v21 = vsel %vm435_vm1, %v5057_v3, 0.0  ;;  %v527_v22 = vsel %vm435_vm1, %v5075_v10, 0.0 }
  0xb3   : > { %v514_v20 = vrot.slane %v513_v19, 4  ;;  %v534_v23 = vsel %vm435_vm1, %v5060_v4, 0.0  ;;  %v494_v24 = vadd.f32 %v493_v16, %v492_v12  ;;  %v508_v26 = vadd.f32 %v507_v18, %v506_v14  ;;  %s7877_s8 = smov 127   ;;  %s7879_s14 = smov 2  }
  0xb4   : > { %v501_v25 = vadd.f32 %v500_v17, %v499_v13  ;;  %v521_v27 = vrot.slane %v520_v21, 4  ;;  %v528_v29 = vrot.slane %v527_v22, 4  ;;  %v535_v30 = vrot.slane %v534_v23, 4  ;;  %v5130_v13 = vld [vmem:[%s5039_s1 + $0x38] sm:$0xff]  ;;  %s7873_s11 = smov 125   ;;  %s7875_s9 = smov 126  }
  0xb5   : > { %v515_v28 = vadd.f32 %v514_v20, %v513_v19  ;;  %v541_v31 = vsel %vm435_vm1, %v5079_v11, 0.0  ;;  %v495_v34 = vrot.slane %v494_v24, 2  ;;  %v509_v39 = vrot.slane %v508_v26, 2  ;;  %s5612_s22 = sld [smem:[#allocation4]]  ;;  %s5614_s30 = sld [smem:[#allocation4 + $0x62]] }
  0xb6   : > { %v1091_v32 = vld [vmem:[#allocation2 + $0x8] sm:$0xe0]  ;;  %v502_v35 = vrot.slane %v501_v25, 2  ;;  %v522_v36 = vadd.f32 %v521_v27, %v520_v21  ;;  %v529_v44 = vadd.f32 %v528_v29, %v527_v22  ;;  %v536_v58 = vadd.f32 %v535_v30, %v534_v23  ;;  %s5616_s5 = sld [smem:[#allocation4 + $0x2]]  ;;  %s5618_s19 = sld [smem:[#allocation4 + $0x64]] }
  0xb7   : > { %v1097_v33 = vld [vmem:[#allocation2 + $0x38] sm:$0x7]  ;;  %v1110_v37 = vrot.slane %v1091_v32, 5  ;;  %v516_v40 = vrot.slane %v515_v28, 2  ;;  %v496_v41 = vadd.f32 %v495_v34, %v494_v24  ;;  %v510_v48 = vadd.f32 %v509_v39, %v508_v26  ;;  %s5624_s21 = sld [smem:[#allocation4 + $0x7]]  ;;  %s5626_s10 = sld [smem:[#allocation4 + $0x69]] }
  0xb8   : > { %v1119_v38 = vrot.slane %v1097_v33, 5  ;;  %v503_v42 = vadd.f32 %v502_v35, %v501_v25  ;;  %v523_v43 = vrot.slane %v522_v36, 2  ;;  %v530_v57 = vrot.slane %v529_v44, 2  ;;  %s5628_s23 = sld [smem:[#allocation4 + $0xe]]  ;;  %s5632_s13 = sld [smem:[#allocation4 + $0x15]] }
  0xb9   : > { %v1112_v45 = vsel %vm1106_vm0, %v1110_v37, %v1111_v9  ;;  %v517_v49 = vadd.f32 %v516_v40, %v515_v28  ;;  %v497_v51 = vrot.slane %v496_v41, 1  ;;  %v511_v55 = vrot.slane %v510_v48, 1  ;;  %s5644_s4 = sld [smem:[#allocation4 + $0x23]]  ;;  %s5646_s6 = sld [smem:[#allocation4 + $0x85]] }
  0xba   : > { %v5103_v46 = vsel %vm1106_vm0, %v1111_v9, %v1119_v38  ;;  %v5108_v50 = vpack.i.bf16 %v1111_v9, %v1112_v45  ;;  %v504_v52 = vrot.slane %v503_v42, 1  ;;  %v524_v53 = vadd.f32 %v523_v43, %v522_v36  ;;  %s5648_s26 = sld [smem:[#allocation4 + $0x2a]]  ;;  %s5650_s25 = sld [smem:[#allocation4 + $0x8c]] }
  0xbb   : > { %1137 = vrot.lane.b32.xlu0 %v5103_v46, %s4761_s29  ;;  %v518_v56 = vrot.slane %v517_v49, 1  ;;  %v5117_v59 = vadd.f32 %v497_v51, %v496_v41  ;;  %v542_v61 = vrot.slane %v541_v31, 4  ;;  %v5121_v62 = vcombine.high %v5106_v47, %v5106_v47  ;;  %8186 = sst [smem:[#allocation39_spill]] %s5612_s22  ;;  %s5652_s28 = sld [smem:[#allocation4 + $0x9]] }
  0xbc   : > { %4395 = vrot.lane.b32.xlu1 %v5108_v50, %s4761_s29  ;;  %v525_v60 = vrot.slane %v524_v53, 1  ;;  %v5123_v63 = vadd.f32 %v504_v52, %v503_v42  ;;  %v5125_v2 = vadd.f32 %v511_v55, %v510_v48  ;;  %v531_v9 = vadd.f32 %v530_v57, %v529_v44  ;;  %8187 = sst [smem:[#allocation40_spill]] %s5614_s30  ;;  %s5654_s27 = sld [smem:[#allocation4 + $0x6b]] }
  0xbd   : > { %v537_v12 = vrot.slane %v536_v58, 2  ;;  %v5132_v14 = vadd.f32 %v518_v56, %v517_v49  ;;  %v543_v17 = vadd.f32 %v542_v61, %v541_v31  ;;  %v5138_v18 = vcombine.high %v5113_v54, %v5113_v54  ;;  %8188 = sst [smem:[#allocation41_spill]] %s5616_s5  ;;  %s5656_s18 = sld [smem:[#allocation4 + $0x10]] }
  0xbe   : > { %v5134_v16 = vadd.f32 %v525_v60, %v524_v53  ;;  %v532_v19 = vrot.slane %v531_v9, 1  ;;  %v628_v21 = vsel %vm435_vm1, %v5063_v5, 0.0  ;;  %v635_v22 = vsel %vm435_vm1, %v5089_v15, 0.0  ;;  %8189 = sst [smem:[#allocation42_spill]] %s5618_s19  ;;  %s5658_s24 = sld [smem:[#allocation4 + $0x72]] }
  0xbf   : > { %4400 = vrot.lane.b32.xlu0 %v5108_v50, %s7898_s17  ;;  %v538_v20 = vadd.f32 %v537_v12, %v536_v58  ;;  %v544_v23 = vrot.slane %v543_v17, 2  ;;  %v629_v24 = vrot.slane %v628_v21, 4  ;;  %v636_v25 = vrot.slane %v635_v22, 4  ;;  %8190 = sst [smem:[#allocation43_spill]] %s5624_s21  ;;  %s5664_s7 = sld [smem:[#allocation4 + $0x17]] }
  0xc0   : > { %1366 = vrot.lane.b32.xlu1 %v5103_v46, %s7898_s17  ;;  %v642_v26 = vsel %vm435_vm1, %v5106_v47, 0.0  ;;  %v5150_v28 = vcombine.high %v5130_v13, %v5130_v13  ;;  %v649_v30 = vsel %vm435_vm1, %v5121_v62, 0.0  ;;  %v533_v35 = vadd.f32 %v532_v19, %v531_v9  ;;  %8191 = sst [smem:[#allocation44_spill]] %s5626_s10  ;;  %s5666_s16 = sld [smem:[#allocation4 + $0x79]] }
  0xc1   : > { %v539_v27 = vrot.slane %v538_v20, 1  ;;  %v643_v29 = vrot.slane %v642_v26, 4  ;;  %v545_v31 = vadd.f32 %v544_v23, %v543_v17  ;;  %v630_v32 = vadd.f32 %v629_v24, %v628_v21  ;;  %8192 = sst [smem:[#allocation45_spill]] %s5628_s23  ;;  %s5668_s20 = sld [smem:[#allocation4 + $0x1e]] }
  0xc2   : > { %v637_v33 = vadd.f32 %v636_v25, %v635_v22  ;;  %v650_v34 = vrot.slane %v649_v30, 4  ;;  %v656_v37 = vsel %vm435_vm1, %v5113_v54, 0.0  ;;  %v663_v38 = vsel %vm435_vm1, %v5138_v18, 0.0  ;;  %8194 = sst [smem:[#allocation47_spill]] %s5632_s13  ;;  %s5670_s12 = sld [smem:[#allocation4 + $0x80]] }
  0xc3   : > { %v644_v36 = vadd.f32 %v643_v29, %v642_v26  ;;  %v540_v39 = vadd.f32 %v539_v27, %v538_v20  ;;  %v631_v40 = vrot.slane %v630_v32, 2  ;;  %v657_v44 = vrot.slane %v656_v37, 4  ;;  %8199 = sst [smem:[#allocation51_spill]] %s5644_s4  ;;  %s5672_s0 = sld [smem:[#allocation4 + $0x25]] }
  0xc4   : > { %4405 = vrot.lane.b32.xlu1 %v5108_v50, %s7877_s8  ;;  %v638_v41 = vrot.slane %v637_v33, 2  ;;  %v651_v42 = vadd.f32 %v650_v34, %v649_v30  ;;  %v664_v45 = vrot.slane %v663_v38, 4  ;;  %v670_v48 = vsel %vm435_vm1, %v5130_v13, 0.0  ;;  %8200 = sst [smem:[#allocation52_spill]] %s5646_s6  ;;  %s5674_s2 = sld [smem:[#allocation4 + $0x87]] }
  0xc5   : > { %v645_v43 = vrot.slane %v644_v36, 2  ;;  %v546_v49 = vrot.slane %v545_v31, 1  ;;  %v632_v51 = vadd.f32 %v631_v40, %v630_v32  ;;  %v658_v56 = vadd.f32 %v657_v44, %v656_v37  ;;  %8201 = sst [smem:[#allocation53_spill]] %s5648_s26  ;;  %s5684_s3 = sld [smem:[#allocation4 + $0x4]] }
  0xc6   : > { %v639_v52 = vadd.f32 %v638_v41, %v637_v33  ;;  %v652_v53 = vrot.slane %v651_v42, 2  ;;  %v665_v57 = vadd.f32 %v664_v45, %v663_v38  ;;  %v671_v58 = vrot.slane %v670_v48, 4  ;;  %8202 = sst [smem:[#allocation54_spill]] %s5650_s25 }
  0xc7   : > { %v646_v55 = vadd.f32 %v645_v43, %v644_v36  ;;  %v633_v60 = vrot.slane %v632_v51, 1  ;;  %v677_v12 = vsel %vm435_vm1, %v5150_v28, 0.0  ;;  %v659_v19 = vrot.slane %v658_v56, 2  ;;  %8203 = sst [smem:[#allocation55_spill]] %s5652_s28 }
  0xc8   : > { %1252 = vrot.lane.b32.xlu1 %v5103_v46, %s7879_s14  ;;  %v640_v61 = vrot.slane %v639_v52, 1  ;;  %v653_v9 = vadd.f32 %v652_v53, %v651_v42  ;;  %v666_v20 = vrot.slane %v665_v57, 2  ;;  %v672_v21 = vadd.f32 %v671_v58, %v670_v48  ;;  %8204 = sst [smem:[#allocation56_spill]] %s5654_s27 }
  0xc9   : > { %v647_v17 = vrot.slane %v646_v55, 1  ;;  %v634_v22 = vadd.f32 %v633_v60, %v632_v51  ;;  %v678_v25 = vrot.slane %v677_v12, 4  ;;  %v660_v27 = vadd.f32 %v659_v19, %v658_v56  ;;  %8205 = sst [smem:[#allocation57_spill]] %s5656_s18 }
  0xca   : > { %v641_v23 = vadd.f32 %v640_v61, %v639_v52  ;;  %v654_v24 = vrot.slane %v653_v9, 1  ;;  %v667_v29 = vadd.f32 %v666_v20, %v665_v57  ;;  %v673_v30 = vrot.slane %v672_v21, 2  ;;  %8206 = sst [smem:[#allocation58_spill]] %s5658_s24 }
  0xcb   : > { %v648_v26 = vadd.f32 %v647_v17, %v646_v55  ;;  %v679_v33 = vadd.f32 %v678_v25, %v677_v12  ;;  %v692_v34 = vadd.f32 %v634_v22, %v5117_v59  ;;  %v661_v37 = vrot.slane %v660_v27, 1  ;;  %8207 = sst [smem:[#allocation59_spill]] %s5664_s7  ;;  %s8225_s7 = smov 126  }
  0xcc   : > { %v655_v32 = vadd.f32 %v654_v24, %v653_v9  ;;  %v693_v36 = vadd.f32 %v641_v23, %v5123_v63  ;;  %v668_v38 = vrot.slane %v667_v29, 1  ;;  %v674_v40 = vadd.f32 %v673_v30, %v672_v21  ;;  %8208 = sst [smem:[#allocation60_spill]] %s5666_s16  ;;  %s5686_s16 = sld [smem:[#allocation4 + $0x66]] }
  0xcd   : > { %v694_v41 = vadd.f32 %v648_v26, %v5125_v2  ;;  %v547_v42 = vadd.f32 %v546_v49, %v545_v31  ;;  %v680_v43 = vrot.slane %v679_v33, 2  ;;  %v5170_v45 = vmul.f32 0.125, %v692_v34  ;;  %8209 = sst [smem:[#allocation61_spill]] %s5668_s20  ;;  %s5688_s20 = sld [smem:[#allocation4 + $0x1]] }
  0xce   : > { %v695_v44 = vadd.f32 %v655_v32, %v5132_v14  ;;  %v662_v48 = vadd.f32 %v661_v37, %v660_v27  ;;  %v669_v51 = vadd.f32 %v668_v38, %v667_v29  ;;  %v675_v52 = vrot.slane %v674_v40, 1  ;;  %8210 = sst [smem:[#allocation62_spill]] %s5670_s12  ;;  %s5690_s12 = sld [smem:[#allocation4 + $0x63]] }
  0xcf   : > { %v5172_v53 = vmul.f32 0.125, %v693_v36  ;;  %v681_v55 = vadd.f32 %v680_v43, %v679_v33  ;;  %v5174_v59 = vmul.f32 0.125, %v694_v41  ;;  %v772_v63 = vsel %vm435_vm1, %v5051_v0, -inf  ;;  %8211 = sst [smem:[#allocation63_spill]] %s5672_s0  ;;  %s5692_s0 = sld [smem:[#allocation4 + $0x8]] }
  0xd0   : > { %v779_v2 = vsel %vm435_vm1, %v5067_v6, -inf  ;;  %v676_v31 = vadd.f32 %v675_v52, %v674_v40  ;;  %v696_v49 = vadd.f32 %v662_v48, %v5134_v16  ;;  %v697_v14 = vadd.f32 %v669_v51, %v533_v35  ;;  %8212 = sst [smem:[#allocation64_spill]] %s5674_s2  ;;  %s5694_s2 = sld [smem:[#allocation4 + $0x6a]] }
  0xd1   : > { %v773_v56 = vrot.slane %v772_v63, 4  ;;  %v682_v57 = vrot.slane %v681_v55, 1  ;;  %v780_v58 = vrot.slane %v779_v2, 4  ;;  %v786_v60 = vsel %vm435_vm1, %v5054_v1, -inf  ;;  %8216 = sst [smem:[#allocation67_spill]] %s5684_s3  ;;  %s5704_s3 = sld [smem:[#allocation4 + $0x16]] }
  0xd2   : > { %v793_v61 = vsel %vm435_vm1, %v5071_v7, -inf  ;;  %v698_v9 = vadd.f32 %v676_v31, %v540_v39  ;;  %v5185_v12 = vmul.f32 0.125, %v695_v44  ;;  %v5187_v0 = vmul.f32 0.125, %v696_v49  ;;  %8217 = sst [smem:[#allocation68_spill]] %s5686_s16  ;;  %s5706_s16 = sld [smem:[#allocation4 + $0x78]] }
  0xd3   : > { %v774_v17 = vmax.f32 %v772_v63, %v773_v56  ;;  %v683_v6 = vadd.f32 %v682_v57, %v681_v55  ;;  %v781_v19 = vmax.f32 %v779_v2, %v780_v58  ;;  %v787_v20 = vrot.slane %v786_v60, 4  ;;  %8218 = sst [smem:[#allocation69_spill]] %s5688_s20  ;;  %s5708_s20 = sld [smem:[#allocation4 + $0x1d]] }
  0xd4   : > { %v794_v16 = vrot.slane %v793_v61, 4  ;;  %v5189_v35 = vmul.f32 0.125, %v697_v14  ;;  %v800_v22 = vsel %vm435_vm1, %v5057_v3, -inf  ;;  %v807_v1 = vsel %vm435_vm1, %v5075_v10, -inf  ;;  %8219 = sst [smem:[#allocation70_spill]] %s5690_s12  ;;  %s5710_s12 = sld [smem:[#allocation4 + $0x7f]] }
  0xd5   : > { %v775_v21 = vrot.slane %v774_v17, 2  ;;  %v5195_v7 = vmul.f32 0.125, %v698_v9  ;;  %v782_v39 = vrot.slane %v781_v19, 2  ;;  %v788_v23 = vmax.f32 %v786_v60, %v787_v20  ;;  %8220 = sst [smem:[#allocation71_spill]] %s5692_s0  ;;  %s5712_s0 = sld [smem:[#allocation4 + $0x24]] }
  0xd6   : > { %v795_v24 = vmax.f32 %v793_v61, %v794_v16  ;;  %v801_v26 = vrot.slane %v800_v22, 4  ;;  %v808_v27 = vrot.slane %v807_v1, 4  ;;  %v814_v29 = vsel %vm435_vm1, %v5060_v4, -inf  ;;  %8221 = sst [smem:[#allocation72_spill]] %s5694_s2 }
  0xd7   : > { %v776_v25 = vmax.f32 %v774_v17, %v775_v21  ;;  %v5199_v30 = vadd.f32 %v683_v6, %v547_v42  ;;  %v783_v32 = vmax.f32 %v781_v19, %v782_v39  ;;  %v789_v33 = vrot.slane %v788_v23, 2  ;;  %8226 = sst [smem:[#allocation75_spill]] %s5704_s3  ;;  %s5714_s2 = sld [smem:[#allocation4 + $0x86]] }
  0xd8   : > { %v796_v34 = vrot.slane %v795_v24, 2  ;;  %v802_v36 = vmax.f32 %v800_v22, %v801_v26  ;;  %v809_v37 = vmax.f32 %v807_v1, %v808_v27  ;;  %v815_v10 = vrot.slane %v814_v29, 4  ;;  %8227 = sst [smem:[#allocation76_spill]] %s5706_s16  ;;  %s5724_s3 = sld [smem:[#allocation4 + $0xb]] }
  0xd9   : > { %v777_v3 = vrot.slane %v776_v25, 1  ;;  %v784_v38 = vrot.slane %v783_v32, 1  ;;  %v790_v40 = vmax.f32 %v788_v23, %v789_v33  ;;  %v821_v43 = vsel %vm435_vm1, %v5079_v11, -inf  ;;  %8228 = sst [smem:[#allocation77_spill]] %s5708_s20  ;;  %s5726_s16 = sld [smem:[#allocation4 + $0x6d]] }
  0xda   : > { %v797_v41 = vmax.f32 %v795_v24, %v796_v34  ;;  %v803_v48 = vrot.slane %v802_v36, 2  ;;  %v810_v51 = vrot.slane %v809_v37, 2  ;;  %v816_v4 = vmax.f32 %v814_v29, %v815_v10  ;;  %8229 = sst [smem:[#allocation78_spill]] %s5710_s12  ;;  %s5728_s20 = sld [smem:[#allocation4 + $0x3]] }
  0xdb   : > { %v5203_v44 = vmax.f32 %v776_v25, %v777_v3  ;;  %v5205_v42 = vmax.f32 %v783_v32, %v784_v38  ;;  %v791_v52 = vrot.slane %v790_v40, 1  ;;  %v822_v63 = vrot.slane %v821_v43, 4  ;;  %8230 = sst [smem:[#allocation79_spill]] %s5712_s0  ;;  %s5730_s12 = sld [smem:[#allocation4 + $0x12]] }
  0xdc   : > { %v798_v55 = vrot.slane %v797_v41, 1  ;;  %v804_v2 = vmax.f32 %v802_v36, %v803_v48  ;;  %v811_v31 = vmax.f32 %v809_v37, %v810_v51  ;;  %v817_v49 = vrot.slane %v816_v4, 2  ;;  %s5732_s0 = sld [smem:[#allocation4 + $0x65]] }
  0xdd   : > { %v884_v14 = vsel %vm435_vm1, %v5063_v5, -inf  ;;  %v5209_v56 = vmax.f32 %v790_v40, %v791_v52  ;;  %v823_v11 = vmax.f32 %v821_v43, %v822_v63  ;;  %v891_v17 = vsel %vm435_vm1, %v5089_v15, -inf  ;;  %8231 = sst [smem:[#allocation80_spill]] %s5714_s2  ;;  %s5734_s2 = sld [smem:[#allocation4 + $0xa]] }
  0xde   : > { %v5211_v57 = vmax.f32 %v797_v41, %v798_v55  ;;  %v885_v58 = vrot.slane %v884_v14, 4  ;;  %v805_v60 = vrot.slane %v804_v2, 1  ;;  %v812_v61 = vrot.slane %v811_v31, 1  ;;  %8235 = sst [smem:[#allocation83_spill]] %s5724_s3  ;;  %s5897_s3 = sld [smem:[#allocation4 + $0x7d]] }
  0xdf   : > { %v818_v9 = vmax.f32 %v816_v4, %v817_v49  ;;  %v824_v6 = vrot.slane %v823_v11, 2  ;;  %v892_v20 = vrot.slane %v891_v17, 4  ;;  %v898_v16 = vsel %vm435_vm1, %v5106_v47, -inf  ;;  %8236 = sst [smem:[#allocation84_spill]] %s5726_s16  ;;  %s5744_s16 = sld [smem:[#allocation4 + $0x73]] }
  0xe0   : > { %v886_v19 = vmax.f32 %v884_v14, %v885_v58  ;;  %v5217_v21 = vmax.f32 %v804_v2, %v805_v60  ;;  %v5219_v5 = vmax.f32 %v811_v31, %v812_v61  ;;  %v899_v1 = vrot.slane %v898_v16, 4  ;;  %8237 = sst [smem:[#allocation85_spill]] %s5728_s20  ;;  %s5758_s20 = sld [smem:[#allocation4 + $0x2d]] }
  0xe1   : > { %v819_v22 = vrot.slane %v818_v9, 1  ;;  %v825_v39 = vmax.f32 %v823_v11, %v824_v6  ;;  %v893_v24 = vmax.f32 %v891_v17, %v892_v20  ;;  %v905_v25 = vsel %vm435_vm1, %v5121_v62, -inf  ;;  %8238 = sst [smem:[#allocation86_spill]] %s5730_s12  ;;  %s5746_s12 = sld [smem:[#allocation4 + $0x18]] }
  0xe2   : > { %v887_v23 = vrot.slane %v886_v19, 2  ;;  %v900_v15 = vmax.f32 %v898_v16, %v899_v1  ;;  %v906_v27 = vrot.slane %v905_v25, 4  ;;  %v912_v29 = vsel %vm435_vm1, %v5113_v54, -inf  ;;  %8239 = sst [smem:[#allocation87_spill]] %s5732_s0  ;;  %s5748_s0 = sld [smem:[#allocation4 + $0x7a]] }
  0xe3   : > { %v5223_v26 = vmax.f32 %v818_v9, %v819_v22  ;;  %v826_v47 = vrot.slane %v825_v39, 1  ;;  %v894_v33 = vrot.slane %v893_v24, 2  ;;  %v913_v34 = vrot.slane %v912_v29, 4  ;;  %8240 = sst [smem:[#allocation88_spill]] %s5734_s2  ;;  %s5750_s2 = sld [smem:[#allocation4 + $0x1f]] }
  0xe4   : > { %v888_v32 = vmax.f32 %v886_v19, %v887_v23  ;;  %v901_v3 = vrot.slane %v900_v15, 2  ;;  %v907_v36 = vmax.f32 %v905_v25, %v906_v27  ;;  %v919_v37 = vsel %vm435_vm1, %v5138_v18, -inf  ;;  %8316 = sst [smem:[#allocation127_spill]] %s5897_s3  ;;  %s6016_s3 = sld [smem:[#allocation4 + $0x94]] }
  0xe5   : > { %v926_v10 = vsel %vm435_vm1, %v5130_v13, -inf  ;;  %v5231_v62 = vmax.f32 %v825_v39, %v826_v47  ;;  %v895_v40 = vmax.f32 %v893_v24, %v894_v33  ;;  %v914_v41 = vmax.f32 %v912_v29, %v913_v34  ;;  %8243 = sst [smem:[#allocation91_spill]] %s5744_s16  ;;  %s5910_s16 = sld [smem:[#allocation4 + $0x22]] }
  0xe6   : > { %v889_v38 = vrot.slane %v888_v32, 1  ;;  %v902_v43 = vmax.f32 %v900_v15, %v901_v3  ;;  %v908_v48 = vrot.slane %v907_v36, 2  ;;  %v920_v54 = vrot.slane %v919_v37, 4  ;;  %8248 = sst [smem:[#allocation96_spill]] %s5758_s20  ;;  %s5773_s20 = sld [smem:[#allocation4 + $0x19]] }
  0xe7   : > { %v927_v51 = vrot.slane %v926_v10, 4  ;;  %v896_v52 = vrot.slane %v895_v40, 1  ;;  %v915_v55 = vrot.slane %v914_v41, 2  ;;  %v933_v63 = vsel %vm435_vm1, %v5150_v28, -inf }
  0xe8   : > { %v890_v4 = vmax.f32 %v888_v32, %v889_v38  ;;  %v903_v2 = vrot.slane %v902_v43, 1  ;;  %v909_v18 = vmax.f32 %v907_v36, %v908_v48  ;;  %v921_v31 = vmax.f32 %v919_v37, %v920_v54  ;;  %v5260_v48 = vld [vmem:[%s5032_s15 + $0x8] sm:$0xff] }
  0xe9   : > { %v928_v49 = vmax.f32 %v926_v10, %v927_v51  ;;  %v897_v13 = vmax.f32 %v895_v40, %v896_v52  ;;  %v916_v14 = vmax.f32 %v914_v41, %v915_v55  ;;  %v934_v11 = vrot.slane %v933_v63, 4  ;;  %v5256_v40 = vld [vmem:[%s5032_s15] sm:$0xff]  ;;  %8244 = sst [smem:[#allocation92_spill]] %s5750_s2 }
  0xea   : > { %v948_v58 = vmax.f32 %v5203_v44, %v890_v4  ;;  %v904_v60 = vmax.f32 %v902_v43, %v903_v2  ;;  %v910_v61 = vrot.slane %v909_v18, 1  ;;  %v922_v9 = vrot.slane %v921_v31, 2  ;;  %v5267_v51 = vld [vmem:[#allocation2 + $0x30] sm:$0x7]  ;;  %s5783_s2 = sld [smem:[#allocation4 + $0x82]]  ;;  %8354 = sst [smem:[#allocation40_spill]] %s6016_s3 }
  0xeb   : > { %v929_v17 = vrot.slane %v928_v49, 2  ;;  %v917_v6 = vrot.slane %v916_v14, 1  ;;  %v935_v19 = vmax.f32 %v933_v63, %v934_v11  ;;  %v949_v20 = vmax.f32 %v5205_v42, %v897_v13  ;;  %8177 = vst [vmem:[#allocation35_spill] sm:$0xff] %v5267_v51  ;;  %8318 = sst [smem:[#allocation128_spill]] %s5910_s16  ;;  %s8392_s3 = sld [smem:[#allocation67_spill]] }
  0xec   : > { %vm956_vm2 = vcmask 1040384   ;;  %v911_v16 = vmax.f32 %v909_v18, %v910_v61  ;;  %v923_v28 = vmax.f32 %v921_v31, %v922_v9  ;;  %v950_v1 = vmax.f32 %v5209_v56, %v904_v60  ;;  %8251 = sst [smem:[#allocation99_spill]] %s5773_s20  ;;  %s5977_s20 = sld [smem:[#allocation4 + $0x4d]] }
  0xed   : > { %v930_v22 = vmax.f32 %v928_v49, %v929_v17  ;;  %v918_v39 = vmax.f32 %v916_v14, %v917_v6  ;;  %v936_v23 = vrot.slane %v935_v19, 2  ;;  %v965_v24 = vsel %vm956_vm2, %v5170_v45, %v948_v58  ;;  %s8414_s16 = sld [smem:[#allocation83_spill]] }
  0xee   : > { %v966_v44 = vsel %vm956_vm2, %v5172_v53, %v949_v20  ;;  %v924_v25 = vrot.slane %v923_v28, 1  ;;  %v951_v27 = vmax.f32 %v5211_v57, %v911_v16  ;;  %v967_v42 = vsel %vm956_vm2, %v5174_v59, %v950_v1 }
  0xef   : > { %v931_v15 = vrot.slane %v930_v22, 1  ;;  %v937_v29 = vmax.f32 %v935_v19, %v936_v23  ;;  %v952_v47 = vmax.f32 %v5217_v21, %v918_v39  ;;  %v5247_v56 = vshrl.u32 %v7865_v8, 7 }
  0xf0   : > { %v925_v32 = vmax.f32 %v923_v28, %v924_v25  ;;  %v968_v45 = vsel %vm956_vm2, %v5185_v12, %v951_v27  ;;  %v4765_v53 = vmov 1983009808   ;;  %v1023_v59 = vcombine.low %v965_v24, %v967_v42  ;;  %v5312_v24 = vld [vmem:[%s5032_s15 + $0x18] sm:$0xff]  ;;  %8254 = sst [smem:[#allocation102_spill]] %s5783_s2  ;;  %s5821_s2 = sld [smem:[#allocation4 + $0x67]] }
  0xf1   : > { %8175 = vst [vmem:[#allocation33_spill] sm:$0xff] %v5247_v56  ;;  %v932_v33 = vmax.f32 %v930_v22, %v931_v15  ;;  %v975_v34 = vunpack.c.l.s4 %v4765_v53  ;;  %v938_v3 = vrot.slane %v937_v29, 1  ;;  %v969_v57 = vsel %vm956_vm2, %v5187_v0, %v952_v47 }
  0xf2   : > { %v953_v36 = vmax.f32 %v5219_v5, %v925_v32  ;;  %v4766_v10 = vmov 1934713408   ;;  %v715_v41 = vmul.f32 0.125, %v5199_v30  ;;  %v1031_v43 = vcombine.low %v966_v44, %v968_v45 }
  0xf3   : > { %v954_v21 = vmax.f32 %v5223_v26, %v932_v33  ;;  %v976_v37 = vunpack.c.0.s8 %v975_v34  ;;  %v1007_v38 = vunpack.c.l.s4 %v4766_v10  ;;  %v939_v12 = vmax.f32 %v937_v29, %v938_v3  ;;  %v5270_v26 = vld [vmem:[%s5032_s15 + $0x10] sm:$0xff]  ;;  %s5678_s15 = sld [smem:[#allocation4 + $0x8e]] }
  0xf4   : > { %v970_v30 = vsel %vm956_vm2, %v5189_v35, %v953_v36  ;;  %v5277_v55 = vcombine.high %v5256_v40, %v5256_v40  ;;  %v5286_v18 = vcombine.high %v5260_v48, %v5260_v48  ;;  %v1117_v31 = vrot.slane %v5267_v51, 5 }
  0xf5   : > { %v971_v0 = vsel %vm956_vm2, %v5195_v7, %v954_v21  ;;  %v5265_v54 = vsub.s32 %v976_v37, %v5247_v56  ;;  %v1008_v5 = vunpack.c.0.s8 %v1007_v38  ;;  %v955_v4 = vmax.f32 %v5231_v62, %v939_v12 }
  0xf6   : > { %v1039_v52 = vcombine.low %v969_v57, %v971_v0  ;;  %v5293_v49 = vcombine.high %v5270_v26, %v5270_v26  ;;  %v436_v11 = vsel %vm435_vm1, %v5256_v40, 0.0  ;;  %v443_v58 = vsel %vm435_vm1, %v5277_v55, 0.0  ;;  %8272 = sst [smem:[#allocation110_spill]] %s5821_s2  ;;  %s5920_s2 = sld [smem:[#allocation4 + $0x8b]] }
  0xf7   : > { %8176 = vst [vmem:[#allocation34_spill] sm:$0xff] %v5265_v54  ;;  %v5280_v7 = vsub.s32 %v1008_v5, %v5247_v56  ;;  %v1030_v63 = vrot.slane %v1023_v59, %v5265_v54  ;;  %v1038_v2 = vrot.slane %v1031_v43, %v5265_v54  ;;  %v972_v62 = vsel %vm956_vm2, %v715_v41, %v955_v4  ;;  %v5332_v5 = vld [vmem:[%s5039_s1] sm:$0xff] }
  0xf8   : > { %v1046_v35 = vrot.slane %v1039_v52, %v5265_v54  ;;  %v1047_v13 = vcombine.low %v970_v30, %v972_v62  ;;  %v437_v60 = vrot.slane %v436_v11, 4  ;;  %v444_v61 = vrot.slane %v443_v58, 4  ;;  %v5335_v52 = vld [vmem:[%s5039_s1 + $0x8] sm:$0xff] }
  0xf9   : > { %8178 = vst [vmem:[#allocation36_spill] sm:$0xff] %v5280_v7  ;;  %v1055_v14 = vcombine.low %v1030_v63, %v1038_v2  ;;  %v450_v9 = vsel %vm435_vm1, %v5260_v48, 0.0  ;;  %v457_v17 = vsel %vm435_vm1, %v5286_v18, 0.0  ;;  %v464_v1 = vsel %vm435_vm1, %v5270_v26, 0.0  ;;  %8214 = sst [smem:[#allocation66_spill]] %s5678_s15  ;;  %s5698_s15 = sld [smem:[#allocation4 + $0x71]] }
  0xfa   : > { %v1054_v6 = vrot.slane %v1047_v13, %v5265_v54  ;;  %v451_v20 = vrot.slane %v450_v9, 4  ;;  %v458_v16 = vrot.slane %v457_v17, 4  ;;  %v438_v28 = vadd.f32 %v437_v60, %v436_v11  ;;  %v5347_v13 = vld [vmem:[%s5039_s1 + $0x10] sm:$0xff] }
  0xfb   : > { %v5305_v19 = vrot.slane %v1055_v14, %v5280_v7  ;;  %v445_v22 = vadd.f32 %v444_v61, %v443_v58  ;;  %v471_v39 = vsel %vm435_vm1, %v5293_v49, 0.0  ;;  %v465_v15 = vrot.slane %v464_v1, 4 }
  0xfc   : > { %v1063_v23 = vcombine.low %v1046_v35, %v1054_v6  ;;  %v452_v44 = vadd.f32 %v451_v20, %v450_v9  ;;  %v459_v25 = vadd.f32 %v458_v16, %v457_v17  ;;  %v439_v27 = vrot.slane %v438_v28, 2  ;;  %8323 = sst [smem:[#allocation131_spill]] %s5920_s2 }
  0xfd   : > { %v446_v42 = vrot.slane %v445_v22, 2  ;;  %v472_v29 = vrot.slane %v471_v39, 4  ;;  %v478_v47 = vsel %vm435_vm1, %v5312_v24, 0.0  ;;  %v466_v53 = vadd.f32 %v465_v15, %v464_v1  ;;  %s5936_s2 = sld [smem:[#allocation4 + $0x31]] }
  0xfe   : > { %v5317_v32 = vrot.slane %v1063_v23, %v5280_v7  ;;  %v453_v33 = vrot.slane %v452_v44, 2  ;;  %v460_v45 = vrot.slane %v459_v25, 2  ;;  %v440_v34 = vadd.f32 %v439_v27, %v438_v28 }
  0xff   : > { %v447_v3 = vadd.f32 %v446_v42, %v445_v22  ;;  %v473_v57 = vadd.f32 %v472_v29, %v471_v39  ;;  %v479_v59 = vrot.slane %v478_v47, 4  ;;  %v467_v10 = vrot.slane %v466_v53, 2  ;;  %8223 = sst [smem:[#allocation74_spill]] %s5698_s15  ;;  %s5718_s15 = sld [smem:[#allocation4 + $0x8d]] }
 0x100   : > { %v5321_v36 = vcombine.low %v5305_v19, %v5317_v32  ;;  %v454_v21 = vadd.f32 %v453_v33, %v452_v44  ;;  %v5323_v37 = vadd.f32 %v460_v45, %v459_v25  ;;  %v5327_v38 = vcombine.high %v5312_v24, %v5312_v24 }
 0x101   : > { %v441_v41 = vrot.slane %v440_v34, 1  ;;  %v474_v12 = vrot.slane %v473_v57, 2  ;;  %v480_v43 = vadd.f32 %v479_v59, %v478_v47  ;;  %v448_v4 = vrot.slane %v447_v3, 1 }
 0x102   : > { %1080 = vst [vmem:[#allocation2 + $0x20] sm:$0xff] %v5321_v36  ;;  %v7866_v0 = vrot.slane %v5321_v36, 5  ;;  %v455_v30 = vrot.slane %v454_v21, 1  ;;  %v5337_v63 = vadd.f32 %v467_v10, %v466_v53  ;;  %v485_v60 = vsel %vm435_vm1, %v5327_v38, 0.0  ;;  %v5388_v53 = vld [vmem:[%s5039_s1 + $0x18] sm:$0xff]  ;;  %s5676_s1 = sld [smem:[#allocation4 + $0x2c]] }
 0x103   : > { %v5339_v2 = vadd.f32 %v474_v12, %v473_v57  ;;  %v481_v62 = vrot.slane %v480_v43, 2  ;;  %v5352_v11 = vadd.f32 %v441_v41, %v440_v34  ;;  %v5360_v61 = vcombine.high %v5332_v5, %v5332_v5 }
 0x104   : > { %v5344_v35 = vsel %vm1106_vm0, %v7866_v0, %v1117_v31  ;;  %v5362_v31 = vadd.f32 %v448_v4, %v447_v3  ;;  %v5364_v9 = vadd.f32 %v455_v30, %v454_v21  ;;  %v486_v17 = vrot.slane %v485_v60, 4 }
 0x105   : > { %8179 = vst [vmem:[#allocation37_spill] sm:$0xff] %v5344_v35  ;;  %1131 = vrot.lane.b32.xlu1 %v5344_v35, %s4761_s29  ;;  %v5354_v58 = vadd.f32 %v481_v62, %v480_v43  ;;  %v5368_v6 = vcombine.high %v5335_v52, %v5335_v52  ;;  %v469_v20 = vrot.slane %v5337_v63, 1  ;;  %v476_v16 = vrot.slane %v5339_v2, 1  ;;  %8233 = sst [smem:[#allocation82_spill]] %s5718_s15  ;;  %s5738_s15 = sld [smem:[#allocation4 + $0x11]] }
 0x106   : > { %v5374_v28 = vcombine.high %v5347_v13, %v5347_v13  ;;  %v572_v22 = vsel %vm435_vm1, %v5332_v5, 0.0  ;;  %v487_v1 = vadd.f32 %v486_v17, %v485_v60  ;;  %v579_v23 = vsel %vm435_vm1, %v5360_v61, 0.0 }
 0x107   : > { %v573_v39 = vrot.slane %v572_v22, 4  ;;  %v586_v44 = vsel %vm435_vm1, %v5335_v52, 0.0  ;;  %v483_v25 = vrot.slane %v5354_v58, 1  ;;  %v580_v15 = vrot.slane %v579_v23, 4 }
 0x108   : > { %v587_v27 = vrot.slane %v586_v44, 4  ;;  %v593_v42 = vsel %vm435_vm1, %v5368_v6, 0.0  ;;  %v488_v29 = vrot.slane %v487_v1, 2  ;;  %v600_v45 = vsel %vm435_vm1, %v5347_v13, 0.0  ;;  %8213 = sst [smem:[#allocation65_spill]] %s5676_s1 }
 0x109   : > { %v574_v47 = vadd.f32 %v573_v39, %v572_v22  ;;  %v594_v33 = vrot.slane %v593_v42, 4  ;;  %v581_v34 = vadd.f32 %v580_v15, %v579_v23  ;;  %v601_v57 = vrot.slane %v600_v45, 4  ;;  %s5696_s1 = sld [smem:[#allocation4 + $0xf]] }
 0x10a   : > { %v588_v3 = vadd.f32 %v587_v27, %v586_v44  ;;  %v607_v59 = vsel %vm435_vm1, %v5374_v28, 0.0  ;;  %v489_v21 = vadd.f32 %v488_v29, %v487_v1  ;;  %v614_v62 = vsel %vm435_vm1, %v5388_v53, 0.0 }
 0x10b   : > { %v575_v10 = vrot.slane %v574_v47, 2  ;;  %v595_v41 = vadd.f32 %v594_v33, %v593_v42  ;;  %v608_v12 = vrot.slane %v607_v59, 4  ;;  %v582_v43 = vrot.slane %v581_v34, 2  ;;  %8242 = sst [smem:[#allocation90_spill]] %s5738_s15  ;;  %s5754_s15 = sld [smem:[#allocation4 + $0x26]] }
 0x10c   : > { %v589_v4 = vrot.slane %v588_v3, 2  ;;  %v602_v30 = vadd.f32 %v601_v57, %v600_v45  ;;  %v5396_v60 = vcombine.high %v5388_v53, %v5388_v53  ;;  %v615_v1 = vrot.slane %v614_v62, 4 }
 0x10d   : > { %v576_v17 = vadd.f32 %v575_v10, %v574_v47  ;;  %v596_v22 = vrot.slane %v595_v41, 2  ;;  %v609_v39 = vadd.f32 %v608_v12, %v607_v59  ;;  %v583_v23 = vadd.f32 %v582_v43, %v581_v34 }
 0x10e   : > { %v590_v44 = vadd.f32 %v589_v4, %v588_v3  ;;  %v603_v15 = vrot.slane %v602_v30, 2  ;;  %v490_v27 = vrot.slane %v489_v21, 1  ;;  %v616_v0 = vadd.f32 %v615_v1, %v614_v62 }
 0x10f   : > { %v577_v42 = vrot.slane %v576_v17, 1  ;;  %v597_v29 = vadd.f32 %v596_v22, %v595_v41  ;;  %v610_v33 = vrot.slane %v609_v39, 2  ;;  %v584_v8 = vrot.slane %v583_v23, 1  ;;  %8222 = sst [smem:[#allocation73_spill]] %s5696_s1  ;;  %s5716_s1 = sld [smem:[#allocation4 + $0x2b]] }
 0x110   : > { %v591_v45 = vrot.slane %v590_v44, 1  ;;  %v604_v57 = vadd.f32 %v603_v15, %v602_v30  ;;  %v621_v47 = vsel %vm435_vm1, %v5396_v60, 0.0  ;;  %v617_v3 = vrot.slane %v616_v0, 2 }
 0x111   : > { %v578_v14 = vadd.f32 %v577_v42, %v576_v17  ;;  %v598_v56 = vrot.slane %v597_v29, 1  ;;  %v611_v51 = vadd.f32 %v610_v33, %v609_v39  ;;  %v585_v10 = vadd.f32 %v584_v8, %v583_v23  ;;  %8246 = sst [smem:[#allocation94_spill]] %s5754_s15 }
 0x112   : > { %v592_v59 = vadd.f32 %v591_v45, %v590_v44  ;;  %v605_v34 = vrot.slane %v604_v57, 1  ;;  %v8180_v12 = vrot.slane %v5323_v37, 1  ;;  %v622_v22 = vrot.slane %v621_v47, 4  ;;  %s5767_s15 = sld [smem:[#allocation4 + $0x74]] }
 0x113   : > { %v599_v41 = vadd.f32 %v598_v56, %v597_v29  ;;  %v612_v4 = vrot.slane %v611_v51, 1  ;;  %v618_v35 = vadd.f32 %v617_v3, %v616_v0  ;;  %v684_v30 = vadd.f32 %v578_v14, %v5352_v11 }
 0x114   : > { %v463_v43 = vadd.f32 %v8180_v12, %v5323_v37  ;;  %v470_v62 = vadd.f32 %v469_v20, %v5337_v63  ;;  %v606_v17 = vadd.f32 %v605_v34, %v604_v57  ;;  %v623_v39 = vadd.f32 %v622_v22, %v621_v47 }
 0x115   : > { %v685_v15 = vadd.f32 %v585_v10, %v5362_v31  ;;  %v477_v8 = vadd.f32 %v476_v16, %v5339_v2  ;;  %v484_v23 = vadd.f32 %v483_v25, %v5354_v58  ;;  %v5408_v44 = vadd.f32 %v490_v27, %v489_v21  ;;  %8232 = sst [smem:[#allocation81_spill]] %s5716_s1  ;;  %s5736_s1 = sld [smem:[#allocation4 + $0x6c]] }
 0x116   : > { %v686_v37 = vadd.f32 %v592_v59, %v5364_v9  ;;  %v613_v56 = vadd.f32 %v612_v4, %v611_v51  ;;  %v624_v1 = vrot.slane %v623_v39, 2  ;;  %v687_v42 = vadd.f32 %v599_v41, %v463_v43 }
 0x117   : > { %v716_v0 = vsel %vm435_vm1, %v5256_v40, -inf  ;;  %v619_v14 = vrot.slane %v618_v35, 1  ;;  %v5413_v63 = vmul.f32 0.125, %v684_v30  ;;  %v723_v31 = vsel %vm435_vm1, %v5277_v55, -inf }
 0x118   : > { %v717_v11 = vrot.slane %v716_v0, 4  ;;  %v688_v2 = vadd.f32 %v606_v17, %v470_v62  ;;  %v5417_v20 = vmul.f32 0.125, %v685_v15  ;;  %v724_v58 = vrot.slane %v723_v31, 4  ;;  %8250 = sst [smem:[#allocation98_spill]] %s5767_s15 }
 0x119   : > { %v730_v9 = vsel %vm435_vm1, %v5260_v48, -inf  ;;  %v5421_v51 = vmul.f32 0.125, %v686_v37  ;;  %v737_v40 = vsel %vm435_vm1, %v5286_v18, -inf  ;;  %v625_v21 = vadd.f32 %v624_v1, %v623_v39 }
 0x11a   : > { %v718_v16 = vmax.f32 %v716_v0, %v717_v11  ;;  %v731_v25 = vrot.slane %v730_v9, 4  ;;  %v725_v27 = vmax.f32 %v723_v31, %v724_v58  ;;  %v738_v29 = vrot.slane %v737_v40, 4 }
 0x11b   : > { %v744_v55 = vsel %vm435_vm1, %v5270_v26, -inf  ;;  %v5427_v33 = vadd.f32 %v613_v56, %v477_v8  ;;  %v620_v10 = vadd.f32 %v619_v14, %v618_v35  ;;  %v751_v34 = vsel %vm435_vm1, %v5293_v49, -inf  ;;  %8241 = sst [smem:[#allocation89_spill]] %s5736_s1  ;;  %s5752_s1 = sld [smem:[#allocation4 + $0x81]] }
 0x11c   : > { %v719_v45 = vrot.slane %v718_v16, 2  ;;  %v732_v57 = vmax.f32 %v730_v9, %v731_v25  ;;  %v745_v47 = vrot.slane %v744_v55, 4  ;;  %v726_v48 = vrot.slane %v725_v27, 2 }
 0x11d   : > { %v739_v59 = vmax.f32 %v737_v40, %v738_v29  ;;  %v752_v43 = vrot.slane %v751_v34, 4  ;;  %v626_v41 = vrot.slane %v625_v21, 1  ;;  %v758_v26 = vsel %vm435_vm1, %v5312_v24, -inf }
 0x11e   : > { %v720_v3 = vmax.f32 %v718_v16, %v719_v45  ;;  %v733_v12 = vrot.slane %v732_v57, 2  ;;  %v746_v18 = vmax.f32 %v744_v55, %v745_v47  ;;  %v727_v4 = vmax.f32 %v725_v27, %v726_v48 }
 0x11f   : > { %v740_v22 = vrot.slane %v739_v59, 2  ;;  %v753_v39 = vmax.f32 %v751_v34, %v752_v43  ;;  %v5433_v35 = vmul.f32 0.125, %v687_v42  ;;  %v5435_v15 = vmul.f32 0.125, %v688_v2 }
 0x120   : > { %v721_v30 = vrot.slane %v720_v3, 1  ;;  %v734_v62 = vmax.f32 %v732_v57, %v733_v12  ;;  %v747_v17 = vrot.slane %v746_v18, 2  ;;  %v759_v49 = vrot.slane %v758_v26, 4 }
 0x121   : > { %v741_v8 = vmax.f32 %v739_v59, %v740_v22  ;;  %v728_v37 = vrot.slane %v727_v4, 1  ;;  %v754_v0 = vrot.slane %v753_v39, 2  ;;  %v5437_v14 = vadd.f32 %v626_v41, %v625_v21  ;;  %8245 = sst [smem:[#allocation93_spill]] %s5752_s1  ;;  %s5765_s1 = sld [smem:[#allocation4 + $0x8f]] }
 0x122   : > { %v735_v56 = vrot.slane %v734_v62, 1  ;;  %v748_v1 = vmax.f32 %v746_v18, %v747_v17  ;;  %v5439_v11 = vadd.f32 %v620_v10, %v484_v23  ;;  %v760_v31 = vmax.f32 %v758_v26, %v759_v49 }
 0x123   : > { %v765_v24 = vsel %vm435_vm1, %v5327_v38, -inf  ;;  %v5443_v58 = vmax.f32 %v720_v3, %v721_v30  ;;  %v742_v42 = vrot.slane %v741_v8, 1  ;;  %v755_v9 = vmax.f32 %v753_v39, %v754_v0 }
 0x124   : > { %v766_v2 = vrot.slane %v765_v24, 4  ;;  %v749_v16 = vrot.slane %v748_v1, 1  ;;  %v761_v25 = vrot.slane %v760_v31, 2  ;;  %v828_v40 = vsel %vm435_vm1, %v5332_v5, -inf }
 0x125   : > { %v835_v21 = vsel %vm435_vm1, %v5360_v61, -inf  ;;  %v5449_v27 = vmax.f32 %v727_v4, %v728_v37  ;;  %v5451_v23 = vmax.f32 %v734_v62, %v735_v56  ;;  %v829_v55 = vrot.slane %v828_v40, 4 }
 0x126   : > { %v767_v29 = vmax.f32 %v765_v24, %v766_v2  ;;  %v756_v38 = vrot.slane %v755_v9, 1  ;;  %v836_v45 = vrot.slane %v835_v21, 4  ;;  %v842_v57 = vsel %vm435_vm1, %v5335_v52, -inf }
 0x127   : > { %v849_v47 = vsel %vm435_vm1, %v5368_v6, -inf  ;;  %v5457_v10 = vmax.f32 %v741_v8, %v742_v42  ;;  %v762_v5 = vmax.f32 %v760_v31, %v761_v25  ;;  %v830_v48 = vmax.f32 %v828_v40, %v829_v55  ;;  %8249 = sst [smem:[#allocation97_spill]] %s5765_s1  ;;  %s5781_s1 = sld [smem:[#allocation4 + $0x20]] }
 0x128   : > { %v843_v59 = vrot.slane %v842_v57, 4  ;;  %v5459_v61 = vmax.f32 %v748_v1, %v749_v16  ;;  %v837_v34 = vmax.f32 %v835_v21, %v836_v45  ;;  %v850_v3 = vrot.slane %v849_v47, 4 }
 0x129   : > { %v856_v12 = vsel %vm435_vm1, %v5347_v13, -inf  ;;  %v768_v18 = vrot.slane %v767_v29, 2  ;;  %v831_v43 = vrot.slane %v830_v48, 2  ;;  %v5463_v52 = vmax.f32 %v755_v9, %v756_v38 }
 0x12a   : > { %v844_v41 = vmax.f32 %v842_v57, %v843_v59  ;;  %v857_v4 = vrot.slane %v856_v12, 4  ;;  %v838_v22 = vrot.slane %v837_v34, 2  ;;  %v851_v6 = vmax.f32 %v849_v47, %v850_v3 }
 0x12b   : > { %v863_v26 = vsel %vm435_vm1, %v5374_v28, -inf  ;;  %v763_v30 = vrot.slane %v762_v5, 1  ;;  %v832_v62 = vmax.f32 %v830_v48, %v831_v43  ;;  %v870_v13 = vsel %vm435_vm1, %v5388_v53, -inf }
 0x12c   : > { %v845_v17 = vrot.slane %v844_v41, 2  ;;  %v858_v39 = vmax.f32 %v856_v12, %v857_v4  ;;  %v839_v8 = vmax.f32 %v837_v34, %v838_v22  ;;  %v852_v49 = vrot.slane %v851_v6, 2 }
 0x12d   : > { %v864_v37 = vrot.slane %v863_v26, 4  ;;  %v769_v56 = vmax.f32 %v767_v29, %v768_v18  ;;  %v833_v1 = vrot.slane %v832_v62, 1  ;;  %v871_v2 = vrot.slane %v870_v13, 4  ;;  %8253 = sst [smem:[#allocation101_spill]] %s5781_s1  ;;  %s5979_s1 = sld [smem:[#allocation4 + $0xaf]] }
 0x12e   : > { %v846_v0 = vmax.f32 %v844_v41, %v845_v17  ;;  %v859_v31 = vrot.slane %v858_v39, 2  ;;  %v840_v24 = vrot.slane %v839_v8, 1  ;;  %v853_v42 = vmax.f32 %v851_v6, %v852_v49 }
 0x12f   : > { %v865_v9 = vmax.f32 %v863_v26, %v864_v37  ;;  %v834_v16 = vmax.f32 %v832_v62, %v833_v1  ;;  %v877_v40 = vsel %vm435_vm1, %v5396_v60, -inf  ;;  %v872_v45 = vmax.f32 %v870_v13, %v871_v2 }
 0x130   : > { %v847_v28 = vrot.slane %v846_v0, 1  ;;  %v860_v25 = vmax.f32 %v858_v39, %v859_v31  ;;  %v841_v21 = vmax.f32 %v839_v8, %v840_v24  ;;  %v854_v55 = vrot.slane %v853_v42, 1 }
 0x131   : > { %v866_v38 = vrot.slane %v865_v9, 2  ;;  %v878_v29 = vrot.slane %v877_v40, 4  ;;  %v940_v47 = vmax.f32 %v5443_v58, %v834_v16  ;;  %v873_v34 = vrot.slane %v872_v45, 2 }
 0x132   : > { %v848_v57 = vmax.f32 %v846_v0, %v847_v28  ;;  %v861_v53 = vrot.slane %v860_v25, 1  ;;  %v855_v48 = vmax.f32 %v853_v42, %v854_v55  ;;  %v941_v3 = vmax.f32 %v5449_v27, %v841_v21  ;;  %v5504_v28 = vld [vmem:[#allocation2] sm:$0xe0] }
 0x133   : > { %v867_v59 = vmax.f32 %v865_v9, %v866_v38  ;;  %v764_v12 = vmax.f32 %v762_v5, %v763_v30  ;;  %v879_v43 = vmax.f32 %v877_v40, %v878_v29  ;;  %v770_v60 = vrot.slane %v769_v56, 1  ;;  %v8182_v29 = vld [vmem:[#allocation37_spill] sm:$0xff]  ;;  %8342 = sst [smem:[#allocation132_spill]] %s5979_s1  ;;  %s8433_s1 = sld [smem:[#allocation78_spill]] }
 0x134   : > { %v862_v18 = vmax.f32 %v860_v25, %v861_v53  ;;  %v942_v41 = vmax.f32 %v5451_v23, %v848_v57  ;;  %v874_v22 = vmax.f32 %v872_v45, %v873_v34  ;;  %v943_v6 = vmax.f32 %v5457_v10, %v855_v48  ;;  %v5534_v48 = vld [vmem:[#allocation2 + $0x40] sm:$0xe0] }
 0x135   : > { %v868_v4 = vrot.slane %v867_v59, 1  ;;  %v880_v26 = vrot.slane %v879_v43, 2  ;;  %v957_v62 = vsel %vm956_vm2, %v5413_v63, %v940_v47  ;;  %v958_v58 = vsel %vm956_vm2, %v5417_v20, %v941_v3  ;;  %v5529_v47 = vpop.permute.xlu1 %4395  ;;  %8183 = vst [vmem:[#allocation37_spill] sm:$0xff] %v5534_v48 }
 0x136   : > { %v959_v27 = vsel %vm956_vm2, %v5421_v51, %v942_v41  ;;  %v875_v30 = vrot.slane %v874_v22, 1  ;;  %v944_v17 = vmax.f32 %v5459_v61, %v862_v18  ;;  %v960_v23 = vsel %vm956_vm2, %v5433_v35, %v943_v6  ;;  %v5554_v41 = vld [vmem:[#allocation2 + $0x70] sm:$0x7] }
 0x137   : > { %v869_v5 = vmax.f32 %v867_v59, %v868_v4  ;;  %v691_v10 = vadd.f32 %v5437_v14, %v5408_v44  ;;  %v881_v39 = vmax.f32 %v879_v43, %v880_v26  ;;  %v706_v8 = vmul.f32 0.125, %v5439_v11  ;;  %v1927_v43 = vld [vmem:[#allocation2 + $0x48] sm:$0xe0]  ;;  %8184 = vst [vmem:[#allocation38_spill] sm:$0xff] %v5554_v41 }
 0x138   : > { %v876_v63 = vmax.f32 %v874_v22, %v875_v30  ;;  %v973_v49 = vcombine.low %v957_v62, %v959_v27  ;;  %v981_v37 = vcombine.low %v958_v58, %v960_v23  ;;  %v705_v20 = vmul.f32 0.125, %v5427_v33  ;;  %v4531_v26 = vld [vmem:[#allocation2 + $0x8] sm:$0xff] }
 0x139   : > { %v771_v13 = vmax.f32 %v769_v56, %v770_v60  ;;  %v882_v51 = vrot.slane %v881_v39, 1  ;;  %v945_v1 = vmax.f32 %v5463_v52, %v869_v5  ;;  %v961_v61 = vsel %vm956_vm2, %v5435_v15, %v944_v17  ;;  %v5536_v59 = vpop.permute.xlu1 %1366  ;;  %v1138_v5 = vpop.permute.xlu0 %1137 }
 0x13a   : > { %v946_v0 = vmax.f32 %v764_v12, %v876_v63  ;;  %v5493_v35 = vcombine.high %v5305_v19, %v5317_v32  ;;  %v707_v44 = vmul.f32 0.125, %v691_v10  ;;  %v980_v31 = vrot.slane %v973_v49, %v5265_v54  ;;  %v1933_v63 = vld [vmem:[#allocation2 + $0x78] sm:$0x7] }
 0x13b   : > { %v883_v14 = vmax.f32 %v881_v39, %v882_v51  ;;  %v988_v33 = vrot.slane %v981_v37, %v5265_v54  ;;  %v962_v52 = vsel %vm956_vm2, %v705_v20, %v945_v1  ;;  %v1107_v21 = vrot.slane %v5504_v28, 5 }
 0x13c   : > { %v963_v11 = vsel %vm956_vm2, %v706_v8, %v946_v0  ;;  %1089 = vst [vmem:[#allocation2 + $0x60] sm:$0xff] %v5493_v35  ;;  %v8181_v57 = vrot.slane %v5321_v36, 5  ;;  %v1942_v34 = vrot.slane %v5534_v48, 5  ;;  %v8185_v4 = vlaneseq }
 0x13d   : > { %v947_v56 = vmax.f32 %v771_v13, %v883_v14  ;;  %v989_v24 = vcombine.low %v961_v61, %v963_v11  ;;  %v1005_v32 = vcombine.low %v980_v31, %v988_v33  ;;  %v5546_v12 = vpop.permute.xlu1 %4405  ;;  %v1945_v6 = vrot.slane %v1927_v43, 5 }
 0x13e   : > { %v5559_v22 = vand.u32 127, %v8185_v4  ;;  %v5563_v62 = vrot.slane %v4531_v26, 5  ;;  %v1952_v58 = vrot.slane %v5554_v41, 5  ;;  %v1948_v27 = vrot.slane %v5493_v35, 5 }
 0x13f   : > { %v964_v15 = vsel %vm956_vm2, %v707_v44, %v947_v56  ;;  %v996_v42 = vrot.slane %v989_v24, %v5265_v54  ;;  %v1012_v2 = vrot.slane %v1005_v32, %v5280_v7  ;;  %v4397_v37 = vunpack.i.l.bf16 %v5529_v47 }
 0x140   : > { %v997_v19 = vcombine.low %v962_v52, %v964_v15  ;;  %vm1141_vm3 = vcmp.lt.s32.totalorder %v5559_v22, 3  ;;  %v5574_v17 = vsel %vm1106_vm0, %v1945_v6, %v5563_v62  ;;  %v5577_v23 = vsel %vm1106_vm0, %v1948_v27, %v1952_v58  ;;  %v5805_v15 = vpop.permute.xlu0 %4400 }
 0x141   : > { %v5556_v60 = vpop.permute.xlu1 %1252  ;;  %v5585_v39 = vpack.i.bf16 %v5563_v62, %v5574_v17  ;;  %v1151_v20 = vstv %s5612_s22  ;;  %v1155_v13 = vstv %s5614_s30  ;;  %v1378_v51 = vstv %s5616_s5  ;;  %s5789_s5 = sld [smem:[#allocation4 + $0x27]]  ;;  %s5811_s30 = sld [smem:[#allocation4 + $0x6]] }
 0x142   : > { %v1004_v9 = vrot.slane %v997_v19, %v5265_v54  ;;  %v1161_v1 = vstv %s5624_s21  ;;  %v1167_v0 = vstv %s5626_s10  ;;  %v1175_v61 = vstv %s5628_s23  ;;  %s5791_s21 = sld [smem:[#allocation4 + $0x89]]  ;;  %s5803_s23 = sld [smem:[#allocation4 + $0x90]] }
 0x143   : > { %v1384_v35 = vstv %s5618_s19  ;;  %v1189_v14 = vstv %s5632_s13  ;;  %s8257_s13 = sld [smem:[#allocation59_spill]]  ;;  %v1217_v24 = vstv %s5644_s4  ;;  %v1231_v19 = vstv %s5648_s26  ;;  %s5837_s10 = sld [smem:[#allocation4 + $0x13]] }
 0x144   : > { %v1013_v16 = vcombine.low %v996_v42, %v1004_v9  ;;  %v1223_v42 = vstv %s5646_s6  ;;  %v1237_v32 = vstv %s5650_s25  ;;  %v1392_v9 = vstv %s5652_s28  ;;  %s5827_s6 = sld [smem:[#allocation4 + $0xc]]  ;;  %s5871_s19 = sld [smem:[#allocation4 + $0x2f]] }
 0x145   : > { %s5887_s4 = sld [smem:[#allocation4 + $0x14]]  ;;  %v1528_v58 = vstv %s5748_s0  ;;  %s5895_s28 = sld [smem:[#allocation4 + $0x1b]]  ;;  %vm1368_vm4 = vcmp.lt.s32.totalorder %v5559_v22, 1  ;;  %vm1254_vm5 = vcmp.lt.s32.totalorder %v5559_v22, 2  ;;  %vm1587_vm6 = vcmp.lt.s32.totalorder %v5559_v22, 127 }
 0x146   : > { %v1020_v25 = vrot.slane %v1013_v16, %v5280_v7  ;;  %v1406_v16 = vstv %s5656_s18  ;;  %s5839_s18 = sld [smem:[#allocation4 + $0x75]]  ;;  %s5928_s26 = sld [smem:[#allocation4 + $0x30]]  ;;  %vm1821_vm7 = vcmp.lt.s32.totalorder %v5559_v22, 125  ;;  %vm1704_vm8 = vcmp.lt.s32.totalorder %v5559_v22, 126 }
 0x147   : > { %8255 = sst [smem:[#allocation103_spill]] %s5789_s5  ;;  %s5861_s5 = sld [smem:[#allocation4 + $0x28]]  ;;  %vm3239_vm9 = vcmask 31744  }
 0x148   : > { %v5507_v40 = vcombine.low %v1012_v2, %v1020_v25  ;;  %v1022_v55 = vcombine.high %v1012_v2, %v1020_v25  ;;  %8256 = sst [smem:[#allocation104_spill]] %s5791_s21  ;;  %s5813_s21 = sld [smem:[#allocation4 + $0x68]]  ;;  %v1398_v2 = vstv %s5654_s27  ;;  %v1412_v25 = vstv %s5658_s24 }
 0x149   : > { %8261 = sst [smem:[#allocation106_spill]] %s5803_s23  ;;  %s5863_s23 = sld [smem:[#allocation4 + $0x8a]] }
 0x14a   : > { %1079 = vst [vmem:[#allocation2 + $0x10] sm:$0xff] %v5507_v40  ;;  %v1108_v38 = vrot.slane %v5507_v40, 5  ;;  %1088 = vst [vmem:[#allocation2 + $0x50] sm:$0xff] %v1022_v55  ;;  %v1943_v3 = vrot.slane %v1022_v55, 5  ;;  %8264 = sst [smem:[#allocation107_spill]] %s5811_s30  ;;  %s5879_s27 = sld [smem:[#allocation4 + $0xd]] }
 0x14b   : > { %8276 = sst [smem:[#allocation111_spill]] %s5827_s6  ;;  %s5873_s6 = sld [smem:[#allocation4 + $0x91]] }
 0x14c   : > { %v1109_v45 = vsel %vm1106_vm0, %v1107_v21, %v1108_v38  ;;  %v1114_v53 = vsel %vm1106_vm0, %v1108_v38, %v8181_v57  ;;  %v5549_v18 = vsel %vm1106_vm0, %v1942_v34, %v1943_v3  ;;  %v5594_v8 = vsel %vm1106_vm0, %v1943_v3, %v1948_v27  ;;  %8283 = sst [smem:[#allocation113_spill]] %s5837_s10  ;;  %s5853_s10 = sld [smem:[#allocation4 + $0x21]] }
 0x14d   : > { %1127 = vrot.lane.b32.xlu0 %v1109_v45, %s4761_s29  ;;  %1356 = vrot.lane.b32.xlu1 %v1109_v45, %s7898_s17  ;;  %v1420_v21 = vstv %s8257_s13  ;;  %8285 = sst [smem:[#allocation114_spill]] %s5839_s18  ;;  %s5855_s18 = sld [smem:[#allocation4 + $0x83]] }
 0x14e   : > { %8266 = sst [smem:[#allocation108_spill]] %s5813_s21  ;;  %s5829_s21 = sld [smem:[#allocation4 + $0x6e]] }
 0x14f   : > { %8297 = sst [smem:[#allocation119_spill]] %s5861_s5  ;;  %s5881_s5 = sld [smem:[#allocation4 + $0x6f]] }
 0x150   : > { %8299 = sst [smem:[#allocation120_spill]] %s5863_s23  ;;  %s5918_s23 = sld [smem:[#allocation4 + $0x29]] }
 0x151   : > { %1129 = vrot.lane.b32.xlu0 %v1114_v53, %s4761_s29  ;;  %1358 = vrot.lane.b32.xlu1 %v1114_v53, %s7898_s17  ;;  %8304 = sst [smem:[#allocation121_spill]] %s5871_s19  ;;  %s5889_s19 = sld [smem:[#allocation4 + $0x76]] }
 0x152   : > { %8293 = sst [smem:[#allocation117_spill]] %s5853_s10  ;;  %s5930_s22 = sld [smem:[#allocation4 + $0x92]] }
 0x153   : > { %8294 = sst [smem:[#allocation118_spill]] %s5855_s18  ;;  %s5960_s0 = sld [smem:[#allocation4 + $0xa1]] }
 0x154   : > { %8278 = sst [smem:[#allocation112_spill]] %s5829_s21  ;;  %s5845_s21 = sld [smem:[#allocation4 + $0x1a]] }
 0x155   : > { %4410 = vrot.lane.b32.xlu0 %v5108_v50, %s7879_s14  ;;  %1585 = vrot.lane.b32.xlu1 %v5103_v46, %s7877_s8  ;;  %8305 = sst [smem:[#allocation122_spill]] %s5873_s6  ;;  %s8329_s6 = sld [smem:[#allocation108_spill]] }
 0x156   : > { %8306 = sst [smem:[#allocation123_spill]] %s5879_s27  ;;  %s8335_s24 = sld [smem:[#allocation119_spill]] }
 0x157   : > { %8309 = sst [smem:[#allocation124_spill]] %s5887_s4  ;;  %s8336_s25 = sld [smem:[#allocation120_spill]] }
 0x158   : > { %8311 = sst [smem:[#allocation125_spill]] %s5889_s19  ;;  %s8337_s15 = sld [smem:[#allocation121_spill]] }
 0x159   : > { %1360 = vrot.lane.b32.xlu0 %v8182_v29, %s7898_s17  ;;  %1244 = vrot.lane.b32.xlu1 %v1114_v53, %s7879_s14  ;;  %8315 = sst [smem:[#allocation126_spill]] %s5895_s28  ;;  %s5966_s13 = sld [smem:[#allocation4 + $0x46]] }
 0x15a   : > { %8287 = sst [smem:[#allocation115_spill]] %s5845_s21  ;;  %s5986_s21 = sld [smem:[#allocation4 + $0x54]] }
 0x15b   : > { %8322 = sst [smem:[#allocation130_spill]] %s5918_s23  ;;  %s5938_s23 = sld [smem:[#allocation4 + $0x93]] }
 0x15c   : > { %8334 = sst [smem:[#allocation108_spill]] %s5960_s0  ;;  %s8345_s18 = sld [smem:[#allocation130_spill]] }
 0x15d   : > { %1575 = vrot.lane.b32.xlu0 %v1109_v45, %s7877_s8  ;;  %1577 = vrot.lane.b32.xlu1 %v1114_v53, %s7877_s8  ;;  %8341 = sst [smem:[#allocation121_spill]] %s5977_s20  ;;  %s8346_s10 = sld [smem:[#allocation131_spill]] }
 0x15e   : > { %s6000_s27 = sld [smem:[#allocation4 + $0xbd]]  ;;  %s6002_s4 = sld [smem:[#allocation4 + $0x32]] }
 0x15f   : > { %8339 = sst [smem:[#allocation119_spill]] %s5966_s13  ;;  %s6022_s28 = sld [smem:[#allocation4 + $0x39]] }
 0x160   : > { %8343 = sst [smem:[#allocation133_spill]] %s5986_s21  ;;  %s8375_s19 = sld [smem:[#allocation62_spill]] }
 0x161   : > { %1242 = vrot.lane.b32.xlu0 %v1109_v45, %s7879_s14  ;;  %4415 = vrot.lane.b32.xlu1 %v5108_v50, %s7873_s11  ;;  %s8383_s21 = sld [smem:[#allocation66_spill]]  ;;  %s8397_s30 = sld [smem:[#allocation69_spill]] }
 0x162   : > { %s8442_s20 = sld [smem:[#allocation79_spill]]  ;;  %s8448_s13 = sld [smem:[#allocation81_spill]] }
 0x163   : > { %s8449_s0 = sld [smem:[#allocation82_spill]] }
 0x164   : > { %8349 = sst [smem:[#allocation131_spill]] %s6000_s27  ;;  %s8374_s27 = sld [smem:[#allocation61_spill]] }
 0x165   : > { %1246 = vrot.lane.b32.xlu0 %v8182_v29, %s7879_s14  ;;  %1813 = vrot.lane.b32.xlu1 %v8182_v29, %s7873_s11  ;;  %8350 = sst [smem:[#allocation39_spill]] %s6002_s4  ;;  %s8393_s4 = sld [smem:[#allocation68_spill]] }
 0x166   : > { %8355 = sst [smem:[#allocation41_spill]] %s6022_s28  ;;  %s8416_s28 = sld [smem:[#allocation84_spill]] }
 0x169   : > { %1579 = vrot.lane.b32.xlu0 %v8182_v29, %s7877_s8  ;;  %1692 = vrot.lane.b32.xlu1 %v1109_v45, %s7875_s9  ;;  %s5638_s8 = sld [smem:[#allocation4 + $0x7e]]  ;;  %v8453_v7 = vstv %s8449_s0 }
 0x16d   : > { %1809 = vrot.lane.b32.xlu0 %v1109_v45, %s7873_s11  ;;  %1962 = vrot.lane.b32.xlu1 %v5549_v18, %s4761_s29 }
 0x16f   : > { %8197 = sst [smem:[#allocation50_spill]] %s5638_s8  ;;  %v1209_v52 = vstv %s5638_s8  ;;  %s8328_s8 = sld [smem:[#allocation111_spill]] }
 0x171   : > { %1811 = vrot.lane.b32.xlu0 %v1114_v53, %s7873_s11  ;;  %1694 = vrot.lane.b32.xlu1 %v1114_v53, %s7875_s9  ;;  %v4403_v53 = vunpack.i.h.bf16 %v5805_v15 }
 0x175   : > { %1819 = vrot.lane.b32.xlu0 %v5103_v46, %s7873_s11  ;;  %1696 = vrot.lane.b32.xlu1 %v8182_v29, %s7875_s9  ;;  %s5634_s11 = sld [smem:[#allocation4 + $0x77]] }
 0x177   : > { %v1132_v30 = vpop.permute.xlu1 %1131 }
 0x178   : > { %v1144_v10 = vsel %vm1141_vm3, %v1138_v5, %v1132_v30 }
 0x179   : > { %1147 = vst [vmem:[#allocation3 + $0x10] sm:$0x3f] %v1144_v10  ;;  %4420 = vrot.lane.b32.xlu0 %v5108_v50, %s7875_s9  ;;  %1966 = vrot.lane.b32.xlu1 %v5577_v23, %s4761_s29  ;;  %v1954_v50 = vrot.slane %v1933_v63, 5  ;;  %v5923_v63 = vmul.f32 %v1528_v58, %v5507_v40 }
 0x17b   : > { %v5606_v49 = vsel %vm1106_vm0, %v5563_v62, %v1954_v50  ;;  %8195 = sst [smem:[#allocation48_spill]] %s5634_s11  ;;  %v1195_v11 = vstv %s5634_s11 }
 0x17c   : > { %s5801_s11 = sld [smem:[#allocation4 + $0x2e]] }
 0x17d   : > { %4425 = vrot.lane.b32.xlu0 %v5585_v39, %s4761_s29  ;;  %2078 = vrot.lane.b32.xlu1 %v5549_v18, %s7879_s14 }
 0x181   : > { %1964 = vrot.lane.b32.xlu0 %v5594_v8, %s4761_s29  ;;  %2194 = vrot.lane.b32.xlu1 %v5549_v18, %s7898_s17 }
 0x182   : > { %8259 = sst [smem:[#allocation105_spill]] %s5801_s11  ;;  %s5819_s11 = sld [smem:[#allocation4 + $0x5]] }
 0x185   : > { %1702 = vrot.lane.b32.xlu0 %v5103_v46, %s7875_s9  ;;  %2080 = vrot.lane.b32.xlu1 %v5594_v8, %s7879_s14  ;;  %s5636_s9 = sld [smem:[#allocation4 + $0x1c]]  ;;  %v4398_v46 = vunpack.i.h.bf16 %v5529_v47 }
 0x188   : > { %8270 = sst [smem:[#allocation109_spill]] %s5819_s11  ;;  %s5847_s11 = sld [smem:[#allocation4 + $0x7c]] }
 0x189   : > { %1972 = vrot.lane.b32.xlu0 %v5606_v49, %s4761_s29  ;;  %2082 = vrot.lane.b32.xlu1 %v5577_v23, %s7879_s14  ;;  %s5630_s29 = sld [smem:[#allocation4 + $0x70]] }
 0x18b   : > { %8196 = sst [smem:[#allocation49_spill]] %s5636_s9  ;;  %v1203_v31 = vstv %s5636_s9  ;;  %s5912_s9 = sld [smem:[#allocation4 + $0x84]] }
 0x18d   : > { %4430 = vrot.lane.b32.xlu0 %v5585_v39, %s7879_s14  ;;  %2198 = vrot.lane.b32.xlu1 %v5577_v23, %s7898_s17  ;;  %s8198_s14 = smov 127  }
 0x18e   : > { %8289 = sst [smem:[#allocation116_spill]] %s5847_s11  ;;  %s5988_s11 = sld [smem:[#allocation4 + $0xb6]] }
 0x18f   : > { %8193 = sst [smem:[#allocation46_spill]] %s5630_s29  ;;  %v1181_v44 = vstv %s5630_s29  ;;  %s5952_s29 = sld [smem:[#allocation4 + $0x9a]] }
 0x191   : > { %4435 = vrot.lane.b32.xlu0 %v5585_v39, %s7898_s17  ;;  %2412 = vrot.lane.b32.xlu1 %v5549_v18, %s8198_s14  ;;  %8320 = sst [smem:[#allocation129_spill]] %s5912_s9  ;;  %s8373_s9 = sld [smem:[#allocation60_spill]] }
 0x194   : > { %8344 = sst [smem:[#allocation134_spill]] %s5988_s11  ;;  %s8382_s11 = sld [smem:[#allocation65_spill]] }
 0x195   : > { %2196 = vrot.lane.b32.xlu0 %v5594_v8, %s7898_s17  ;;  %2414 = vrot.lane.b32.xlu1 %v5594_v8, %s8198_s14  ;;  %s8215_s17 = smov 2  }
 0x199   : > { %2088 = vrot.lane.b32.xlu0 %v5606_v49, %s8215_s17  ;;  %2422 = vrot.lane.b32.xlu1 %v5606_v49, %s8198_s14  ;;  %s8224_s17 = smov 1  }
 0x19d   : > { %2204 = vrot.lane.b32.xlu0 %v5606_v49, %s8224_s17  ;;  %4445 = vrot.lane.b32.xlu1 %v5585_v39, %s8225_s7  ;;  %s8234_s17 = smov 125  }
 0x1a1   : > { %4440 = vrot.lane.b32.xlu0 %v5585_v39, %s8198_s14  ;;  %2650 = vrot.lane.b32.xlu1 %v5574_v17, %s8234_s17  ;;  %v4402_v39 = vunpack.i.l.bf16 %v5805_v15 }
 0x1a5   : > { %2416 = vrot.lane.b32.xlu0 %v5577_v23, %s8198_s14  ;;  %2646 = vrot.lane.b32.xlu1 %v5594_v8, %s8234_s17  ;;  %s5756_s14 = sld [smem:[#allocation4 + $0x88]] }
 0x1a9   : > { %2528 = vrot.lane.b32.xlu0 %v5549_v18, %s8225_s7  ;;  %2532 = vrot.lane.b32.xlu1 %v5577_v23, %s8225_s7 }
 0x1ab   : > { %8247 = sst [smem:[#allocation95_spill]] %s5756_s14  ;;  %s5775_s14 = sld [smem:[#allocation4 + $0x7b]] }
 0x1ad   : > { %2644 = vrot.lane.b32.xlu0 %v5549_v18, %s8234_s17  ;;  %2648 = vrot.lane.b32.xlu1 %v5577_v23, %s8234_s17  ;;  %v1522_v23 = vstv %s5746_s12  ;;  %s5968_s12 = sld [smem:[#allocation4 + $0xa8]] }
 0x1ae   : > { %v5905_v10 = vmul.f32 %v1522_v23, %v5507_v40  ;;  %v5908_v27 = vmul.f32 %v1522_v23, %v5321_v36  ;;  %v5942_v40 = vld [vmem:[#allocation2 + $0x20] sm:$0xff] }
 0x1af   : > { %v5945_v50 = vmul.f32 %v5942_v40, %v1528_v58 }
 0x1b1   : > { %8252 = sst [smem:[#allocation100_spill]] %s5775_s14  ;;  %2530 = vrot.lane.b32.xlu0 %v5594_v8, %s8225_s7  ;;  %s5994_s14 = sld [smem:[#allocation4 + $0x5b]] }
 0x1b3   : > { %8340 = sst [smem:[#allocation120_spill]] %s5968_s12 }
 0x1b4   : > { %s8443_s12 = sld [smem:[#allocation80_spill]] }
 0x1b5   : > { %2652 = vrot.lane.b32.xlu0 %v5563_v62, %s8234_s17 }
 0x1b7   : > { %8347 = sst [smem:[#allocation130_spill]] %s5994_s14  ;;  %s8380_s14 = sld [smem:[#allocation64_spill]] }
 0x1b9   : > { %2538 = vrot.lane.b32.xlu0 %v5606_v49, %s8225_s7  ;;  %s5950_s7 = sld [smem:[#allocation4 + $0x38]] }
 0x1bd   : > { %2654 = vrot.lane.b32.xlu0 %v5606_v49, %s8234_s17  ;;  %s5958_s17 = sld [smem:[#allocation4 + $0x3f]] }
 0x1bf   : > { %v1128_v58 = vpop.permute.xlu0 %1127  ;;  %v1357_v8 = vpop.permute.xlu1 %1356 }
 0x1c0   : > { %v1142_v23 = vsel %vm1141_vm3, %v4397_v37, %v1128_v58  ;;  %v6008_v49 = vsel %vm1368_vm4, %v4402_v39, %v1357_v8 }
 0x1c1   : > { %1145 = vst [vmem:[#allocation3] sm:$0xff] %v1142_v23  ;;  %v1152_v47 = vmul.f32 %v1151_v20, %v1142_v23  ;;  %v1156_v30 = vmul.f32 %v1155_v13, %v1142_v23  ;;  %v6034_v5 = vmul.f32 %v1378_v51, %v6008_v49  ;;  %v6039_v39 = vmul.f32 %v1384_v35, %v6008_v49 }
 0x1c3   : > { %8333 = sst [smem:[#allocation111_spill]] %s5958_s17  ;;  %v1130_v36 = vpop.permute.xlu0 %1129  ;;  %v1359_v62 = vpop.permute.xlu1 %1358 }
 0x1c4   : > { %v1143_v17 = vsel %vm1141_vm3, %v4398_v46, %v1130_v36  ;;  %v1370_v46 = vsel %vm1368_vm4, %v4403_v53, %v1359_v62  ;;  %s8379_s17 = sld [smem:[#allocation63_spill]] }
 0x1c5   : > { %1146 = vst [vmem:[#allocation3 + $0x8] sm:$0xff] %v1143_v17  ;;  %v1153_v58 = vmul.f32 %v1151_v20, %v1143_v17  ;;  %v1157_v15 = vmul.f32 %v1155_v13, %v1143_v17  ;;  %v6062_v53 = vmul.f32 %v1378_v51, %v1370_v46  ;;  %v6066_v62 = vmul.f32 %v1384_v35, %v1370_v46 }
 0x1c7   : > { %v6045_v8 = vpop.permute.xlu0 %4410  ;;  %v6047_v36 = vpop.permute.xlu1 %1585 }
 0x1c8   : > { %v4413_v37 = vunpack.i.h.bf16 %v6045_v8 }
 0x1cb   : > { %v1361_v43 = vpop.permute.xlu0 %1360  ;;  %v1245_v18 = vpop.permute.xlu1 %1244 }
 0x1cc   : > { %v1158_v17 = vld [vmem:[#allocation3 + $0x1] sm:$0xff]  ;;  %v1159_v51 = vld [vmem:[#allocation3 + $0x9] sm:$0xff]  ;;  %v1371_v35 = vsel %vm1368_vm4, %v5536_v59, %v1361_v43  ;;  %v6078_v23 = vsel %vm1254_vm5, %v4413_v37, %v1245_v18 }
 0x1cd   : > { %v1172_v26 = vld [vmem:[#allocation3 + $0x2] sm:$0xff]  ;;  %v1162_v6 = vmul.f32 %v1161_v1, %v1158_v17  ;;  %v1163_v13 = vmul.f32 %v1161_v1, %v1159_v51  ;;  %v1168_v4 = vmul.f32 %v1167_v0, %v1158_v17  ;;  %v1169_v56 = vmul.f32 %v1167_v0, %v1159_v51  ;;  %v1173_v3 = vld [vmem:[#allocation3 + $0xa] sm:$0xff]  ;;  %1260 = vst [vmem:[#allocation3 + $0x20] sm:$0xff] %v6078_v23 }
 0x1ce   : > { %v1186_v34 = vld [vmem:[#allocation3 + $0x3] sm:$0xff]  ;;  %v1187_v29 = vld [vmem:[#allocation3 + $0xb] sm:$0xff]  ;;  %v1176_v59 = vmul.f32 %v1175_v61, %v1172_v26  ;;  %v1177_v18 = vmul.f32 %v1175_v61, %v1173_v3  ;;  %v1182_v43 = vmul.f32 %v1181_v44, %v1172_v26  ;;  %v1183_v1 = vmul.f32 %v1181_v44, %v1173_v3 }
 0x1cf   : > { %v1200_v37 = vld [vmem:[#allocation3 + $0x4] sm:$0xff]  ;;  %v1201_v17 = vld [vmem:[#allocation3 + $0xc] sm:$0xff]  ;;  %v1164_v51 = vadd.f32 %v1162_v6, %v1152_v47  ;;  %v1165_v33 = vadd.f32 %v1163_v13, %v1153_v58  ;;  %v1170_v20 = vadd.f32 %v1168_v4, %v1156_v30  ;;  %v1171_v57 = vadd.f32 %v1169_v56, %v1157_v15  ;;  %v6099_v61 = vpop.permute.xlu0 %1575  ;;  %v6101_v26 = vpop.permute.xlu1 %1577 }
 0x1d0   : > { %v1214_v0 = vld [vmem:[#allocation3 + $0x5] sm:$0xff]  ;;  %v1215_v45 = vld [vmem:[#allocation3 + $0xd] sm:$0xff]  ;;  %v1190_v44 = vmul.f32 %v1189_v14, %v1186_v34  ;;  %v1191_v3 = vmul.f32 %v1189_v14, %v1187_v29  ;;  %v1196_v6 = vmul.f32 %v1195_v11, %v1186_v34  ;;  %v1197_v4 = vmul.f32 %v1195_v11, %v1187_v29 }
 0x1d1   : > { %v1228_v38 = vld [vmem:[#allocation3 + $0x6] sm:$0xff]  ;;  %v1229_v55 = vld [vmem:[#allocation3 + $0xe] sm:$0xff]  ;;  %v1178_v56 = vadd.f32 %v1176_v59, %v1164_v51  ;;  %v1179_v30 = vadd.f32 %v1177_v18, %v1165_v33  ;;  %v1184_v58 = vadd.f32 %v1182_v43, %v1170_v20  ;;  %v1185_v47 = vadd.f32 %v1183_v1, %v1171_v57 }
 0x1d2   : > { %1372 = vst [vmem:[#allocation3] sm:$0xff] %v6008_v49  ;;  %1373 = vst [vmem:[#allocation3 + $0x8] sm:$0xff] %v1370_v46  ;;  %v1204_v15 = vmul.f32 %v1203_v31, %v1200_v37  ;;  %v1205_v14 = vmul.f32 %v1203_v31, %v1201_v17  ;;  %v1210_v34 = vmul.f32 %v1209_v52, %v1200_v37 }
 0x1d3   : > { %1374 = vst [vmem:[#allocation3 + $0x10] sm:$0x3f] %v1371_v35  ;;  %v1211_v11 = vmul.f32 %v1209_v52, %v1201_v17  ;;  %v1192_v29 = vadd.f32 %v1190_v44, %v1178_v56  ;;  %v1193_v49 = vadd.f32 %v1191_v3, %v1179_v30  ;;  %v1198_v46 = vadd.f32 %v1196_v6, %v1184_v58  ;;  %v6120_v33 = vpop.permute.xlu0 %1242  ;;  %v6122_v20 = vpop.permute.xlu1 %4415 }
 0x1d4   : > { %v1199_v13 = vadd.f32 %v1197_v4, %v1185_v47  ;;  %v1218_v57 = vmul.f32 %v1217_v24, %v1214_v0  ;;  %v1219_v31 = vmul.f32 %v1217_v24, %v1215_v45  ;;  %v1224_v35 = vmul.f32 %v1223_v42, %v1214_v0 }
 0x1d5   : > { %v1225_v59 = vmul.f32 %v1223_v42, %v1215_v45  ;;  %v1206_v52 = vadd.f32 %v1204_v15, %v1192_v29  ;;  %v1207_v18 = vadd.f32 %v1205_v14, %v1193_v49  ;;  %v1212_v43 = vadd.f32 %v1210_v34, %v1198_v46 }
 0x1d6   : > { %v1213_v1 = vadd.f32 %v1211_v11, %v1199_v13  ;;  %v1232_v37 = vmul.f32 %v1231_v19, %v1228_v38  ;;  %v1233_v17 = vmul.f32 %v1231_v19, %v1229_v55  ;;  %v1238_v51 = vmul.f32 %v1237_v32, %v1228_v38 }
 0x1d7   : > { %v1239_v24 = vmul.f32 %v1237_v32, %v1229_v55  ;;  %v1220_v44 = vadd.f32 %v1218_v57, %v1206_v52  ;;  %v1221_v0 = vadd.f32 %v1219_v31, %v1207_v18  ;;  %v1226_v3 = vadd.f32 %v1224_v35, %v1212_v43  ;;  %v6140_v56 = vpop.permute.xlu0 %1246  ;;  %v6142_v30 = vpop.permute.xlu1 %1813 }
 0x1d8   : > { %v1227_v42 = vadd.f32 %v1225_v59, %v1213_v1  ;;  %v8376_v46 = vstv %s8373_s9  ;;  %v8377_v57 = vstv %s8374_s27  ;;  %v8378_v35 = vstv %s8375_s19  ;;  %s6204_s27 = sld [smem:[#allocation4 + $0x9b]]  ;;  %s8419_s9 = sld [smem:[#allocation86_spill]] }
 0x1d9   : > { %v1389_v45 = vld [vmem:[#allocation3 + $0x1] sm:$0xff]  ;;  %v1234_v47 = vadd.f32 %v1232_v37, %v1220_v44  ;;  %v1235_v15 = vadd.f32 %v1233_v17, %v1221_v0  ;;  %v1240_v14 = vadd.f32 %v1238_v51, %v1226_v3  ;;  %s8421_s19 = sld [smem:[#allocation98_spill]] }
 0x1da   : > { %v1403_v6 = vld [vmem:[#allocation3 + $0x2] sm:$0xff]  ;;  %v1393_v38 = vmul.f32 %v1392_v9, %v1389_v45  ;;  %v1399_v32 = vmul.f32 %v1398_v2, %v1389_v45  ;;  %v1241_v34 = vadd.f32 %v1239_v24, %v1227_v42  ;;  %v1404_v29 = vld [vmem:[#allocation3 + $0xa] sm:$0xff]  ;;  %v8381_v45 = vmov %v8376_v46 }
 0x1db   : > { %v1417_v4 = vld [vmem:[#allocation3 + $0x3] sm:$0xff]  ;;  %v1407_v55 = vmul.f32 %v1406_v16, %v1403_v6  ;;  %v1413_v58 = vmul.f32 %v1412_v25, %v1403_v6  ;;  %v1418_v52 = vld [vmem:[#allocation3 + $0xb] sm:$0xff]  ;;  %v1381_v18 = vadd.f32 %v6034_v5, %v1234_v47  ;;  %v1387_v43 = vadd.f32 %v6039_v39, %v1240_v14  ;;  %v6165_v51 = vpop.permute.xlu0 %1579  ;;  %v6167_v24 = vpop.permute.xlu1 %1692 }
 0x1dc   : > { %v1431_v19 = vld [vmem:[#allocation3 + $0x4] sm:$0xff]  ;;  %v1421_v49 = vmul.f32 %v1420_v21, %v1417_v4  ;;  %v1427_v13 = vmul.f32 %v8376_v46, %v1417_v4  ;;  %v1382_v1 = vadd.f32 %v6062_v53, %v1235_v15  ;;  %v1388_v37 = vadd.f32 %v6066_v62, %v1241_v34  ;;  %v1432_v17 = vld [vmem:[#allocation3 + $0xc] sm:$0xff] }
 0x1dd   : > { %v1390_v11 = vld [vmem:[#allocation3 + $0x9] sm:$0xff]  ;;  %v1435_v31 = vmul.f32 %v8377_v57, %v1431_v19  ;;  %v1441_v59 = vmul.f32 %v8378_v35, %v1431_v19  ;;  %v1408_v3 = vmul.f32 %v1406_v16, %v1404_v29  ;;  %v1414_v5 = vmul.f32 %v1412_v25, %v1404_v29 }
 0x1de   : > { %v1394_v44 = vmul.f32 %v1392_v9, %v1390_v11  ;;  %v1400_v0 = vmul.f32 %v1398_v2, %v1390_v11  ;;  %v1446_v39 = vld [vmem:[#allocation3 + $0xd] sm:$0xff]  ;;  %v1395_v53 = vadd.f32 %v1393_v38, %v1381_v18  ;;  %v1401_v62 = vadd.f32 %v1399_v32, %v1387_v43  ;;  %v1445_v19 = vld [vmem:[#allocation3 + $0x5] sm:$0xff]  ;;  %8396 = sst [smem:[#allocation42_spill]] %s6204_s27  ;;  %s8431_s27 = sld [smem:[#allocation77_spill]] }
 0x1df   : > { %v1422_v42 = vmul.f32 %v1420_v21, %v1418_v52  ;;  %v1428_v6 = vmul.f32 %v8381_v45, %v1418_v52  ;;  %v1460_v4 = vld [vmem:[#allocation3 + $0xe] sm:$0xff]  ;;  %v8384_v2 = vmov %v8377_v57  ;;  %v8385_v16 = vmov %v8378_v35  ;;  %v1459_v25 = vld [vmem:[#allocation3 + $0x6] sm:$0xff]  ;;  %v1810_v46 = vpop.permute.xlu0 %1809  ;;  %v6189_v57 = vpop.permute.xlu1 %1962 }
 0x1e0   : > { %v1396_v9 = vadd.f32 %v1394_v44, %v1382_v1  ;;  %v1402_v47 = vadd.f32 %v1400_v0, %v1388_v37  ;;  %v1436_v15 = vmul.f32 %v8384_v2, %v1432_v17  ;;  %v1442_v14 = vmul.f32 %v8385_v16, %v1432_v17 }
 0x1e1   : > { %v1409_v34 = vadd.f32 %v1407_v55, %v1395_v53  ;;  %v1415_v38 = vadd.f32 %v1413_v58, %v1401_v62  ;;  %v8386_v32 = vstv %s8379_s17  ;;  %v8387_v11 = vstv %s8380_s14  ;;  %s8409_s14 = sld [smem:[#allocation107_spill]]  ;;  %s8422_s17 = sld [smem:[#allocation71_spill]] }
 0x1e2   : > { %v1450_v21 = vmul.f32 %v8386_v32, %v1446_v39  ;;  %v1456_v29 = vmul.f32 %v8387_v11, %v1446_v39  ;;  %v1410_v35 = vadd.f32 %v1408_v3, %v1396_v9  ;;  %v1416_v52 = vadd.f32 %v1414_v5, %v1402_v47 }
 0x1e3   : > { %v8388_v18 = vstv %s8382_s11  ;;  %v8389_v1 = vstv %s8383_s21  ;;  %v1423_v17 = vadd.f32 %v1421_v49, %v1409_v34  ;;  %v1429_v55 = vadd.f32 %v1427_v13, %v1415_v38  ;;  %v6216_v47 = vpop.permute.xlu1 %1694  ;;  %s8400_s11 = sld [smem:[#allocation70_spill]]  ;;  %s6218_s21 = sld [smem:[#allocation4 + $0x40]] }
 0x1e4   : > { %v1464_v43 = vmul.f32 %v8388_v18, %v1460_v4  ;;  %v1470_v37 = vmul.f32 %v8389_v1, %v1460_v4  ;;  %v8390_v58 = vmov %v8386_v32  ;;  %v8391_v0 = vmov %v8387_v11 }
 0x1e5   : > { %v1449_v44 = vmul.f32 %v8390_v58, %v1445_v19  ;;  %v1455_v53 = vmul.f32 %v8391_v0, %v1445_v19  ;;  %v1424_v62 = vadd.f32 %v1422_v42, %v1410_v35  ;;  %v1430_v39 = vadd.f32 %v1428_v6, %v1416_v52  ;;  %v1812_v6 = vpop.permute.xlu0 %1811 }
 0x1e6   : > { %v8394_v45 = vmov %v8388_v18  ;;  %v8395_v3 = vmov %v8389_v1  ;;  %v1437_v9 = vadd.f32 %v1435_v31, %v1423_v17  ;;  %v1443_v4 = vadd.f32 %v1441_v59, %v1429_v55 }
 0x1e7   : > { %v1463_v2 = vmul.f32 %v8394_v45, %v1459_v25  ;;  %v1469_v5 = vmul.f32 %v8395_v3, %v1459_v25  ;;  %v8398_v49 = vunpack.i.l.bf16 %v5546_v12  ;;  %v8399_v19 = vunpack.i.h.bf16 %v5546_v12  ;;  %v4533_v3 = vld [vmem:[#allocation2 + $0x10] sm:$0xff] }
 0x1e8   : > { %v1438_v31 = vadd.f32 %v1436_v15, %v1424_v62  ;;  %v1444_v59 = vadd.f32 %v1442_v14, %v1430_v39  ;;  %v8402_v16 = vstv %s8392_s3  ;;  %v1451_v12 = vadd.f32 %v1449_v44, %v1437_v9  ;;  %s8424_s3 = sld [smem:[#allocation72_spill]] }
 0x1e9   : > { %v1588_v13 = vsel %vm1587_vm6, %v6099_v61, %v8398_v49  ;;  %v1589_v42 = vsel %vm1587_vm6, %v6101_v26, %v8399_v19  ;;  %8401 = sst [smem:[#allocation43_spill]] %s6218_s21  ;;  %v8403_v61 = vstv %s8393_s4  ;;  %v1457_v38 = vadd.f32 %v1455_v53, %v1443_v4  ;;  %s8426_s4 = sld [smem:[#allocation73_spill]] }
 0x1ea   : > { %1591 = vst [vmem:[#allocation3] sm:$0xff] %v1588_v13  ;;  %v1598_v25 = vmul.f32 %v8402_v16, %v1588_v13  ;;  %v1604_v34 = vmul.f32 %v8403_v61, %v1588_v13  ;;  %1592 = vst [vmem:[#allocation3 + $0x8] sm:$0xff] %v1589_v42  ;;  %v8404_v26 = vunpack.i.l.bf16 %v6045_v8  ;;  %v8405_v11 = vstv %s8397_s30  ;;  %s8428_s30 = sld [smem:[#allocation74_spill]]  ;;  %s8430_s21 = sld [smem:[#allocation76_spill]] }
 0x1eb   : > { %v6232_v35 = vmul.f32 %v8405_v11, %v6078_v23  ;;  %v1452_v15 = vadd.f32 %v1450_v21, %v1438_v31  ;;  %v1458_v14 = vadd.f32 %v1456_v29, %v1444_v59  ;;  %v8406_v52 = vmov %v8405_v11  ;;  %v1820_v21 = vpop.permute.xlu0 %1819  ;;  %v6251_v29 = vpop.permute.xlu1 %1696 }
 0x1ec   : > { %v1255_v32 = vsel %vm1254_vm5, %v8404_v26, %v6120_v33  ;;  %v8407_v1 = vstv %s8400_s11  ;;  %v1465_v55 = vadd.f32 %v1463_v2, %v1451_v12  ;;  %v1471_v58 = vadd.f32 %v1469_v5, %v1457_v38  ;;  %s8429_s11 = sld [smem:[#allocation75_spill]] }
 0x1ed   : > { %1259 = vst [vmem:[#allocation3 + $0x18] sm:$0xff] %v1255_v32  ;;  %v6236_v18 = vmul.f32 %v8406_v52, %v1255_v32  ;;  %v6240_v17 = vmul.f32 %v8407_v1, %v1255_v32  ;;  %v8408_v8 = vmov %v8407_v1  ;;  %v1257_v33 = vsel %vm1254_vm5, %v5556_v60, %v6140_v56 }
 0x1ee   : > { %v6245_v44 = vmul.f32 %v8408_v8, %v6078_v23  ;;  %v1466_v0 = vadd.f32 %v1464_v43, %v1452_v15  ;;  %v1472_v53 = vadd.f32 %v1470_v37, %v1458_v14  ;;  %1261 = vst [vmem:[#allocation3 + $0x28] sm:$0x3f] %v1257_v33  ;;  %v1590_v62 = vsel %vm1587_vm6, %v6165_v51, %v6047_v36 }
 0x1ef   : > { %v4418_v23 = vunpack.i.h.bf16 %v6122_v20  ;;  %v6258_v39 = vadd.f32 %v1598_v25, %v1465_v55  ;;  %v6260_v45 = vadd.f32 %v1604_v34, %v1471_v58  ;;  %1593 = vst [vmem:[#allocation3 + $0x10] sm:$0x3f] %v1590_v62  ;;  %v4417_v60 = vunpack.i.l.bf16 %v6122_v20  ;;  %v6283_v49 = vpop.permute.xlu0 %4420 }
 0x1f0   : > { %v6266_v56 = vsel %vm1821_vm7, %v6142_v30, %v1820_v21  ;;  %v8410_v51 = vmov %v8402_v16  ;;  %v8411_v37 = vmov %v8403_v61  ;;  %v6285_v30 = vpop.permute.xlu1 %1966  ;;  %v8415_v13 = vstv %s8409_s14 }
 0x1f1   : > { %v6270_v36 = vsel %vm1821_vm7, %v1812_v6, %v4418_v23  ;;  %v1599_v43 = vmul.f32 %v8410_v51, %v1589_v42  ;;  %v1605_v2 = vmul.f32 %v8411_v37, %v1589_v42  ;;  %v1608_v5 = vld [vmem:[#allocation3 + $0x1] sm:$0xff]  ;;  %v6281_v20 = vsel %vm1821_vm7, %v1810_v46, %v4417_v60 }
 0x1f2   : > { %v1622_v9 = vld [vmem:[#allocation3 + $0x2] sm:$0xff]  ;;  %8413 = vst [vmem:[#allocation136_spill] sm:$0xff] %v6281_v20  ;;  %v6290_v19 = vmul.f32 %v8415_v13, %v6270_v36  ;;  %v8418_v42 = vstv %s8329_s6  ;;  %v8432_v11 = vstv %s8414_s16  ;;  %v8434_v14 = vstv %s8416_s28 }
 0x1f3   : > { %v6277_v4 = vld [vmem:[#allocation3 + $0x3] sm:$0xff]  ;;  %v6295_v6 = vmul.f32 %v8418_v42, %v6270_v36  ;;  %v6306_v34 = vadd.f32 %v1599_v43, %v1466_v0  ;;  %v6308_v12 = vadd.f32 %v1605_v2, %v1472_v53  ;;  %v6313_v15 = vmul.f32 %v8432_v11, %v1608_v5 }
 0x1f4   : > { %8412 = vst [vmem:[#allocation135_spill] sm:$0xff] %v6277_v4  ;;  %8417 = vst [vmem:[#allocation137_spill] sm:$0xff] %v6290_v19  ;;  %v6298_v46 = vld [vmem:[#allocation3 + $0x4] sm:$0xff]  ;;  %v1272_v38 = vld [vmem:[#allocation3 + $0x19] sm:$0xff]  ;;  %v6317_v52 = vmul.f32 %v8434_v14, %v1608_v5  ;;  %v8435_v1 = vstv %s8419_s9  ;;  %v8436_v58 = vstv %s8421_s19  ;;  %v8438_v33 = vstv %s8422_s17 }
 0x1f5   : > { %8420 = vst [vmem:[#allocation138_spill] sm:$0xff] %v6295_v6  ;;  %8423 = vst [vmem:[#allocation139_spill] sm:$0xff] %v6298_v46  ;;  %v6300_v59 = vld [vmem:[#allocation3 + $0x5] sm:$0xff]  ;;  %v1286_v26 = vld [vmem:[#allocation3 + $0x1a] sm:$0xff]  ;;  %v6321_v55 = vmul.f32 %v8435_v1, %v1622_v9  ;;  %v6325_v8 = vmul.f32 %v8436_v58, %v1622_v9  ;;  %v1276_v21 = vmul.f32 %v8438_v33, %v1272_v38  ;;  %v8439_v0 = vstv %s8424_s3 }
 0x1f6   : > { %8425 = vst [vmem:[#allocation140_spill] sm:$0xff] %v6300_v59  ;;  %v6302_v16 = vld [vmem:[#allocation3 + $0x6] sm:$0xff]  ;;  %v1300_v32 = vld [vmem:[#allocation3 + $0x1b] sm:$0xff]  ;;  %v1282_v53 = vmul.f32 %v8439_v0, %v1272_v38  ;;  %v8440_v62 = vstv %s8426_s4  ;;  %v8441_v60 = vstv %s8428_s30  ;;  %1473 = vst [vmem:[#allocation3 + $0x13] sm:$0xe0] %v5504_v28  ;;  %v8444_v5 = vstv %s8429_s11  ;;  %v6344_v0 = vpop.permute.xlu0 %4425 }
 0x1f7   : > { %8427 = vst [vmem:[#allocation141_spill] sm:$0xff] %v6302_v16  ;;  %1825 = vst [vmem:[#allocation3] sm:$0xff] %v6281_v20  ;;  %v1290_v23 = vmul.f32 %v8440_v62, %v1286_v26  ;;  %v1296_v51 = vmul.f32 %v8441_v60, %v1286_v26  ;;  %v1314_v43 = vld [vmem:[#allocation3 + $0x1c] sm:$0xff]  ;;  %v1304_v13 = vmul.f32 %v8444_v5, %v1300_v32  ;;  %v8445_v42 = vstv %s8430_s21  ;;  %v6346_v62 = vpop.permute.xlu1 %2078  ;;  %v1315_v31 = vld [vmem:[#allocation3 + $0x24] sm:$0xff] }
 0x1f8   : > { %8437 = vst [vmem:[#allocation142_spill] sm:$0xff] %v6325_v8  ;;  %v1328_v37 = vld [vmem:[#allocation3 + $0x1d] sm:$0xff]  ;;  %v1310_v9 = vmul.f32 %v8445_v42, %v1300_v32  ;;  %v8446_v11 = vstv %s8431_s27  ;;  %v8447_v1 = vstv %s8433_s1  ;;  %v1278_v28 = vadd.f32 %v1276_v21, %v6236_v18  ;;  %v6372_v20 = vld [vmem:[#allocation3 + $0xc] sm:$0xff] }
 0x1f9   : > { %v1342_v2 = vld [vmem:[#allocation3 + $0x1e] sm:$0xff]  ;;  %v1318_v14 = vmul.f32 %v8446_v11, %v1314_v43  ;;  %v1324_v38 = vmul.f32 %v8447_v1, %v1314_v43  ;;  %v1284_v60 = vadd.f32 %v1282_v53, %v6240_v17  ;;  %v8450_v32 = vstv %s8442_s20  ;;  %v1343_v1 = vld [vmem:[#allocation3 + $0x26] sm:$0xff]  ;;  %8460 = vst [vmem:[#allocation143_spill] sm:$0xff] %v6372_v20 }
 0x1fa   : > { %v1273_v58 = vld [vmem:[#allocation3 + $0x21] sm:$0xff]  ;;  %v1332_v5 = vmul.f32 %v8450_v32, %v1328_v37  ;;  %v8451_v42 = vstv %s8443_s12  ;;  %v8452_v25 = vstv %s8448_s13  ;;  %v1352_v54 = vmul.f32 %v8453_v7, %v1342_v2  ;;  %v1609_v53 = vld [vmem:[#allocation3 + $0x9] sm:$0xff] }
 0x1fb   : > { %v1287_v26 = vld [vmem:[#allocation3 + $0x22] sm:$0xff]  ;;  %v1338_v11 = vmul.f32 %v8451_v42, %v1328_v37  ;;  %v1346_v61 = vmul.f32 %v8452_v25, %v1342_v2  ;;  %v8454_v6 = vstv %s8422_s17  ;;  %v8455_v18 = vstv %s8424_s3  ;;  %v6364_v37 = vld [vmem:[#allocation3 + $0xa] sm:$0xff]  ;;  %s8470_s17 = sld [smem:[#allocation87_spill]]  ;;  %s8499_s3 = sld [smem:[#allocation96_spill]] }
 0x1fc   : > { %v1301_v33 = vld [vmem:[#allocation3 + $0x23] sm:$0xff]  ;;  %1474 = vst [vmem:[#allocation3 + $0x1b] sm:$0xff] %v4533_v3  ;;  %v1277_v19 = vmul.f32 %v8454_v6, %v1273_v58  ;;  %v1283_v17 = vmul.f32 %v8455_v18, %v1273_v58  ;;  %v6366_v32 = vld [vmem:[#allocation3 + $0xb] sm:$0xff]  ;;  %v1292_v3 = vadd.f32 %v1290_v23, %v1278_v28  ;;  %v1298_v42 = vadd.f32 %v1296_v51, %v1284_v60 }
 0x1fd   : > { %v1329_v43 = vld [vmem:[#allocation3 + $0x25] sm:$0xff]  ;;  %v8458_v25 = vstv %s8426_s4  ;;  %v8459_v2 = vstv %s8428_s30  ;;  %v6374_v58 = vld [vmem:[#allocation3 + $0xd] sm:$0xff]  ;;  %v8463_v23 = vstv %s8429_s11  ;;  %v8464_v28 = vstv %s8430_s21  ;;  %s8469_s21 = sld [smem:[#allocation85_spill]]  ;;  %s8501_s4 = sld [smem:[#allocation97_spill]] }
 0x1fe   : > { %1475 = vst [vmem:[#allocation3 + $0x23] sm:$0xff] %v5942_v40  ;;  %v8456_v21 = vld [vmem:[#allocation35_spill] sm:$0xff]  ;;  %v1291_v7 = vmul.f32 %v8458_v25, %v1287_v26  ;;  %v1297_v6 = vmul.f32 %v8459_v2, %v1287_v26  ;;  %8461 = vst [vmem:[#allocation144_spill] sm:$0xff] %v6374_v58  ;;  %v6376_v40 = vld [vmem:[#allocation3 + $0xe] sm:$0xff]  ;;  %v1279_v18 = vadd.f32 %v1277_v19, %v6232_v35  ;;  %v6385_v26 = vpop.permute.xlu0 %1964  ;;  %v6387_v25 = vpop.permute.xlu1 %2194  ;;  %v8465_v35 = vstv %s8431_s27  ;;  %s8488_s27 = sld [smem:[#allocation93_spill]]  ;;  %s8514_s30 = sld [smem:[#allocation99_spill]] }
 0x1ff   : > { %1476 = vst [vmem:[#allocation3 + $0x2b] sm:$0x7] %v8456_v21  ;;  %8457 = vst [vmem:[#allocation35_spill] sm:$0xff] %v6366_v32  ;;  %v1285_v21 = vadd.f32 %v1283_v17, %v6245_v44  ;;  %v1305_v51 = vmul.f32 %v8463_v23, %v1301_v33  ;;  %v1311_v60 = vmul.f32 %v8464_v28, %v1301_v33  ;;  %v8466_v19 = vstv %s8433_s1  ;;  %s8477_s1 = sld [smem:[#allocation89_spill]]  ;;  %s8518_s11 = sld [smem:[#allocation100_spill]] }
 0x200   : > { %8462 = vst [vmem:[#allocation145_spill] sm:$0xff] %v6376_v40  ;;  %1827 = vst [vmem:[#allocation3 + $0x10] sm:$0x3f] %v6266_v56  ;;  %v1306_v2 = vadd.f32 %v1304_v13, %v1292_v3  ;;  %v1312_v41 = vadd.f32 %v1310_v9, %v1298_v42  ;;  %v1319_v44 = vmul.f32 %v8465_v35, %v1315_v31  ;;  %v8467_v33 = vstv %s8442_s20  ;;  %s8475_s20 = sld [smem:[#allocation88_spill]] }
 0x201   : > { %1826 = vst [vmem:[#allocation3 + $0x8] sm:$0xff] %v6270_v36  ;;  %v1325_v17 = vmul.f32 %v8466_v19, %v1315_v31  ;;  %v1293_v23 = vadd.f32 %v1291_v7, %v1279_v18  ;;  %v1299_v48 = vadd.f32 %v1297_v6, %v1285_v21  ;;  %v1333_v28 = vmul.f32 %v8467_v33, %v1329_v43 }
 0x202   : > { %v8468_v40 = vstv %s8443_s12  ;;  %v1320_v16 = vadd.f32 %v1318_v14, %v1306_v2  ;;  %v1326_v58 = vadd.f32 %v1324_v38, %v1312_v41  ;;  %v8471_v59 = vstv %s8448_s13  ;;  %v6412_v41 = vpop.permute.xlu1 %2080  ;;  %s8481_s13 = sld [smem:[#allocation90_spill]]  ;;  %s8483_s12 = sld [smem:[#allocation91_spill]] }
 0x203   : > { %v1339_v56 = vmul.f32 %v8468_v40, %v1329_v43  ;;  %v1347_v36 = vmul.f32 %v8471_v59, %v1343_v1  ;;  %v8472_v13 = vstv %s8449_s0  ;;  %v1307_v9 = vadd.f32 %v1305_v51, %v1293_v23  ;;  %v1477_v35 = vld [vmem:[#allocation3 + $0x18] sm:$0xff]  ;;  %v6410_v43 = vpop.permute.xlu0 %1702  ;;  %s8487_s0 = sld [smem:[#allocation92_spill]] }
 0x204   : > { %v1353_v3 = vmul.f32 %v8472_v13, %v1343_v1  ;;  %v1313_v42 = vadd.f32 %v1311_v60, %v1299_v48  ;;  %v1491_v31 = vld [vmem:[#allocation3 + $0x19] sm:$0xff]  ;;  %v8473_v7 = vstv %s8414_s16  ;;  %v8474_v18 = vstv %s8416_s28  ;;  %s8493_s16 = sld [smem:[#allocation94_spill]]  ;;  %s8496_s28 = sld [smem:[#allocation95_spill]] }
 0x205   : > { %v6404_v6 = vmul.f32 %v8473_v7, %v1609_v53  ;;  %v6408_v21 = vmul.f32 %v8474_v18, %v1609_v53  ;;  %v1334_v59 = vadd.f32 %v1332_v5, %v1320_v16  ;;  %v1340_v14 = vadd.f32 %v1338_v11, %v1326_v58  ;;  %v1478_v38 = vld [vmem:[#allocation3 + $0x20] sm:$0xff] }
 0x206   : > { %v8476_v1 = vstv %s8469_s21  ;;  %v8478_v40 = vstv %s8470_s17  ;;  %v1492_v60 = vld [vmem:[#allocation3 + $0x21] sm:$0xff]  ;;  %v1321_v2 = vadd.f32 %v1319_v44, %v1307_v9  ;;  %v1327_v19 = vadd.f32 %v1325_v17, %v1313_v42  ;;  %s8534_s21 = sld [smem:[#allocation103_spill]]  ;;  %s8536_s17 = sld [smem:[#allocation104_spill]] }
 0x207   : > { %v1481_v48 = vmul.f32 %v8476_v1, %v1477_v35  ;;  %v1487_v51 = vmul.f32 %v8478_v40, %v1477_v35  ;;  %v8479_v53 = vmov %v8476_v1  ;;  %v8480_v33 = vmov %v8478_v40  ;;  %v1505_v7 = vld [vmem:[#allocation3 + $0x1a] sm:$0xff] }
 0x208   : > { %v1482_v23 = vmul.f32 %v8479_v53, %v1478_v38  ;;  %v1488_v13 = vmul.f32 %v8480_v33, %v1478_v38  ;;  %v1348_v16 = vadd.f32 %v1346_v61, %v1334_v59  ;;  %v1354_v5 = vadd.f32 %v1352_v54, %v1340_v14  ;;  %v1506_v38 = vld [vmem:[#allocation3 + $0x22] sm:$0xff]  ;;  %v6431_v53 = vpop.permute.xlu0 %1972  ;;  %v6433_v33 = vpop.permute.xlu1 %2082 }
 0x209   : > { %v8482_v11 = vstv %s8475_s20  ;;  %v1335_v1 = vadd.f32 %v1333_v28, %v1321_v2  ;;  %v1341_v44 = vadd.f32 %v1339_v56, %v1327_v19  ;;  %v8485_v17 = vstv %s8477_s1  ;;  %s8539_s20 = sld [smem:[#allocation105_spill]]  ;;  %s8554_s1 = sld [smem:[#allocation106_spill]] }
 0x20a   : > { %v1495_v58 = vmul.f32 %v8482_v11, %v1491_v31  ;;  %v8484_v18 = vmov %v8482_v11  ;;  %v1501_v9 = vmul.f32 %v8485_v17, %v1491_v31  ;;  %v8486_v42 = vmov %v8485_v17  ;;  %v1533_v17 = vld [vmem:[#allocation3 + $0x1c] sm:$0xff] }
 0x20b   : > { %v1496_v35 = vmul.f32 %v8484_v18, %v1492_v60  ;;  %v1502_v40 = vmul.f32 %v8486_v42, %v1492_v60  ;;  %v1483_v54 = vadd.f32 %v1481_v48, %v1348_v16  ;;  %v1489_v61 = vadd.f32 %v1487_v51, %v1354_v5  ;;  %v1534_v42 = vld [vmem:[#allocation3 + $0x24] sm:$0xff] }
 0x20c   : > { %v8489_v59 = vstv %s8481_s13  ;;  %v1349_v56 = vadd.f32 %v1347_v36, %v1335_v1  ;;  %v1355_v2 = vadd.f32 %v1353_v3, %v1341_v44  ;;  %v8491_v31 = vstv %s8483_s12  ;;  %v1547_v44 = vld [vmem:[#allocation3 + $0x1d] sm:$0xff]  ;;  %s8559_s13 = sld [smem:[#allocation109_spill]]  ;;  %s8563_s12 = sld [smem:[#allocation110_spill]] }
 0x20d   : > { %v1509_v14 = vmul.f32 %v8489_v59, %v1505_v7  ;;  %v8490_v11 = vmov %v8489_v59  ;;  %v1515_v19 = vmul.f32 %v8491_v31, %v1505_v7  ;;  %v8492_v60 = vmov %v8491_v31  ;;  %v6451_v31 = vpop.permute.xlu0 %4430 }
 0x20e   : > { %v1510_v28 = vmul.f32 %v8490_v11, %v1506_v38  ;;  %v1516_v18 = vmul.f32 %v8492_v60, %v1506_v38  ;;  %v1497_v20 = vadd.f32 %v1495_v58, %v1483_v54  ;;  %v1503_v46 = vadd.f32 %v1501_v9, %v1489_v61  ;;  %v1548_v38 = vld [vmem:[#allocation3 + $0x25] sm:$0xff]  ;;  %v6453_v58 = vpop.permute.xlu1 %2198 }
 0x20f   : > { %v8494_v48 = vstv %s8487_s0  ;;  %v1484_v59 = vadd.f32 %v1482_v23, %v1349_v56  ;;  %v1490_v11 = vadd.f32 %v1488_v13, %v1355_v2  ;;  %v8497_v36 = vstv %s8488_s27  ;;  %8500 = vst [vmem:[#allocation146_spill] sm:$0xff] %v6453_v58  ;;  %s8571_s0 = sld [smem:[#allocation112_spill]]  ;;  %s8574_s27 = sld [smem:[#allocation113_spill]] }
 0x210   : > { %v1537_v16 = vmul.f32 %v8494_v48, %v1533_v17  ;;  %v8495_v51 = vmov %v8494_v48  ;;  %v1543_v3 = vmul.f32 %v8497_v36, %v1533_v17  ;;  %v8498_v1 = vmov %v8497_v36  ;;  %v1561_v36 = vld [vmem:[#allocation3 + $0x1e] sm:$0xff] }
 0x211   : > { %v1538_v5 = vmul.f32 %v8495_v51, %v1534_v42  ;;  %v1544_v7 = vmul.f32 %v8498_v1, %v1534_v42  ;;  %v1511_v9 = vadd.f32 %v1509_v14, %v1497_v20  ;;  %v1517_v54 = vadd.f32 %v1515_v19, %v1503_v46  ;;  %v1562_v1 = vld [vmem:[#allocation3 + $0x26] sm:$0xff] }
 0x212   : > { %v8502_v61 = vstv %s8493_s16  ;;  %v1498_v56 = vadd.f32 %v1496_v35, %v1484_v59  ;;  %v1504_v2 = vadd.f32 %v1502_v40, %v1490_v11  ;;  %v8504_v17 = vstv %s8496_s28  ;;  %v4436_v59 = vpop.permute.xlu0 %4435  ;;  %v6473_v11 = vpop.permute.xlu1 %2412  ;;  %s8588_s16 = sld [smem:[#allocation115_spill]]  ;;  %s8593_s28 = sld [smem:[#allocation116_spill]] }
 0x213   : > { %v1551_v60 = vmul.f32 %v8502_v61, %v1547_v44  ;;  %v8503_v23 = vmov %v8502_v61  ;;  %v1557_v42 = vmul.f32 %v8504_v17, %v1547_v44  ;;  %v8505_v48 = vmov %v8504_v17 }
 0x214   : > { %v1552_v13 = vmul.f32 %v8503_v23, %v1548_v38  ;;  %v1558_v51 = vmul.f32 %v8505_v48, %v1548_v38  ;;  %v1525_v8 = vadd.f32 %v5905_v10, %v1511_v9  ;;  %v1531_v58 = vadd.f32 %v5923_v63, %v1517_v54  ;;  %v6505_v9 = vld [vmem:[#allocation3 + $0xb] sm:$0xff] }
 0x215   : > { %v8506_v20 = vstv %s8499_s3  ;;  %v1512_v32 = vadd.f32 %v1510_v28, %v1498_v56  ;;  %v1518_v61 = vadd.f32 %v1516_v18, %v1504_v2  ;;  %v8508_v4 = vstv %s8501_s4  ;;  %v6489_v28 = vld [vmem:[#allocation3 + $0x9] sm:$0xff]  ;;  %s8600_s3 = sld [smem:[#allocation117_spill]]  ;;  %s8605_s4 = sld [smem:[#allocation118_spill]] }
 0x216   : > { %v1565_v14 = vmul.f32 %v8506_v20, %v1561_v36  ;;  %v8507_v46 = vmov %v8506_v20  ;;  %v1571_v23 = vmul.f32 %v8508_v4, %v1561_v36  ;;  %v8509_v35 = vmov %v8508_v4  ;;  %v6515_v54 = vld [vmem:[#allocation3 + $0xc] sm:$0xff] }
 0x217   : > { %v1566_v19 = vmul.f32 %v8507_v46, %v1562_v1  ;;  %v1572_v40 = vmul.f32 %v8509_v35, %v1562_v1  ;;  %v1539_v44 = vadd.f32 %v1537_v16, %v1525_v8  ;;  %v1545_v38 = vadd.f32 %v1543_v3, %v1531_v58  ;;  %v6499_v3 = vld [vmem:[#allocation3 + $0x2] sm:$0xff]  ;;  %v6517_v56 = vld [vmem:[#allocation3 + $0xd] sm:$0xff] }
 0x218   : > { %v8510_v17 = vunpack.i.l.bf16 %v6283_v49  ;;  %v8511_v63 = vunpack.i.h.bf16 %v6283_v49  ;;  %v1526_v18 = vadd.f32 %v5908_v27, %v1512_v32  ;;  %v1532_v8 = vadd.f32 %v5945_v50, %v1518_v61  ;;  %v6497_v49 = vld [vmem:[#allocation3 + $0x1] sm:$0xff]  ;;  %v6519_v2 = vld [vmem:[#allocation3 + $0xe] sm:$0xff] }
 0x219   : > { %v4427_v16 = vunpack.i.l.bf16 %v6344_v0  ;;  %v6503_v58 = vld [vmem:[#allocation3 + $0x3] sm:$0xff]  ;;  %v1553_v27 = vadd.f32 %v1551_v60, %v1539_v44  ;;  %v1559_v50 = vadd.f32 %v1557_v42, %v1545_v38  ;;  %v1707_v32 = vsel %vm1704_vm8, %v6251_v29, %v6410_v43  ;;  %v6531_v43 = vpop.permute.xlu1 %2414 }
 0x21a   : > { %v6480_v10 = vsel %vm1704_vm8, %v6167_v24, %v8510_v17  ;;  %v6487_v4 = vsel %vm1704_vm8, %v6216_v47, %v8511_v63  ;;  %v4428_v24 = vunpack.i.h.bf16 %v6344_v0  ;;  %v6501_v47 = vld [vmem:[#allocation3 + $0xa] sm:$0xff]  ;;  %v1976_v0 = vsel %vm1141_vm3, %v6431_v53, %v6285_v30  ;;  %1710 = vst [vmem:[#allocation3 + $0x28] sm:$0x3f] %v1707_v32  ;;  %v2197_v30 = vpop.permute.xlu0 %2196 }
 0x21b   : > { %1708 = vst [vmem:[#allocation3 + $0x18] sm:$0xff] %v6480_v10  ;;  %1709 = vst [vmem:[#allocation3 + $0x20] sm:$0xff] %v6487_v4  ;;  %v1540_v48 = vadd.f32 %v1538_v5, %v1526_v18  ;;  %v1546_v36 = vadd.f32 %v1544_v7, %v1532_v8  ;;  %v6524_v60 = vsel %vm1141_vm3, %v4427_v16, %v6189_v57  ;;  %v6533_v53 = vld [vmem:[#allocation3 + $0x4] sm:$0xff]  ;;  %v4433_v1 = vunpack.i.h.bf16 %v6451_v31 }
 0x21c   : > { %v6529_v29 = vsel %vm1141_vm3, %v4428_v24, %v6385_v26  ;;  %v6535_v42 = vld [vmem:[#allocation3 + $0x5] sm:$0xff]  ;;  %1979 = vst [vmem:[#allocation3 + $0x10] sm:$0x3f] %v1976_v0  ;;  %v6539_v7 = vadd.f32 %v1565_v14, %v1553_v27  ;;  %v6541_v57 = vadd.f32 %v1571_v23, %v1559_v50  ;;  %v4432_v26 = vunpack.i.l.bf16 %v6451_v31 }
 0x21d   : > { %v6537_v5 = vld [vmem:[#allocation3 + $0x6] sm:$0xff]  ;;  %v1554_v20 = vadd.f32 %v1552_v13, %v1540_v48  ;;  %v1560_v46 = vadd.f32 %v1558_v51, %v1546_v36  ;;  %v4438_v61 = vunpack.i.h.bf16 %v4436_v59  ;;  %v4437_v35 = vunpack.i.l.bf16 %v4436_v59  ;;  %v8525_v48 = vld [vmem:[#allocation142_spill] sm:$0xff] }
 0x21e   : > { %1977 = vst [vmem:[#allocation3] sm:$0xff] %v6524_v60  ;;  %1978 = vst [vmem:[#allocation3 + $0x8] sm:$0xff] %v6529_v29  ;;  %v6550_v14 = vsel %vm1254_vm5, %v4432_v26, %v6346_v62  ;;  %v6555_v23 = vsel %vm1254_vm5, %v4433_v1, %v6412_v41  ;;  %v1614_v31 = vadd.f32 %v6313_v15, %v6258_v39  ;;  %v2089_v39 = vpop.permute.xlu0 %2088  ;;  %v6574_v15 = vpop.permute.xlu1 %2422 }
 0x21f   : > { %8512 = vst [vmem:[#allocation147_spill] sm:$0xff] %v6550_v14  ;;  %8513 = vst [vmem:[#allocation148_spill] sm:$0xff] %v6555_v23  ;;  %v1615_v13 = vadd.f32 %v6404_v6, %v6306_v34  ;;  %v6561_v51 = vadd.f32 %v1566_v19, %v1554_v20  ;;  %v6563_v59 = vadd.f32 %v1572_v40, %v1560_v46 }
 0x220   : > { %v6568_v62 = vsel %vm1368_vm4, %v4437_v35, %v6387_v25  ;;  %v6572_v41 = vsel %vm1368_vm4, %v4438_v61, %v2197_v30  ;;  %v2092_v34 = vsel %vm1254_vm5, %v2089_v39, %v6433_v33  ;;  %v1620_v6 = vadd.f32 %v6317_v52, %v6260_v45  ;;  %v8520_v45 = vld [vmem:[#allocation135_spill] sm:$0xff] }
 0x221   : > { %8515 = vst [vmem:[#allocation149_spill] sm:$0xff] %v6568_v62  ;;  %8516 = vst [vmem:[#allocation150_spill] sm:$0xff] %v6572_v41  ;;  %v1621_v19 = vadd.f32 %v6408_v21, %v6308_v12  ;;  %v8517_v25 = vstv %s8419_s9  ;;  %v1628_v63 = vadd.f32 %v6321_v55, %v1614_v31  ;;  %v8519_v33 = vstv %s8421_s19  ;;  %v8522_v12 = vld [vmem:[#allocation35_spill] sm:$0xff]  ;;  %s8524_s9 = sld [smem:[#allocation101_spill]]  ;;  %s8528_s19 = sld [smem:[#allocation102_spill]] }
 0x222   : > { %v1627_v40 = vmul.f32 %v8517_v25, %v6364_v37  ;;  %v6586_v44 = vld [vmem:[#allocation3 + $0x19] sm:$0xff]  ;;  %v1633_v18 = vmul.f32 %v8519_v33, %v6364_v37  ;;  %v8521_v52 = vstv %s8514_s30  ;;  %v6608_v32 = vld [vmem:[#allocation3 + $0x21] sm:$0xff]  ;;  %v1634_v36 = vadd.f32 %v8525_v48, %v1620_v6  ;;  %v2205_v31 = vpop.permute.xlu0 %2204  ;;  %v6628_v39 = vpop.permute.xlu1 %4445  ;;  %s8615_s30 = sld [smem:[#allocation122_spill]] }
 0x223   : > { %v6588_v38 = vld [vmem:[#allocation3 + $0x1a] sm:$0xff]  ;;  %v1640_v8 = vmul.f32 %v8521_v52, %v8520_v45  ;;  %v8523_v21 = vmov %v8521_v52  ;;  %v6610_v55 = vld [vmem:[#allocation3 + $0x22] sm:$0xff]  ;;  %v8526_v30 = vstv %s8518_s11  ;;  %s8655_s11 = sld [smem:[#allocation129_spill]] }
 0x224   : > { %v6590_v17 = vld [vmem:[#allocation3 + $0x1b] sm:$0xff]  ;;  %v1641_v24 = vmul.f32 %v8523_v21, %v8522_v12  ;;  %v6612_v0 = vld [vmem:[#allocation3 + $0x23] sm:$0xff]  ;;  %v1629_v37 = vadd.f32 %v1627_v40, %v1615_v13  ;;  %v1646_v1 = vmul.f32 %v8526_v30, %v8520_v45  ;;  %v8527_v26 = vmov %v8526_v30 }
 0x225   : > { %v6602_v16 = vld [vmem:[#allocation3 + $0x1c] sm:$0xff]  ;;  %v1647_v20 = vmul.f32 %v8527_v26, %v8522_v12  ;;  %v6622_v46 = vld [vmem:[#allocation3 + $0x24] sm:$0xff]  ;;  %v1635_v13 = vadd.f32 %v1633_v18, %v1621_v19  ;;  %v1642_v6 = vadd.f32 %v1640_v8, %v1628_v63 }
 0x226   : > { %v6604_v27 = vld [vmem:[#allocation3 + $0x1d] sm:$0xff]  ;;  %v6624_v61 = vld [vmem:[#allocation3 + $0x25] sm:$0xff]  ;;  %v1643_v19 = vadd.f32 %v1641_v24, %v1629_v37  ;;  %v1648_v63 = vadd.f32 %v1646_v1, %v1634_v36 }
 0x227   : > { %v6606_v50 = vld [vmem:[#allocation3 + $0x1e] sm:$0xff]  ;;  %v6626_v35 = vld [vmem:[#allocation3 + $0x26] sm:$0xff]  ;;  %v8530_v40 = vstv %s8524_s9  ;;  %v1649_v18 = vadd.f32 %v1647_v20, %v1635_v13  ;;  %s8705_s9 = sld [smem:[#allocation130_spill]] }
 0x228   : > { %2093 = vst [vmem:[#allocation3 + $0x18] sm:$0xff] %v6550_v14  ;;  %v8529_v25 = vld [vmem:[#allocation139_spill] sm:$0xff]  ;;  %v8532_v52 = vmov %v8530_v40  ;;  %2095 = vst [vmem:[#allocation3 + $0x28] sm:$0x3f] %v2092_v34  ;;  %v8533_v21 = vld [vmem:[#allocation146_spill] sm:$0xff] }
 0x229   : > { %v1654_v33 = vmul.f32 %v8530_v40, %v8529_v25  ;;  %v8531_v45 = vld [vmem:[#allocation143_spill] sm:$0xff]  ;;  %v2208_v48 = vsel %vm1368_vm4, %v2205_v31, %v8533_v21  ;;  %2094 = vst [vmem:[#allocation3 + $0x20] sm:$0xff] %v6555_v23  ;;  %v8535_v40 = vstv %s8528_s19  ;;  %v6647_v31 = vld [vmem:[#allocation3 + $0x9] sm:$0xff]  ;;  %s8708_s19 = sld [smem:[#allocation131_spill]] }
 0x22a   : > { %v1655_v12 = vmul.f32 %v8532_v52, %v8531_v45  ;;  %v1660_v34 = vmul.f32 %v8535_v40, %v8529_v25  ;;  %v6645_v52 = vld [vmem:[#allocation3 + $0x1] sm:$0xff]  ;;  %8538 = vst [vmem:[#allocation35_spill] sm:$0xff] %v6647_v31  ;;  %v6651_v30 = vld [vmem:[#allocation3 + $0xa] sm:$0xff]  ;;  %v8544_v1 = vmov %v8535_v40 }
 0x22b   : > { %v1656_v8 = vadd.f32 %v1654_v33, %v1642_v6  ;;  %8537 = vst [vmem:[#allocation135_spill] sm:$0xff] %v6645_v52  ;;  %v6649_v21 = vld [vmem:[#allocation3 + $0x2] sm:$0xff]  ;;  %8541 = vst [vmem:[#allocation139_spill] sm:$0xff] %v6651_v30  ;;  %v6655_v37 = vld [vmem:[#allocation3 + $0xb] sm:$0xff]  ;;  %v1661_v20 = vmul.f32 %v8544_v1, %v8531_v45  ;;  %v8546_v6 = vstv %s8534_s21  ;;  %v4441_v30 = vpop.permute.xlu0 %4440  ;;  %s8713_s21 = sld [smem:[#allocation39_spill]] }
 0x22c   : > { %8540 = vst [vmem:[#allocation142_spill] sm:$0xff] %v6649_v21  ;;  %v6653_v24 = vld [vmem:[#allocation3 + $0x3] sm:$0xff]  ;;  %8543 = vst [vmem:[#allocation146_spill] sm:$0xff] %v6655_v37  ;;  %v1657_v36 = vadd.f32 %v1655_v12, %v1643_v19  ;;  %v8548_v40 = vmov %v8546_v6  ;;  %v6668_v14 = vld [vmem:[#allocation3 + $0xc] sm:$0xff]  ;;  %v8552_v37 = vstv %s8536_s17  ;;  %v4442_v52 = vunpack.i.l.bf16 %v4441_v30  ;;  %s7105_s17 = sld [smem:[#allocation4 + $0xa2]] }
 0x22d   : > { %8542 = vst [vmem:[#allocation143_spill] sm:$0xff] %v6653_v24  ;;  %v8545_v13 = vld [vmem:[#allocation140_spill] sm:$0xff]  ;;  %v1662_v24 = vadd.f32 %v1660_v34, %v1648_v63  ;;  %v8553_v45 = vmov %v8552_v37  ;;  %v8555_v1 = vld [vmem:[#allocation141_spill] sm:$0xff]  ;;  %v1663_v63 = vadd.f32 %v1661_v20, %v1649_v18 }
 0x22e   : > { %v1668_v25 = vmul.f32 %v8546_v6, %v8545_v13  ;;  %v8547_v33 = vld [vmem:[#allocation144_spill] sm:$0xff]  ;;  %v1674_v12 = vmul.f32 %v8552_v37, %v8545_v13  ;;  %v8556_v6 = vstv %s8539_s20  ;;  %s7107_s20 = sld [smem:[#allocation4 + $0x47]] }
 0x22f   : > { %v1669_v26 = vmul.f32 %v8548_v40, %v8547_v33  ;;  %v6666_v23 = vld [vmem:[#allocation3 + $0x4] sm:$0xff]  ;;  %8550 = vst [vmem:[#allocation144_spill] sm:$0xff] %v6668_v14  ;;  %v1675_v19 = vmul.f32 %v8553_v45, %v8547_v33  ;;  %v1682_v31 = vmul.f32 %v8556_v6, %v8555_v1  ;;  %v6681_v40 = vld [vmem:[#allocation3 + $0xd] sm:$0xff]  ;;  %v8561_v45 = vmov %v8556_v6 }
 0x230   : > { %8549 = vst [vmem:[#allocation140_spill] sm:$0xff] %v6666_v23  ;;  %v6670_v21 = vld [vmem:[#allocation3 + $0x5] sm:$0xff]  ;;  %v6685_v14 = vld [vmem:[#allocation3 + $0xe] sm:$0xff]  ;;  %v1670_v34 = vadd.f32 %v1668_v25, %v1656_v8  ;;  %v1676_v13 = vadd.f32 %v1674_v12, %v1662_v24  ;;  %v2417_v8 = vpop.permute.xlu0 %2416  ;;  %v6717_v25 = vld [vmem:[#allocation3 + $0x19] sm:$0xff] }
 0x231   : > { %8551 = vst [vmem:[#allocation151_spill] sm:$0xff] %v6670_v21  ;;  %v6683_v23 = vld [vmem:[#allocation3 + $0x6] sm:$0xff]  ;;  %8558 = vst [vmem:[#allocation152_spill] sm:$0xff] %v6685_v14  ;;  %v4443_v21 = vunpack.i.h.bf16 %v4441_v30  ;;  %v1671_v37 = vadd.f32 %v1669_v26, %v1657_v36  ;;  %v8560_v33 = vld [vmem:[#allocation145_spill] sm:$0xff]  ;;  %v1677_v26 = vadd.f32 %v1675_v19, %v1663_v63 }
 0x232   : > { %8557 = vst [vmem:[#allocation141_spill] sm:$0xff] %v6683_v23  ;;  %2209 = vst [vmem:[#allocation3] sm:$0xff] %v6568_v62  ;;  %v1683_v6 = vmul.f32 %v8561_v45, %v8560_v33  ;;  %v8562_v23 = vstv %s8554_s1  ;;  %v6705_v18 = vadd.f32 %v1682_v31, %v1670_v34  ;;  %v6726_v31 = vsel %vm1587_vm6, %v2417_v8, %v6574_v15  ;;  %v8572_v45 = vld [vmem:[#allocation37_spill] sm:$0xff]  ;;  %s8715_s1 = sld [smem:[#allocation40_spill]] }
 0x233   : > { %2210 = vst [vmem:[#allocation3 + $0x8] sm:$0xff] %v6572_v41  ;;  %2211 = vst [vmem:[#allocation3 + $0x10] sm:$0x3f] %v2208_v48  ;;  %v1688_v14 = vmul.f32 %v8562_v23, %v8555_v1  ;;  %v6698_v30 = vsel %vm1587_vm6, %v6531_v43, %v4443_v21  ;;  %v6703_v48 = vsel %vm1587_vm6, %v6473_v11, %v4442_v52  ;;  %v8566_v36 = vmov %v8562_v23  ;;  %v6719_v11 = vld [vmem:[#allocation3 + $0x21] sm:$0xff] }
 0x234   : > { %8564 = vst [vmem:[#allocation145_spill] sm:$0xff] %v6698_v30  ;;  %8565 = vst [vmem:[#allocation153_spill] sm:$0xff] %v6703_v48  ;;  %v6707_v24 = vadd.f32 %v1683_v6, %v1671_v37  ;;  %v1689_v23 = vmul.f32 %v8566_v36, %v8560_v33  ;;  %v8567_v43 = vstv %s8559_s13  ;;  %v6721_v52 = vld [vmem:[#allocation3 + $0x1a] sm:$0xff]  ;;  %v6737_v37 = vld [vmem:[#allocation3 + $0x22] sm:$0xff]  ;;  %v8573_v8 = vstv %s8328_s8  ;;  %s8580_s8 = sld [smem:[#allocation114_spill]]  ;;  %v2529_v41 = vpop.permute.xlu0 %2528  ;;  %s8722_s13 = sld [smem:[#allocation41_spill]] }
 0x235   : > { %v6712_v20 = vadd.f32 %v1688_v14, %v1676_v13  ;;  %v1715_v21 = vmul.f32 %v8567_v43, %v6480_v10  ;;  %v8568_v12 = vmov %v8567_v43  ;;  %v8569_v14 = vstv %s8563_s12  ;;  %v6739_v13 = vld [vmem:[#allocation3 + $0x1b] sm:$0xff]  ;;  %v6741_v33 = vld [vmem:[#allocation3 + $0x23] sm:$0xff]  ;;  %2310 = vst [vmem:[#allocation3 + $0x13] sm:$0xe0] %v8572_v45  ;;  %s7121_s12 = sld [smem:[#allocation4 + $0xa9]] }
 0x236   : > { %v1716_v19 = vmul.f32 %v8568_v12, %v6487_v4  ;;  %v1721_v1 = vmul.f32 %v8569_v14, %v6480_v10  ;;  %v8570_v63 = vmov %v8569_v14  ;;  %v6744_v15 = vadd.f32 %v1689_v23, %v1677_v26  ;;  %v6753_v43 = vld [vmem:[#allocation3 + $0x1c] sm:$0xff]  ;;  %v6755_v12 = vld [vmem:[#allocation3 + $0x24] sm:$0xff] }
 0x237   : > { %v1722_v34 = vmul.f32 %v8570_v63, %v6487_v4  ;;  %v1717_v6 = vadd.f32 %v1715_v21, %v6539_v7  ;;  %v1729_v10 = vmul.f32 %v8573_v8, %v6586_v44  ;;  %v8575_v36 = vmov %v8573_v8  ;;  %8576 = vst [vmem:[#allocation37_spill] sm:$0xff] %v6755_v12  ;;  %v6757_v14 = vld [vmem:[#allocation3 + $0x1d] sm:$0xff]  ;;  %v6765_v45 = vld [vmem:[#allocation3 + $0x25] sm:$0xff] }
 0x238   : > { %v1730_v4 = vmul.f32 %v8575_v36, %v6608_v32  ;;  %8577 = vst [vmem:[#allocation154_spill] sm:$0xff] %v6757_v14  ;;  %v1718_v26 = vadd.f32 %v1716_v19, %v6561_v51  ;;  %v1723_v23 = vadd.f32 %v1721_v1, %v6541_v57  ;;  %v8578_v21 = vstv %s8571_s0  ;;  %v6767_v8 = vld [vmem:[#allocation3 + $0x1e] sm:$0xff]  ;;  %v6769_v36 = vld [vmem:[#allocation3 + $0x26] sm:$0xff]  ;;  %s8725_s0 = sld [smem:[#allocation42_spill]] }
 0x239   : > { %v1724_v7 = vadd.f32 %v1722_v34, %v6563_v59  ;;  %v1735_v63 = vmul.f32 %v8578_v21, %v6586_v44  ;;  %8579 = vst [vmem:[#allocation155_spill] sm:$0xff] %v6767_v8  ;;  %8581 = vst [vmem:[#allocation156_spill] sm:$0xff] %v6769_v36  ;;  %v1731_v62 = vadd.f32 %v1729_v10, %v1717_v6  ;;  %v8582_v14 = vmov %v8578_v21  ;;  %v6782_v44 = vld [vmem:[#allocation2 + $0x50] sm:$0xff]  ;;  %v6785_v34 = vld [vmem:[#allocation2 + $0x60] sm:$0xff]  ;;  %v2651_v8 = vpop.permute.xlu1 %2650 }
 0x23a   : > { %v1736_v12 = vmul.f32 %v8582_v14, %v6608_v32  ;;  %v8583_v51 = vstv %s8574_s27  ;;  %v6780_v1 = vld [vmem:[#allocation3 + $0x9] sm:$0xff]  ;;  %8586 = vst [vmem:[#allocation158_spill] sm:$0xff] %v6782_v44  ;;  %2311 = vst [vmem:[#allocation3 + $0x1b] sm:$0xff] %v6782_v44  ;;  %v8589_v6 = vld [vmem:[#allocation38_spill] sm:$0xff]  ;;  %v8590_v32 = vunpack.i.l.bf16 %v6628_v39  ;;  %v1732_v14 = vadd.f32 %v1730_v4, %v1718_v26  ;;  %s8730_s27 = sld [smem:[#allocation43_spill]] }
 0x23b   : > { %v1743_v57 = vmul.f32 %v8583_v51, %v6588_v38  ;;  %v8584_v59 = vmov %v8583_v51  ;;  %8585 = vst [vmem:[#allocation157_spill] sm:$0xff] %v6780_v1  ;;  %8587 = vst [vmem:[#allocation159_spill] sm:$0xff] %v6785_v34  ;;  %v1737_v21 = vadd.f32 %v1735_v63, %v1723_v23  ;;  %v8592_v51 = vstv %s8580_s8  ;;  %v6798_v44 = vld [vmem:[#allocation3 + $0x1] sm:$0xff]  ;;  %v6806_v36 = vld [vmem:[#allocation3 + $0xb] sm:$0xff]  ;;  %s7141_s8 = sld [smem:[#allocation4 + $0x4e]] }
 0x23c   : > { %v1744_v19 = vmul.f32 %v8584_v59, %v6610_v55  ;;  %2312 = vst [vmem:[#allocation3 + $0x23] sm:$0xff] %v6785_v34  ;;  %2313 = vst [vmem:[#allocation3 + $0x2b] sm:$0x7] %v8589_v6  ;;  %v6793_v10 = vsel %vm1704_vm8, %v2529_v41, %v8590_v32  ;;  %v1749_v59 = vmul.f32 %v8592_v51, %v6588_v38  ;;  %v6800_v1 = vld [vmem:[#allocation3 + $0x2] sm:$0xff]  ;;  %v6802_v34 = vld [vmem:[#allocation3 + $0xa] sm:$0xff]  ;;  %v8598_v4 = vmov %v8592_v51 }
 0x23d   : > { %8591 = vst [vmem:[#allocation38_spill] sm:$0xff] %v6793_v10  ;;  %8594 = vst [vmem:[#allocation160_spill] sm:$0xff] %v6800_v1  ;;  %v6804_v6 = vld [vmem:[#allocation3 + $0x3] sm:$0xff]  ;;  %v1738_v41 = vadd.f32 %v1736_v12, %v1724_v7  ;;  %v1745_v32 = vadd.f32 %v1743_v57, %v1731_v62  ;;  %v1750_v26 = vmul.f32 %v8598_v4, %v6610_v55  ;;  %v8599_v38 = vstv %s8588_s16  ;;  %v6816_v51 = vld [vmem:[#allocation3 + $0xc] sm:$0xff]  ;;  %s7143_s16 = sld [smem:[#allocation4 + $0xb0]] }
 0x23e   : > { %8595 = vst [vmem:[#allocation161_spill] sm:$0xff] %v6802_v34  ;;  %8596 = vst [vmem:[#allocation162_spill] sm:$0xff] %v6804_v6  ;;  %v1757_v23 = vmul.f32 %v8599_v38, %v6590_v17  ;;  %v6814_v63 = vld [vmem:[#allocation3 + $0x4] sm:$0xff]  ;;  %v1746_v6 = vadd.f32 %v1744_v19, %v1732_v14  ;;  %v1751_v1 = vadd.f32 %v1749_v59, %v1737_v21  ;;  %v8604_v62 = vstv %s8593_s28  ;;  %v6826_v55 = vld [vmem:[#allocation3 + $0xd] sm:$0xff]  ;;  %s7160_s28 = sld [smem:[#allocation4 + $0x55]] }
 0x23f   : > { %8597 = vst [vmem:[#allocation163_spill] sm:$0xff] %v6806_v36  ;;  %8601 = vst [vmem:[#allocation164_spill] sm:$0xff] %v6816_v51  ;;  %v6818_v34 = vld [vmem:[#allocation3 + $0x5] sm:$0xff]  ;;  %v8603_v36 = vmov %v8599_v38  ;;  %v1763_v7 = vmul.f32 %v8604_v62, %v6590_v17  ;;  %v6830_v4 = vld [vmem:[#allocation3 + $0xe] sm:$0xff]  ;;  %v2645_v38 = vpop.permute.xlu0 %2644  ;;  %v1752_v51 = vadd.f32 %v1750_v26, %v1738_v41  ;;  %v8606_v19 = vmov %v8604_v62  ;;  %v2647_v26 = vpop.permute.xlu1 %2646 }
 0x240   : > { %8602 = vst [vmem:[#allocation165_spill] sm:$0xff] %v6818_v34  ;;  %v1758_v12 = vmul.f32 %v8603_v36, %v6612_v0  ;;  %v6828_v57 = vld [vmem:[#allocation3 + $0x6] sm:$0xff]  ;;  %v1759_v34 = vadd.f32 %v1757_v23, %v1745_v32  ;;  %v1764_v14 = vmul.f32 %v8606_v19, %v6612_v0  ;;  %v8607_v36 = vstv %s8600_s3  ;;  %2429 = vst [vmem:[#allocation3 + $0x10] sm:$0x3f] %v6726_v31  ;;  %s7162_s3 = sld [smem:[#allocation4 + $0xb7]] }
 0x241   : > { %v1771_v21 = vmul.f32 %v8607_v36, %v6602_v16  ;;  %2427 = vst [vmem:[#allocation3] sm:$0xff] %v6703_v48  ;;  %2428 = vst [vmem:[#allocation3 + $0x8] sm:$0xff] %v6698_v30  ;;  %v6843_v17 = vsel %vm1821_vm7, %v2645_v38, %v2651_v8  ;;  %v1765_v41 = vadd.f32 %v1763_v7, %v1751_v1  ;;  %v8608_v32 = vmov %v8607_v36 }
 0x242   : > { %v1760_v59 = vadd.f32 %v1758_v12, %v1746_v6  ;;  %v1772_v0 = vmul.f32 %v8608_v32, %v6622_v46  ;;  %v1766_v23 = vadd.f32 %v1764_v14, %v1752_v51  ;;  %v8609_v19 = vstv %s8605_s4  ;;  %v6863_v32 = vld [vmem:[#allocation3 + $0x18] sm:$0xff]  ;;  %s7177_s4 = sld [smem:[#allocation4 + $0x5c]] }
 0x243   : > { %v1773_v62 = vadd.f32 %v1771_v21, %v1759_v34  ;;  %v1777_v36 = vmul.f32 %v8609_v19, %v6602_v16  ;;  %v8610_v30 = vmov %v8609_v19  ;;  %v8611_v8 = vstv %s8335_s24  ;;  %v6865_v34 = vld [vmem:[#allocation3 + $0x19] sm:$0xff]  ;;  %v2531_v51 = vpop.permute.xlu0 %2530  ;;  %v6875_v19 = vld [vmem:[#allocation3 + $0x21] sm:$0xff]  ;;  %s8629_s24 = sld [smem:[#allocation123_spill]] }
 0x244   : > { %v1778_v31 = vmul.f32 %v8610_v30, %v6622_v46  ;;  %v1774_v48 = vadd.f32 %v1772_v0, %v1760_v59  ;;  %v1785_v38 = vmul.f32 %v8611_v8, %v6604_v27  ;;  %v8612_v1 = vmov %v8611_v8  ;;  %v6873_v0 = vld [vmem:[#allocation3 + $0x20] sm:$0xff]  ;;  %8617 = vst [vmem:[#allocation166_spill] sm:$0xff] %v6875_v19 }
 0x245   : > { %v1786_v6 = vmul.f32 %v8612_v1, %v6624_v61  ;;  %v8613_v12 = vstv %s8336_s25  ;;  %v1779_v16 = vadd.f32 %v1777_v36, %v1765_v41  ;;  %v8616_v21 = vstv %s8337_s15  ;;  %v6879_v8 = vld [vmem:[#allocation3 + $0x22] sm:$0xff]  ;;  %s8633_s25 = sld [smem:[#allocation124_spill]]  ;;  %s8646_s15 = sld [smem:[#allocation126_spill]] }
 0x246   : > { %v1791_v7 = vmul.f32 %v8613_v12, %v6604_v27  ;;  %v1780_v14 = vadd.f32 %v1778_v31, %v1766_v23  ;;  %v8614_v46 = vmov %v8613_v12  ;;  %v1799_v59 = vmul.f32 %v8616_v21, %v6606_v50  ;;  %v6877_v27 = vld [vmem:[#allocation3 + $0x1a] sm:$0xff]  ;;  %8619 = vst [vmem:[#allocation168_spill] sm:$0xff] %v6879_v8 }
 0x247   : > { %v1792_v30 = vmul.f32 %v8614_v46, %v6624_v61  ;;  %8618 = vst [vmem:[#allocation167_spill] sm:$0xff] %v6877_v27  ;;  %v8620_v1 = vunpack.i.h.bf16 %v6628_v39  ;;  %v1787_v61 = vadd.f32 %v1785_v38, %v1773_v62  ;;  %v1788_v23 = vadd.f32 %v1786_v6, %v1774_v48  ;;  %v6890_v12 = vld [vmem:[#allocation3 + $0x1c] sm:$0xff]  ;;  %v6892_v46 = vld [vmem:[#allocation3 + $0x24] sm:$0xff] }
 0x248   : > { %v8622_v36 = vmov %v8616_v21  ;;  %v6894_v21 = vld [vmem:[#allocation3 + $0x1d] sm:$0xff]  ;;  %v1793_v27 = vadd.f32 %v1791_v7, %v1779_v16  ;;  %v8624_v39 = vstv %s8615_s30  ;;  %v6902_v62 = vld [vmem:[#allocation3 + $0x25] sm:$0xff]  ;;  %v8627_v7 = vstv %s8409_s14  ;;  %s8652_s14 = sld [smem:[#allocation128_spill]] }
 0x249   : > { %v6885_v41 = vsel %vm1704_vm8, %v2531_v51, %v8620_v1  ;;  %v1800_v31 = vmul.f32 %v8622_v36, %v6626_v35  ;;  %8623 = vst [vmem:[#allocation170_spill] sm:$0xff] %v6894_v21  ;;  %v1794_v8 = vadd.f32 %v1792_v30, %v1780_v14  ;;  %v1805_v19 = vmul.f32 %v8624_v39, %v6606_v50  ;;  %v6904_v48 = vld [vmem:[#allocation3 + $0x1e] sm:$0xff]  ;;  %v6906_v38 = vld [vmem:[#allocation3 + $0x26] sm:$0xff]  ;;  %v8628_v14 = vld [vmem:[#allocation137_spill] sm:$0xff]  ;;  %s7179_s30 = sld [smem:[#allocation4 + $0xbe]] }
 0x24a   : > { %8621 = vst [vmem:[#allocation169_spill] sm:$0xff] %v6885_v41  ;;  %v8625_v51 = vmov %v8624_v39  ;;  %v6908_v6 = vadd.f32 %v1799_v59, %v1787_v61  ;;  %v8626_v21 = vld [vmem:[#allocation136_spill] sm:$0xff]  ;;  %v1835_v50 = vadd.f32 %v8628_v14, %v6707_v24  ;;  %2543 = vst [vmem:[#allocation3 + $0x18] sm:$0xff] %v6793_v10  ;;  %v2653_v59 = vpop.permute.xlu0 %2652  ;;  %v2533_v61 = vpop.permute.xlu1 %2532  ;;  %v8631_v39 = vstv %s8329_s6  ;;  %s8639_s6 = sld [smem:[#allocation125_spill]] }
 0x24b   : > { %v1806_v1 = vmul.f32 %v8625_v51, %v6626_v35  ;;  %v6910_v36 = vadd.f32 %v1800_v31, %v1788_v23  ;;  %v1832_v16 = vmul.f32 %v8627_v7, %v8626_v21  ;;  %v6917_v30 = vld [vmem:[#allocation3 + $0x1] sm:$0xff]  ;;  %2544 = vst [vmem:[#allocation3 + $0x20] sm:$0xff] %v6885_v41  ;;  %v6923_v23 = vadd.f32 %v1805_v19, %v1793_v27  ;;  %v8632_v51 = vld [vmem:[#allocation138_spill] sm:$0xff]  ;;  %v6932_v14 = vld [vmem:[#allocation3 + $0x9] sm:$0xff] }
 0x24c   : > { %v6919_v35 = vld [vmem:[#allocation3 + $0x2] sm:$0xff]  ;;  %v1838_v24 = vmul.f32 %v8631_v39, %v8626_v21  ;;  %v1841_v7 = vadd.f32 %v8632_v51, %v6744_v15  ;;  %8634 = vst [vmem:[#allocation137_spill] sm:$0xff] %v6932_v14  ;;  %v6934_v10 = vld [vmem:[#allocation3 + $0xa] sm:$0xff]  ;;  %v2657_v19 = vsel %vm1821_vm7, %v2647_v26, %v2653_v59  ;;  %v8644_v26 = vstv %s5881_s5  ;;  %s8651_s5 = sld [smem:[#allocation127_spill]] }
 0x24d   : > { %8630 = vst [vmem:[#allocation136_spill] sm:$0xff] %v6919_v35  ;;  %v6925_v31 = vadd.f32 %v1806_v1, %v1794_v8  ;;  %8635 = vst [vmem:[#allocation138_spill] sm:$0xff] %v6934_v10  ;;  %v6936_v41 = vld [vmem:[#allocation3 + $0x3] sm:$0xff]  ;;  %v6938_v35 = vld [vmem:[#allocation3 + $0xb] sm:$0xff]  ;;  %v1834_v27 = vadd.f32 %v1832_v16, %v6705_v18  ;;  %v8638_v8 = vstv %s8629_s24  ;;  %v1852_v59 = vmul.f32 %v8644_v26, %v6497_v49  ;;  %s7186_s24 = sld [smem:[#allocation4 + $0x33]] }
 0x24e   : > { %8636 = vst [vmem:[#allocation171_spill] sm:$0xff] %v6936_v41  ;;  %8637 = vst [vmem:[#allocation172_spill] sm:$0xff] %v6938_v35  ;;  %v1846_v21 = vmul.f32 %v8638_v8, %v6497_v49  ;;  %v8640_v15 = vmov %v8638_v8  ;;  %v6949_v39 = vld [vmem:[#allocation3 + $0x4] sm:$0xff]  ;;  %v6951_v51 = vld [vmem:[#allocation3 + $0xc] sm:$0xff]  ;;  %v1840_v35 = vadd.f32 %v1838_v24, %v6712_v20  ;;  %v8645_v18 = vmov %v8644_v26 }
 0x24f   : > { %v1847_v1 = vmul.f32 %v8640_v15, %v6489_v28  ;;  %8641 = vst [vmem:[#allocation173_spill] sm:$0xff] %v6949_v39  ;;  %8642 = vst [vmem:[#allocation174_spill] sm:$0xff] %v6951_v51  ;;  %v6953_v41 = vld [vmem:[#allocation3 + $0x5] sm:$0xff]  ;;  %v1853_v16 = vmul.f32 %v8645_v18, %v6489_v28  ;;  %v8647_v8 = vstv %s8633_s25  ;;  %v6965_v15 = vld [vmem:[#allocation3 + $0xd] sm:$0xff]  ;;  %v2539_v28 = vpop.permute.xlu0 %2538  ;;  %s7188_s25 = sld [smem:[#allocation4 + $0x95]] }
 0x250   : > { %8643 = vst [vmem:[#allocation175_spill] sm:$0xff] %v6953_v41  ;;  %v1860_v10 = vmul.f32 %v8647_v8, %v6499_v3  ;;  %v6967_v39 = vld [vmem:[#allocation3 + $0x6] sm:$0xff]  ;;  %v6969_v51 = vld [vmem:[#allocation3 + $0xe] sm:$0xff]  ;;  %v1848_v41 = vadd.f32 %v1846_v21, %v1834_v27  ;;  %v8649_v24 = vmov %v8647_v8  ;;  %v8650_v49 = vstv %s8639_s6  ;;  %s7198_s6 = sld [smem:[#allocation4 + $0x3a]] }
 0x251   : > { %8648 = vst [vmem:[#allocation176_spill] sm:$0xff] %v6967_v39  ;;  %v1849_v20 = vadd.f32 %v1847_v1, %v1835_v50  ;;  %v1861_v14 = vmul.f32 %v8649_v24, %v6501_v47  ;;  %v1866_v26 = vmul.f32 %v8650_v49, %v6499_v3  ;;  %2659 = vst [vmem:[#allocation3] sm:$0xff] %v6843_v17  ;;  %v8653_v39 = vmov %v8650_v49 }
 0x252   : > { %2660 = vst [vmem:[#allocation3 + $0x8] sm:$0xff] %v2657_v19  ;;  %v1854_v18 = vadd.f32 %v1852_v59, %v1840_v35  ;;  %v1855_v8 = vadd.f32 %v1853_v16, %v1841_v7  ;;  %v1867_v27 = vmul.f32 %v8653_v39, %v6501_v47  ;;  %v8654_v50 = vstv %s8646_s15  ;;  %v2649_v35 = vpop.permute.xlu1 %2648  ;;  %s7200_s15 = sld [smem:[#allocation4 + $0x9c]] }
 0x253   : > { %v1874_v21 = vmul.f32 %v8654_v50, %v6503_v58  ;;  %v2542_v1 = vsel %vm1704_vm8, %v2533_v61, %v2539_v28  ;;  %v1862_v24 = vadd.f32 %v1860_v10, %v1848_v41  ;;  %v1863_v3 = vadd.f32 %v1861_v14, %v1849_v20 }
 0x254   : > { %v8656_v17 = vmov %v8654_v50  ;;  %v1868_v59 = vadd.f32 %v1866_v26, %v1854_v18  ;;  %v1869_v7 = vadd.f32 %v1867_v27, %v1855_v8  ;;  %v8657_v16 = vstv %s8651_s5  ;;  %2545 = vst [vmem:[#allocation3 + $0x28] sm:$0x3f] %v2542_v1  ;;  %v2655_v26 = vpop.permute.xlu0 %2654  ;;  %s7206_s5 = sld [smem:[#allocation4 + $0x41]] }
 0x255   : > { %v1875_v19 = vmul.f32 %v8656_v17, %v6505_v9  ;;  %v1880_v47 = vmul.f32 %v8657_v16, %v6503_v58  ;;  %v8658_v39 = vmov %v8657_v16  ;;  %v1876_v61 = vadd.f32 %v1874_v21, %v1862_v24 }
 0x256   : > { %v1881_v49 = vmul.f32 %v8658_v39, %v6505_v9  ;;  %v8659_v41 = vstv %s8652_s14  ;;  %v8661_v8 = vstv %s8655_s11  ;;  %v2658_v21 = vsel %vm1821_vm7, %v2649_v35, %v2655_v26  ;;  %s7208_s14 = sld [smem:[#allocation4 + $0xa3]]  ;;  %s7218_s11 = sld [smem:[#allocation4 + $0x48]] }
 0x257   : > { %v1877_v10 = vadd.f32 %v1875_v19, %v1863_v3  ;;  %v1888_v14 = vmul.f32 %v8659_v41, %v6533_v53  ;;  %v8660_v20 = vmov %v8659_v41  ;;  %v1882_v18 = vadd.f32 %v1880_v47, %v1868_v59  ;;  %2661 = vst [vmem:[#allocation3 + $0x10] sm:$0x3f] %v2658_v21 }
 0x258   : > { %v1889_v28 = vmul.f32 %v8660_v20, %v6515_v54  ;;  %v1883_v58 = vadd.f32 %v1881_v49, %v1869_v7  ;;  %v1894_v9 = vmul.f32 %v8661_v8, %v6533_v53  ;;  %v8662_v27 = vmov %v8661_v8 }
 0x259   : > { %v1895_v50 = vmul.f32 %v8662_v27, %v6515_v54  ;;  %v1890_v1 = vadd.f32 %v1888_v14, %v1876_v61  ;;  %v8663_v3 = vstv %s8345_s18  ;;  %v8665_v16 = vstv %s8346_s10  ;;  %s8676_s18 = sld [smem:[#allocation108_spill]]  ;;  %s8689_s10 = sld [smem:[#allocation121_spill]] }
 0x25a   : > { %v1891_v24 = vadd.f32 %v1889_v28, %v1877_v10  ;;  %v1902_v17 = vmul.f32 %v8663_v3, %v6535_v42  ;;  %v1896_v19 = vadd.f32 %v1894_v9, %v1882_v18  ;;  %v8664_v7 = vmov %v8663_v3 }
 0x25b   : > { %v1897_v59 = vadd.f32 %v1895_v50, %v1883_v58  ;;  %v1903_v53 = vmul.f32 %v8664_v7, %v6517_v56  ;;  %v1908_v54 = vmul.f32 %v8665_v16, %v6535_v42  ;;  %v8666_v35 = vmov %v8665_v16 }
 0x25c   : > { %v1904_v22 = vadd.f32 %v1902_v17, %v1890_v1  ;;  %v1909_v47 = vmul.f32 %v8666_v35, %v6517_v56  ;;  %v8667_v39 = vstv %s5928_s26  ;;  %v8669_v20 = vstv %s5930_s22  ;;  %s8673_s26 = sld [smem:[#allocation111_spill]]  ;;  %s8684_s22 = sld [smem:[#allocation120_spill]] }
 0x25d   : > { %v1916_v49 = vmul.f32 %v8667_v39, %v6537_v5  ;;  %v8668_v61 = vmov %v8667_v39  ;;  %v1905_v41 = vadd.f32 %v1903_v53, %v1891_v24  ;;  %v1910_v14 = vadd.f32 %v1908_v54, %v1896_v19  ;;  %v8677_v19 = vld [vmem:[#allocation135_spill] sm:$0xff] }
 0x25e   : > { %v1917_v10 = vmul.f32 %v8668_v61, %v6519_v2  ;;  %v1922_v42 = vmul.f32 %v8669_v20, %v6537_v5  ;;  %v8670_v28 = vmov %v8669_v20  ;;  %v1911_v18 = vadd.f32 %v1909_v47, %v1897_v59  ;;  %v8679_v53 = vld [vmem:[#allocation35_spill] sm:$0xff] }
 0x25f   : > { %v1923_v26 = vmul.f32 %v8670_v28, %v6519_v2  ;;  %v1918_v56 = vadd.f32 %v1916_v49, %v1904_v22  ;;  %v8671_v58 = vstv %s5936_s2  ;;  %v8674_v1 = vstv %s5938_s23  ;;  %s8681_s2 = sld [smem:[#allocation119_spill]]  ;;  %v8687_v20 = vld [vmem:[#allocation139_spill] sm:$0xff]  ;;  %s8692_s23 = sld [smem:[#allocation132_spill]] }
 0x260   : > { %v1984_v8 = vmul.f32 %v8671_v58, %v6524_v60  ;;  %v8672_v9 = vmov %v8671_v58  ;;  %v1919_v50 = vadd.f32 %v1917_v10, %v1905_v41  ;;  %v1924_v21 = vadd.f32 %v1922_v42, %v1910_v14  ;;  %v8685_v10 = vld [vmem:[#allocation142_spill] sm:$0xff] }
 0x261   : > { %v1985_v27 = vmul.f32 %v8672_v9, %v6529_v29  ;;  %v1990_v5 = vmul.f32 %v8674_v1, %v6524_v60  ;;  %v8675_v24 = vmov %v8674_v1  ;;  %v1925_v3 = vadd.f32 %v1923_v26, %v1911_v18 }
 0x262   : > { %v1991_v2 = vmul.f32 %v8675_v24, %v6529_v29  ;;  %v1986_v17 = vadd.f32 %v1984_v8, %v1918_v56  ;;  %v8678_v59 = vstv %s5950_s7  ;;  %v8682_v47 = vstv %s5952_s29  ;;  %v8695_v24 = vld [vmem:[#allocation146_spill] sm:$0xff]  ;;  %s8697_s29 = sld [smem:[#allocation133_spill]]  ;;  %s8700_s7 = sld [smem:[#allocation134_spill]] }
 0x263   : > { %v1998_v7 = vmul.f32 %v8678_v59, %v8677_v19  ;;  %v8680_v16 = vmov %v8678_v59  ;;  %v1987_v22 = vadd.f32 %v1985_v27, %v1919_v50  ;;  %v1992_v35 = vadd.f32 %v1990_v5, %v1924_v21  ;;  %v8693_v21 = vld [vmem:[#allocation143_spill] sm:$0xff] }
 0x264   : > { %v1999_v54 = vmul.f32 %v8680_v16, %v8679_v53  ;;  %v2004_v60 = vmul.f32 %v8682_v47, %v8677_v19  ;;  %v8683_v39 = vmov %v8682_v47  ;;  %v1993_v49 = vadd.f32 %v1991_v2, %v1925_v3 }
 0x265   : > { %v2005_v29 = vmul.f32 %v8683_v39, %v8679_v53  ;;  %v2000_v61 = vadd.f32 %v1998_v7, %v1986_v17  ;;  %v8686_v41 = vstv %s8673_s26  ;;  %v8690_v56 = vstv %s8676_s18  ;;  %v8703_v39 = vld [vmem:[#allocation144_spill] sm:$0xff]  ;;  %s7220_s26 = sld [smem:[#allocation4 + $0xaa]]  ;;  %s7234_s18 = sld [smem:[#allocation4 + $0x4f]] }
 0x266   : > { %v2012_v14 = vmul.f32 %v8686_v41, %v8685_v10  ;;  %v8688_v42 = vmov %v8686_v41  ;;  %v2001_v26 = vadd.f32 %v1999_v54, %v1987_v22  ;;  %v2006_v18 = vadd.f32 %v2004_v60, %v1992_v35  ;;  %v8701_v35 = vld [vmem:[#allocation140_spill] sm:$0xff] }
 0x267   : > { %v2013_v28 = vmul.f32 %v8688_v42, %v8687_v20  ;;  %v2018_v58 = vmul.f32 %v8690_v56, %v8685_v10  ;;  %v8691_v8 = vmov %v8690_v56  ;;  %v2007_v27 = vadd.f32 %v2005_v29, %v1993_v49 }
 0x268   : > { %v2019_v9 = vmul.f32 %v8691_v8, %v8687_v20  ;;  %v2014_v50 = vadd.f32 %v2012_v14, %v2000_v61  ;;  %v8694_v1 = vstv %s8681_s2  ;;  %v8698_v59 = vstv %s8684_s22  ;;  %s7236_s2 = sld [smem:[#allocation4 + $0xb1]]  ;;  %s7250_s22 = sld [smem:[#allocation4 + $0x56]] }
 0x269   : > { %v2026_v5 = vmul.f32 %v8694_v1, %v8693_v21  ;;  %v8696_v2 = vmov %v8694_v1  ;;  %v2015_v17 = vadd.f32 %v2013_v28, %v2001_v26  ;;  %v2020_v19 = vadd.f32 %v2018_v58, %v2006_v18  ;;  %v8709_v18 = vld [vmem:[#allocation151_spill] sm:$0xff] }
 0x26a   : > { %v2027_v3 = vmul.f32 %v8696_v2, %v8695_v24  ;;  %v2032_v7 = vmul.f32 %v8698_v59, %v8693_v21  ;;  %v8699_v53 = vmov %v8698_v59  ;;  %v2021_v54 = vadd.f32 %v2019_v9, %v2007_v27 }
 0x26b   : > { %v2033_v16 = vmul.f32 %v8699_v53, %v8695_v24  ;;  %v2028_v22 = vadd.f32 %v2026_v5, %v2014_v50  ;;  %v8702_v47 = vstv %s8689_s10  ;;  %v8706_v41 = vstv %s8692_s23  ;;  %s7252_s10 = sld [smem:[#allocation4 + $0xb8]]  ;;  %s7258_s23 = sld [smem:[#allocation4 + $0x5d]] }
 0x26c   : > { %v2040_v60 = vmul.f32 %v8702_v47, %v8701_v35  ;;  %v8704_v29 = vmov %v8702_v47  ;;  %v2029_v61 = vadd.f32 %v2027_v3, %v2015_v17  ;;  %v2034_v10 = vadd.f32 %v2032_v7, %v2020_v19  ;;  %v8716_v17 = vld [vmem:[#allocation141_spill] sm:$0xff]  ;;  %v8718_v7 = vld [vmem:[#allocation152_spill] sm:$0xff] }
 0x26d   : > { %v2041_v49 = vmul.f32 %v8704_v29, %v8703_v39  ;;  %v2046_v14 = vmul.f32 %v8706_v41, %v8701_v35  ;;  %v8707_v20 = vmov %v8706_v41  ;;  %v2035_v28 = vadd.f32 %v2033_v16, %v2021_v54  ;;  %v8726_v41 = vld [vmem:[#allocation148_spill] sm:$0xff] }
 0x26e   : > { %v2047_v42 = vmul.f32 %v8707_v20, %v8703_v39  ;;  %v2042_v26 = vadd.f32 %v2040_v60, %v2028_v22  ;;  %v8710_v56 = vstv %s8697_s29  ;;  %v8712_v21 = vstv %s8700_s7  ;;  %s7260_s29 = sld [smem:[#allocation4 + $0xbf]]  ;;  %s7270_s7 = sld [smem:[#allocation4 + $0x34]] }
 0x26f   : > { %v2054_v58 = vmul.f32 %v8710_v56, %v8709_v18  ;;  %v8711_v8 = vmov %v8710_v56  ;;  %v2043_v27 = vadd.f32 %v2041_v49, %v2029_v61  ;;  %v2048_v50 = vadd.f32 %v2046_v14, %v2034_v10  ;;  %v8723_v49 = vld [vmem:[#allocation147_spill] sm:$0xff] }
 0x270   : > { %v2055_v9 = vmul.f32 %v8711_v8, %v6681_v40  ;;  %v2060_v1 = vmul.f32 %v8712_v21, %v8709_v18  ;;  %v8714_v5 = vmov %v8712_v21  ;;  %v2049_v2 = vadd.f32 %v2047_v42, %v2035_v28 }
 0x271   : > { %v2061_v24 = vmul.f32 %v8714_v5, %v6681_v40  ;;  %v2056_v3 = vadd.f32 %v2054_v58, %v2042_v26  ;;  %v8717_v19 = vstv %s8705_s9  ;;  %v8720_v35 = vstv %s8708_s19  ;;  %s7272_s9 = sld [smem:[#allocation4 + $0x96]]  ;;  %s7278_s19 = sld [smem:[#allocation4 + $0x3b]] }
 0x272   : > { %v2068_v59 = vmul.f32 %v8717_v19, %v8716_v17  ;;  %v8719_v53 = vmov %v8717_v19  ;;  %v2057_v54 = vadd.f32 %v2055_v9, %v2043_v27  ;;  %v2062_v22 = vadd.f32 %v2060_v1, %v2048_v50 }
 0x273   : > { %v2069_v16 = vmul.f32 %v8719_v53, %v8718_v7  ;;  %v2074_v47 = vmul.f32 %v8720_v35, %v8716_v17  ;;  %v8721_v40 = vmov %v8720_v35  ;;  %v2063_v39 = vadd.f32 %v2061_v24, %v2049_v2 }
 0x274   : > { %v2075_v60 = vmul.f32 %v8721_v40, %v8718_v7  ;;  %v7123_v29 = vadd.f32 %v2068_v59, %v2056_v3  ;;  %v8724_v61 = vstv %s8713_s21  ;;  %v8728_v26 = vstv %s8715_s1  ;;  %s7280_s21 = sld [smem:[#allocation4 + $0x9d]]  ;;  %s7300_s1 = sld [smem:[#allocation4 + $0x49]] }
 0x275   : > { %v2100_v10 = vmul.f32 %v8724_v61, %v8723_v49  ;;  %v8727_v14 = vmov %v8724_v61  ;;  %v7131_v42 = vadd.f32 %v2069_v16, %v2057_v54  ;;  %v7133_v28 = vadd.f32 %v2074_v47, %v2062_v22 }
 0x276   : > { %v2101_v20 = vmul.f32 %v8727_v14, %v8726_v41  ;;  %v2106_v18 = vmul.f32 %v8728_v26, %v8723_v49  ;;  %v8729_v56 = vmov %v8728_v26  ;;  %v7145_v8 = vadd.f32 %v2075_v60, %v2063_v39 }
 0x277   : > { %v2107_v58 = vmul.f32 %v8729_v56, %v8726_v41  ;;  %v2102_v9 = vadd.f32 %v2100_v10, %v6908_v6  ;;  %v8731_v50 = vstv %s8722_s13  ;;  %v8733_v3 = vstv %s8725_s0  ;;  %s7302_s13 = sld [smem:[#allocation4 + $0xab]]  ;;  %s7324_s0 = sld [smem:[#allocation4 + $0xb2]] }
 0x278   : > { %v2103_v27 = vadd.f32 %v2101_v20, %v6910_v36  ;;  %v2114_v21 = vmul.f32 %v8731_v50, %v6717_v25  ;;  %v2108_v1 = vadd.f32 %v2106_v18, %v6923_v23  ;;  %v8732_v24 = vmov %v8731_v50 }
 0x279   : > { %v2109_v5 = vadd.f32 %v2107_v58, %v6925_v31  ;;  %v2115_v2 = vmul.f32 %v8732_v24, %v6719_v11  ;;  %v2120_v17 = vmul.f32 %v8733_v3, %v6717_v25  ;;  %v8734_v36 = vmov %v8733_v3  ;;  %v8738_v24 = vld [vmem:[#allocation154_spill] sm:$0xff] }
 0x27a   : > { %v2116_v6 = vadd.f32 %v2114_v21, %v2102_v9  ;;  %v2121_v19 = vmul.f32 %v8734_v36, %v6719_v11  ;;  %v8735_v59 = vstv %s8730_s27  ;;  %v2133_v54 = vstv %s7105_s17  ;;  %v8737_v9 = vld [vmem:[#allocation37_spill] sm:$0xff]  ;;  %s7290_s17 = sld [smem:[#allocation4 + $0x42]]  ;;  %s7334_s27 = sld [smem:[#allocation4 + $0x57]] }
 0x27b   : > { %v2128_v23 = vmul.f32 %v8735_v59, %v6721_v52  ;;  %v8736_v31 = vmov %v8735_v59  ;;  %v2117_v53 = vadd.f32 %v2115_v2, %v2103_v27  ;;  %v2122_v16 = vadd.f32 %v2120_v17, %v2108_v1 }
 0x27c   : > { %v2129_v7 = vmul.f32 %v8736_v31, %v6737_v37  ;;  %v2141_v22 = vstv %s7107_s20  ;;  %v2123_v25 = vadd.f32 %v2121_v19, %v2109_v5  ;;  %v2134_v47 = vmul.f32 %v2133_v54, %v6721_v52  ;;  %s7292_s20 = sld [smem:[#allocation4 + $0xa4]] }
 0x27d   : > { %v2130_v35 = vadd.f32 %v2128_v23, %v2116_v6  ;;  %v2135_v40 = vmul.f32 %v2133_v54, %v6737_v37  ;;  %v2142_v60 = vmul.f32 %v2141_v22, %v6739_v13  ;;  %v2143_v39 = vmul.f32 %v2141_v22, %v6741_v33  ;;  %v8740_v22 = vld [vmem:[#allocation156_spill] sm:$0xff] }
 0x27e   : > { %v2131_v11 = vadd.f32 %v2129_v7, %v2117_v53  ;;  %v2147_v49 = vstv %s7121_s12  ;;  %v2136_v61 = vadd.f32 %v2134_v47, %v2122_v16  ;;  %v2155_v20 = vstv %s7141_s8  ;;  %v8739_v16 = vld [vmem:[#allocation155_spill] sm:$0xff]  ;;  %s7322_s12 = sld [smem:[#allocation4 + $0x50]]  ;;  %s7336_s8 = sld [smem:[#allocation4 + $0xb9]] }
 0x27f   : > { %v2137_v10 = vadd.f32 %v2135_v40, %v2123_v25  ;;  %v2148_v52 = vmul.f32 %v2147_v49, %v6739_v13  ;;  %v2149_v41 = vmul.f32 %v2147_v49, %v6741_v33  ;;  %v2144_v37 = vadd.f32 %v2142_v60, %v2130_v35 }
 0x280   : > { %v2145_v14 = vadd.f32 %v2143_v39, %v2131_v11  ;;  %v2161_v26 = vstv %s7143_s16  ;;  %v2156_v58 = vmul.f32 %v2155_v20, %v6753_v43  ;;  %v2157_v27 = vmul.f32 %v2155_v20, %v8737_v9  ;;  %v8741_v39 = vld [vmem:[#allocation149_spill] sm:$0xff]  ;;  %s7346_s16 = sld [smem:[#allocation4 + $0x5e]] }
 0x281   : > { %v2150_v18 = vadd.f32 %v2148_v52, %v2136_v61  ;;  %v2151_v56 = vadd.f32 %v2149_v41, %v2137_v10  ;;  %v2162_v50 = vmul.f32 %v2161_v26, %v6753_v43  ;;  %v2163_v13 = vmul.f32 %v2161_v26, %v8737_v9  ;;  %v8742_v61 = vld [vmem:[#allocation150_spill] sm:$0xff] }
 0x282   : > { %v2169_v21 = vstv %s7160_s28  ;;  %v2175_v33 = vstv %s7162_s3  ;;  %v2158_v1 = vadd.f32 %v2156_v58, %v2144_v37  ;;  %v2159_v5 = vadd.f32 %v2157_v27, %v2145_v14  ;;  %s7348_s28 = sld [smem:[#allocation4 + $0xc0]]  ;;  %s7354_s3 = sld [smem:[#allocation4 + $0x35]] }
 0x283   : > { %v2170_v2 = vmul.f32 %v2169_v21, %v8738_v24  ;;  %v2171_v3 = vmul.f32 %v2169_v21, %v6765_v45  ;;  %v2164_v17 = vadd.f32 %v2162_v50, %v2150_v18  ;;  %v2165_v6 = vadd.f32 %v2163_v13, %v2151_v56  ;;  %v8743_v50 = vld [vmem:[#allocation157_spill] sm:$0xff] }
 0x284   : > { %v2176_v43 = vmul.f32 %v2175_v33, %v8738_v24  ;;  %v2177_v36 = vmul.f32 %v2175_v33, %v6765_v45  ;;  %v2183_v23 = vstv %s7177_s4  ;;  %v2189_v31 = vstv %s7179_s30  ;;  %v8745_v24 = vld [vmem:[#allocation161_spill] sm:$0xff]  ;;  %s7356_s4 = sld [smem:[#allocation4 + $0x97]]  ;;  %s7366_s30 = sld [smem:[#allocation4 + $0x3c]] }
 0x285   : > { %v2172_v19 = vadd.f32 %v2170_v2, %v2158_v1  ;;  %v2173_v59 = vadd.f32 %v2171_v3, %v2159_v5  ;;  %v2184_v54 = vmul.f32 %v2183_v23, %v8739_v16  ;;  %v2185_v25 = vmul.f32 %v2183_v23, %v8740_v22 }
 0x286   : > { %v2178_v7 = vadd.f32 %v2176_v43, %v2164_v17  ;;  %v2179_v53 = vadd.f32 %v2177_v36, %v2165_v6  ;;  %v2190_v35 = vmul.f32 %v2189_v31, %v8739_v16  ;;  %v2191_v47 = vmul.f32 %v2189_v31, %v8740_v22  ;;  %v8747_v16 = vld [vmem:[#allocation163_spill] sm:$0xff] }
 0x287   : > { %v2215_v40 = vstv %s7186_s24  ;;  %v2221_v45 = vstv %s7188_s25  ;;  %v7222_v11 = vadd.f32 %v2184_v54, %v2172_v19  ;;  %v7224_v60 = vadd.f32 %v2185_v25, %v2173_v59  ;;  %s7368_s24 = sld [smem:[#allocation4 + $0x9e]]  ;;  %s7374_s25 = sld [smem:[#allocation4 + $0x43]] }
 0x288   : > { %v2216_v49 = vmul.f32 %v2215_v40, %v8741_v39  ;;  %v2217_v10 = vmul.f32 %v2215_v40, %v8742_v61  ;;  %v7228_v52 = vadd.f32 %v2190_v35, %v2178_v7  ;;  %v7230_v41 = vadd.f32 %v2191_v47, %v2179_v53  ;;  %v8746_v7 = vld [vmem:[#allocation162_spill] sm:$0xff] }
 0x289   : > { %v2222_v37 = vmul.f32 %v2221_v45, %v8741_v39  ;;  %v2223_v14 = vmul.f32 %v2221_v45, %v8742_v61  ;;  %v2229_v18 = vstv %s7198_s6  ;;  %v2235_v56 = vstv %s7200_s15  ;;  %s7376_s6 = sld [smem:[#allocation4 + $0xa5]]  ;;  %s7392_s15 = sld [smem:[#allocation4 + $0x4a]] }
 0x28a   : > { %v2218_v20 = vadd.f32 %v2216_v49, %v7123_v29  ;;  %v2219_v26 = vadd.f32 %v2217_v10, %v7131_v42  ;;  %v2230_v27 = vmul.f32 %v2229_v18, %v6798_v44  ;;  %v2231_v13 = vmul.f32 %v2229_v18, %v8743_v50  ;;  %v8748_v49 = vld [vmem:[#allocation164_spill] sm:$0xff] }
 0x28b   : > { %v2224_v58 = vadd.f32 %v2222_v37, %v7133_v28  ;;  %v2225_v9 = vadd.f32 %v2223_v14, %v7145_v8  ;;  %v2236_v21 = vmul.f32 %v2235_v56, %v6798_v44  ;;  %v2237_v33 = vmul.f32 %v2235_v56, %v8743_v50  ;;  %v8744_v28 = vld [vmem:[#allocation160_spill] sm:$0xff]  ;;  %v8749_v50 = vld [vmem:[#allocation165_spill] sm:$0xff] }
 0x28c   : > { %v2243_v1 = vstv %s7206_s5  ;;  %v2249_v5 = vstv %s7208_s14  ;;  %v2232_v29 = vadd.f32 %v2230_v27, %v2218_v20  ;;  %v2233_v42 = vadd.f32 %v2231_v13, %v2219_v26  ;;  %s7394_s5 = sld [smem:[#allocation4 + $0xac]]  ;;  %s7410_s14 = sld [smem:[#allocation4 + $0x51]] }
 0x28d   : > { %v2244_v8 = vmul.f32 %v2243_v1, %v8744_v28  ;;  %v2245_v2 = vmul.f32 %v2243_v1, %v8745_v24  ;;  %v2238_v3 = vadd.f32 %v2236_v21, %v2224_v58  ;;  %v2239_v17 = vadd.f32 %v2237_v33, %v2225_v9 }
 0x28e   : > { %v2250_v44 = vmul.f32 %v2249_v5, %v8744_v28  ;;  %v2251_v6 = vmul.f32 %v2249_v5, %v8745_v24  ;;  %v2257_v19 = vstv %s7218_s11  ;;  %v2263_v59 = vstv %s7220_s26  ;;  %s7412_s11 = sld [smem:[#allocation4 + $0xb3]]  ;;  %s7424_s26 = sld [smem:[#allocation4 + $0x58]] }
 0x28f   : > { %v2246_v43 = vadd.f32 %v2244_v8, %v2232_v29  ;;  %v2247_v36 = vadd.f32 %v2245_v2, %v2233_v42  ;;  %v2258_v53 = vmul.f32 %v2257_v19, %v8746_v7  ;;  %v2259_v54 = vmul.f32 %v2257_v19, %v8747_v16 }
 0x290   : > { %v2252_v23 = vadd.f32 %v2250_v44, %v2238_v3  ;;  %v2253_v31 = vadd.f32 %v2251_v6, %v2239_v17  ;;  %v2264_v22 = vmul.f32 %v2263_v59, %v8746_v7  ;;  %v2265_v25 = vmul.f32 %v2263_v59, %v8747_v16  ;;  %v8750_v16 = vld [vmem:[#allocation166_spill] sm:$0xff] }
 0x291   : > { %v2271_v35 = vstv %s7234_s18  ;;  %v2277_v47 = vstv %s7236_s2  ;;  %v2260_v40 = vadd.f32 %v2258_v53, %v2246_v43  ;;  %v2261_v45 = vadd.f32 %v2259_v54, %v2247_v36  ;;  %s7426_s18 = sld [smem:[#allocation4 + $0xba]]  ;;  %s7432_s2 = sld [smem:[#allocation4 + $0x5f]] }
 0x292   : > { %v2272_v39 = vmul.f32 %v2271_v35, %v6814_v63  ;;  %v2273_v61 = vmul.f32 %v2271_v35, %v8748_v49  ;;  %v2266_v10 = vadd.f32 %v2264_v22, %v2252_v23  ;;  %v2267_v37 = vadd.f32 %v2265_v25, %v2253_v31 }
 0x293   : > { %v2278_v14 = vmul.f32 %v2277_v47, %v6814_v63  ;;  %v2279_v20 = vmul.f32 %v2277_v47, %v8748_v49  ;;  %v2285_v56 = vstv %s7250_s22  ;;  %v2291_v58 = vstv %s7252_s10  ;;  %v8752_v49 = vld [vmem:[#allocation168_spill] sm:$0xff]  ;;  %s7434_s22 = sld [smem:[#allocation4 + $0xc1]]  ;;  %s7444_s10 = sld [smem:[#allocation4 + $0x36]] }
 0x294   : > { %v2274_v26 = vadd.f32 %v2272_v39, %v2260_v40  ;;  %v2275_v18 = vadd.f32 %v2273_v61, %v2261_v45  ;;  %v2286_v13 = vmul.f32 %v2285_v56, %v8749_v50  ;;  %v2287_v21 = vmul.f32 %v2285_v56, %v6826_v55  ;;  %v8751_v39 = vld [vmem:[#allocation167_spill] sm:$0xff] }
 0x295   : > { %v2280_v9 = vadd.f32 %v2278_v14, %v2266_v10  ;;  %v2281_v27 = vadd.f32 %v2279_v20, %v2267_v37  ;;  %v2292_v33 = vmul.f32 %v2291_v58, %v8749_v50  ;;  %v2293_v63 = vmul.f32 %v2291_v58, %v6826_v55  ;;  %v8754_v56 = vld [vmem:[#allocation159_spill] sm:$0xff] }
 0x296   : > { %v2299_v1 = vstv %s7258_s23  ;;  %v2305_v5 = vstv %s7260_s29  ;;  %v2288_v29 = vadd.f32 %v2286_v13, %v2274_v26  ;;  %v2289_v42 = vadd.f32 %v2287_v21, %v2275_v18  ;;  %v8753_v26 = vld [vmem:[#allocation158_spill] sm:$0xff]  ;;  %s7446_s23 = sld [smem:[#allocation4 + $0x98]]  ;;  %s7452_s29 = sld [smem:[#allocation4 + $0x3d]] }
 0x297   : > { %v7294_v28 = vadd.f32 %v2292_v33, %v2280_v9  ;;  %v7296_v8 = vadd.f32 %v2293_v63, %v2281_v27  ;;  %v2300_v24 = vmul.f32 %v2299_v1, %v6828_v57  ;;  %v2301_v2 = vmul.f32 %v2299_v1, %v6830_v4 }
 0x298   : > { %v7305_v55 = vmul.f32 %v2305_v5, %v6828_v57  ;;  %v7308_v3 = vmul.f32 %v2305_v5, %v6830_v4  ;;  %v2317_v17 = vstv %s7270_s7  ;;  %v2323_v44 = vstv %s7272_s9  ;;  %s7454_s7 = sld [smem:[#allocation4 + $0x9f]]  ;;  %s7464_s9 = sld [smem:[#allocation4 + $0x44]] }
 0x299   : > { %v7312_v6 = vadd.f32 %v2300_v24, %v2288_v29  ;;  %v7314_v43 = vadd.f32 %v2301_v2, %v2289_v42  ;;  %v2318_v36 = vmul.f32 %v2317_v17, %v6863_v32  ;;  %v2319_v19 = vmul.f32 %v2317_v17, %v6873_v0 }
 0x29a   : > { %v2324_v59 = vmul.f32 %v2323_v44, %v6863_v32  ;;  %v2325_v23 = vmul.f32 %v2323_v44, %v6873_v0  ;;  %v2331_v31 = vstv %s7278_s19  ;;  %v2337_v57 = vstv %s7280_s21  ;;  %s7466_s19 = sld [smem:[#allocation4 + $0xa6]]  ;;  %s7478_s21 = sld [smem:[#allocation4 + $0x4b]] }
 0x29b   : > { %v2320_v4 = vadd.f32 %v2318_v36, %v7222_v11  ;;  %v2321_v7 = vadd.f32 %v2319_v19, %v7224_v60  ;;  %v2332_v53 = vmul.f32 %v2331_v31, %v6865_v34  ;;  %v2333_v54 = vmul.f32 %v2331_v31, %v8750_v16 }
 0x29c   : > { %v2326_v32 = vadd.f32 %v2324_v59, %v7228_v52  ;;  %v2327_v0 = vadd.f32 %v2325_v23, %v7230_v41  ;;  %v2338_v22 = vmul.f32 %v2337_v57, %v6865_v34  ;;  %v2339_v25 = vmul.f32 %v2337_v57, %v8750_v16  ;;  %v8755_v23 = vld [vmem:[#allocation170_spill] sm:$0xff] }
 0x29d   : > { %v2334_v11 = vadd.f32 %v2332_v53, %v2320_v4  ;;  %v2335_v60 = vadd.f32 %v2333_v54, %v2321_v7  ;;  %v2345_v35 = vstv %s7290_s17  ;;  %v2351_v47 = vstv %s7292_s20  ;;  %s7480_s17 = sld [smem:[#allocation4 + $0xad]]  ;;  %s7500_s20 = sld [smem:[#allocation4 + $0x52]] }
 0x29e   : > { %v2340_v40 = vadd.f32 %v2338_v22, %v2326_v32  ;;  %v2341_v45 = vadd.f32 %v2339_v25, %v2327_v0  ;;  %v2346_v52 = vmul.f32 %v2345_v35, %v8751_v39  ;;  %v2347_v61 = vmul.f32 %v2345_v35, %v8752_v49 }
 0x29f   : > { %v2352_v41 = vmul.f32 %v2351_v47, %v8751_v39  ;;  %v2353_v34 = vmul.f32 %v2351_v47, %v8752_v49  ;;  %v2359_v10 = vstv %s7300_s1  ;;  %v2365_v37 = vstv %s7302_s13  ;;  %s7502_s1 = sld [smem:[#allocation4 + $0xb4]]  ;;  %s7506_s13 = sld [smem:[#allocation4 + $0x59]] }
 0x2a0   : > { %v2348_v14 = vadd.f32 %v2346_v52, %v2334_v11  ;;  %v2349_v20 = vadd.f32 %v2347_v61, %v2335_v60  ;;  %v2360_v18 = vmul.f32 %v8753_v26, %v2359_v10  ;;  %v2361_v58 = vmul.f32 %v8754_v56, %v2359_v10 }
 0x2a1   : > { %v2354_v9 = vadd.f32 %v2352_v41, %v2340_v40  ;;  %v2355_v27 = vadd.f32 %v2353_v34, %v2341_v45  ;;  %v2366_v50 = vmul.f32 %v8753_v26, %v2365_v37  ;;  %v2367_v13 = vmul.f32 %v8754_v56, %v2365_v37  ;;  %v8757_v40 = vld [vmem:[#allocation145_spill] sm:$0xff] }
 0x2a2   : > { %v2362_v21 = vadd.f32 %v2360_v18, %v2348_v14  ;;  %v2363_v33 = vadd.f32 %v2361_v58, %v2349_v20  ;;  %v2373_v63 = vstv %s7322_s12  ;;  %v2379_v1 = vstv %s7324_s0  ;;  %v8758_v20 = vld [vmem:[#allocation137_spill] sm:$0xff]  ;;  %s7508_s12 = sld [smem:[#allocation4 + $0xbb]]  ;;  %s7514_s0 = sld [smem:[#allocation4 + $0x60]] }
 0x2a3   : > { %v2368_v5 = vadd.f32 %v2366_v50, %v2354_v9  ;;  %v2369_v29 = vadd.f32 %v2367_v13, %v2355_v27  ;;  %v2374_v42 = vmul.f32 %v2373_v63, %v6890_v12  ;;  %v2375_v24 = vmul.f32 %v2373_v63, %v6892_v46  ;;  %v8759_v27 = vld [vmem:[#allocation136_spill] sm:$0xff]  ;;  %v8760_v13 = vld [vmem:[#allocation138_spill] sm:$0xff] }
 0x2a4   : > { %v2380_v2 = vmul.f32 %v2379_v1, %v6890_v12  ;;  %v2381_v17 = vmul.f32 %v2379_v1, %v6892_v46  ;;  %v2387_v44 = vstv %s7334_s27  ;;  %v2393_v36 = vstv %s7336_s8  ;;  %s7516_s27 = sld [smem:[#allocation4 + $0xc2]]  ;;  %s7518_s8 = sld [smem:[#allocation4 + $0x37]] }
 0x2a5   : > { %v2376_v19 = vadd.f32 %v2374_v42, %v2362_v21  ;;  %v2377_v59 = vadd.f32 %v2375_v24, %v2363_v33  ;;  %v2388_v31 = vmul.f32 %v2387_v44, %v8755_v23  ;;  %v2389_v57 = vmul.f32 %v2387_v44, %v6902_v62  ;;  %v8761_v44 = vld [vmem:[#allocation171_spill] sm:$0xff] }
 0x2a6   : > { %v2382_v4 = vadd.f32 %v2380_v2, %v2368_v5  ;;  %v2383_v7 = vadd.f32 %v2381_v17, %v2369_v29  ;;  %v2394_v12 = vmul.f32 %v2393_v36, %v8755_v23  ;;  %v2395_v46 = vmul.f32 %v2393_v36, %v6902_v62 }
 0x2a7   : > { %v2390_v53 = vadd.f32 %v2388_v31, %v2376_v19  ;;  %v2391_v16 = vadd.f32 %v2389_v57, %v2377_v59  ;;  %v2401_v54 = vstv %s7346_s16  ;;  %v2407_v32 = vstv %s7348_s28  ;;  %v8762_v19 = vld [vmem:[#allocation172_spill] sm:$0xff]  ;;  %s7520_s16 = sld [smem:[#allocation4 + $0x99]]  ;;  %s7526_s28 = sld [smem:[#allocation4 + $0x3e]] }
 0x2a8   : > { %v2308_v0 = vadd.f32 %v7305_v55, %v7294_v28  ;;  %v2309_v22 = vadd.f32 %v7308_v3, %v7296_v8  ;;  %v2402_v25 = vmul.f32 %v2401_v54, %v6904_v48  ;;  %v2403_v11 = vmul.f32 %v2401_v54, %v6906_v38  ;;  %v8756_v55 = vld [vmem:[#allocation153_spill] sm:$0xff] }
 0x2a9   : > { %v7386_v60 = vadd.f32 %v2394_v12, %v2382_v4  ;;  %v7388_v62 = vadd.f32 %v2395_v46, %v2383_v7  ;;  %v2433_v35 = vstv %s7354_s3  ;;  %v2439_v47 = vstv %s7356_s4  ;;  %v8763_v46 = vld [vmem:[#allocation173_spill] sm:$0xff]  ;;  %s7528_s3 = sld [smem:[#allocation4 + $0xa0]]  ;;  %s7530_s4 = sld [smem:[#allocation4 + $0x45]] }
 0x2aa   : > { %v7397_v28 = vmul.f32 %v2407_v32, %v6904_v48  ;;  %v7400_v8 = vmul.f32 %v2407_v32, %v6906_v38  ;;  %v2434_v3 = vmul.f32 %v2433_v35, %v8756_v55  ;;  %v2435_v45 = vmul.f32 %v2433_v35, %v8757_v40 }
 0x2ab   : > { %v7404_v39 = vadd.f32 %v2402_v25, %v2390_v53  ;;  %v7406_v52 = vadd.f32 %v2403_v11, %v2391_v16  ;;  %v2440_v49 = vmul.f32 %v2439_v47, %v8756_v55  ;;  %v2441_v61 = vmul.f32 %v2439_v47, %v8757_v40  ;;  %v8764_v16 = vld [vmem:[#allocation174_spill] sm:$0xff] }
 0x2ac   : > { %v2436_v48 = vadd.f32 %v2434_v3, %v7312_v6  ;;  %v2437_v38 = vadd.f32 %v2435_v45, %v7314_v43  ;;  %v2447_v41 = vstv %s7366_s30  ;;  %v2453_v34 = vstv %s7368_s24  ;;  %v8765_v45 = vld [vmem:[#allocation175_spill] sm:$0xff]  ;;  %s7532_s30 = sld [smem:[#allocation4 + $0xa7]]  ;;  %s7546_s24 = sld [smem:[#allocation4 + $0x4c]] }
 0x2ad   : > { %v2442_v10 = vadd.f32 %v2440_v49, %v2308_v0  ;;  %v2443_v37 = vadd.f32 %v2441_v61, %v2309_v22  ;;  %v2448_v14 = vmul.f32 %v2447_v41, %v6917_v30  ;;  %v2449_v26 = vmul.f32 %v2447_v41, %v8758_v20 }
 0x2ae   : > { %v2454_v18 = vmul.f32 %v2453_v34, %v6917_v30  ;;  %v2455_v56 = vmul.f32 %v2453_v34, %v8758_v20  ;;  %v2461_v58 = vstv %s7374_s25  ;;  %v2467_v9 = vstv %s7376_s6  ;;  %s7548_s25 = sld [smem:[#allocation4 + $0xae]]  ;;  %s7558_s6 = sld [smem:[#allocation4 + $0x53]] }
 0x2af   : > { %v2450_v6 = vadd.f32 %v2448_v14, %v2436_v48  ;;  %v2451_v43 = vadd.f32 %v2449_v26, %v2437_v38  ;;  %v2462_v50 = vmul.f32 %v2461_v58, %v8759_v27  ;;  %v2463_v21 = vmul.f32 %v2461_v58, %v8760_v13 }
 0x2b0   : > { %v2456_v33 = vadd.f32 %v2454_v18, %v2442_v10  ;;  %v2457_v63 = vadd.f32 %v2455_v56, %v2443_v37  ;;  %v2468_v30 = vmul.f32 %v2467_v9, %v8759_v27  ;;  %v2469_v1 = vmul.f32 %v2467_v9, %v8760_v13  ;;  %v2560_v9 = vld [vmem:[#allocation3 + $0x19] sm:$0xff] }
 0x2b1   : > { %v2464_v5 = vadd.f32 %v2462_v50, %v2450_v6  ;;  %v2465_v29 = vadd.f32 %v2463_v21, %v2451_v43  ;;  %v2475_v42 = vstv %s7392_s15  ;;  %v2481_v24 = vstv %s7394_s5  ;;  %v2561_v6 = vld [vmem:[#allocation3 + $0x21] sm:$0xff]  ;;  %v8767_v50 = vld [vmem:[#allocation38_spill] sm:$0xff]  ;;  %v8768_v21 = vld [vmem:[#allocation169_spill] sm:$0xff]  ;;  %s7560_s15 = sld [smem:[#allocation4 + $0xb5]]  ;;  %s7568_s5 = sld [smem:[#allocation4 + $0x5a]] }
 0x2b2   : > { %v2470_v2 = vadd.f32 %v2468_v30, %v2456_v33  ;;  %v2471_v17 = vadd.f32 %v2469_v1, %v2457_v63  ;;  %v2476_v36 = vmul.f32 %v2475_v42, %v8761_v44  ;;  %v2477_v59 = vmul.f32 %v2475_v42, %v8762_v19 }
 0x2b3   : > { %v2482_v23 = vmul.f32 %v2481_v24, %v8761_v44  ;;  %v2483_v31 = vmul.f32 %v2481_v24, %v8762_v19  ;;  %v2489_v57 = vstv %s7410_s14  ;;  %v2495_v4 = vstv %s7412_s11  ;;  %s7570_s14 = sld [smem:[#allocation4 + $0xbc]]  ;;  %s7572_s11 = sld [smem:[#allocation4 + $0x61]] }
 0x2b4   : > { %v2478_v7 = vadd.f32 %v2476_v36, %v2464_v5  ;;  %v2479_v12 = vadd.f32 %v2477_v59, %v2465_v29  ;;  %v2490_v53 = vmul.f32 %v2489_v57, %v8763_v46  ;;  %v2491_v54 = vmul.f32 %v2489_v57, %v8764_v16 }
 0x2b5   : > { %v2484_v32 = vadd.f32 %v2482_v23, %v2470_v2  ;;  %v2485_v0 = vadd.f32 %v2483_v31, %v2471_v17  ;;  %v2496_v22 = vmul.f32 %v2495_v4, %v8763_v46  ;;  %v2497_v25 = vmul.f32 %v2495_v4, %v8764_v16  ;;  %v2574_v2 = vld [vmem:[#allocation3 + $0x1a] sm:$0xff]  ;;  %v2575_v17 = vld [vmem:[#allocation3 + $0x22] sm:$0xff] }
 0x2b6   : > { %v2492_v11 = vadd.f32 %v2490_v53, %v2478_v7  ;;  %v2493_v35 = vadd.f32 %v2491_v54, %v2479_v12  ;;  %v2503_v47 = vstv %s7424_s26  ;;  %v2509_v55 = vstv %s7426_s18  ;;  %v2588_v4 = vld [vmem:[#allocation3 + $0x1b] sm:$0xff]  ;;  %s7574_s26 = sld [smem:[#allocation4 + $0xc3]]  ;;  %s7580_s18 = sld [smem:[#allocation8]] }
 0x2b7   : > { %v2498_v3 = vadd.f32 %v2496_v22, %v2484_v32  ;;  %v2499_v40 = vadd.f32 %v2497_v25, %v2485_v0  ;;  %v2504_v49 = vmul.f32 %v2503_v47, %v8765_v45  ;;  %v2505_v61 = vmul.f32 %v2503_v47, %v6965_v15  ;;  %v2602_v47 = vld [vmem:[#allocation3 + $0x1c] sm:$0xff] }
 0x2b8   : > { %v2510_v48 = vmul.f32 %v2509_v55, %v8765_v45  ;;  %v2511_v38 = vmul.f32 %v2509_v55, %v6965_v15  ;;  %v2517_v41 = vstv %s7432_s2  ;;  %v2523_v34 = vstv %s7434_s22  ;;  %v8766_v15 = vld [vmem:[#allocation176_spill] sm:$0xff]  ;;  %s7582_s2 = sld [smem:[#allocation8 + $0x1]] }
 0x2b9   : > { %v2410_v10 = vadd.f32 %v7397_v28, %v7386_v60  ;;  %v2411_v37 = vadd.f32 %v7400_v8, %v7388_v62  ;;  %v2506_v14 = vadd.f32 %v2504_v49, %v2492_v11  ;;  %v2507_v20 = vadd.f32 %v2505_v61, %v2493_v35  ;;  %v2603_v55 = vld [vmem:[#allocation3 + $0x24] sm:$0xff] }
 0x2ba   : > { %v7472_v26 = vadd.f32 %v2510_v48, %v2498_v3  ;;  %v7474_v18 = vadd.f32 %v2511_v38, %v2499_v40  ;;  %v2518_v56 = vmul.f32 %v2517_v41, %v8766_v15  ;;  %v2519_v58 = vmul.f32 %v2517_v41, %v6969_v51 }
 0x2bb   : > { %v7483_v60 = vmul.f32 %v2523_v34, %v8766_v15  ;;  %v7486_v62 = vmul.f32 %v2523_v34, %v6969_v51  ;;  %v2549_v28 = vstv %s7444_s10  ;;  %v2555_v8 = vstv %s7446_s23  ;;  %v2616_v34 = vld [vmem:[#allocation3 + $0x1d] sm:$0xff]  ;;  %s8769_s23 = sld [smem:[#allocation180_spill]] }
 0x2bc   : > { %v7490_v43 = vadd.f32 %v2518_v56, %v2506_v14  ;;  %v7492_v27 = vadd.f32 %v2519_v58, %v2507_v20  ;;  %v2550_v13 = vmul.f32 %v2549_v28, %v8767_v50  ;;  %v2551_v33 = vmul.f32 %v2549_v28, %v8768_v21 }
 0x2bd   : > { %v2556_v63 = vmul.f32 %v2555_v8, %v8767_v50  ;;  %v2557_v30 = vmul.f32 %v2555_v8, %v8768_v21  ;;  %v2563_v1 = vstv %s7452_s29  ;;  %v2569_v5 = vstv %s7454_s7  ;;  %s8773_s29 = sld [smem:[#allocation30_spill]]  ;;  %s8774_s7 = sld [smem:[#allocation31_spill]] }
 0x2be   : > { %v2552_v51 = vadd.f32 %v2550_v13, %v7404_v39  ;;  %v2553_v29 = vadd.f32 %v2551_v33, %v7406_v52  ;;  %v2564_v42 = vmul.f32 %v2563_v1, %v2560_v9  ;;  %v2565_v24 = vmul.f32 %v2563_v1, %v2561_v6  ;;  %v2589_v52 = vld [vmem:[#allocation3 + $0x23] sm:$0xff] }
 0x2bf   : > { %v2558_v44 = vadd.f32 %v2556_v63, %v2410_v10  ;;  %v2559_v36 = vadd.f32 %v2557_v30, %v2411_v37  ;;  %v2570_v19 = vmul.f32 %v2569_v5, %v2560_v9  ;;  %v2571_v59 = vmul.f32 %v2569_v5, %v2561_v6  ;;  %v2617_v10 = vld [vmem:[#allocation3 + $0x25] sm:$0xff] }
 0x2c0   : > { %v2566_v23 = vadd.f32 %v2564_v42, %v2552_v51  ;;  %v2567_v31 = vadd.f32 %v2565_v24, %v2553_v29  ;;  %v2577_v57 = vstv %s7464_s9  ;;  %v2583_v39 = vstv %s7466_s19  ;;  %v2630_v1 = vld [vmem:[#allocation3 + $0x1e] sm:$0xff]  ;;  %v2631_v5 = vld [vmem:[#allocation3 + $0x26] sm:$0xff] }
 0x2c1   : > { %v2572_v7 = vadd.f32 %v2570_v19, %v2558_v44  ;;  %v2573_v12 = vadd.f32 %v2571_v59, %v2559_v36  ;;  %v2578_v46 = vmul.f32 %v2577_v57, %v2574_v2  ;;  %v2579_v53 = vmul.f32 %v2577_v57, %v2575_v17 }
 0x2c2   : > { %v2584_v16 = vmul.f32 %v2583_v39, %v2574_v2  ;;  %v2585_v54 = vmul.f32 %v2583_v39, %v2575_v17  ;;  %v2591_v32 = vstv %s7478_s21  ;;  %v2597_v0 = vstv %s7480_s17  ;;  %s8775_s21 = sld [smem:[#allocation179_spill]]  ;;  %s8776_s17 = sld [smem:[#allocation32_spill]] }
 0x2c3   : > { %v2580_v22 = vadd.f32 %v2578_v46, %v2566_v23  ;;  %v2581_v25 = vadd.f32 %v2579_v53, %v2567_v31  ;;  %v2592_v11 = vmul.f32 %v2591_v32, %v2588_v4  ;;  %v2593_v35 = vmul.f32 %v2591_v32, %v2589_v52 }
 0x2c4   : > { %v2586_v3 = vadd.f32 %v2584_v16, %v2572_v7  ;;  %v2587_v40 = vadd.f32 %v2585_v54, %v2573_v12  ;;  %v2598_v45 = vmul.f32 %v2597_v0, %v2588_v4  ;;  %v2599_v49 = vmul.f32 %v2597_v0, %v2589_v52  ;;  %v2676_v4 = vld [vmem:[#allocation3 + $0x1] sm:$0xff]  ;;  %v2677_v52 = vld [vmem:[#allocation3 + $0x9] sm:$0xff] }
 0x2c5   : > { %v2594_v61 = vadd.f32 %v2592_v11, %v2580_v22  ;;  %v2595_v48 = vadd.f32 %v2593_v35, %v2581_v25  ;;  %v2605_v38 = vstv %s7500_s20  ;;  %v2611_v41 = vstv %s7502_s1  ;;  %v2690_v22 = vld [vmem:[#allocation3 + $0x2] sm:$0xff]  ;;  %v2691_v25 = vld [vmem:[#allocation3 + $0xa] sm:$0xff]  ;;  %s8777_s20 = sld [smem:[#allocation29_spill]] }
 0x2c6   : > { %v2600_v37 = vadd.f32 %v2598_v45, %v2586_v3  ;;  %v2601_v14 = vadd.f32 %v2599_v49, %v2587_v40  ;;  %v2606_v20 = vmul.f32 %v2605_v38, %v2602_v47  ;;  %v2607_v15 = vmul.f32 %v2605_v38, %v2603_v55  ;;  %v2704_v38 = vld [vmem:[#allocation3 + $0x3] sm:$0xff] }
 0x2c7   : > { %v2612_v56 = vmul.f32 %v2611_v41, %v2602_v47  ;;  %v2613_v58 = vmul.f32 %v2611_v41, %v2603_v55  ;;  %v2619_v28 = vstv %s7506_s13  ;;  %v2625_v8 = vstv %s7508_s12  ;;  %v2705_v41 = vld [vmem:[#allocation3 + $0xb] sm:$0xff]  ;;  %s8779_s12 = sld [smem:[#allocation26_spill]] }
 0x2c8   : > { %v2608_v9 = vadd.f32 %v2606_v20, %v2594_v61  ;;  %v2609_v6 = vadd.f32 %v2607_v15, %v2595_v48  ;;  %v2620_v50 = vmul.f32 %v2619_v28, %v2616_v34  ;;  %v2621_v13 = vmul.f32 %v2619_v28, %v2617_v10  ;;  %v2718_v28 = vld [vmem:[#allocation3 + $0x4] sm:$0xff] }
 0x2c9   : > { %v2614_v21 = vadd.f32 %v2612_v56, %v2600_v37  ;;  %v2615_v33 = vadd.f32 %v2613_v58, %v2601_v14  ;;  %v2626_v63 = vmul.f32 %v2625_v8, %v2616_v34  ;;  %v2627_v30 = vmul.f32 %v2625_v8, %v2617_v10  ;;  %v2719_v8 = vld [vmem:[#allocation3 + $0xc] sm:$0xff] }
 0x2ca   : > { %v2622_v51 = vadd.f32 %v2620_v50, %v2608_v9  ;;  %v2623_v29 = vadd.f32 %v2621_v13, %v2609_v6  ;;  %v2633_v42 = vstv %s7514_s0  ;;  %v2639_v24 = vstv %s7516_s27  ;;  %s8780_s0 = sld [smem:[#allocation27_spill]] }
 0x2cb   : > { %v2526_v2 = vadd.f32 %v7483_v60, %v7472_v26  ;;  %v2527_v17 = vadd.f32 %v7486_v62, %v7474_v18  ;;  %v7540_v44 = vadd.f32 %v2626_v63, %v2614_v21  ;;  %v7542_v36 = vadd.f32 %v2627_v30, %v2615_v33  ;;  %v4536_v26 = vld [vmem:[#allocation3] sm:$0xff]  ;;  %v4537_v60 = vld [vmem:[#allocation3 + $0x8] sm:$0xff]  ;;  %s8778_s1 = sshll.u32 %s8777_s20, 7 }
 0x2cc   : > { %v2634_v19 = vmul.f32 %v2633_v42, %v2630_v1  ;;  %v2635_v59 = vmul.f32 %v2633_v42, %v2631_v5  ;;  %v2665_v23 = vstv %s7518_s8  ;;  %v2671_v31 = vstv %s7520_s16  ;;  %v2732_v42 = vld [vmem:[#allocation3 + $0x5] sm:$0xff]  ;;  %s7757_s13 = scalar_lea.vmem [#allocation14], %s8778_s1 }
 0x2cd   : > { %v7550_v57 = vmul.f32 %v2639_v24, %v2630_v1  ;;  %v7552_v39 = vmul.f32 %v2639_v24, %v2631_v5  ;;  %v2666_v18 = vmul.f32 %v4536_v26, %v2665_v23  ;;  %v2667_v62 = vmul.f32 %v4537_v60, %v2665_v23  ;;  %v2733_v24 = vld [vmem:[#allocation3 + $0xd] sm:$0xff]  ;;  %s4306_s27 = sshll.u32 %s8779_s12, 11  ;;  %s3906_s8 = sshll.u32 %s7757_s13, 4  ;;  %s7803_s8 = int_to_ptr.vmem [resolvable:$true] %s3906_s8 }
 0x2ce   : > { %v7554_v7 = vadd.f32 %v2634_v19, %v2622_v51  ;;  %v7556_v12 = vadd.f32 %v2635_v59, %v2623_v29  ;;  %v2672_v46 = vmul.f32 %v4536_v26, %v2671_v31  ;;  %v2673_v53 = vmul.f32 %v4537_v60, %v2671_v31  ;;  %v2746_v60 = vld [vmem:[#allocation3 + $0x6] sm:$0xff] }
 0x2cf   : > { %v2668_v16 = vadd.f32 %v2666_v18, %v7490_v43  ;;  %v2669_v54 = vadd.f32 %v2667_v62, %v7492_v27  ;;  %v2679_v32 = vstv %s7526_s28  ;;  %v2685_v0 = vstv %s7528_s3  ;;  %v2747_v62 = vld [vmem:[#allocation3 + $0xe] sm:$0xff]  ;;  %s8781_s3 = sld [smem:[#allocation184_spill]] }
 0x2d0   : > { %v2674_v11 = vadd.f32 %v2672_v46, %v2526_v2  ;;  %v2675_v35 = vadd.f32 %v2673_v53, %v2527_v17  ;;  %v2680_v47 = vmul.f32 %v2679_v32, %v2676_v4  ;;  %v2681_v55 = vmul.f32 %v2679_v32, %v2677_v52  ;;  %p8782_p3 = scmp.ne.s32.totalorder %s8780_s0, 0 }
 0x2d1   : > { %v2686_v3 = vmul.f32 %v2685_v0, %v2676_v4  ;;  %v2687_v40 = vmul.f32 %v2685_v0, %v2677_v52  ;;  %v2693_v45 = vstv %s7530_s4  ;;  %v2699_v49 = vstv %s7532_s30  ;;  %s3892_s30 = scalar_lea.sflag [#allocation6], %s8777_s20 }
 0x2d2   : > { %v2682_v43 = vadd.f32 %v2680_v47, %v2668_v16  ;;  %v2683_v27 = vadd.f32 %v2681_v55, %v2669_v54  ;;  %v2694_v61 = vmul.f32 %v2693_v45, %v2690_v22  ;;  %v2695_v48 = vmul.f32 %v2693_v45, %v2691_v25 }
 0x2d3   : > { %v2688_v34 = vadd.f32 %v2686_v3, %v2674_v11  ;;  %v2689_v10 = vadd.f32 %v2687_v40, %v2675_v35  ;;  %v2700_v37 = vmul.f32 %v2699_v49, %v2690_v22  ;;  %v2701_v14 = vmul.f32 %v2699_v49, %v2691_v25 }
 0x2d4   : > { %v2696_v20 = vadd.f32 %v2694_v61, %v2682_v43  ;;  %v2697_v15 = vadd.f32 %v2695_v48, %v2683_v27  ;;  %v2707_v56 = vstv %s7546_s24  ;;  %v2713_v58 = vstv %s7548_s25  ;;  %v3217_v61 = vld [vmem:[%s8769_s23] sm:$0xff]  ;;  %s4675_s24 = scalar_lea.vmem %s7803_s8, 2048  ;;  %s4770_s25 = smov [#allocation14]  }
 0x2d5   : > { %v2702_v9 = vadd.f32 %v2700_v37, %v2688_v34  ;;  %v2703_v6 = vadd.f32 %v2701_v14, %v2689_v10  ;;  %v2708_v50 = vmul.f32 %v2707_v56, %v2704_v38  ;;  %v2709_v13 = vmul.f32 %v2707_v56, %v2705_v41  ;;  %v7599_v56 = vld [vmem:[#allocation2 + $0x8] sm:$0xff]  ;;  %s7801_s4 = scalar_lea.hbm %s8781_s3, %s4306_s27  ;;  %p4676_p2 = scmp.ne.s32.totalorder %s7803_s8, %s4675_s24 }
 0x2d6   : > { %v2714_v21 = vmul.f32 %v2713_v58, %v2704_v38  ;;  %v2715_v33 = vmul.f32 %v2713_v58, %v2705_v41  ;;  %v2721_v63 = vstv %s7558_s6  ;;  %v2727_v30 = vstv %s7560_s15  ;;  %s4679_s6 = sshll.u32 %s4770_s25, 4  ;;  %s4680_s6 = int_to_ptr.vmem [resolvable:$false] %s4679_s6 }
 0x2d7   : > { %v2710_v1 = vadd.f32 %v2708_v50, %v2696_v20  ;;  %v2711_v5 = vadd.f32 %v2709_v13, %v2697_v15  ;;  %v2722_v51 = vmul.f32 %v2721_v63, %v2718_v28  ;;  %v2723_v29 = vmul.f32 %v2721_v63, %v2719_v8  ;;  %p4677_p5 = pnand %p4676_p2, %p8782_p3  ;;  %s4681_s15 = scalar_lea.vmem %s4680_s6, 4096 }
 0x2d8   : > { %v2716_v2 = vadd.f32 %v2714_v21, %v2702_v9  ;;  %v2717_v17 = vadd.f32 %v2715_v33, %v2703_v6  ;;  %v2728_v19 = vmul.f32 %v2727_v30, %v2718_v28  ;;  %v2729_v59 = vmul.f32 %v2727_v30, %v2719_v8  ;;  %v8770_v28 = vld [vmem:[#allocation34_spill] sm:$0xff]  ;;  %p4682_p8 = scmp.lt.s32.totalorder %s7803_s8, %s4680_s6  ;;  %p4683_p11 = scmp.lt.s32.totalorder %s4681_s15, %s4675_s24 }
 0x2d9   : > { %v2724_v23 = vadd.f32 %v2722_v51, %v2710_v1  ;;  %v2725_v31 = vadd.f32 %v2723_v29, %v2711_v5  ;;  %v2735_v26 = vstv %s7568_s5  ;;  %v2741_v18 = vstv %s7570_s14  ;;  %p4678_p6 = pneg %p4677_p5 }
 0x2da   : > { %v2730_v4 = vadd.f32 %v2728_v19, %v2716_v2  ;;  %v2731_v52 = vadd.f32 %v2729_v59, %v2717_v17  ;;  %v2736_v46 = vmul.f32 %v2735_v26, %v2732_v42  ;;  %v2737_v53 = vmul.f32 %v2735_v26, %v2733_v24  ;;  %p4684_p4 = por %p4683_p11, %p4682_p8 }
 0x2db   : > { %v2742_v16 = vmul.f32 %v2741_v18, %v2732_v42  ;;  %v2743_v54 = vmul.f32 %v2741_v18, %v2733_v24  ;;  %v2749_v32 = vstv %s7572_s11  ;;  %v2755_v0 = vstv %s7574_s26  ;;  %v8771_v42 = vld [vmem:[#allocation36_spill] sm:$0xff] }
 0x2dc   : > { %v2738_v22 = vadd.f32 %v2736_v46, %v2724_v23  ;;  %v2739_v25 = vadd.f32 %v2737_v53, %v2725_v31  ;;  %v2750_v11 = vmul.f32 %v2749_v32, %v2746_v60  ;;  %v2751_v35 = vmul.f32 %v2749_v32, %v2747_v62  ;;  %p4685_p9 = pnand %p4684_p4, %p4678_p6 }
 0x2dd   : > { %v2744_v47 = vadd.f32 %v2742_v16, %v2730_v4  ;;  %v2745_v55 = vadd.f32 %v2743_v54, %v2731_v52  ;;  %v2756_v3 = vmul.f32 %v2755_v0, %v2746_v60  ;;  %v2757_v40 = vmul.f32 %v2755_v0, %v2747_v62 }
 0x2de   : > { %v2642_v45 = vadd.f32 %v7550_v57, %v7540_v44  ;;  %v2643_v49 = vadd.f32 %v7552_v39, %v7542_v36  ;;  %v2752_v43 = vadd.f32 %v2750_v11, %v2738_v22  ;;  %v2753_v27 = vadd.f32 %v2751_v35, %v2739_v25 }
 0x2df   : > { %v2758_v48 = vadd.f32 %v2756_v3, %v2744_v47  ;;  %v2759_v38 = vadd.f32 %v2757_v40, %v2745_v55  ;;  %v2763_v41 = vstv %s7580_s18  ;;  %v2769_v37 = vstv %s7582_s2 }
 0x2e0   : > { %v2760_v34 = vadd.f32 %v2752_v43, %v7554_v7  ;;  %v2761_v10 = vadd.f32 %v2753_v27, %v7556_v12  ;;  %v4769_v14 = vmov 0  }
 0x2e1   : > { %4449 = vset.pattern.permute.xlu1 %v4769_v14  ;;  %4450 = vset.pattern.permute.xlu0 %v4769_v14  ;;  %v2766_v44 = vadd.f32 %v2758_v48, %v2642_v45  ;;  %v2767_v57 = vadd.f32 %v2759_v38, %v2643_v49 }
 0x2e2   : > { %3220 = vperm.xlu1 %4449, %v3217_v61   ;;  %v2764_v36 = vadd.f32 %v2763_v41, %v2760_v34  ;;  %v2765_v39 = vadd.f32 %v2763_v41, %v2761_v10 }
 0x2e3   : > { %v2770_v20 = vadd.f32 %v2769_v37, %v2766_v44  ;;  %v2771_v15 = vadd.f32 %v2769_v37, %v2767_v57 }
 0x2e4   : > { %v2772_v58 = vcombine.high %v2764_v36, %v7599_v56  ;;  %v2779_v8 = vrot.slane %v2764_v36, %v8770_v28  ;;  %v2838_v7 = vcombine.high %v2765_v39, %v7599_v56  ;;  %v2845_v12 = vrot.slane %v2765_v39, %v8770_v28 }
 0x2e5   : > { %v2787_v9 = vcombine.high %v2770_v20, %v7599_v56  ;;  %v2794_v6 = vrot.slane %v2770_v20, %v8770_v28  ;;  %v2853_v50 = vcombine.high %v2771_v15, %v7599_v56  ;;  %v2860_v13 = vrot.slane %v2771_v15, %v8770_v28 }
 0x2e6   : > { %v2786_v21 = vrot.slane %v2772_v58, %v8770_v28  ;;  %v7611_v33 = vrot.slane %v2838_v7, %v8770_v28 }
 0x2e7   : > { %v2802_v63 = vcombine.low %v2779_v8, %v2794_v6  ;;  %v2803_v30 = vcombine.high %v2779_v8, %v2794_v6  ;;  %v2801_v1 = vrot.slane %v2787_v9, %v8770_v28  ;;  %v2868_v5 = vcombine.low %v2845_v12, %v2860_v13 }
 0x2e8   : > { %v2869_v51 = vcombine.high %v2845_v12, %v2860_v13  ;;  %v7615_v29 = vrot.slane %v2853_v50, %v8770_v28  ;;  %v8772_v50 = vld [vmem:[#allocation33_spill] sm:$0xff] }
 0x2e9   : > { %v2810_v24 = vrot.slane %v2802_v63, %v8771_v42  ;;  %v2817_v2 = vrot.slane %v2803_v30, %v8771_v42  ;;  %v2818_v17 = vcombine.low %v2786_v21, %v2801_v1  ;;  %v2819_v19 = vcombine.high %v2786_v21, %v2801_v1 }
 0x2ea   : > { %v2876_v59 = vrot.slane %v2868_v5, %v8771_v42  ;;  %v2884_v23 = vcombine.low %v7611_v33, %v7615_v29  ;;  %v2885_v31 = vcombine.high %v7611_v33, %v7615_v29  ;;  %v2883_v46 = vrot.slane %v2869_v51, %v8771_v42 }
 0x2eb   : > { %v2834_v26 = vcombine.high %v2810_v24, %v7599_v56  ;;  %v4258_v18 = vmul.f32 -1.442695, %v2810_v24  ;;  %v2835_v60 = vcombine.high %v2817_v2, %v7599_v56  ;;  %v4260_v62 = vmul.f32 -1.442695, %v2817_v2 }
 0x2ec   : > { %v2826_v4 = vrot.slane %v2818_v17, %v8771_v42  ;;  %v2833_v52 = vrot.slane %v2819_v19, %v8771_v42  ;;  %v2900_v54 = vcombine.high %v2876_v59, %v7599_v56  ;;  %v2901_v47 = vcombine.high %v2883_v46, %v7599_v56 }
 0x2ed   : > { %4467 = vpow2.f32 %v4258_v18  ;;  %v4259_v53 = vmul.f32 -1.442695, %v2834_v26  ;;  %v4261_v16 = vmul.f32 -1.442695, %v2835_v60  ;;  %v4266_v55 = vmul.f32 -1.442695, %v2876_v59 }
 0x2ee   : > { %4469 = vpow2.f32 %v4260_v62  ;;  %v2836_v32 = vcombine.high %v2826_v4, %v7599_v56  ;;  %v4262_v0 = vmul.f32 -1.442695, %v2826_v4  ;;  %v2837_v22 = vcombine.high %v2833_v52, %v7599_v56 }
 0x2ef   : > { %4471 = vpow2.f32 %v4259_v53  ;;  %v4264_v25 = vmul.f32 -1.442695, %v2833_v52  ;;  %v2892_v3 = vrot.slane %v2884_v23, %v8771_v42  ;;  %v4267_v40 = vmul.f32 -1.442695, %v2900_v54 }
 0x2f0   : > { %4473 = vpow2.f32 %v4261_v16  ;;  %v4263_v11 = vmul.f32 -1.442695, %v2836_v32  ;;  %v4265_v35 = vmul.f32 -1.442695, %v2837_v22  ;;  %v4268_v45 = vmul.f32 -1.442695, %v2883_v46 }
 0x2f1   : > { %4475 = vpow2.f32 %v4262_v0  ;;  %v4269_v49 = vmul.f32 -1.442695, %v2901_v47  ;;  %v4270_v43 = vmul.f32 -1.442695, %v2892_v3  ;;  %v2902_v58 = vcombine.high %v2892_v3, %v7599_v56 }
 0x2f2   : > { %4477 = vpow2.f32 %v4263_v11  ;;  %v2899_v9 = vrot.slane %v2885_v31, %v8771_v42  ;;  %v7640_v13 = vsub.s32 0, %v8772_v50  ;;  %v7643_v21 = vsub.s32 1, %v8772_v50 }
 0x2f3   : > { %4479 = vpow2.f32 %v4264_v25  ;;  %v4271_v5 = vmul.f32 -1.442695, %v2902_v58 }
 0x2f4   : > { %4481 = vpow2.f32 %v4265_v35  ;;  %v2903_v29 = vcombine.high %v2899_v9, %v7599_v56  ;;  %v4272_v42 = vmul.f32 -1.442695, %v2899_v9 }
 0x2f5   : > { %4483 = vpow2.f32 %v4266_v55 }
 0x2f6   : > { %4485 = vpow2.f32 %v4267_v40  ;;  %v7654_v53 = vmul.f32 -1.442695, %v2903_v29  ;;  %v4539_v40 = vld [vmem:[%s8773_s29] sm:$0xff] }
 0x2f7   : > { %v4468_v27 = vpop.eup %4467  ;;  %4487 = vpow2.f32 %v4268_v45 }
 0x2f8   : > { %v4470_v61 = vpop.eup %4469  ;;  %v2952_v48 = vadd.f32 1.0, %v4468_v27  ;;  %4489 = vpow2.f32 %v4269_v49  ;;  %v4540_v49 = vld [vmem:[%s8774_s7] sm:$0xff] }
 0x2f9   : > { %v4472_v38 = vpop.eup %4471  ;;  %v2954_v41 = vadd.f32 1.0, %v4470_v61  ;;  %4491 = vpow2.f32 %v4270_v43 }
 0x2fa   : > { %v4474_v34 = vpop.eup %4473  ;;  %v2953_v10 = vadd.f32 1.0, %v4472_v38  ;;  %4493 = vrcp.f32 %v2952_v48  ;;  %v4541_v38 = vld [vmem:[%s8773_s29 + $0x8] sm:$0xff] }
 0x2fb   : > { %v4476_v37 = vpop.eup %4475  ;;  %v2955_v14 = vadd.f32 1.0, %v4474_v34  ;;  %4495 = vrcp.f32 %v2954_v41  ;;  %v4542_v34 = vld [vmem:[%s8774_s7 + $0x8] sm:$0xff] }
 0x2fc   : > { %v4478_v44 = vpop.eup %4477  ;;  %4497 = vrcp.f32 %v2953_v10  ;;  %v2956_v57 = vadd.f32 1.0, %v4476_v37 }
 0x2fd   : > { %v4480_v36 = vpop.eup %4479  ;;  %4499 = vrcp.f32 %v2955_v14  ;;  %v2957_v39 = vadd.f32 1.0, %v4478_v44 }
 0x2fe   : > { %v4482_v20 = vpop.eup %4481  ;;  %4501 = vrcp.f32 %v2956_v57  ;;  %v2958_v15 = vadd.f32 1.0, %v4480_v36 }
 0x2ff   : > { %v4484_v28 = vpop.eup %4483  ;;  %4503 = vrcp.f32 %v2957_v39  ;;  %v2959_v8 = vadd.f32 1.0, %v4482_v20 }
 0x300   : > { %v4486_v7 = vpop.eup %4485  ;;  %4505 = vrcp.f32 %v2958_v15  ;;  %v2960_v12 = vadd.f32 1.0, %v4484_v28  ;;  %v4543_v28 = vld [vmem:[%s8773_s29 + $0x10] sm:$0xff] }
 0x301   : > { %v4488_v6 = vpop.eup %4487  ;;  %4507 = vrcp.f32 %v2959_v8  ;;  %v2961_v63 = vadd.f32 1.0, %v4486_v7  ;;  %v4544_v7 = vld [vmem:[%s8774_s7 + $0x10] sm:$0xff] }
 0x302   : > { %v4490_v30 = vpop.eup %4489  ;;  %4509 = vrcp.f32 %v2960_v12  ;;  %v2962_v1 = vadd.f32 1.0, %v4488_v6 }
 0x303   : > { %v4492_v51 = vpop.eup %4491  ;;  %4511 = vrcp.f32 %v2961_v63  ;;  %v2963_v24 = vadd.f32 1.0, %v4490_v30 }
 0x304   : > { %v4494_v2 = vpop.eup %4493  ;;  %4513 = vrcp.f32 %v2962_v1  ;;  %v2964_v33 = vadd.f32 1.0, %v4492_v51 }
 0x305   : > { %v4496_v17 = vpop.eup %4495  ;;  %v3003_v19 = vrot.slane %v4494_v2, %v7640_v13  ;;  %v3107_v59 = vrot.slane %v4494_v2, %v7643_v21  ;;  %4515 = vrcp.f32 %v2963_v24  ;;  %v7676_v2 = vld [vmem:[%s8775_s21] sm:$0xff] }
 0x306   : > { %v4498_v23 = vpop.eup %4497  ;;  %v3011_v31 = vrot.slane %v4496_v17, %v7640_v13  ;;  %v3115_v26 = vrot.slane %v4496_v17, %v7643_v21  ;;  %4517 = vpow2.f32 %v4271_v5  ;;  %v4545_v17 = vld [vmem:[%s8773_s29 + $0x18] sm:$0xff] }
 0x307   : > { %v4500_v18 = vpop.eup %4499  ;;  %v3007_v60 = vrot.slane %v4498_v23, %v7640_v13  ;;  %v3111_v62 = vrot.slane %v4498_v23, %v7643_v21  ;;  %4519 = vrcp.f32 %v2964_v33 }
 0x308   : > { %v4502_v4 = vpop.eup %4501  ;;  %v3015_v52 = vrot.slane %v4500_v18, %v7640_v13  ;;  %v3119_v46 = vrot.slane %v4500_v18, %v7643_v21  ;;  %4521 = vpow2.f32 %v4272_v42 }
 0x309   : > { %v4504_v16 = vpop.eup %4503  ;;  %v3080_v54 = vcombine.low %v3003_v19, %v3007_v60  ;;  %v3184_v32 = vcombine.low %v3107_v59, %v3111_v62  ;;  %v3019_v0 = vrot.slane %v4502_v4, %v7640_v13  ;;  %v3123_v22 = vrot.slane %v4502_v4, %v7643_v21  ;;  %v4546_v59 = vld [vmem:[%s8774_s7 + $0x18] sm:$0xff]  ;;  %v4547_v62 = vld [vmem:[%s8773_s29 + $0x20] sm:$0xff] }
 0x30a   : > { %v4506_v25 = vpop.eup %4505  ;;  %v3081_v11 = vcombine.low %v3011_v31, %v3015_v52  ;;  %v3185_v35 = vcombine.low %v3115_v26, %v3119_v46  ;;  %v3023_v47 = vrot.slane %v4504_v16, %v7640_v13  ;;  %v3127_v55 = vrot.slane %v4504_v16, %v7643_v21 }
 0x30b   : > { %v4508_v3 = vpop.eup %4507  ;;  %v3096_v45 = vmul.f32 %v4539_v40, %v3080_v54  ;;  %v3200_v43 = vmul.f32 %v4540_v49, %v3184_v32  ;;  %v3027_v27 = vrot.slane %v4506_v25, %v7640_v13  ;;  %v3131_v61 = vrot.slane %v4506_v25, %v7643_v21 }
 0x30c   : > { %v4510_v48 = vpop.eup %4509  ;;  %v3097_v41 = vmul.f32 %v4541_v38, %v3081_v11  ;;  %v3201_v10 = vmul.f32 %v4542_v34, %v3185_v35  ;;  %v3082_v37 = vcombine.low %v3019_v0, %v3023_v47  ;;  %v3186_v14 = vcombine.low %v3123_v22, %v3127_v55  ;;  %v4548_v0 = vld [vmem:[%s8774_s7 + $0x20] sm:$0xff] }
 0x30d   : > { %v4512_v44 = vpop.eup %4511  ;;  %v3208_v57 = vadd.f32 %v3200_v43, %v3096_v45  ;;  %v3031_v36 = vrot.slane %v4508_v3, %v7640_v13  ;;  %v3135_v39 = vrot.slane %v4508_v3, %v7643_v21  ;;  %v3035_v20 = vrot.slane %v4510_v48, %v7640_v13  ;;  %v4549_v3 = vld [vmem:[%s8773_s29 + $0x28] sm:$0xff] }
 0x30e   : > { %v4514_v15 = vpop.eup %4513  ;;  %v3209_v58 = vadd.f32 %v3201_v10, %v3097_v41  ;;  %v3098_v8 = vmul.f32 %v4543_v28, %v3082_v37  ;;  %v3202_v12 = vmul.f32 %v4544_v7, %v3186_v14  ;;  %v3039_v9 = vrot.slane %v4512_v44, %v7640_v13  ;;  %v4550_v43 = vld [vmem:[%s8774_s7 + $0x28] sm:$0xff] }
 0x30f   : > { %v4516_v6 = vpop.eup %4515  ;;  %v3231_v50 = vcombine.high %v3208_v57, %v3208_v57  ;;  %v3083_v63 = vcombine.low %v3027_v27, %v3031_v36  ;;  %v3187_v30 = vcombine.low %v3131_v61, %v3135_v39  ;;  %v3139_v1 = vrot.slane %v4510_v48, %v7643_v21 }
 0x310   : > { %v4518_v5 = vpop.eup %4517  ;;  %v3232_v51 = vcombine.high %v3209_v58, %v3209_v58  ;;  %v3210_v24 = vadd.f32 %v3202_v12, %v3098_v8  ;;  %v3084_v33 = vcombine.low %v3035_v20, %v3039_v9  ;;  %v3143_v29 = vrot.slane %v4512_v44, %v7643_v21  ;;  %v4551_v20 = vld [vmem:[%s8773_s29 + $0x30] sm:$0xff] }
 0x311   : > { %v7679_v42 = vpop.eup %4519  ;;  %4274 = vmatprep.subr.msk.mxu0 %vm435_vm1, %v3231_v50  ;;  %v3099_v19 = vmul.f32 %v4545_v17, %v3083_v63  ;;  %v3203_v23 = vmul.f32 %v4546_v59, %v3187_v30  ;;  %v3043_v31 = vrot.slane %v4514_v15, %v7640_v13  ;;  %v3047_v26 = vrot.slane %v4516_v6, %v7640_v13  ;;  %v4553_v63 = vld [vmem:[%s8773_s29 + $0x38] sm:$0xff]  ;;  %v3844_v59 = vld [vmem:[%s8776_s17 + $0x8] sm:$0xff] }
 0x312   : > { %v4522_v18 = vpop.eup %4521  ;;  %4277 = vmatprep.subr.msk.mxu1 %vm435_vm1, %v3232_v51  ;;  %4275 = vmatpush1.msk.msra.mxu0 %vm435_vm1, %v3208_v57  ;;  %v3233_v60 = vcombine.high %v3210_v24, %v3210_v24  ;;  %v3100_v4 = vmul.f32 %v4547_v62, %v3084_v33  ;;  %v3188_v52 = vcombine.low %v3139_v1, %v3143_v29  ;;  %v2965_v46 = vadd.f32 1.0, %v4518_v5  ;;  %v4554_v1 = vld [vmem:[%s8774_s7 + $0x38] sm:$0xff]  ;;  %v3843_v33 = vld [vmem:[%s8776_s17] sm:$0xff] }
 0x313   : > { %4278 = vmatpush1.msk.msra.mxu1 %vm435_vm1, %v3209_v58  ;;  %v3211_v16 = vadd.f32 %v3203_v23, %v3099_v19  ;;  %4276 = vmatmul.mubr.msk.f32.vlgmr.msra.gmra.mrb[0].mxu0 %vm3239_vm9, %v7676_v2  ;;  %v3085_v54 = vcombine.low %v3043_v31, %v3047_v26  ;;  %v3147_v32 = vrot.slane %v4514_v15, %v7643_v21  ;;  %4523 = vpow2.f32 %v7654_v53  ;;  %v4552_v58 = vld [vmem:[%s8774_s7 + $0x30] sm:$0xff] }
 0x314   : > { %4280 = vmatprep.subr.msk.mxu0 %vm435_vm1, %v3233_v60  ;;  %4279 = vmatmul.mubr.msk.f32.vlgmr.msra.gmra.mrb[0].mxu1 %vm3239_vm9, %v7676_v2  ;;  %v3204_v22 = vmul.f32 %v4548_v0, %v3188_v52  ;;  %v3151_v25 = vrot.slane %v4516_v6, %v7643_v21  ;;  %4525 = vrcp.f32 %v2965_v46  ;;  %v3051_v11 = vrot.slane %v7679_v42, %v7640_v13  ;;  %v3847_v46 = vld [vmem:[%s8776_s17 + $0x20] sm:$0xff]  ;;  %v3848_v0 = vld [vmem:[%s8776_s17 + $0x28] sm:$0xff] }
 0x315   : > { %v3234_v35 = vcombine.high %v3211_v16, %v3211_v16  ;;  %4281 = vmatpush1.msk.msra.mxu0 %vm435_vm1, %v3210_v24  ;;  %3481 = vmatprep.mubr.f32.mxu0 %v7599_v56  ;;  %v3155_v53 = vrot.slane %v7679_v42, %v7643_v21  ;;  %v2966_v47 = vadd.f32 1.0, %v4522_v18  ;;  %v3101_v40 = vmul.f32 %v4549_v3, %v3085_v54  ;;  %v3845_v42 = vld [vmem:[%s8776_s17 + $0x10] sm:$0xff]  ;;  %v3846_v18 = vld [vmem:[%s8776_s17 + $0x18] sm:$0xff] }
 0x316   : > { %3552 = vmatprep.mubr.f32.mxu1 %v7599_v56  ;;  %v3212_v55 = vadd.f32 %v3204_v22, %v3100_v4  ;;  %v3189_v45 = vcombine.low %v3147_v32, %v3151_v25  ;;  %v3849_v25 = vld [vmem:[%s8776_s17 + $0x30] sm:$0xff] }
 0x317   : > { %4283 = vmatprep.subr.msk.mxu1 %vm435_vm1, %v3234_v35  ;;  %4282 = vmatmul.mubr.msk.f32.vlgmr.msra.gmra.mrb[2].mxu0 %vm3239_vm9, %v7676_v2  ;;  %4527 = vrcp.f32 %v2966_v47 }
 0x318   : > { %4284 = vmatpush1.msk.msra.mxu1 %vm435_vm1, %v3211_v16  ;;  %v3235_v49 = vcombine.high %v3212_v55, %v3212_v55  ;;  %v3205_v27 = vmul.f32 %v4550_v43, %v3189_v45  ;;  %3623 = vmatprep.mubr.f32.mxu0 %v7599_v56  ;;  %v3851_v43 = vld [vmem:[%s8776_s17 + $0x40] sm:$0xff] }
 0x319   : > { %4285 = vmatmul.mubr.msk.f32.vlgmr.msra.gmra.mrb[2].mxu1 %vm3239_vm9, %v7676_v2 }
 0x31a   : > { %4286 = vmatprep.subr.msk.mxu0 %vm435_vm1, %v3235_v49  ;;  %v3213_v61 = vadd.f32 %v3205_v27, %v3101_v40  ;;  %3694 = vmatprep.mubr.f32.mxu1 %v7599_v56 }
 0x31b   : > { %4287 = vmatpush1.msk.msra.mxu0 %vm435_vm1, %v3212_v55  ;;  %v3850_v55 = vld [vmem:[%s8776_s17 + $0x38] sm:$0xff] }
 0x31c   : > { %v3236_v48 = vcombine.high %v3213_v61, %v3213_v61  ;;  %4288 = vmatmul.mubr.msk.f32.vlgmr.msra.gmra.mrb[4].mxu0 %vm3239_vm9, %v7676_v2 }
 0x31d   : > { %v4524_v38 = vpop.eup %4523  ;;  %3765 = vmatprep.mubr.f32.mxu0 %v7599_v56 }
 0x31e   : > { %v4526_v41 = vpop.eup %4525  ;;  %4289 = vmatprep.subr.msk.mxu1 %vm435_vm1, %v3236_v48  ;;  %v2967_v34 = vadd.f32 1.0, %v4524_v38  ;;  %v3852_v38 = vld [vmem:[%s8776_s17 + $0x48] sm:$0xff] }
 0x31f   : > { %4290 = vmatpush1.msk.msra.mxu1 %vm435_vm1, %v3213_v61  ;;  %v3055_v10 = vrot.slane %v4526_v41, %v7640_v13  ;;  %v3159_v37 = vrot.slane %v4526_v41, %v7643_v21 }
 0x320   : > { %4529 = vrcp.f32 %v2967_v34  ;;  %4291 = vmatmul.mubr.msk.f32.vlgmr.msra.gmra.mrb[4].mxu1 %vm3239_vm9, %v7676_v2 }
 0x321   : > { %v4528_v14 = vpop.eup %4527  ;;  %v3086_v44 = vcombine.low %v3051_v11, %v3055_v10  ;;  %v3190_v57 = vcombine.low %v3155_v53, %v3159_v37  ;;  %3836 = vmatprep.mubr.f32.mxu1 %v7599_v56  ;;  %v3853_v37 = vld [vmem:[%s8776_s17 + $0x50] sm:$0xff] }
 0x322   : > { %v3059_v36 = vrot.slane %v4528_v14, %v7640_v13  ;;  %v3163_v39 = vrot.slane %v4528_v14, %v7643_v21 }
 0x323   : > { %v3102_v15 = vmul.f32 %v4551_v20, %v3086_v44  ;;  %v3206_v28 = vmul.f32 %v4552_v58, %v3190_v57 }
 0x325   : > { %v3214_v8 = vadd.f32 %v3206_v28, %v3102_v15  ;;  %v3855_v28 = vld [vmem:[%s8776_s17 + $0x60] sm:$0xff] }
 0x327   : > { %v3237_v7 = vcombine.high %v3214_v8, %v3214_v8 }
 0x329   : > { %4292 = vmatprep.subr.msk.mxu0 %vm435_vm1, %v3237_v7 }
 0x32a   : > { %v4530_v12 = vpop.eup %4529  ;;  %4293 = vmatpush1.msk.msra.mxu0 %vm435_vm1, %v3214_v8 }
 0x32b   : > { %v3063_v9 = vrot.slane %v4530_v12, %v7640_v13  ;;  %v3167_v56 = vrot.slane %v4530_v12, %v7643_v21  ;;  %4294 = vmatmul.mubr.msk.f32.vlgmr.msra.gmra.mrb[6].mxu0 %vm3239_vm9, %v7676_v2  ;;  %v3856_v12 = vld [vmem:[%s8776_s17 + $0x68] sm:$0xff] }
 0x32d   : > { %v3087_v6 = vcombine.low %v3059_v36, %v3063_v9  ;;  %v3191_v50 = vcombine.low %v3163_v39, %v3167_v56  ;;  %v3854_v36 = vld [vmem:[%s8776_s17 + $0x58] sm:$0xff] }
 0x32f   : > { %v3103_v30 = vmul.f32 %v4553_v63, %v3087_v6  ;;  %v3207_v5 = vmul.f32 %v4554_v1, %v3191_v50  ;;  %v3857_v63 = vld [vmem:[%s8776_s17 + $0x70] sm:$0xff] }
 0x331   : > { %v3215_v51 = vadd.f32 %v3207_v5, %v3103_v30  ;;  %v3858_v5 = vld [vmem:[%s8776_s17 + $0x78] sm:$0xff] }
 0x333   : > { %v3238_v24 = vcombine.high %v3215_v51, %v3215_v51 }
 0x335   : > { %4295 = vmatprep.subr.msk.mxu1 %vm435_vm1, %v3238_v24 }
 0x336   : > { %4296 = vmatpush1.msk.msra.mxu1 %vm435_vm1, %v3215_v51 }
 0x337   : > { %4297 = vmatmul.mubr.msk.f32.vlgmr.msra.gmra.mrb[6].mxu1 %vm3239_vm9, %v7676_v2 }
 0x361   : > { %v7744_v13 = vpop.permute.xlu1 %3220 }
 0x3e6   : > { %v3341_v21 = vpop.f32.mrb[0].mxu0 }
 0x3e7   : > { %v3412_v29 = vpop.f32.mrb[0].mxu1  ;;  %v3342_v17 = vadd.f32 %v3341_v21, %v7744_v13  ;;  %v3343_v19 = vpop.f32.mrb[1].mxu0 }
 0x3e8   : > { %v3413_v23 = vadd.f32 %v3412_v29, %v7744_v13  ;;  %v3344_v31 = vadd.f32 %v3343_v19, %v7744_v13  ;;  %v3414_v26 = vpop.f32.mrb[1].mxu1 }
 0x3e9   : > { %v3859_v2 = vmul.f32 %v3843_v33, %v3342_v17  ;;  %v3415_v60 = vadd.f32 %v3414_v26, %v7744_v13 }
 0x3ea   : > { %v3861_v62 = vmul.f32 %v3845_v42, %v3413_v23  ;;  %v3860_v4 = vmul.f32 %v3844_v59, %v3344_v31  ;;  %v3483_v52 = vpop.f32.mrb[2].mxu0 }
 0x3eb   : > { %3875 = vst [vmem:[%s7757_s13] sm:$0xff] %v3859_v2  ;;  %v3862_v16 = vmul.f32 %v3846_v18, %v3415_v60  ;;  %v3484_v54 = vadd.f32 %v3483_v52, %v7744_v13  ;;  %v3485_v32 = vpop.f32.mrb[3].mxu0 }
 0x3ec   : > { %3877 = vst [vmem:[%s7757_s13 + $0x10] sm:$0xff] %v3861_v62  ;;  %3876 = vst [vmem:[%s7757_s13 + $0x8] sm:$0xff] %v3860_v4  ;;  %v3554_v22 = vpop.f32.mrb[2].mxu1  ;;  %v3486_v11 = vadd.f32 %v3485_v32, %v7744_v13 }
 0x3ed   : > { %3878 = vst [vmem:[%s7757_s13 + $0x18] sm:$0xff] %v3862_v16  ;;  %v3863_v35 = vmul.f32 %v3847_v46, %v3484_v54  ;;  %v3555_v53 = vadd.f32 %v3554_v22, %v7744_v13  ;;  %v3556_v47 = vpop.f32.mrb[3].mxu1 }
 0x3ee   : > { %v3864_v3 = vmul.f32 %v3848_v0, %v3486_v11  ;;  %v3557_v40 = vadd.f32 %v3556_v47, %v7744_v13 }
 0x3ef   : > { %3879 = vst [vmem:[%s7757_s13 + $0x20] sm:$0xff] %v3863_v35  ;;  %v3865_v45 = vmul.f32 %v3849_v25, %v3555_v53  ;;  %v3625_v49 = vpop.f32.mrb[4].mxu0 }
 0x3f0   : > { %3880 = vst [vmem:[%s7757_s13 + $0x28] sm:$0xff] %v3864_v3  ;;  %v3866_v27 = vmul.f32 %v3850_v55, %v3557_v40  ;;  %v3626_v61 = vadd.f32 %v3625_v49, %v7744_v13  ;;  %v3627_v48 = vpop.f32.mrb[5].mxu0 }
 0x3f1   : > { %3881 = vst [vmem:[%s7757_s13 + $0x30] sm:$0xff] %v3865_v45  ;;  %v3628_v41 = vadd.f32 %v3627_v48, %v7744_v13 }
 0x3f2   : > { %3882 = vst [vmem:[%s7757_s13 + $0x38] sm:$0xff] %v3866_v27  ;;  %v3867_v34 = vmul.f32 %v3851_v43, %v3626_v61 }
 0x3f3   : > { %v3696_v10 = vpop.f32.mrb[4].mxu1  ;;  %v3868_v14 = vmul.f32 %v3852_v38, %v3628_v41 }
 0x3f4   : > { %3883 = vst [vmem:[%s7757_s13 + $0x40] sm:$0xff] %v3867_v34  ;;  %v3697_v44 = vadd.f32 %v3696_v10, %v7744_v13  ;;  %v3698_v57 = vpop.f32.mrb[5].mxu1 }
 0x3f5   : > { %3884 = vst [vmem:[%s7757_s13 + $0x48] sm:$0xff] %v3868_v14  ;;  %v3699_v39 = vadd.f32 %v3698_v57, %v7744_v13 }
 0x3f6   : > { %v3869_v20 = vmul.f32 %v3853_v37, %v3697_v44 }
 0x3f7   : > { %v3870_v15 = vmul.f32 %v3854_v36, %v3699_v39 }
 0x3f8   : > { %3885 = vst [vmem:[%s7757_s13 + $0x50] sm:$0xff] %v3869_v20 }
 0x3f9   : > { %3886 = vst [vmem:[%s7757_s13 + $0x58] sm:$0xff] %v3870_v15 }
 0x3fe   : > { %v3767_v58 = vpop.f32.mrb[6].mxu0 }
 0x3ff   : > { %v3768_v8 = vadd.f32 %v3767_v58, %v7744_v13  ;;  %v3769_v7 = vpop.f32.mrb[7].mxu0 }
 0x400   : > { %v3770_v9 = vadd.f32 %v3769_v7, %v7744_v13 }
 0x401   : > { %v3871_v56 = vmul.f32 %v3855_v28, %v3768_v8 }
 0x402   : > { %v3872_v6 = vmul.f32 %v3856_v12, %v3770_v9 }
 0x403   : > { %3887 = vst [vmem:[%s7757_s13 + $0x60] sm:$0xff] %v3871_v56 }
 0x404   : > { %3888 = vst [vmem:[%s7757_s13 + $0x68] sm:$0xff] %v3872_v6 }
 0x40a   : > { %v3838_v50 = vpop.f32.mrb[6].mxu1 }
 0x40b   : > { %v3839_v30 = vadd.f32 %v3838_v50, %v7744_v13  ;;  %v3840_v1 = vpop.f32.mrb[7].mxu1 }
 0x40c   : > { %v3841_v51 = vadd.f32 %v3840_v1, %v7744_v13 }
 0x40d   : > { %v3873_v24 = vmul.f32 %v3857_v63, %v3839_v30 }
 0x40e   : > { %v3874_v21 = vmul.f32 %v3858_v5, %v3841_v51 }
 0x40f   : > { %3889 = vst [vmem:[%s7757_s13 + $0x70] sm:$0xff] %v3873_v24 }
 0x410   : > { %3890 = vst [vmem:[%s7757_s13 + $0x78] sm:$0xff] %v3874_v21 }
 0x411   : > { %4688 = shalt.err (!%p4685_p9)
}
 0x412   : > { %s4689_s5 = scalar_lea.hbm %s7801_s4, 2048  ;;  %s4693_s26 = scalar_lea.hbm %s8781_s3, 4096 }
 0x413   : > { %p4690_p13 = scmp.ne.s32.totalorder %s7801_s4, %s4689_s5  ;;  %p4694_p12 = scmp.lt.u32.totalorder %s7801_s4, %s8781_s3 }
 0x414   : > { %p4695_p7 = scmp.lt.u32.totalorder %s4693_s26, %s4689_s5  ;;  %p4697_p2 = scmp.lt.u32.totalorder %s4689_s5, %s7801_s4 }
 0x415   : > { %p4691_p1 = pnand %p4690_p13, %p8782_p3 }
 0x416   : > { %p4696_p10 = por %p4695_p7, %p4694_p12 }
 0x417   : > { %p4692_p0 = pneg %p4691_p1 }
 0x418   : > { %p4698_p5 = por %p4697_p2, %p4696_p10 }
 0x41a   : > { %p4699_p6 = pnand %p4698_p5, %p4692_p0 }
 0x41c   : > { %4702 = shalt.err (!%p4699_p6)
}
 0x41d   : > { %4321 = dma.vmem_to_hbm [thread:$0]  (%p8782_p3), %s7803_s8, 2048, %s7801_s4, %s3892_s30  }
 0x41e PF: > { %s8783_s22 = sld [smem:[#allocation20_spill]]  ;;  %s8784_s10 = sld [smem:[#allocation28_spill]] }
 0x41f   : > { %s8785_s23 = sld [smem:[#allocation23_spill]] }
 0x424   : > { %s3918_s29 = sand.u32 1, %s8783_s22   ;;  %p8786_p8 = scmp.ne.s32.totalorder %s8784_s10, 0 }
 0x425   : > { %p8787_p11 = scmp.ge.s32.totalorder %s8785_s23, 2  ;;  %s3919_s7 = scalar_lea.sflag [#allocation6], %s3918_s29 }
 0x427   : > { %p4341_p4 = pnand %p8787_p11, %p8786_p8 }
 0x429   : > { %4736 = dma.done.wait (!%p4341_p4), %s3919_s7, 2048  }
 0x42a   : > { %4738 = vsyncadd (!%p4341_p4), %s3919_s7, 4294965248  ;;  %s8788_s27 = sld [smem:[#allocation24_spill]]  ;;  %s8789_s24 = sld [smem:[#allocation21_spill]] }
 0x42b   : > { %s8790_s25 = sld [smem:[#allocation22_spill]]  ;;  %s8791_s26 = sld [smem:[#allocation25_spill]] }
 0x430   : > { %p25_p9 = scmp.ge.s32.totalorder %s8788_s27, 4  }
 0x432   :  { %27 = sbr.rel (!%p25_p9) target bundleno = 18 (0x12), region = 128 }
 0x439   :  { %3924 = vsyncpa [#allocation5], 1 }
 0x43a   :  { %3926 = vsyncpa [#allocation5 + $0x1], 1 }
 0x43b   :  { %3927 = vsyncpa [#allocation12], 1 }
 0x43c   :  { %3929 = vsyncpa [#allocation12 + $0x1], 1 }
 0x43d   :  { %3930 = vsyncpa [#allocation6], 1 }
 0x43e   :  { %3932 = vsyncpa [#allocation6 + $0x1], 1 }
 0x43f   :  { %3933 = vsyncpa [#allocation7], 1 }
 0x440   :  { %3935 = vsyncpa [#allocation7 + $0x1], 1 }
 0x441   :  { %3936 = vsyncpa [#allocation9], 1 }

</bundles_post_ra>
